<compile_context>
chip_gen: v6e
topology: v6e:2x2x1
jax: 0.10.0
libtpu: 0.0.40
codegen_flags: <defaults>
</compile_context>

<pallas_src>
import functools

import jax
import jax.numpy as jnp
from jax import lax
from jax.experimental import pallas as pl
from jax.experimental.pallas import tpu as pltpu


def _tile(n, multiple, cap=1024):
    """Largest divisor of n that is a multiple of `multiple` and <= cap, else n."""
    for t in range(min(n, cap), 0, -1):
        if n % t == 0 and t % multiple == 0:
            return t
    return n


# ----------------- fused 3x3 conv + bias + ReLU + 2x2 max-pool ----------------

def _conv3x3_relu_pool_kernel(x_ref, w_ref, b_ref, o_ref, *, cout, h_out, pieces):
    """One (image, row-block) of fused conv(pad=1) + bias + ReLU + 2x2 max-pool.

    x_ref: (rows, W//2, Kp)   width-im2col'd input; adjacent output columns merged
                              into the lane dim (Kp = 6*Cin, or 18*Cin if the row
                              taps were pre-folded in the wrapper).
    w_ref: (pieces, Kp, 2*Cout)  block_diag(w_tap, w_tap) per row tap.
    b_ref: (1, 2*Cout)
    o_ref: (h_out, W//2, Cout)   pooled output rows for this block.
    """
    bias = b_ref[...]

    def body(h2, carry):
        del carry
        rows = []
        for r in range(2):                       # the two conv rows of this pool window
            h = 2 * h2 + r
            acc = jnp.dot(x_ref[h], w_ref[0], preferred_element_type=jnp.float32)
            for p in range(1, pieces):           # remaining row taps (K accumulation)
                acc = acc + jnp.dot(x_ref[h + p], w_ref[p],
                                    preferred_element_type=jnp.float32)
            rows.append(jnp.maximum(acc + bias, 0.0))          # bias + ReLU
        rowmax = jnp.maximum(rows[0], rows[1])                 # pool over the 2 rows
        pooled = jnp.maximum(rowmax[:, :cout], rowmax[:, cout:])  # pool over col pair
        o_ref[h2] = pooled.astype(o_ref.dtype)
        return 0

    lax.fori_loop(0, h_out, body, 0)


def conv3x3_relu_pool(x, w, b, *, fold_row_taps=False, row_blocks=1):
    """x: (B, H, W, Cin) NHWC; w: (3, 3, Cin, Cout); b: (Cout,).

    Returns maxpool2x2(relu(conv3x3(x, pad=1) + b)) as (B, H//2, W//2, Cout)."""
    B, H, W, Cin = x.shape
    Cout = w.shape[-1]
    assert H % 2 == 0 and W % 2 == 0 and (H // 2) % row_blocks == 0

    xp = jnp.pad(x, ((0, 0), (1, 1), (1, 1), (0, 0)))
    # Width-direction im2col (3x the activation, built once by XLA), then merge each
    # adjacent output-column pair into the lane dim: (B, H+2, W//2, 6*Cin).
    xw = jnp.concatenate([xp[:, :, kw:kw + W, :] for kw in range(3)], axis=-1)
    xv = xw.reshape(B, H + 2, W // 2, 6 * Cin)

    # Per row tap: block_diag(w_tap, w_tap) so one dot yields the even and odd output
    # columns side by side in lanes -> the 2x2 pool is a row max + lane-half max.
    wk = w.reshape(3, 3 * Cin, Cout)
    z = jnp.zeros_like(wk)
    w2 = jnp.concatenate([jnp.concatenate([wk, z], axis=-1),
                          jnp.concatenate([z, wk], axis=-1)], axis=1)  # (3,6Cin,2Cout)
    b2 = jnp.concatenate([b, b]).reshape(1, 2 * Cout)

    if fold_row_taps:
        # Also fold the 3 row taps into K in the wrapper (used for conv1, Cin=3:
        # one dot with K=54 instead of 3 dots with K=18 -> much better MXU packing).
        xv = jnp.concatenate([xv[:, kh:kh + H] for kh in range(3)], axis=-1)
        w2 = w2.reshape(1, 18 * Cin, 2 * Cout)
        pieces = 1
        x_rows = H // row_blocks
    else:
        assert row_blocks == 1  # row taps need a halo -> process whole images
        pieces = 3
        x_rows = H + 2

    h_out = (H // 2) // row_blocks
    kernel = functools.partial(_conv3x3_relu_pool_kernel,
                               cout=Cout, h_out=h_out, pieces=pieces)
    return pl.pallas_call(
        kernel,
        out_shape=jax.ShapeDtypeStruct((B, H // 2, W // 2, Cout), jnp.float32),
        grid_spec=pltpu.PrefetchScalarGridSpec(
            num_scalar_prefetch=0,
            grid=(B, row_blocks),
            in_specs=[
                pl.BlockSpec((None, x_rows, W // 2, xv.shape[-1]),
                             lambda bb, ii: (bb, ii, 0, 0)),
                pl.BlockSpec((pieces, w2.shape[1], 2 * Cout),
                             lambda bb, ii: (0, 0, 0)),
                pl.BlockSpec((1, 2 * Cout), lambda bb, ii: (0, 0)),
            ],
            out_specs=pl.BlockSpec((None, h_out, W // 2, Cout),
                                   lambda bb, ii: (bb, ii, 0, 0)),
        ),
        compiler_params=pltpu.CompilerParams(
            dimension_semantics=("parallel", "parallel")),
    )(xv, w2, b2)


# ------------------- fused matmul + bias + activation kernels -----------------

def _epilogue(r, activation):
    if activation == "relu":
        return jnp.maximum(r, 0.0)
    if activation == "sigmoid":
        return 1.0 / (1.0 + jnp.exp(-r))
    return r


def _mm_kernel_acc(x_ref, w_ref, b_ref, o_ref, acc_ref, *, activation):
    k = pl.program_id(2)

    @pl.when(k == 0)
    def _():
        acc_ref[...] = jnp.zeros_like(acc_ref)

    acc_ref[...] += jnp.dot(x_ref[...], w_ref[...],
                            preferred_element_type=jnp.float32)

    @pl.when(k == pl.num_programs(2) - 1)
    def _():
        o_ref[...] = _epilogue(acc_ref[...] + b_ref[...],
                               activation).astype(o_ref.dtype)


def _mm_kernel_single(x_ref, w_ref, b_ref, o_ref, *, activation):
    r = jnp.dot(x_ref[...], w_ref[...], preferred_element_type=jnp.float32)
    o_ref[...] = _epilogue(r + b_ref[...], activation).astype(o_ref.dtype)


def matmul_bias_act(x, w, b, activation="none", *, tn_cap=512, tk_cap=4608):
    M, K = x.shape
    K2, N = w.shape
    assert K == K2
    tm = _tile(M, 8)
    tn = _tile(N, 128, cap=tn_cap)
    tk = _tile(K, 128, cap=tk_cap)
    grid = (M // tm, N // tn, K // tk)
    single = grid[2] == 1
    kernel = functools.partial(
        _mm_kernel_single if single else _mm_kernel_acc, activation=activation)
    scratch = [] if single else [pltpu.VMEM((tm, tn), jnp.float32)]
    return pl.pallas_call(
        kernel,
        out_shape=jax.ShapeDtypeStruct((M, N), jnp.float32),
        grid_spec=pltpu.PrefetchScalarGridSpec(
            num_scalar_prefetch=0,
            grid=grid,
            in_specs=[
                pl.BlockSpec((tm, tk), lambda i, j, k: (i, k)),
                pl.BlockSpec((tk, tn), lambda i, j, k: (k, j)),
                pl.BlockSpec((1, tn), lambda i, j, k: (0, j)),
            ],
            out_specs=pl.BlockSpec((tm, tn), lambda i, j, k: (i, j)),
            scratch_shapes=scratch,
        ),
        compiler_params=pltpu.CompilerParams(
            dimension_semantics=("parallel", "parallel", "arbitrary")),
    )(x, w, b.reshape(1, N))


# ----------------------------------- model ------------------------------------

def init_params(key):
    ks = jax.random.split(key, 10)

    def conv_w(k, cin, cout):
        fan_in = 9 * cin
        return (jax.random.normal(k, (3, 3, cin, cout), jnp.float32)
                / jnp.sqrt(fan_in))

    def lin_w(k, din, dout):
        return jax.random.normal(k, (din, dout), jnp.float32) / jnp.sqrt(din)

    return {
        "w1": conv_w(ks[0], 3, 32),
        "b1": 0.01 * jax.random.normal(ks[1], (32,), jnp.float32),
        "w2": conv_w(ks[2], 32, 64),
        "b2": 0.01 * jax.random.normal(ks[3], (64,), jnp.float32),
        "w3": conv_w(ks[4], 64, 128),
        "b3": 0.01 * jax.random.normal(ks[5], (128,), jnp.float32),
        "wf1": lin_w(ks[6], 128 * 18 * 18, 512),
        "bf1": 0.01 * jax.random.normal(ks[7], (512,), jnp.float32),
        "wf2": lin_w(ks[8], 512, 1),
        "bf2": 0.01 * jax.random.normal(ks[9], (1,), jnp.float32),
    }


@jax.jit
def forward(params, x_nchw):
    B = x_nchw.shape[0]
    x = jnp.transpose(x_nchw, (0, 2, 3, 1))                          # NCHW -> NHWC
    x = conv3x3_relu_pool(x, params["w1"], params["b1"],
                          fold_row_taps=True, row_blocks=4)          # (B, 72, 72, 32)
    x = conv3x3_relu_pool(x, params["w2"], params["b2"])             # (B, 36, 36, 64)
    x = conv3x3_relu_pool(x, params["w3"], params["b3"])             # (B, 18, 18, 128)
    # Match torch's x.view(-1, 128*18*18) flattening order (C, H, W).
    x = jnp.transpose(x, (0, 3, 1, 2)).reshape(B, 128 * 18 * 18)
    x = matmul_bias_act(x, params["wf1"], params["bf1"], "relu",
                        tn_cap=256, tk_cap=4608)                     # (B, 512)
    x = matmul_bias_act(x, params["wf2"], params["bf2"], "sigmoid")  # (B, 1)
    return x


if __name__ == "__main__":
    key = jax.random.PRNGKey(0)
    pkey, xkey = jax.random.split(key)
    params = init_params(pkey)
    # Input spatial size 144 is implied by the module (fc1 expects 128*18*18,
    # and 144 / 2 / 2 / 2 = 18 after the three 2x2 pools).
    x = jax.random.normal(xkey, (2, 3, 144, 144), jnp.float32)
    y = forward(params, x)
    jax.block_until_ready(y)
    assert y.shape == (2, 1)
    assert bool(jnp.all(jnp.isfinite(y)))
    print("KERNEL_OK")
</pallas_src>

<mosaic_0001>
module attributes {stable_mosaic.version = 11 : i64} {
  func.func @_conv3x3_relu_pool_kernel(%arg0: i32, %arg1: i32, %arg2: memref<1x36x72x54xf32, #tpu.memory_space<vmem>>, %arg3: memref<1x54x64xf32, #tpu.memory_space<vmem>>, %arg4: memref<1x64xf32, #tpu.memory_space<vmem>>, %arg5: memref<1x18x72x32xf32, #tpu.memory_space<vmem>>) attributes {dimension_semantics = [#tpu.dimension_semantics<parallel>, #tpu.dimension_semantics<parallel>], iteration_bounds = array<i64: 2, 4>, scalar_prefetch = 0 : i64, scratch_operands = 0 : i64, tpu.core_type = #tpu.core_type<tc>, window_params = [{transform_indices = @transform_0, window_bounds = array<i64: 1, 36, 72, 54>}, {pipeline_mode = #tpu.pipeline_mode<synchronous>, transform_indices = @transform_1, window_bounds = array<i64: 1, 54, 64>}, {pipeline_mode = #tpu.pipeline_mode<synchronous>, transform_indices = @transform_2, window_bounds = array<i64: 1, 64>}, {transform_indices = @transform_3, window_bounds = array<i64: 1, 18, 72, 32>}]} {
    %c0 = arith.constant 0 : index
    %c0_0 = arith.constant 0 : index
    %0 = vector.load %arg4[%c0, %c0_0] : memref<1x64xf32, #tpu.memory_space<vmem>>, vector<1x64xf32>
    %c0_i32 = arith.constant 0 : i32
    %c18_i32 = arith.constant 18 : i32
    %1 = arith.addi %c0_i32, %c18_i32 : i32
    %c1_i32 = arith.constant 1 : i32
    scf.for %arg6 = %c0_i32 to %1 step %c1_i32  : i32 {
      %c2_i32 = arith.constant 2 : i32
      %2 = arith.muli %c2_i32, %arg6 : i32
      %c0_i32_2 = arith.constant 0 : i32
      %3 = arith.addi %2, %c0_i32_2 : i32
      %c0_3 = arith.constant 0 : index
      %4 = arith.index_cast %3 : i32 to index
      %c0_4 = arith.constant 0 : index
      %c0_5 = arith.constant 0 : index
      %5 = vector.load %arg2[%c0_3, %4, %c0_4, %c0_5] : memref<1x36x72x54xf32, #tpu.memory_space<vmem>>, vector<1x1x72x54xf32>
      %6 = vector.shape_cast %5 : vector<1x1x72x54xf32> to vector<72x54xf32>
      %c0_6 = arith.constant 0 : index
      %c0_7 = arith.constant 0 : index
      %c0_8 = arith.constant 0 : index
      %7 = vector.load %arg3[%c0_6, %c0_7, %c0_8] : memref<1x54x64xf32, #tpu.memory_space<vmem>>, vector<1x54x64xf32>
      %8 = vector.shape_cast %7 : vector<1x54x64xf32> to vector<54x64xf32>
      %cst = arith.constant dense<0.000000e+00> : vector<72x64xf32>
      %9 = tpu.matmul %6, %8, %cst {dimension_numbers = #tpu.dot_dimension_numbers<[1], [0], [0], [1], [0, 0, 1, 1], [], []>} : vector<72x54xf32>, vector<54x64xf32>, vector<72x64xf32> -> vector<72x64xf32>
      %10 = vector.broadcast %0 : vector<1x64xf32> to vector<72x64xf32>
      %11 = arith.addf %9, %10 : vector<72x64xf32>
      %cst_9 = arith.constant 0.000000e+00 : f32
      %12 = vector.broadcast %cst_9 : f32 to vector<72x64xf32>
      %13 = arith.maximumf %11, %12 : vector<72x64xf32>
      %c2_i32_10 = arith.constant 2 : i32
      %14 = arith.muli %c2_i32_10, %arg6 : i32
      %c1_i32_11 = arith.constant 1 : i32
      %15 = arith.addi %14, %c1_i32_11 : i32
      %c0_12 = arith.constant 0 : index
      %16 = arith.index_cast %15 : i32 to index
      %c0_13 = arith.constant 0 : index
      %c0_14 = arith.constant 0 : index
      %17 = vector.load %arg2[%c0_12, %16, %c0_13, %c0_14] : memref<1x36x72x54xf32, #tpu.memory_space<vmem>>, vector<1x1x72x54xf32>
      %18 = vector.shape_cast %17 : vector<1x1x72x54xf32> to vector<72x54xf32>
      %c0_15 = arith.constant 0 : index
      %c0_16 = arith.constant 0 : index
      %c0_17 = arith.constant 0 : index
      %19 = vector.load %arg3[%c0_15, %c0_16, %c0_17] : memref<1x54x64xf32, #tpu.memory_space<vmem>>, vector<1x54x64xf32>
      %20 = vector.shape_cast %19 : vector<1x54x64xf32> to vector<54x64xf32>
      %cst_18 = arith.constant dense<0.000000e+00> : vector<72x64xf32>
      %21 = tpu.matmul %18, %20, %cst_18 {dimension_numbers = #tpu.dot_dimension_numbers<[1], [0], [0], [1], [0, 0, 1, 1], [], []>} : vector<72x54xf32>, vector<54x64xf32>, vector<72x64xf32> -> vector<72x64xf32>
      %22 = vector.broadcast %0 : vector<1x64xf32> to vector<72x64xf32>
      %23 = arith.addf %21, %22 : vector<72x64xf32>
      %cst_19 = arith.constant 0.000000e+00 : f32
      %24 = vector.broadcast %cst_19 : f32 to vector<72x64xf32>
      %25 = arith.maximumf %23, %24 : vector<72x64xf32>
      %26 = arith.maximumf %13, %25 : vector<72x64xf32>
      %27 = vector.extract_strided_slice %26 {offsets = [0, 0], sizes = [72, 32], strides = [1, 1]} : vector<72x64xf32> to vector<72x32xf32>
      %28 = vector.extract_strided_slice %26 {offsets = [0, 32], sizes = [72, 32], strides = [1, 1]} : vector<72x64xf32> to vector<72x32xf32>
      %29 = arith.maximumf %27, %28 : vector<72x32xf32>
      %c0_20 = arith.constant 0 : index
      %30 = arith.index_cast %arg6 : i32 to index
      %c0_21 = arith.constant 0 : index
      %c0_22 = arith.constant 0 : index
      %31 = vector.load %arg5[%c0_20, %30, %c0_21, %c0_22] : memref<1x18x72x32xf32, #tpu.memory_space<vmem>>, vector<1x1x72x32xf32>
      %32 = vector.shape_cast %31 : vector<1x1x72x32xf32> to vector<72x32xf32>
      %33 = vector.shape_cast %29 : vector<72x32xf32> to vector<1x1x72x32xf32>
      tpu.vector_store %arg5[%c0_20, %30, %c0_21, %c0_22], %33 {strides = array<i32>} : memref<1x18x72x32xf32, #tpu.memory_space<vmem>>, vector<1x1x72x32xf32>,
    }
    %c18_i32_1 = arith.constant 18 : i32
    return
  }
  func.func @transform_0(%arg0: i32, %arg1: i32) -> (i32, i32, i32, i32) {
    %c0_i32 = arith.constant 0 : i32
    %c0_i32_0 = arith.constant 0 : i32
    %c0_i32_1 = arith.constant 0 : i32
    return %arg0, %arg1, %c0_i32, %c0_i32_0 : i32, i32, i32, i32
  }
  func.func @transform_1(%arg0: i32, %arg1: i32) -> (i32, i32, i32) {
    %c0_i32 = arith.constant 0 : i32
    %c0_i32_0 = arith.constant 0 : i32
    %c0_i32_1 = arith.constant 0 : i32
    %c0_i32_2 = arith.constant 0 : i32
    return %c0_i32, %c0_i32_0, %c0_i32_1 : i32, i32, i32
  }
  func.func @transform_2(%arg0: i32, %arg1: i32) -> (i32, i32) {
    %c0_i32 = arith.constant 0 : i32
    %c0_i32_0 = arith.constant 0 : i32
    %c0_i32_1 = arith.constant 0 : i32
    return %c0_i32, %c0_i32_0 : i32, i32
  }
  func.func @transform_3(%arg0: i32, %arg1: i32) -> (i32, i32, i32, i32) {
    %c0_i32 = arith.constant 0 : i32
    %c0_i32_0 = arith.constant 0 : i32
    %c0_i32_1 = arith.constant 0 : i32
    return %arg0, %arg1, %c0_i32, %c0_i32_0 : i32, i32, i32, i32
  }
}

module attributes {stable_mosaic.version = 11 : i64} {
  func.func @_conv3x3_relu_pool_kernel(%arg0: i32, %arg1: i32, %arg2: memref<1x74x36x192xf32, #tpu.memory_space<vmem>>, %arg3: memref<3x192x128xf32, #tpu.memory_space<vmem>>, %arg4: memref<1x128xf32, #tpu.memory_space<vmem>>, %arg5: memref<1x36x36x64xf32, #tpu.memory_space<vmem>>) attributes {dimension_semantics = [#tpu.dimension_semantics<parallel>, #tpu.dimension_semantics<parallel>], iteration_bounds = array<i64: 2, 1>, scalar_prefetch = 0 : i64, scratch_operands = 0 : i64, tpu.core_type = #tpu.core_type<tc>, window_params = [{transform_indices = @transform_0, window_bounds = array<i64: 1, 74, 36, 192>}, {pipeline_mode = #tpu.pipeline_mode<synchronous>, transform_indices = @transform_1, window_bounds = array<i64: 3, 192, 128>}, {pipeline_mode = #tpu.pipeline_mode<synchronous>, transform_indices = @transform_2, window_bounds = array<i64: 1, 128>}, {transform_indices = @transform_3, window_bounds = array<i64: 1, 36, 36, 64>}]} {
    %c0 = arith.constant 0 : index
    %c0_0 = arith.constant 0 : index
    %0 = vector.load %arg4[%c0, %c0_0] : memref<1x128xf32, #tpu.memory_space<vmem>>, vector<1x128xf32>
    %c0_i32 = arith.constant 0 : i32
    %c36_i32 = arith.constant 36 : i32
    %1 = arith.addi %c0_i32, %c36_i32 : i32
    %c1_i32 = arith.constant 1 : i32
    scf.for %arg6 = %c0_i32 to %1 step %c1_i32  : i32 {
      %c2_i32 = arith.constant 2 : i32
      %2 = arith.muli %c2_i32, %arg6 : i32
      %c0_i32_2 = arith.constant 0 : i32
      %3 = arith.addi %2, %c0_i32_2 : i32
      %c0_3 = arith.constant 0 : index
      %4 = arith.index_cast %3 : i32 to index
      %c0_4 = arith.constant 0 : index
      %c0_5 = arith.constant 0 : index
      %5 = vector.load %arg2[%c0_3, %4, %c0_4, %c0_5] : memref<1x74x36x192xf32, #tpu.memory_space<vmem>>, vector<1x1x36x192xf32>
      %6 = vector.shape_cast %5 : vector<1x1x36x192xf32> to vector<36x192xf32>
      %c0_6 = arith.constant 0 : index
      %c0_7 = arith.constant 0 : index
      %c0_8 = arith.constant 0 : index
      %7 = vector.load %arg3[%c0_6, %c0_7, %c0_8] : memref<3x192x128xf32, #tpu.memory_space<vmem>>, vector<1x192x128xf32>
      %8 = vector.shape_cast %7 : vector<1x192x128xf32> to vector<192x128xf32>
      %cst = arith.constant dense<0.000000e+00> : vector<36x128xf32>
      %9 = tpu.matmul %6, %8, %cst {dimension_numbers = #tpu.dot_dimension_numbers<[1], [0], [0], [1], [0, 0, 1, 1], [], []>} : vector<36x192xf32>, vector<192x128xf32>, vector<36x128xf32> -> vector<36x128xf32>
      %c1_i32_9 = arith.constant 1 : i32
      %10 = arith.addi %3, %c1_i32_9 : i32
      %c0_10 = arith.constant 0 : index
      %11 = arith.index_cast %10 : i32 to index
      %c0_11 = arith.constant 0 : index
      %c0_12 = arith.constant 0 : index
      %12 = vector.load %arg2[%c0_10, %11, %c0_11, %c0_12] : memref<1x74x36x192xf32, #tpu.memory_space<vmem>>, vector<1x1x36x192xf32>
      %13 = vector.shape_cast %12 : vector<1x1x36x192xf32> to vector<36x192xf32>
      %c1 = arith.constant 1 : index
      %c0_13 = arith.constant 0 : index
      %c0_14 = arith.constant 0 : index
      %14 = vector.load %arg3[%c1, %c0_13, %c0_14] : memref<3x192x128xf32, #tpu.memory_space<vmem>>, vector<1x192x128xf32>
      %15 = vector.shape_cast %14 : vector<1x192x128xf32> to vector<192x128xf32>
      %cst_15 = arith.constant dense<0.000000e+00> : vector<36x128xf32>
      %16 = tpu.matmul %13, %15, %cst_15 {dimension_numbers = #tpu.dot_dimension_numbers<[1], [0], [0], [1], [0, 0, 1, 1], [], []>} : vector<36x192xf32>, vector<192x128xf32>, vector<36x128xf32> -> vector<36x128xf32>
      %17 = arith.addf %9, %16 : vector<36x128xf32>
      %c2_i32_16 = arith.constant 2 : i32
      %18 = arith.addi %3, %c2_i32_16 : i32
      %c0_17 = arith.constant 0 : index
      %19 = arith.index_cast %18 : i32 to index
      %c0_18 = arith.constant 0 : index
      %c0_19 = arith.constant 0 : index
      %20 = vector.load %arg2[%c0_17, %19, %c0_18, %c0_19] : memref<1x74x36x192xf32, #tpu.memory_space<vmem>>, vector<1x1x36x192xf32>
      %21 = vector.shape_cast %20 : vector<1x1x36x192xf32> to vector<36x192xf32>
      %c2 = arith.constant 2 : index
      %c0_20 = arith.constant 0 : index
      %c0_21 = arith.constant 0 : index
      %22 = vector.load %arg3[%c2, %c0_20, %c0_21] : memref<3x192x128xf32, #tpu.memory_space<vmem>>, vector<1x192x128xf32>
      %23 = vector.shape_cast %22 : vector<1x192x128xf32> to vector<192x128xf32>
      %cst_22 = arith.constant dense<0.000000e+00> : vector<36x128xf32>
      %24 = tpu.matmul %21, %23, %cst_22 {dimension_numbers = #tpu.dot_dimension_numbers<[1], [0], [0], [1], [0, 0, 1, 1], [], []>} : vector<36x192xf32>, vector<192x128xf32>, vector<36x128xf32> -> vector<36x128xf32>
      %25 = arith.addf %17, %24 : vector<36x128xf32>
      %26 = vector.broadcast %0 : vector<1x128xf32> to vector<36x128xf32>
      %27 = arith.addf %25, %26 : vector<36x128xf32>
      %cst_23 = arith.constant 0.000000e+00 : f32
      %28 = vector.broadcast %cst_23 : f32 to vector<36x128xf32>
      %29 = arith.maximumf %27, %28 : vector<36x128xf32>
      %c2_i32_24 = arith.constant 2 : i32
      %30 = arith.muli %c2_i32_24, %arg6 : i32
      %c1_i32_25 = arith.constant 1 : i32
      %31 = arith.addi %30, %c1_i32_25 : i32
      %c0_26 = arith.constant 0 : index
      %32 = arith.index_cast %31 : i32 to index
      %c0_27 = arith.constant 0 : index
      %c0_28 = arith.constant 0 : index
      %33 = vector.load %arg2[%c0_26, %32, %c0_27, %c0_28] : memref<1x74x36x192xf32, #tpu.memory_space<vmem>>, vector<1x1x36x192xf32>
      %34 = vector.shape_cast %33 : vector<1x1x36x192xf32> to vector<36x192xf32>
      %c0_29 = arith.constant 0 : index
      %c0_30 = arith.constant 0 : index
      %c0_31 = arith.constant 0 : index
      %35 = vector.load %arg3[%c0_29, %c0_30, %c0_31] : memref<3x192x128xf32, #tpu.memory_space<vmem>>, vector<1x192x128xf32>
      %36 = vector.shape_cast %35 : vector<1x192x128xf32> to vector<192x128xf32>
      %cst_32 = arith.constant dense<0.000000e+00> : vector<36x128xf32>
      %37 = tpu.matmul %34, %36, %cst_32 {dimension_numbers = #tpu.dot_dimension_numbers<[1], [0], [0], [1], [0, 0, 1, 1], [], []>} : vector<36x192xf32>, vector<192x128xf32>, vector<36x128xf32> -> vector<36x128xf32>
      %c1_i32_33 = arith.constant 1 : i32
      %38 = arith.addi %31, %c1_i32_33 : i32
      %c0_34 = arith.constant 0 : index
      %39 = arith.index_cast %38 : i32 to index
      %c0_35 = arith.constant 0 : index
      %c0_36 = arith.constant 0 : index
      %40 = vector.load %arg2[%c0_34, %39, %c0_35, %c0_36] : memref<1x74x36x192xf32, #tpu.memory_space<vmem>>, vector<1x1x36x192xf32>
      %41 = vector.shape_cast %40 : vector<1x1x36x192xf32> to vector<36x192xf32>
      %c1_37 = arith.constant 1 : index
      %c0_38 = arith.constant 0 : index
      %c0_39 = arith.constant 0 : index
      %42 = vector.load %arg3[%c1_37, %c0_38, %c0_39] : memref<3x192x128xf32, #tpu.memory_space<vmem>>, vector<1x192x128xf32>
      %43 = vector.shape_cast %42 : vector<1x192x128xf32> to vector<192x128xf32>
      %cst_40 = arith.constant dense<0.000000e+00> : vector<36x128xf32>
      %44 = tpu.matmul %41, %43, %cst_40 {dimension_numbers = #tpu.dot_dimension_numbers<[1], [0], [0], [1], [0, 0, 1, 1], [], []>} : vector<36x192xf32>, vector<192x128xf32>, vector<36x128xf32> -> vector<36x128xf32>
      %45 = arith.addf %37, %44 : vector<36x128xf32>
      %c2_i32_41 = arith.constant 2 : i32
      %46 = arith.addi %31, %c2_i32_41 : i32
      %c0_42 = arith.constant 0 : index
      %47 = arith.index_cast %46 : i32 to index
      %c0_43 = arith.constant 0 : index
      %c0_44 = arith.constant 0 : index
      %48 = vector.load %arg2[%c0_42, %47, %c0_43, %c0_44] : memref<1x74x36x192xf32, #tpu.memory_space<vmem>>, vector<1x1x36x192xf32>
      %49 = vector.shape_cast %48 : vector<1x1x36x192xf32> to vector<36x192xf32>
      %c2_45 = arith.constant 2 : index
      %c0_46 = arith.constant 0 : index
      %c0_47 = arith.constant 0 : index
      %50 = vector.load %arg3[%c2_45, %c0_46, %c0_47] : memref<3x192x128xf32, #tpu.memory_space<vmem>>, vector<1x192x128xf32>
      %51 = vector.shape_cast %50 : vector<1x192x128xf32> to vector<192x128xf32>
      %cst_48 = arith.constant dense<0.000000e+00> : vector<36x128xf32>
      %52 = tpu.matmul %49, %51, %cst_48 {dimension_numbers = #tpu.dot_dimension_numbers<[1], [0], [0], [1], [0, 0, 1, 1], [], []>} : vector<36x192xf32>, vector<192x128xf32>, vector<36x128xf32> -> vector<36x128xf32>
      %53 = arith.addf %45, %52 : vector<36x128xf32>
      %54 = vector.broadcast %0 : vector<1x128xf32> to vector<36x128xf32>
      %55 = arith.addf %53, %54 : vector<36x128xf32>
      %cst_49 = arith.constant 0.000000e+00 : f32
      %56 = vector.broadcast %cst_49 : f32 to vector<36x128xf32>
      %57 = arith.maximumf %55, %56 : vector<36x128xf32>
      %58 = arith.maximumf %29, %57 : vector<36x128xf32>
      %59 = vector.extract_strided_slice %58 {offsets = [0, 0], sizes = [36, 64], strides = [1, 1]} : vector<36x128xf32> to vector<36x64xf32>
      %60 = vector.extract_strided_slice %58 {offsets = [0, 64], sizes = [36, 64], strides = [1, 1]} : vector<36x128xf32> to vector<36x64xf32>
      %61 = arith.maximumf %59, %60 : vector<36x64xf32>
      %c0_50 = arith.constant 0 : index
      %62 = arith.index_cast %arg6 : i32 to index
      %c0_51 = arith.constant 0 : index
      %c0_52 = arith.constant 0 : index
      %63 = vector.load %arg5[%c0_50, %62, %c0_51, %c0_52] : memref<1x36x36x64xf32, #tpu.memory_space<vmem>>, vector<1x1x36x64xf32>
      %64 = vector.shape_cast %63 : vector<1x1x36x64xf32> to vector<36x64xf32>
      %65 = vector.shape_cast %61 : vector<36x64xf32> to vector<1x1x36x64xf32>
      tpu.vector_store %arg5[%c0_50, %62, %c0_51, %c0_52], %65 {strides = array<i32>} : memref<1x36x36x64xf32, #tpu.memory_space<vmem>>, vector<1x1x36x64xf32>,
    }
    %c36_i32_1 = arith.constant 36 : i32
    return
  }
  func.func @transform_0(%arg0: i32, %arg1: i32) -> (i32, i32, i32, i32) {
    %c0_i32 = arith.constant 0 : i32
    %c0_i32_0 = arith.constant 0 : i32
    %c0_i32_1 = arith.constant 0 : i32
    return %arg0, %arg1, %c0_i32, %c0_i32_0 : i32, i32, i32, i32
  }
  func.func @transform_1(%arg0: i32, %arg1: i32) -> (i32, i32, i32) {
    %c0_i32 = arith.constant 0 : i32
    %c0_i32_0 = arith.constant 0 : i32
    %c0_i32_1 = arith.constant 0 : i32
    %c0_i32_2 = arith.constant 0 : i32
    return %c0_i32, %c0_i32_0, %c0_i32_1 : i32, i32, i32
  }
  func.func @transform_2(%arg0: i32, %arg1: i32) -> (i32, i32) {
    %c0_i32 = arith.constant 0 : i32
    %c0_i32_0 = arith.constant 0 : i32
    %c0_i32_1 = arith.constant 0 : i32
    return %c0_i32, %c0_i32_0 : i32, i32
  }
  func.func @transform_3(%arg0: i32, %arg1: i32) -> (i32, i32, i32, i32) {
    %c0_i32 = arith.constant 0 : i32
    %c0_i32_0 = arith.constant 0 : i32
    %c0_i32_1 = arith.constant 0 : i32
    return %arg0, %arg1, %c0_i32, %c0_i32_0 : i32, i32, i32, i32
  }
}

module attributes {stable_mosaic.version = 11 : i64} {
  func.func @_conv3x3_relu_pool_kernel(%arg0: i32, %arg1: i32, %arg2: memref<1x38x18x384xf32, #tpu.memory_space<vmem>>, %arg3: memref<3x384x256xf32, #tpu.memory_space<vmem>>, %arg4: memref<1x256xf32, #tpu.memory_space<vmem>>, %arg5: memref<1x18x18x128xf32, #tpu.memory_space<vmem>>) attributes {dimension_semantics = [#tpu.dimension_semantics<parallel>, #tpu.dimension_semantics<parallel>], iteration_bounds = array<i64: 2, 1>, scalar_prefetch = 0 : i64, scratch_operands = 0 : i64, tpu.core_type = #tpu.core_type<tc>, window_params = [{transform_indices = @transform_0, window_bounds = array<i64: 1, 38, 18, 384>}, {pipeline_mode = #tpu.pipeline_mode<synchronous>, transform_indices = @transform_1, window_bounds = array<i64: 3, 384, 256>}, {pipeline_mode = #tpu.pipeline_mode<synchronous>, transform_indices = @transform_2, window_bounds = array<i64: 1, 256>}, {transform_indices = @transform_3, window_bounds = array<i64: 1, 18, 18, 128>}]} {
    %c0 = arith.constant 0 : index
    %c0_0 = arith.constant 0 : index
    %0 = vector.load %arg4[%c0, %c0_0] : memref<1x256xf32, #tpu.memory_space<vmem>>, vector<1x256xf32>
    %c0_i32 = arith.constant 0 : i32
    %c18_i32 = arith.constant 18 : i32
    %1 = arith.addi %c0_i32, %c18_i32 : i32
    %c1_i32 = arith.constant 1 : i32
    scf.for %arg6 = %c0_i32 to %1 step %c1_i32  : i32 {
      %c2_i32 = arith.constant 2 : i32
      %2 = arith.muli %c2_i32, %arg6 : i32
      %c0_i32_2 = arith.constant 0 : i32
      %3 = arith.addi %2, %c0_i32_2 : i32
      %c0_3 = arith.constant 0 : index
      %4 = arith.index_cast %3 : i32 to index
      %c0_4 = arith.constant 0 : index
      %c0_5 = arith.constant 0 : index
      %5 = vector.load %arg2[%c0_3, %4, %c0_4, %c0_5] : memref<1x38x18x384xf32, #tpu.memory_space<vmem>>, vector<1x1x18x384xf32>
      %6 = vector.shape_cast %5 : vector<1x1x18x384xf32> to vector<18x384xf32>
      %c0_6 = arith.constant 0 : index
      %c0_7 = arith.constant 0 : index
      %c0_8 = arith.constant 0 : index
      %7 = vector.load %arg3[%c0_6, %c0_7, %c0_8] : memref<3x384x256xf32, #tpu.memory_space<vmem>>, vector<1x384x256xf32>
      %8 = vector.shape_cast %7 : vector<1x384x256xf32> to vector<384x256xf32>
      %cst = arith.constant dense<0.000000e+00> : vector<18x256xf32>
      %9 = tpu.matmul %6, %8, %cst {dimension_numbers = #tpu.dot_dimension_numbers<[1], [0], [0], [1], [0, 0, 1, 1], [], []>} : vector<18x384xf32>, vector<384x256xf32>, vector<18x256xf32> -> vector<18x256xf32>
      %c1_i32_9 = arith.constant 1 : i32
      %10 = arith.addi %3, %c1_i32_9 : i32
      %c0_10 = arith.constant 0 : index
      %11 = arith.index_cast %10 : i32 to index
      %c0_11 = arith.constant 0 : index
      %c0_12 = arith.constant 0 : index
      %12 = vector.load %arg2[%c0_10, %11, %c0_11, %c0_12] : memref<1x38x18x384xf32, #tpu.memory_space<vmem>>, vector<1x1x18x384xf32>
      %13 = vector.shape_cast %12 : vector<1x1x18x384xf32> to vector<18x384xf32>
      %c1 = arith.constant 1 : index
      %c0_13 = arith.constant 0 : index
      %c0_14 = arith.constant 0 : index
      %14 = vector.load %arg3[%c1, %c0_13, %c0_14] : memref<3x384x256xf32, #tpu.memory_space<vmem>>, vector<1x384x256xf32>
      %15 = vector.shape_cast %14 : vector<1x384x256xf32> to vector<384x256xf32>
      %cst_15 = arith.constant dense<0.000000e+00> : vector<18x256xf32>
      %16 = tpu.matmul %13, %15, %cst_15 {dimension_numbers = #tpu.dot_dimension_numbers<[1], [0], [0], [1], [0, 0, 1, 1], [], []>} : vector<18x384xf32>, vector<384x256xf32>, vector<18x256xf32> -> vector<18x256xf32>
      %17 = arith.addf %9, %16 : vector<18x256xf32>
      %c2_i32_16 = arith.constant 2 : i32
      %18 = arith.addi %3, %c2_i32_16 : i32
      %c0_17 = arith.constant 0 : index
      %19 = arith.index_cast %18 : i32 to index
      %c0_18 = arith.constant 0 : index
      %c0_19 = arith.constant 0 : index
      %20 = vector.load %arg2[%c0_17, %19, %c0_18, %c0_19] : memref<1x38x18x384xf32, #tpu.memory_space<vmem>>, vector<1x1x18x384xf32>
      %21 = vector.shape_cast %20 : vector<1x1x18x384xf32> to vector<18x384xf32>
      %c2 = arith.constant 2 : index
      %c0_20 = arith.constant 0 : index
      %c0_21 = arith.constant 0 : index
      %22 = vector.load %arg3[%c2, %c0_20, %c0_21] : memref<3x384x256xf32, #tpu.memory_space<vmem>>, vector<1x384x256xf32>
      %23 = vector.shape_cast %22 : vector<1x384x256xf32> to vector<384x256xf32>
      %cst_22 = arith.constant dense<0.000000e+00> : vector<18x256xf32>
      %24 = tpu.matmul %21, %23, %cst_22 {dimension_numbers = #tpu.dot_dimension_numbers<[1], [0], [0], [1], [0, 0, 1, 1], [], []>} : vector<18x384xf32>, vector<384x256xf32>, vector<18x256xf32> -> vector<18x256xf32>
      %25 = arith.addf %17, %24 : vector<18x256xf32>
      %26 = vector.broadcast %0 : vector<1x256xf32> to vector<18x256xf32>
      %27 = arith.addf %25, %26 : vector<18x256xf32>
      %cst_23 = arith.constant 0.000000e+00 : f32
      %28 = vector.broadcast %cst_23 : f32 to vector<18x256xf32>
      %29 = arith.maximumf %27, %28 : vector<18x256xf32>
      %c2_i32_24 = arith.constant 2 : i32
      %30 = arith.muli %c2_i32_24, %arg6 : i32
      %c1_i32_25 = arith.constant 1 : i32
      %31 = arith.addi %30, %c1_i32_25 : i32
      %c0_26 = arith.constant 0 : index
      %32 = arith.index_cast %31 : i32 to index
      %c0_27 = arith.constant 0 : index
      %c0_28 = arith.constant 0 : index
      %33 = vector.load %arg2[%c0_26, %32, %c0_27, %c0_28] : memref<1x38x18x384xf32, #tpu.memory_space<vmem>>, vector<1x1x18x384xf32>
      %34 = vector.shape_cast %33 : vector<1x1x18x384xf32> to vector<18x384xf32>
      %c0_29 = arith.constant 0 : index
      %c0_30 = arith.constant 0 : index
      %c0_31 = arith.constant 0 : index
      %35 = vector.load %arg3[%c0_29, %c0_30, %c0_31] : memref<3x384x256xf32, #tpu.memory_space<vmem>>, vector<1x384x256xf32>
      %36 = vector.shape_cast %35 : vector<1x384x256xf32> to vector<384x256xf32>
      %cst_32 = arith.constant dense<0.000000e+00> : vector<18x256xf32>
      %37 = tpu.matmul %34, %36, %cst_32 {dimension_numbers = #tpu.dot_dimension_numbers<[1], [0], [0], [1], [0, 0, 1, 1], [], []>} : vector<18x384xf32>, vector<384x256xf32>, vector<18x256xf32> -> vector<18x256xf32>
      %c1_i32_33 = arith.constant 1 : i32
      %38 = arith.addi %31, %c1_i32_33 : i32
      %c0_34 = arith.constant 0 : index
      %39 = arith.index_cast %38 : i32 to index
      %c0_35 = arith.constant 0 : index
      %c0_36 = arith.constant 0 : index
      %40 = vector.load %arg2[%c0_34, %39, %c0_35, %c0_36] : memref<1x38x18x384xf32, #tpu.memory_space<vmem>>, vector<1x1x18x384xf32>
      %41 = vector.shape_cast %40 : vector<1x1x18x384xf32> to vector<18x384xf32>
      %c1_37 = arith.constant 1 : index
      %c0_38 = arith.constant 0 : index
      %c0_39 = arith.constant 0 : index
      %42 = vector.load %arg3[%c1_37, %c0_38, %c0_39] : memref<3x384x256xf32, #tpu.memory_space<vmem>>, vector<1x384x256xf32>
      %43 = vector.shape_cast %42 : vector<1x384x256xf32> to vector<384x256xf32>
      %cst_40 = arith.constant dense<0.000000e+00> : vector<18x256xf32>
      %44 = tpu.matmul %41, %43, %cst_40 {dimension_numbers = #tpu.dot_dimension_numbers<[1], [0], [0], [1], [0, 0, 1, 1], [], []>} : vector<18x384xf32>, vector<384x256xf32>, vector<18x256xf32> -> vector<18x256xf32>
      %45 = arith.addf %37, %44 : vector<18x256xf32>
      %c2_i32_41 = arith.constant 2 : i32
      %46 = arith.addi %31, %c2_i32_41 : i32
      %c0_42 = arith.constant 0 : index
      %47 = arith.index_cast %46 : i32 to index
      %c0_43 = arith.constant 0 : index
      %c0_44 = arith.constant 0 : index
      %48 = vector.load %arg2[%c0_42, %47, %c0_43, %c0_44] : memref<1x38x18x384xf32, #tpu.memory_space<vmem>>, vector<1x1x18x384xf32>
      %49 = vector.shape_cast %48 : vector<1x1x18x384xf32> to vector<18x384xf32>
      %c2_45 = arith.constant 2 : index
      %c0_46 = arith.constant 0 : index
      %c0_47 = arith.constant 0 : index
      %50 = vector.load %arg3[%c2_45, %c0_46, %c0_47] : memref<3x384x256xf32, #tpu.memory_space<vmem>>, vector<1x384x256xf32>
      %51 = vector.shape_cast %50 : vector<1x384x256xf32> to vector<384x256xf32>
      %cst_48 = arith.constant dense<0.000000e+00> : vector<18x256xf32>
      %52 = tpu.matmul %49, %51, %cst_48 {dimension_numbers = #tpu.dot_dimension_numbers<[1], [0], [0], [1], [0, 0, 1, 1], [], []>} : vector<18x384xf32>, vector<384x256xf32>, vector<18x256xf32> -> vector<18x256xf32>
      %53 = arith.addf %45, %52 : vector<18x256xf32>
      %54 = vector.broadcast %0 : vector<1x256xf32> to vector<18x256xf32>
      %55 = arith.addf %53, %54 : vector<18x256xf32>
      %cst_49 = arith.constant 0.000000e+00 : f32
      %56 = vector.broadcast %cst_49 : f32 to vector<18x256xf32>
      %57 = arith.maximumf %55, %56 : vector<18x256xf32>
      %58 = arith.maximumf %29, %57 : vector<18x256xf32>
      %59 = vector.extract_strided_slice %58 {offsets = [0, 0], sizes = [18, 128], strides = [1, 1]} : vector<18x256xf32> to vector<18x128xf32>
      %60 = vector.extract_strided_slice %58 {offsets = [0, 128], sizes = [18, 128], strides = [1, 1]} : vector<18x256xf32> to vector<18x128xf32>
      %61 = arith.maximumf %59, %60 : vector<18x128xf32>
      %c0_50 = arith.constant 0 : index
      %62 = arith.index_cast %arg6 : i32 to index
      %c0_51 = arith.constant 0 : index
      %c0_52 = arith.constant 0 : index
      %63 = vector.load %arg5[%c0_50, %62, %c0_51, %c0_52] : memref<1x18x18x128xf32, #tpu.memory_space<vmem>>, vector<1x1x18x128xf32>
      %64 = vector.shape_cast %63 : vector<1x1x18x128xf32> to vector<18x128xf32>
      %65 = vector.shape_cast %61 : vector<18x128xf32> to vector<1x1x18x128xf32>
      tpu.vector_store %arg5[%c0_50, %62, %c0_51, %c0_52], %65 {strides = array<i32>} : memref<1x18x18x128xf32, #tpu.memory_space<vmem>>, vector<1x1x18x128xf32>,
    }
    %c18_i32_1 = arith.constant 18 : i32
    return
  }
  func.func @transform_0(%arg0: i32, %arg1: i32) -> (i32, i32, i32, i32) {
    %c0_i32 = arith.constant 0 : i32
    %c0_i32_0 = arith.constant 0 : i32
    %c0_i32_1 = arith.constant 0 : i32
    return %arg0, %arg1, %c0_i32, %c0_i32_0 : i32, i32, i32, i32
  }
  func.func @transform_1(%arg0: i32, %arg1: i32) -> (i32, i32, i32) {
    %c0_i32 = arith.constant 0 : i32
    %c0_i32_0 = arith.constant 0 : i32
    %c0_i32_1 = arith.constant 0 : i32
    %c0_i32_2 = arith.constant 0 : i32
    return %c0_i32, %c0_i32_0, %c0_i32_1 : i32, i32, i32
  }
  func.func @transform_2(%arg0: i32, %arg1: i32) -> (i32, i32) {
    %c0_i32 = arith.constant 0 : i32
    %c0_i32_0 = arith.constant 0 : i32
    %c0_i32_1 = arith.constant 0 : i32
    return %c0_i32, %c0_i32_0 : i32, i32
  }
  func.func @transform_3(%arg0: i32, %arg1: i32) -> (i32, i32, i32, i32) {
    %c0_i32 = arith.constant 0 : i32
    %c0_i32_0 = arith.constant 0 : i32
    %c0_i32_1 = arith.constant 0 : i32
    return %arg0, %arg1, %c0_i32, %c0_i32_0 : i32, i32, i32, i32
  }
}

module attributes {stable_mosaic.version = 11 : i64} {
  func.func @_mm_kernel_acc(%arg0: i32, %arg1: i32, %arg2: i32, %arg3: memref<2x4608xf32, #tpu.memory_space<vmem>>, %arg4: memref<4608x256xf32, #tpu.memory_space<vmem>>, %arg5: memref<1x256xf32, #tpu.memory_space<vmem>>, %arg6: memref<2x256xf32, #tpu.memory_space<vmem>>, %arg7: memref<2x256xf32, #tpu.memory_space<vmem>>) attributes {dimension_semantics = [#tpu.dimension_semantics<parallel>, #tpu.dimension_semantics<parallel>, #tpu.dimension_semantics<arbitrary>], iteration_bounds = array<i64: 1, 2, 9>, scalar_prefetch = 0 : i64, scratch_operands = 1 : i64, tpu.core_type = #tpu.core_type<tc>, window_params = [{transform_indices = @transform_0, window_bounds = array<i64: 2, 4608>}, {transform_indices = @transform_1, window_bounds = array<i64: 4608, 256>}, {transform_indices = @transform_2, window_bounds = array<i64: 1, 256>}, {transform_indices = @transform_3, window_bounds = array<i64: 2, 256>}]} {
    %c0_i32 = arith.constant 0 : i32
    %0 = arith.cmpi eq, %arg2, %c0_i32 : i32
    %1 = arith.extui %0 : i1 to i32
    %c0_i32_0 = arith.constant 0 : i32
    %2 = arith.cmpi ne, %1, %c0_i32_0 : i32
    scf.if %2 {
      %cst_9 = arith.constant 0.000000e+00 : f32
      %12 = vector.broadcast %cst_9 : f32 to vector<2x256xf32>
      %c0_10 = arith.constant 0 : index
      %c0_11 = arith.constant 0 : index
      %13 = vector.load %arg7[%c0_10, %c0_11] : memref<2x256xf32, #tpu.memory_space<vmem>>, vector<2x256xf32>
      tpu.vector_store %arg7[%c0_10, %c0_11], %12 {strides = array<i32>} : memref<2x256xf32, #tpu.memory_space<vmem>>, vector<2x256xf32>,
    } else {
    }
    %c0 = arith.constant 0 : index
    %c0_1 = arith.constant 0 : index
    %3 = vector.load %arg7[%c0, %c0_1] : memref<2x256xf32, #tpu.memory_space<vmem>>, vector<2x256xf32>
    %c0_2 = arith.constant 0 : index
    %c0_3 = arith.constant 0 : index
    %4 = vector.load %arg3[%c0_2, %c0_3] : memref<2x4608xf32, #tpu.memory_space<vmem>>, vector<2x4608xf32>
    %c0_4 = arith.constant 0 : index
    %c0_5 = arith.constant 0 : index
    %5 = vector.load %arg4[%c0_4, %c0_5] : memref<4608x256xf32, #tpu.memory_space<vmem>>, vector<4608x256xf32>
    %cst = arith.constant dense<0.000000e+00> : vector<2x256xf32>
    %6 = tpu.matmul %4, %5, %cst {dimension_numbers = #tpu.dot_dimension_numbers<[1], [0], [0], [1], [0, 0, 1, 1], [], []>} : vector<2x4608xf32>, vector<4608x256xf32>, vector<2x256xf32> -> vector<2x256xf32>
    %7 = arith.addf %3, %6 : vector<2x256xf32>
    %c0_6 = arith.constant 0 : index
    %c0_7 = arith.constant 0 : index
    %8 = vector.load %arg7[%c0_6, %c0_7] : memref<2x256xf32, #tpu.memory_space<vmem>>, vector<2x256xf32>
    tpu.vector_store %arg7[%c0_6, %c0_7], %7 {strides = array<i32>} : memref<2x256xf32, #tpu.memory_space<vmem>>, vector<2x256xf32>,
    %c8_i32 = arith.constant 8 : i32
    %9 = arith.cmpi eq, %arg2, %c8_i32 : i32
    %10 = arith.extui %9 : i1 to i32
    %c0_i32_8 = arith.constant 0 : i32
    %11 = arith.cmpi ne, %10, %c0_i32_8 : i32
    scf.if %11 {
      %c0_9 = arith.constant 0 : index
      %c0_10 = arith.constant 0 : index
      %12 = vector.load %arg7[%c0_9, %c0_10] : memref<2x256xf32, #tpu.memory_space<vmem>>, vector<2x256xf32>
      %c0_11 = arith.constant 0 : index
      %c0_12 = arith.constant 0 : index
      %13 = vector.load %arg5[%c0_11, %c0_12] : memref<1x256xf32, #tpu.memory_space<vmem>>, vector<1x256xf32>
      %14 = vector.broadcast %13 : vector<1x256xf32> to vector<2x256xf32>
      %15 = arith.addf %12, %14 : vector<2x256xf32>
      %cst_13 = arith.constant 0.000000e+00 : f32
      %16 = vector.broadcast %cst_13 : f32 to vector<2x256xf32>
      %17 = arith.maximumf %15, %16 : vector<2x256xf32>
      %c0_14 = arith.constant 0 : index
      %c0_15 = arith.constant 0 : index
      %18 = vector.load %arg6[%c0_14, %c0_15] : memref<2x256xf32, #tpu.memory_space<vmem>>, vector<2x256xf32>
      tpu.vector_store %arg6[%c0_14, %c0_15], %17 {strides = array<i32>} : memref<2x256xf32, #tpu.memory_space<vmem>>, vector<2x256xf32>,
    } else {
    }
    return
  }
  func.func @transform_0(%arg0: i32, %arg1: i32, %arg2: i32) -> (i32, i32) {
    %c0_i32 = arith.constant 0 : i32
    return %arg0, %arg2 : i32, i32
  }
  func.func @transform_1(%arg0: i32, %arg1: i32, %arg2: i32) -> (i32, i32) {
    %c0_i32 = arith.constant 0 : i32
    return %arg2, %arg1 : i32, i32
  }
  func.func @transform_2(%arg0: i32, %arg1: i32, %arg2: i32) -> (i32, i32) {
    %c0_i32 = arith.constant 0 : i32
    %c0_i32_0 = arith.constant 0 : i32
    return %c0_i32, %arg1 : i32, i32
  }
  func.func @transform_3(%arg0: i32, %arg1: i32, %arg2: i32) -> (i32, i32) {
    %c0_i32 = arith.constant 0 : i32
    return %arg0, %arg1 : i32, i32
  }
}

module attributes {stable_mosaic.version = 11 : i64} {
  func.func @_mm_kernel_single(%arg0: i32, %arg1: i32, %arg2: i32, %arg3: memref<2x512xf32, #tpu.memory_space<vmem>>, %arg4: memref<512x1xf32, #tpu.memory_space<vmem>>, %arg5: memref<1x1xf32, #tpu.memory_space<vmem>>, %arg6: memref<2x1xf32, #tpu.memory_space<vmem>>) attributes {dimension_semantics = [#tpu.dimension_semantics<parallel>, #tpu.dimension_semantics<parallel>, #tpu.dimension_semantics<arbitrary>], iteration_bounds = array<i64: 1, 1, 1>, scalar_prefetch = 0 : i64, scratch_operands = 0 : i64, tpu.core_type = #tpu.core_type<tc>, window_params = [{transform_indices = @transform_0, window_bounds = array<i64: 2, 512>}, {transform_indices = @transform_1, window_bounds = array<i64: 512, 1>}, {transform_indices = @transform_2, window_bounds = array<i64: 1, 1>}, {transform_indices = @transform_3, window_bounds = array<i64: 2, 1>}]} {
    %c0 = arith.constant 0 : index
    %c0_0 = arith.constant 0 : index
    %0 = vector.load %arg3[%c0, %c0_0] : memref<2x512xf32, #tpu.memory_space<vmem>>, vector<2x512xf32>
    %c0_1 = arith.constant 0 : index
    %c0_2 = arith.constant 0 : index
    %1 = vector.load %arg4[%c0_1, %c0_2] : memref<512x1xf32, #tpu.memory_space<vmem>>, vector<512x1xf32>
    %cst = arith.constant dense<0.000000e+00> : vector<2x1xf32>
    %2 = tpu.matmul %0, %1, %cst {dimension_numbers = #tpu.dot_dimension_numbers<[1], [0], [0], [1], [0, 0, 1, 1], [], []>} : vector<2x512xf32>, vector<512x1xf32>, vector<2x1xf32> -> vector<2x1xf32>
    %c0_3 = arith.constant 0 : index
    %c0_4 = arith.constant 0 : index
    %3 = vector.load %arg5[%c0_3, %c0_4] : memref<1x1xf32, #tpu.memory_space<vmem>>, vector<1x1xf32>
    %4 = vector.broadcast %3 : vector<1x1xf32> to vector<2x1xf32>
    %5 = arith.addf %2, %4 : vector<2x1xf32>
    %cst_5 = arith.constant 0.000000e+00 : f32
    %6 = vector.broadcast %cst_5 : f32 to vector<2x1xf32>
    %7 = arith.subf %6, %5 : vector<2x1xf32>
    %8 = math.exp %7 : vector<2x1xf32>
    %cst_6 = arith.constant 1.000000e+00 : f32
    %9 = vector.broadcast %cst_6 : f32 to vector<2x1xf32>
    %10 = arith.addf %9, %8 : vector<2x1xf32>
    %cst_7 = arith.constant 1.000000e+00 : f32
    %11 = vector.broadcast %cst_7 : f32 to vector<2x1xf32>
    %12 = arith.divf %11, %10 : vector<2x1xf32>
    %c0_8 = arith.constant 0 : index
    %c0_9 = arith.constant 0 : index
    %13 = vector.load %arg6[%c0_8, %c0_9] : memref<2x1xf32, #tpu.memory_space<vmem>>, vector<2x1xf32>
    tpu.vector_store %arg6[%c0_8, %c0_9], %12 {strides = array<i32>} : memref<2x1xf32, #tpu.memory_space<vmem>>, vector<2x1xf32>,
    return
  }
  func.func @transform_0(%arg0: i32, %arg1: i32, %arg2: i32) -> (i32, i32) {
    %c0_i32 = arith.constant 0 : i32
    return %arg0, %arg2 : i32, i32
  }
  func.func @transform_1(%arg0: i32, %arg1: i32, %arg2: i32) -> (i32, i32) {
    %c0_i32 = arith.constant 0 : i32
    return %arg2, %arg1 : i32, i32
  }
  func.func @transform_2(%arg0: i32, %arg1: i32, %arg2: i32) -> (i32, i32) {
    %c0_i32 = arith.constant 0 : i32
    %c0_i32_0 = arith.constant 0 : i32
    return %c0_i32, %arg1 : i32, i32
  }
  func.func @transform_3(%arg0: i32, %arg1: i32, %arg2: i32) -> (i32, i32) {
    %c0_i32 = arith.constant 0 : i32
    return %arg0, %arg1 : i32, i32
  }
}

</mosaic_0001>

<bundles_post_ra>
// kernel: forward.5
= control target key start
LH: loop header
LB: loop body
LE: loop exit
PB: predicated region body
PF: predicated region fallthrough
CT: control target
= control target key end

     0   :  { %s1017_s12 = smov 0   ;;  %s1019_s13 = smov 0   ;;  %s1250_s0 = inlined_call_operand.vmem [shape: f32[2,144,72,54], index: 0, kind: input, shape index: {}]   ;;  %s1251_s1 = inlined_call_operand.vmem [shape: f32[1,54,64], index: 1, kind: input, shape index: {}]   ;;  %s1252_s2 = inlined_call_operand.vmem [shape: f32[1,64], index: 2, kind: input, shape index: {}]   ;;  %s1253_s3 = inlined_call_operand.vmem [shape: f32[2,72,72,32], index: 3, kind: output, shape index: {}]  }
   0x1   :  { %s1021_s14 = smov 0   ;;  %s1023_s15 = smov 0  }
   0x2   :  { %s1025_s16 = smov 0  }
   0x3 LB: > { %s22_s17 = sadd.s32 1, %s980_s14  ;;  %s25_s18 = sadd.s32 1, %s984_s15  ;;  %s988_s16 = sphi %s1025_s16, %s13_s16   ;;  %s984_s15 = sphi %s1023_s15, %s1257_s15   ;;  %s980_s14 = sphi %s1021_s14, %s1256_s14   ;;  %s976_s13 = sphi %s1019_s13, %s1255_s13   ;;  %s972_s12 = sphi %s1017_s12, %s1254_s12  }
   0x4   : > { %p23_p0 = scmp.ge.s32.totalorder %s22_s17, 4  ;;  %p738_p1 = scmp.ge.s32.totalorder %s988_s16, 1 }
   0x5   : > { %p159_p2 = scmp.lt.s32.totalorder %s988_s16, 9 }
   0x6   : > { %s1259_s17 = smov (%p23_p0, %s22_s17), 0  ;;  %s1261_s18 = smov (!%p23_p0, %s25_s18), %s984_s15 }
   0x7   : > { %p160_p3 = pnand %p738_p1, %p159_p2  ;;  %p27_p4 = scmp.ge.s32.totalorder %s1261_s18, 2 }
   0x8   : > { %s193_s19 = smul.u32 (!%p160_p3), 36, %s972_s12  ;;  %p194_p5 = scmp.lt.s32.totalorder (!%p160_p3), %s976_s13, 1 }
   0x9   : > { %s1263_s18 = smov (%p27_p4, %s1261_s18), 0  ;;  %163 = sbr.rel (%p160_p3) target bundleno = 388 (0x184), region = 32 }
   0xa   : > { %s204_s22 = smul.u32 (!%p160_p3), 18, %s972_s12  ;;  %p196_p6 = scmp.lt.s32.totalorder (!%p160_p3), %s193_s19, 143 }
   0xb   : > { %s1062_s10 = smov (!%p160_p3), 0  }
   0xc   : > { %p207_p7 = scmp.lt.s32.totalorder (!%p160_p3), %s204_s22, 71 }
   0xe   : > { %v1050_v0 = vld [vmem:[%s1252_s2] ss:$0 sm:$0xff]  ;;  %s1265_s13 = smov (!%p194_p5, %s976_s13), 1  ;;  %s1267_s19 = smov (!%p196_p6, %s193_s19), 143 }
   0xf   : > { %s892_s23 = smul.u32 1296, %s1265_s13  ;;  %s1269_s22 = smov (!%p207_p7, %s204_s22), 71 }
  0x10   : > { %s891_s24 = smul.u32 9, %s1267_s19 }
  0x11   : > { %s893_s25 = smul.u32 9, %s1269_s22 }
  0x12   : > { %s200_s26 = sadd.s32 %s892_s23, %s891_s24  ;;  %s894_s27 = smul.u32 648, %s1265_s13 }
  0x13   : > { %s739_s28 = sshll.u32 %s200_s26, 3 }
  0x14   : > { %s1055_s4 = scalar_lea.vmem %s1250_s0, %s739_s28  ;;  %s211_s5 = sadd.s32 %s894_s27, %s893_s25 }
  0x15   : > { %s740_s6 = sshll.u32 %s211_s5, 3 }
  0x16   : > { %s1060_s9 = scalar_lea.vmem %s1253_s3, %s740_s6 }
  0x17 LB: >> { %v240_v1 = vld [vmem:[%s1251_s1 + $0x30] sm:$0x3f]  ;;  %vm275_vm0 = vcmask 1045504   ;;  %v994_v2 = vmov 0.0   ;;  %v239_v3 = vld [vmem:[%s1251_s1 + $0x28] sm:$0xff]  ;;  %v238_v4 = vld [vmem:[%s1251_s1 + $0x20] sm:$0xff]  ;;  %s992_s10 = sphi %s1062_s10, %s221_s10  }
  0x18   : >> { %809 = vmatprep.subr.mxu0 %v994_v2  ;;  %850 = vmatprep.subr.mxu1 %v994_v2  ;;  %v237_v5 = vld [vmem:[%s1251_s1 + $0x18] sm:$0xff]  ;;  %s742_s24 = smul.u32 144, %s992_s10  ;;  %v236_v6 = vld [vmem:[%s1251_s1 + $0x10] sm:$0xff]  ;;  %v235_v7 = vld [vmem:[%s1251_s1 + $0x8] sm:$0xff]  ;;  %vm247_vm1 = vcmask 441344   ;;  %vm995_vm2 = vmmov 0  }
  0x19   : >> { %810 = vmatpush3.msk.msra.mxu0 %vm275_vm0, %v240_v1  ;;  %851 = vmatpush3.msk.msra.mxu1 %vm275_vm0, %v240_v1  ;;  %v234_v8 = vld [vmem:[%s1251_s1] sm:$0xff]  ;;  %s996_s6 = smov 96   ;;  %s610_s7 = smul.u32 72, %s992_s10  ;;  %vm612_vm3 = vcmask 261120  }
  0x1a   : >> { %811 = vmatprep.subr.mxu0 %v994_v2  ;;  %852 = vmatprep.subr.mxu1 %v994_v2  ;;  %s1097_s29 = scalar_lea.vmem %s1055_s4, %s742_s24  ;;  %s221_s10 = sadd.s32 1, %s992_s10  }
  0x1b   : >> { %812 = vmatpush3.msra.mxu0 %v239_v3  ;;  %853 = vmatpush3.msra.mxu1 %v239_v3  ;;  %v225_v9 = vld [vmem:[%s1097_s29] sm:$0xff]  ;;  %v756_v10 = vld [vmem:[%s1097_s29 + $0x48] sm:$0xff]  ;;  %v757_v12 = vld [vmem:[%s1097_s29 + $0x50] sm:$0xff]  ;;  %s611_s8 = scalar_lea.vmem %s1060_s9, %s610_s7  ;;  %p218_p8 = scmp.ge.s32.totalorder %s221_s10, 18  }
  0x1c   : >> { %813 = vmatprep.subr.mxu0 %v994_v2  ;;  %854 = vmatprep.subr.mxu1 %v994_v2  ;;  %v226_v11 = vld [vmem:[%s1097_s29 + $0x8] sm:$0xff]  ;;  %v227_v13 = vld [vmem:[%s1097_s29 + $0x10] sm:$0xff]  ;;  %v758_v14 = vld [vmem:[%s1097_s29 + $0x58] sm:$0xff] }
  0x1d   : >> { %814 = vmatpush3.msra.mxu0 %v238_v4  ;;  %855 = vmatpush3.msra.mxu1 %v238_v4  ;;  %v228_v15 = vld [vmem:[%s1097_s29 + $0x18] sm:$0xff]  ;;  %v759_v16 = vld [vmem:[%s1097_s29 + $0x60] sm:$0xff]  ;;  %v760_v18 = vld [vmem:[%s1097_s29 + $0x68] sm:$0xff] }
  0x1e   : >> { %815 = vmatprep.subr.mxu0 %v994_v2  ;;  %856 = vmatprep.subr.mxu1 %v994_v2  ;;  %v229_v17 = vld [vmem:[%s1097_s29 + $0x20] sm:$0xff]  ;;  %v230_v19 = vld [vmem:[%s1097_s29 + $0x28] sm:$0xff]  ;;  %v761_v20 = vld [vmem:[%s1097_s29 + $0x70] sm:$0xff] }
  0x1f   : >> { %816 = vmatpush3.msra.mxu0 %v237_v5  ;;  %857 = vmatpush3.msra.mxu1 %v237_v5  ;;  %v231_v21 = vld [vmem:[%s1097_s29 + $0x30] sm:$0xff]  ;;  %v762_v22 = vld [vmem:[%s1097_s29 + $0x78] sm:$0xff]  ;;  %v763_v24 = vld [vmem:[%s1097_s29 + $0x80] sm:$0xff] }
  0x20   : >> { %817 = vmatprep.subr.mxu0 %v994_v2  ;;  %858 = vmatprep.subr.mxu1 %v994_v2  ;;  %v232_v23 = vld [vmem:[%s1097_s29 + $0x38] sm:$0xff]  ;;  %v233_v25 = vld [vmem:[%s1097_s29 + $0x40] sm:$0xff]  ;;  %v764_v26 = vld [vmem:[%s1097_s29 + $0x88] sm:$0xff] }
  0x21   : >> { %818 = vmatpush3.msra.mxu0 %v236_v6  ;;  %859 = vmatpush3.msra.mxu1 %v236_v6 }
  0x22   : >> { %819 = vmatprep.subr.mxu0 %v994_v2  ;;  %860 = vmatprep.subr.mxu1 %v994_v2 }
  0x23   : >> { %820 = vmatpush3.msra.mxu0 %v235_v7  ;;  %861 = vmatpush3.msra.mxu1 %v235_v7 }
  0x24   : >> { %821 = vmatprep.subr.mxu0 %v994_v2  ;;  %862 = vmatprep.subr.mxu1 %v994_v2 }
  0x25   : >> { %822 = vmatpush3.msra.mxu0 %v234_v8  ;;  %823 = vmatprep.mubr.msk.f32.mxu0 %vm995_vm2, %v994_v2 }
  0x26   : >> { %863 = vmatpush3.msra.mxu1 %v234_v8  ;;  %864 = vmatprep.mubr.msk.f32.mxu1 %vm995_vm2, %v994_v2 }
  0x27   : >> { %824 = vmatmul.mubr.msk.f32.vlgmr.msra.gmra.mxu0 %vm247_vm1, %v225_v9  ;;  %865 = vmatmul.mubr.msk.f32.vlgmr.msra.gmra.mxu1 %vm247_vm1, %v756_v10 }
  0x28   : >> { %826 = vmatprep.mubr.msk.f32.mxu0 %vm995_vm2, %v994_v2  ;;  %867 = vmatprep.mubr.msk.f32.mxu1 %vm995_vm2, %v994_v2 }
  0x2b   : >> { %827 = vmatmul.mubr.msk.f32.gmra.mxu0 %vm247_vm1, %v226_v11  ;;  %868 = vmatmul.mubr.msk.f32.gmra.mxu1 %vm247_vm1, %v757_v12 }
  0x2c   : >> { %829 = vmatprep.mubr.msk.f32.mxu0 %vm995_vm2, %v994_v2  ;;  %870 = vmatprep.mubr.msk.f32.mxu1 %vm995_vm2, %v994_v2 }
  0x2f   : >> { %830 = vmatmul.mubr.msk.f32.gmra.mxu0 %vm247_vm1, %v227_v13  ;;  %871 = vmatmul.mubr.msk.f32.gmra.mxu1 %vm247_vm1, %v758_v14 }
  0x30   : >> { %832 = vmatprep.mubr.msk.f32.mxu0 %vm995_vm2, %v994_v2  ;;  %873 = vmatprep.mubr.msk.f32.mxu1 %vm995_vm2, %v994_v2 }
  0x33   : >> { %833 = vmatmul.mubr.msk.f32.gmra.mxu0 %vm247_vm1, %v228_v15  ;;  %874 = vmatmul.mubr.msk.f32.gmra.mxu1 %vm247_vm1, %v759_v16 }
  0x34   : >> { %835 = vmatprep.mubr.msk.f32.mxu0 %vm995_vm2, %v994_v2  ;;  %876 = vmatprep.mubr.msk.f32.mxu1 %vm995_vm2, %v994_v2 }
  0x37   : >> { %836 = vmatmul.mubr.msk.f32.gmra.mxu0 %vm247_vm1, %v229_v17  ;;  %877 = vmatmul.mubr.msk.f32.gmra.mxu1 %vm247_vm1, %v760_v18 }
  0x38   : >> { %838 = vmatprep.mubr.msk.f32.mxu0 %vm995_vm2, %v994_v2  ;;  %879 = vmatprep.mubr.msk.f32.mxu1 %vm995_vm2, %v994_v2 }
  0x3b   : >> { %839 = vmatmul.mubr.msk.f32.gmra.mxu0 %vm247_vm1, %v230_v19  ;;  %880 = vmatmul.mubr.msk.f32.gmra.mxu1 %vm247_vm1, %v761_v20 }
  0x3c   : >> { %841 = vmatprep.mubr.msk.f32.mxu0 %vm995_vm2, %v994_v2  ;;  %882 = vmatprep.mubr.msk.f32.mxu1 %vm995_vm2, %v994_v2 }
  0x3f   : >> { %842 = vmatmul.mubr.msk.f32.gmra.mxu0 %vm247_vm1, %v231_v21  ;;  %883 = vmatmul.mubr.msk.f32.gmra.mxu1 %vm247_vm1, %v762_v22 }
  0x40   : >> { %844 = vmatprep.mubr.msk.f32.mxu0 %vm995_vm2, %v994_v2  ;;  %885 = vmatprep.mubr.msk.f32.mxu1 %vm995_vm2, %v994_v2 }
  0x43   : >> { %845 = vmatmul.mubr.msk.f32.gmra.mxu0 %vm247_vm1, %v232_v23  ;;  %886 = vmatmul.mubr.msk.f32.gmra.mxu1 %vm247_vm1, %v763_v24 }
  0x44   : >> { %847 = vmatprep.mubr.msk.f32.mxu0 %vm995_vm2, %v994_v2  ;;  %888 = vmatprep.mubr.msk.f32.mxu1 %vm995_vm2, %v994_v2 }
  0x47   : >> { %848 = vmatmul.mubr.msk.f32.gmra.mxu0 %vm247_vm1, %v233_v25  ;;  %889 = vmatmul.mubr.msk.f32.gmra.mxu1 %vm247_vm1, %v764_v26 }
  0xe7   : >> { %v345_v27 = vpop.f32.mrf.mxu0  ;;  %v503_v28 = vpop.f32.mrf.mxu1 }
  0xe8   : >> { %v346_v29 = vadd.f32 %v1050_v0, %v345_v27  ;;  %v504_v30 = vadd.f32 %v1050_v0, %v503_v28 }
  0xe9   : >> { %v825_v31 = vpop.f32.mrf.mxu0  ;;  %v866_v32 = vpop.f32.mrf.mxu1 }
  0xea   : >> { %v389_v33 = vmax.f32 %v346_v29, 0.0  ;;  %v547_v34 = vmax.f32 %v504_v30, 0.0 }
  0xeb   : >> { %v350_v35 = vpop.f32.mrf.mxu0  ;;  %v508_v36 = vpop.f32.mrf.mxu1 }
  0xec   : >> { %v351_v37 = vadd.f32 %v1050_v0, %v350_v35  ;;  %v509_v38 = vadd.f32 %v1050_v0, %v508_v36  ;;  %v1182_v39 = vmax.f32 %v389_v33, %v547_v34 }
  0xed   : >> { %v828_v40 = vpop.f32.mrf.mxu0  ;;  %v869_v41 = vpop.f32.mrf.mxu1 }
  0xee   : >> { %v390_v42 = vmax.f32 %v351_v37, 0.0  ;;  %v548_v43 = vmax.f32 %v509_v38, 0.0  ;;  %574 = vrot.lane.b32.xlu0 %v1182_v39, %s996_s6 }
  0xef   : >> { %v355_v44 = vpop.f32.mrf.mxu0  ;;  %v513_v45 = vpop.f32.mrf.mxu1 }
  0xf0   : >> { %v1186_v46 = vmax.f32 %v390_v42, %v548_v43  ;;  %v356_v47 = vadd.f32 %v1050_v0, %v355_v44  ;;  %v514_v48 = vadd.f32 %v1050_v0, %v513_v45 }
  0xf1   : >> { %v831_v49 = vpop.f32.mrf.mxu0  ;;  %v872_v50 = vpop.f32.mrf.mxu1 }
  0xf2   : >> { %v391_v51 = vmax.f32 %v356_v47, 0.0  ;;  %v549_v52 = vmax.f32 %v514_v48, 0.0  ;;  %576 = vrot.lane.b32.xlu0 %v1186_v46, %s996_s6 }
  0xf3   : >> { %v360_v53 = vpop.f32.mrf.mxu0  ;;  %v518_v54 = vpop.f32.mrf.mxu1 }
  0xf4   : >> { %v361_v55 = vadd.f32 %v1050_v0, %v360_v53  ;;  %v519_v56 = vadd.f32 %v1050_v0, %v518_v54  ;;  %v1194_v57 = vmax.f32 %v391_v51, %v549_v52 }
  0xf5   : >> { %v834_v58 = vpop.f32.mrf.mxu0  ;;  %v875_v59 = vpop.f32.mrf.mxu1 }
  0xf6   : >> { %v392_v60 = vmax.f32 %v361_v55, 0.0  ;;  %v550_v61 = vmax.f32 %v519_v56, 0.0  ;;  %578 = vrot.lane.b32.xlu1 %v1194_v57, %s996_s6 }
  0xf7   : >> { %v365_v62 = vpop.f32.mrf.mxu0  ;;  %v523_v63 = vpop.f32.mrf.mxu1 }
  0xf8   : >> { %v1198_v1 = vmax.f32 %v392_v60, %v550_v61  ;;  %v366_v2 = vadd.f32 %v1050_v0, %v365_v62  ;;  %v524_v3 = vadd.f32 %v1050_v0, %v523_v63 }
  0xf9   : >> { %v837_v4 = vpop.f32.mrf.mxu0  ;;  %v878_v5 = vpop.f32.mrf.mxu1 }
  0xfa   : >> { %v393_v6 = vmax.f32 %v366_v2, 0.0  ;;  %v551_v7 = vmax.f32 %v524_v3, 0.0  ;;  %580 = vrot.lane.b32.xlu1 %v1198_v1, %s996_s6 }
  0xfb   : >> { %v370_v8 = vpop.f32.mrf.mxu0  ;;  %v528_v9 = vpop.f32.mrf.mxu1 }
  0xfc   : >> { %v560_v10 = vmax.f32 %v393_v6, %v551_v7  ;;  %v371_v11 = vadd.f32 %v1050_v0, %v370_v8  ;;  %v529_v12 = vadd.f32 %v1050_v0, %v528_v9 }
  0xfd   : >> { %v840_v13 = vpop.f32.mrf.mxu0  ;;  %v881_v14 = vpop.f32.mrf.mxu1 }
  0xfe   : >> { %v394_v15 = vmax.f32 %v371_v11, 0.0  ;;  %v552_v16 = vmax.f32 %v529_v12, 0.0  ;;  %582 = vrot.lane.b32.xlu0 %v560_v10, %s996_s6 }
  0xff   : >> { %v375_v17 = vpop.f32.mrf.mxu0  ;;  %v533_v18 = vpop.f32.mrf.mxu1 }
 0x100   : >> { %v561_v19 = vmax.f32 %v394_v15, %v552_v16  ;;  %v376_v20 = vadd.f32 %v1050_v0, %v375_v17  ;;  %v534_v21 = vadd.f32 %v1050_v0, %v533_v18 }
 0x101   : >> { %v843_v22 = vpop.f32.mrf.mxu0  ;;  %v884_v23 = vpop.f32.mrf.mxu1 }
 0x102   : >> { %v395_v24 = vmax.f32 %v376_v20, 0.0  ;;  %v553_v25 = vmax.f32 %v534_v21, 0.0  ;;  %584 = vrot.lane.b32.xlu1 %v561_v19, %s996_s6 }
 0x103   : >> { %v380_v26 = vpop.f32.mrf.mxu0  ;;  %v538_v27 = vpop.f32.mrf.mxu1 }
 0x104   : >> { %v562_v28 = vmax.f32 %v395_v24, %v553_v25  ;;  %v381_v29 = vadd.f32 %v1050_v0, %v380_v26  ;;  %v539_v30 = vadd.f32 %v1050_v0, %v538_v27 }
 0x105   : >> { %v846_v31 = vpop.f32.mrf.mxu0  ;;  %v887_v32 = vpop.f32.mrf.mxu1 }
 0x106   : >> { %v396_v33 = vmax.f32 %v381_v29, 0.0  ;;  %v554_v34 = vmax.f32 %v539_v30, 0.0  ;;  %586 = vrot.lane.b32.xlu0 %v562_v28, %s996_s6 }
 0x107   : >> { %v385_v35 = vpop.f32.mrf.mxu0  ;;  %v543_v36 = vpop.f32.mrf.mxu1 }
 0x108   : >> { %v563_v37 = vmax.f32 %v396_v33, %v554_v34  ;;  %v386_v38 = vadd.f32 %v1050_v0, %v385_v35  ;;  %v544_v40 = vadd.f32 %v1050_v0, %v543_v36 }
 0x109   : >> { %v849_v41 = vpop.f32.mrf.mxu0  ;;  %v890_v42 = vpop.f32.mrf.mxu1 }
 0x10a   : >> { %v397_v43 = vmax.f32 %v386_v38, 0.0  ;;  %v555_v44 = vmax.f32 %v544_v40, 0.0  ;;  %588 = vrot.lane.b32.xlu1 %v563_v37, %s996_s6 }
 0x10c   : >> { %v564_v45 = vmax.f32 %v397_v43, %v555_v44 }
 0x10e   : >> { %590 = vrot.lane.b32.xlu0 %v564_v45, %s996_s6 }
 0x160   : >> { %v575_v47 = vpop.permute.xlu0 %574 }
 0x161   : >> { %v601_v48 = vmax.f32 %v1182_v39, %v575_v47 }
 0x163   : >> { %613 = vst.msk [vmem:[%s611_s8] sm:$0xff] %vm612_vm3, %v601_v48 }
 0x164   : >> { %v577_v49 = vpop.permute.xlu0 %576 }
 0x165   : >> { %v602_v50 = vmax.f32 %v1186_v46, %v577_v49 }
 0x167   : >> { %614 = vst.msk [vmem:[%s611_s8 + $0x8] sm:$0xff] %vm612_vm3, %v602_v50 }
 0x168   : >> { %v579_v51 = vpop.permute.xlu1 %578 }
 0x169   : >> { %v603_v52 = vmax.f32 %v1194_v57, %v579_v51 }
 0x16b   : >> { %615 = vst.msk [vmem:[%s611_s8 + $0x10] sm:$0xff] %vm612_vm3, %v603_v52 }
 0x16c   : >> { %v581_v53 = vpop.permute.xlu1 %580 }
 0x16d   : >> { %v604_v54 = vmax.f32 %v1198_v1, %v581_v53 }
 0x16f   : >> { %616 = vst.msk [vmem:[%s611_s8 + $0x18] sm:$0xff] %vm612_vm3, %v604_v54 }
 0x170   : >> { %v583_v55 = vpop.permute.xlu0 %582 }
 0x171   : >> { %v605_v56 = vmax.f32 %v560_v10, %v583_v55 }
 0x173   : >> { %617 = vst.msk [vmem:[%s611_s8 + $0x20] sm:$0xff] %vm612_vm3, %v605_v56 }
 0x174   : >> { %v585_v39 = vpop.permute.xlu1 %584 }
 0x175   : >> { %v606_v58 = vmax.f32 %v561_v19, %v585_v39 }
 0x177   : >> { %618 = vst.msk [vmem:[%s611_s8 + $0x28] sm:$0xff] %vm612_vm3, %v606_v58 }
 0x178   : >> { %v587_v46 = vpop.permute.xlu0 %586 }
 0x179   : >> { %v607_v59 = vmax.f32 %v562_v28, %v587_v46 }
 0x17b   : >> { %619 = vst.msk [vmem:[%s611_s8 + $0x30] sm:$0xff] %vm612_vm3, %v607_v59 }
 0x17c   : >> { %v589_v57 = vpop.permute.xlu1 %588 }
 0x17d   : >> { %v608_v60 = vmax.f32 %v563_v37, %v589_v57 }
 0x17f   : >> { %620 = vst.msk [vmem:[%s611_s8 + $0x38] sm:$0xff] %vm612_vm3, %v608_v60  ;;  %220 = sbr.rel (!%p218_p8) target bundleno = 23 (0x17), region = 72 }
 0x180   : >> { %v591_v61 = vpop.permute.xlu0 %590 }
 0x181   : >> { %v609_v62 = vmax.f32 %v564_v45, %v591_v61 }
 0x183   : >> { %621 = vst.msk [vmem:[%s611_s8 + $0x40] sm:$0xff] %vm612_vm3, %v609_v62 }
 0x184 PF: > { %s13_s16 = sadd.s32 1, %s988_s16   ;;  %s1254_s12 = smov %s980_s14 }
 0x185   : > { %p10_p9 = scmp.ge.s32.totalorder %s13_s16, 10   ;;  %s1255_s13 = smov %s984_s15 }
 0x186   : > { %s1256_s14 = smov %s1259_s17  ;;  %s1257_s15 = smov %s1263_s18 }
 0x187   :  { %12 = sbr.rel (!%p10_p9) target bundleno = 3 (0x3), region = 83 }

// kernel: forward.6
= control target key start
LH: loop header
LB: loop body
LE: loop exit
PB: predicated region body
PF: predicated region fallthrough
CT: control target
= control target key end

     0   :  { %s1362_s12 = smov 0   ;;  %s1364_s13 = smov 0   ;;  %s2230_s0 = inlined_call_operand.vmem [shape: f32[2,74,36,192], index: 0, kind: input, shape index: {}]   ;;  %s2231_s1 = inlined_call_operand.vmem [shape: f32[3,192,128], index: 1, kind: input, shape index: {}]   ;;  %s2232_s2 = inlined_call_operand.vmem [shape: f32[1,128], index: 2, kind: input, shape index: {}]   ;;  %s2233_s3 = inlined_call_operand.vmem [shape: f32[2,36,36,64], index: 3, kind: output, shape index: {}]  }
   0x1   :  { %s1366_s14 = smov 0  }
   0x2 LB: > { %s25_s15 = sadd.s32 1, %s1330_s13  ;;  %p1148_p0 = scmp.ge.s32.totalorder %s1334_s14, 1  ;;  %s1334_s14 = sphi %s1366_s14, %s13_s14   ;;  %s1330_s13 = sphi %s1364_s13, %s2241_s13   ;;  %s1326_s12 = sphi %s1362_s12, %s2240_s12  }
   0x3   : > { %p27_p1 = scmp.ge.s32.totalorder %s25_s15, 2  ;;  %p159_p2 = scmp.lt.s32.totalorder %s1334_s14, 3 }
   0x5   : > { %s2243_s15 = smov (%p27_p1, %s25_s15), 0  ;;  %p160_p3 = pnand %p1148_p0, %p159_p2 }
   0x6   : > { %p194_p4 = scmp.lt.s32.totalorder (!%p160_p3), %s1326_s12, 1  ;;  %s1395_s26 = smov (!%p160_p3), 0  }
   0x7   : > { %163 = sbr.rel (%p160_p3) target bundleno = 520 (0x208), region = 32 }
   0xc   : > { %v1383_v0 = vld [vmem:[%s2232_s2] ss:$0 sm:$0xff]  ;;  %s2245_s12 = smov (!%p194_p4, %s1326_s12), 1 }
   0xd   : > { %2236 = vst [vmem:[#allocation2_spill] sm:$0xff] %v1383_v0  ;;  %s1272_s18 = smul.u32 5920, %s2245_s12 }
   0xe   : > { %s1273_s19 = smul.u32 1440, %s2245_s12 }
   0xf   : > { %s1388_s22 = scalar_lea.vmem %s2230_s0, %s1272_s18 }
  0x10   : > { %s1393_s25 = scalar_lea.vmem %s2233_s3, %s1273_s19 }
  0x11 LB: >> { %v1403_v1 = vld [vmem:[%s2231_s1 + $0x138] sm:$0xff]  ;;  %v1340_v3 = vmov 0.0   ;;  %v1415_v4 = vld [vmem:[%s2231_s1 + $0x130] sm:$0xff]  ;;  %v1429_v6 = vld [vmem:[%s2231_s1 + $0x128] sm:$0xff]  ;;  %s1271_s20 = smul.u32 160, %s1338_s26  ;;  %vm299_vm0 = vcmask 523264   ;;  %s1338_s26 = sphi %s1395_s26, %s221_s26  }
  0x12   : >> { %v1408_v2 = vld [vmem:[%s2231_s1 + $0x78] sm:$0xff]  ;;  %315 = vmatprep.subr.mxu0 %v1340_v3  ;;  %420 = vmatprep.subr.mxu1 %v1340_v3  ;;  %v1420_v5 = vld [vmem:[%s2231_s1 + $0x70] sm:$0xff]  ;;  %v1434_v7 = vld [vmem:[%s2231_s1 + $0x68] sm:$0xff]  ;;  %s1019_s28 = smul.u32 40, %s1338_s26  ;;  %vm1025_vm1 = vcmask 519168   ;;  %s221_s26 = sadd.s32 1, %s1338_s26  }
  0x13   : >> { %316 = vmatpush1.msra.mxu0 %v1403_v1  ;;  %421 = vmatpush1.msra.mxu1 %v1408_v2  ;;  %v1443_v8 = vld [vmem:[%s2231_s1 + $0x120] sm:$0xff]  ;;  %v1457_v10 = vld [vmem:[%s2231_s1 + $0x118] sm:$0xff]  ;;  %v1471_v12 = vld [vmem:[%s2231_s1 + $0x110] sm:$0xff]  ;;  %s1706_s5 = scalar_lea.vmem %s1388_s22, %s1271_s20  ;;  %p218_p5 = scmp.ge.s32.totalorder %s221_s26, 36  }
  0x14   : >> { %317 = vmatprep.subr.mxu0 %v1340_v3  ;;  %422 = vmatprep.subr.mxu1 %v1340_v3  ;;  %v1448_v9 = vld [vmem:[%s2231_s1 + $0x60] sm:$0xff]  ;;  %v1462_v11 = vld [vmem:[%s2231_s1 + $0x58] sm:$0xff]  ;;  %v1476_v13 = vld [vmem:[%s2231_s1 + $0x50] sm:$0xff]  ;;  %s1020_s29 = scalar_lea.vmem %s1393_s25, %s1019_s28 }
  0x15   : >> { %318 = vmatpush1.msra.mxu0 %v1415_v4  ;;  %423 = vmatpush1.msra.mxu1 %v1420_v5  ;;  %v1485_v14 = vld [vmem:[%s2231_s1 + $0x108] sm:$0xff]  ;;  %v1499_v16 = vld [vmem:[%s2231_s1 + $0x100] sm:$0xff]  ;;  %v1513_v18 = vld [vmem:[%s2231_s1 + $0xf8] sm:$0xff] }
  0x16   : >> { %319 = vmatprep.subr.mxu0 %v1340_v3  ;;  %424 = vmatprep.subr.mxu1 %v1340_v3  ;;  %v1490_v15 = vld [vmem:[%s2231_s1 + $0x48] sm:$0xff]  ;;  %v1504_v17 = vld [vmem:[%s2231_s1 + $0x40] sm:$0xff]  ;;  %v1518_v19 = vld [vmem:[%s2231_s1 + $0x38] sm:$0xff] }
  0x17   : >> { %320 = vmatpush1.msra.mxu0 %v1429_v6  ;;  %425 = vmatpush1.msra.mxu1 %v1434_v7  ;;  %v1527_v20 = vld [vmem:[%s2231_s1 + $0xf0] sm:$0xff]  ;;  %v1541_v22 = vld [vmem:[%s2231_s1 + $0xe8] sm:$0xff]  ;;  %v1555_v24 = vld [vmem:[%s2231_s1 + $0xe0] sm:$0xff] }
  0x18   : >> { %321 = vmatprep.subr.mxu0 %v1340_v3  ;;  %426 = vmatprep.subr.mxu1 %v1340_v3  ;;  %v1532_v21 = vld [vmem:[%s2231_s1 + $0x30] sm:$0xff]  ;;  %v1546_v23 = vld [vmem:[%s2231_s1 + $0x28] sm:$0xff]  ;;  %v1560_v25 = vld [vmem:[%s2231_s1 + $0x20] sm:$0xff] }
  0x19   : >> { %322 = vmatpush1.msra.mxu0 %v1443_v8  ;;  %427 = vmatpush1.msra.mxu1 %v1448_v9  ;;  %v1569_v26 = vld [vmem:[%s2231_s1 + $0xd8] sm:$0xff]  ;;  %v1583_v28 = vld [vmem:[%s2231_s1 + $0xd0] sm:$0xff]  ;;  %v1597_v30 = vld [vmem:[%s2231_s1 + $0xc8] sm:$0xff] }
  0x1a   : >> { %323 = vmatprep.subr.mxu0 %v1340_v3  ;;  %428 = vmatprep.subr.mxu1 %v1340_v3  ;;  %v1574_v27 = vld [vmem:[%s2231_s1 + $0x18] sm:$0xff]  ;;  %v1588_v29 = vld [vmem:[%s2231_s1 + $0x10] sm:$0xff]  ;;  %v1602_v31 = vld [vmem:[%s2231_s1 + $0x8] sm:$0xff] }
  0x1b   : >> { %324 = vmatpush1.msra.mxu0 %v1457_v10  ;;  %429 = vmatpush1.msra.mxu1 %v1462_v11  ;;  %v1611_v32 = vld [vmem:[%s2231_s1 + $0xc0] sm:$0xff]  ;;  %v1625_v34 = vld [vmem:[%s2231_s1 + $0x178] sm:$0xff]  ;;  %v1639_v36 = vld [vmem:[%s2231_s1 + $0x170] sm:$0xff] }
  0x1c   : >> { %325 = vmatprep.subr.mxu0 %v1340_v3  ;;  %430 = vmatprep.subr.mxu1 %v1340_v3  ;;  %v1616_v33 = vld [vmem:[%s2231_s1] sm:$0xff]  ;;  %v1630_v35 = vld [vmem:[%s2231_s1 + $0xb8] sm:$0xff]  ;;  %v1644_v37 = vld [vmem:[%s2231_s1 + $0xb0] sm:$0xff] }
  0x1d   : >> { %326 = vmatpush1.msra.mxu0 %v1471_v12  ;;  %431 = vmatpush1.msra.mxu1 %v1476_v13  ;;  %v1653_v38 = vld [vmem:[%s2231_s1 + $0x168] sm:$0xff]  ;;  %v1667_v40 = vld [vmem:[%s2231_s1 + $0x160] sm:$0xff]  ;;  %v1682_v42 = vld [vmem:[%s2231_s1 + $0x158] sm:$0xff] }
  0x1e   : >> { %327 = vmatprep.subr.mxu0 %v1340_v3  ;;  %432 = vmatprep.subr.mxu1 %v1340_v3  ;;  %v1658_v39 = vld [vmem:[%s2231_s1 + $0xa8] sm:$0xff]  ;;  %v1672_v41 = vld [vmem:[%s2231_s1 + $0xa0] sm:$0xff]  ;;  %v1687_v43 = vld [vmem:[%s2231_s1 + $0x98] sm:$0xff] }
  0x1f   : >> { %328 = vmatpush1.msra.mxu0 %v1485_v14  ;;  %433 = vmatpush1.msra.mxu1 %v1490_v15  ;;  %v1696_v44 = vld [vmem:[%s2231_s1 + $0x150] sm:$0xff]  ;;  %v1713_v46 = vld [vmem:[%s2231_s1 + $0x148] sm:$0xff]  ;;  %v1727_v48 = vld [vmem:[%s2231_s1 + $0x140] sm:$0xff] }
  0x20   : >> { %329 = vmatprep.subr.mxu0 %v1340_v3  ;;  %434 = vmatprep.subr.mxu1 %v1340_v3  ;;  %v1701_v45 = vld [vmem:[%s2231_s1 + $0x90] sm:$0xff]  ;;  %v1718_v47 = vld [vmem:[%s2231_s1 + $0x88] sm:$0xff]  ;;  %v1730_v49 = vld [vmem:[%s1706_s5 + $0x58] sm:$0xff] }
  0x21   : >> { %330 = vmatpush1.msra.mxu0 %v1499_v16  ;;  %435 = vmatpush1.msra.mxu1 %v1504_v17  ;;  %v1737_v50 = vld [vmem:[%s2231_s1 + $0x80] sm:$0xff]  ;;  %v1740_v51 = vld [vmem:[%s1706_s5 + $0x50] sm:$0xff]  ;;  %v227_v52 = vld [vmem:[%s1706_s5 + $0x8] sm:$0xff] }
  0x22   : >> { %331 = vmatprep.subr.mxu0 %v1340_v3  ;;  %436 = vmatprep.subr.mxu1 %v1340_v3  ;;  %v226_v53 = vld [vmem:[%s1706_s5] sm:$0xff]  ;;  %v1754_v54 = vld [vmem:[%s2231_s1 + $0x1f8] sm:$0xff]  ;;  %v1762_v55 = vld [vmem:[%s2231_s1 + $0x1f0] sm:$0xff] }
  0x23   : >> { %332 = vmatpush1.msra.mxu0 %v1513_v18  ;;  %437 = vmatpush1.msra.mxu1 %v1518_v19  ;;  %v1771_v56 = vld [vmem:[%s2231_s1 + $0x1e8] sm:$0xff]  ;;  %v1780_v57 = vld [vmem:[%s2231_s1 + $0x1e0] sm:$0xff]  ;;  %v1789_v58 = vld [vmem:[%s2231_s1 + $0x1d8] sm:$0xff] }
  0x24   : >> { %333 = vmatprep.subr.mxu0 %v1340_v3  ;;  %438 = vmatprep.subr.mxu1 %v1340_v3  ;;  %v1798_v59 = vld [vmem:[%s2231_s1 + $0x1d0] sm:$0xff]  ;;  %v1807_v60 = vld [vmem:[%s2231_s1 + $0x1c8] sm:$0xff]  ;;  %v1816_v61 = vld [vmem:[%s2231_s1 + $0x1c0] sm:$0xff] }
  0x25   : >> { %334 = vmatpush1.msra.mxu0 %v1527_v20  ;;  %439 = vmatpush1.msra.mxu1 %v1532_v21  ;;  %v1825_v62 = vld [vmem:[%s2231_s1 + $0x1b8] sm:$0xff]  ;;  %v1834_v63 = vld [vmem:[%s2231_s1 + $0x1b0] sm:$0xff]  ;;  %v2008_v0 = vld [vmem:[%s2231_s1 + $0x200] sm:$0xff] }
  0x26   : >> { %335 = vmatprep.subr.mxu0 %v1340_v3  ;;  %440 = vmatprep.subr.mxu1 %v1340_v3 }
  0x27   : >> { %336 = vmatpush1.msra.mxu0 %v1541_v22  ;;  %441 = vmatpush1.msra.mxu1 %v1546_v23 }
  0x28   : >> { %337 = vmatprep.subr.mxu0 %v1340_v3  ;;  %442 = vmatprep.subr.mxu1 %v1340_v3 }
  0x29   : >> { %338 = vmatpush1.msra.mxu0 %v1555_v24  ;;  %443 = vmatpush1.msra.mxu1 %v1560_v25 }
  0x2a   : >> { %339 = vmatprep.subr.mxu0 %v1340_v3  ;;  %444 = vmatprep.subr.mxu1 %v1340_v3 }
  0x2b   : >> { %340 = vmatpush1.msra.mxu0 %v1569_v26  ;;  %445 = vmatpush1.msra.mxu1 %v1574_v27 }
  0x2c   : >> { %341 = vmatprep.subr.mxu0 %v1340_v3  ;;  %446 = vmatprep.subr.mxu1 %v1340_v3 }
  0x2d   : >> { %342 = vmatpush1.msra.mxu0 %v1583_v28  ;;  %447 = vmatpush1.msra.mxu1 %v1588_v29 }
  0x2e   : >> { %343 = vmatprep.subr.mxu0 %v1340_v3  ;;  %448 = vmatprep.subr.mxu1 %v1340_v3 }
  0x2f   : >> { %344 = vmatpush1.msra.mxu0 %v1597_v30  ;;  %449 = vmatpush1.msra.mxu1 %v1602_v31 }
  0x30   : >> { %345 = vmatprep.subr.mxu0 %v1340_v3  ;;  %450 = vmatprep.subr.mxu1 %v1340_v3 }
  0x31   : >> { %346 = vmatpush1.msra.mxu0 %v1611_v32  ;;  %451 = vmatpush1.msra.mxu1 %v1616_v33 }
  0x32   : >> { %363 = vmatprep.subr.mxu0 %v1340_v3  ;;  %468 = vmatprep.subr.mxu1 %v1340_v3 }
  0x33   : >> { %364 = vmatpush2.msra.mxu0 %v1625_v34  ;;  %469 = vmatpush2.msra.mxu1 %v1630_v35 }
  0x34   : >> { %365 = vmatprep.subr.mxu0 %v1340_v3  ;;  %470 = vmatprep.subr.mxu1 %v1340_v3 }
  0x35   : >> { %366 = vmatpush2.msra.mxu0 %v1639_v36  ;;  %471 = vmatpush2.msra.mxu1 %v1644_v37 }
  0x36   : >> { %367 = vmatprep.subr.mxu0 %v1340_v3  ;;  %472 = vmatprep.subr.mxu1 %v1340_v3 }
  0x37   : >> { %368 = vmatpush2.msra.mxu0 %v1653_v38  ;;  %473 = vmatpush2.msra.mxu1 %v1658_v39 }
  0x38   : >> { %369 = vmatprep.subr.mxu0 %v1340_v3  ;;  %474 = vmatprep.subr.mxu1 %v1340_v3 }
  0x39   : >> { %370 = vmatpush2.msra.mxu0 %v1667_v40  ;;  %475 = vmatpush2.msra.mxu1 %v1672_v41 }
  0x3a   : >> { %371 = vmatprep.subr.mxu0 %v1340_v3  ;;  %476 = vmatprep.subr.mxu1 %v1340_v3 }
  0x3b   : >> { %372 = vmatpush2.msra.mxu0 %v1682_v42  ;;  %477 = vmatpush2.msra.mxu1 %v1687_v43 }
  0x3c   : >> { %373 = vmatprep.subr.mxu0 %v1340_v3  ;;  %478 = vmatprep.subr.mxu1 %v1340_v3 }
  0x3d   : >> { %374 = vmatpush2.msra.mxu0 %v1696_v44  ;;  %479 = vmatpush2.msra.mxu1 %v1701_v45 }
  0x3e   : >> { %375 = vmatprep.subr.mxu0 %v1340_v3  ;;  %480 = vmatprep.subr.mxu1 %v1340_v3 }
  0x3f   : >> { %376 = vmatpush2.msra.mxu0 %v1713_v46  ;;  %481 = vmatpush2.msra.mxu1 %v1718_v47 }
  0x40   : >> { %377 = vmatprep.subr.mxu0 %v1340_v3  ;;  %482 = vmatprep.subr.mxu1 %v1340_v3 }
  0x41   : >> { %378 = vmatpush2.msra.mxu0 %v1727_v48  ;;  %1190 = vmatprep.mubr.msk.f32.mxu0 %vm299_vm0, %v1730_v49 }
  0x42   : >> { %483 = vmatpush2.msra.mxu1 %v1737_v50  ;;  %380 = vmatmul.mubr.f32.vlgmr.msra.gmra.mxu0 %v1740_v51 }
  0x43   : >> { %1195 = vmatprep.mubr.msk.f32.mxu1 %vm299_vm0, %v227_v52  ;;  %564 = vmatprep.subr.mxu0 %v1340_v3  ;;  %v1945_v52 = vld [vmem:[%s1706_s5 + $0x88] sm:$0xff] }
  0x44   : >> { %675 = vmatprep.subr.mxu1 %v1340_v3  ;;  %485 = vmatmul.mubr.f32.vlgmr.msra.gmra.mxu1 %v226_v53  ;;  %v1949_v53 = vld [vmem:[%s1706_s5 + $0x80] sm:$0xff] }
  0x45   : >> { %565 = vmatpush1.msra.mxu0 %v1754_v54  ;;  %676 = vmatpush1.msra.mxu1 %v1403_v1  ;;  %v1843_v1 = vld [vmem:[%s2231_s1 + $0x1a8] sm:$0xff] }
  0x46   : >> { %566 = vmatprep.subr.mxu0 %v1340_v3  ;;  %677 = vmatprep.subr.mxu1 %v1340_v3 }
  0x47   : >> { %567 = vmatpush1.msra.mxu0 %v1762_v55  ;;  %678 = vmatpush1.msra.mxu1 %v1415_v4  ;;  %v1852_v4 = vld [vmem:[%s2231_s1 + $0x1a0] sm:$0xff] }
  0x48   : >> { %568 = vmatprep.subr.mxu0 %v1340_v3  ;;  %679 = vmatprep.subr.mxu1 %v1340_v3 }
  0x49   : >> { %569 = vmatpush1.msra.mxu0 %v1771_v56  ;;  %680 = vmatpush1.msra.mxu1 %v1429_v6  ;;  %v1861_v6 = vld [vmem:[%s2231_s1 + $0x198] sm:$0xff] }
  0x4a   : >> { %570 = vmatprep.subr.mxu0 %v1340_v3  ;;  %681 = vmatprep.subr.mxu1 %v1340_v3 }
  0x4b   : >> { %571 = vmatpush1.msra.mxu0 %v1780_v57  ;;  %682 = vmatpush1.msra.mxu1 %v1443_v8  ;;  %v1870_v8 = vld [vmem:[%s2231_s1 + $0x190] sm:$0xff] }
  0x4c   : >> { %572 = vmatprep.subr.mxu0 %v1340_v3  ;;  %683 = vmatprep.subr.mxu1 %v1340_v3 }
  0x4d   : >> { %573 = vmatpush1.msra.mxu0 %v1789_v58  ;;  %684 = vmatpush1.msra.mxu1 %v1457_v10  ;;  %v1879_v10 = vld [vmem:[%s2231_s1 + $0x188] sm:$0xff] }
  0x4e   : >> { %574 = vmatprep.subr.mxu0 %v1340_v3  ;;  %685 = vmatprep.subr.mxu1 %v1340_v3 }
  0x4f   : >> { %575 = vmatpush1.msra.mxu0 %v1798_v59  ;;  %686 = vmatpush1.msra.mxu1 %v1471_v12  ;;  %v1884_v12 = vld [vmem:[%s1706_s5 + $0x68] sm:$0xff] }
  0x50   : >> { %576 = vmatprep.subr.mxu0 %v1340_v3  ;;  %687 = vmatprep.subr.mxu1 %v1340_v3 }
  0x51   : >> { %577 = vmatpush1.msra.mxu0 %v1807_v60  ;;  %688 = vmatpush1.msra.mxu1 %v1485_v14  ;;  %v1889_v14 = vld [vmem:[%s1706_s5 + $0x60] sm:$0xff] }
  0x52   : >> { %578 = vmatprep.subr.mxu0 %v1340_v3  ;;  %689 = vmatprep.subr.mxu1 %v1340_v3 }
  0x53   : >> { %579 = vmatpush1.msra.mxu0 %v1816_v61  ;;  %690 = vmatpush1.msra.mxu1 %v1499_v16  ;;  %v1896_v16 = vld [vmem:[%s2231_s1 + $0x180] sm:$0xff] }
  0x54   : >> { %580 = vmatprep.subr.mxu0 %v1340_v3  ;;  %691 = vmatprep.subr.mxu1 %v1340_v3 }
  0x55   : >> { %581 = vmatpush1.msra.mxu0 %v1825_v62  ;;  %692 = vmatpush1.msra.mxu1 %v1513_v18  ;;  %v229_v18 = vld [vmem:[%s1706_s5 + $0x18] sm:$0xff] }
  0x56   : >> { %582 = vmatprep.subr.mxu0 %v1340_v3  ;;  %693 = vmatprep.subr.mxu1 %v1340_v3 }
  0x57   : >> { %583 = vmatpush1.msra.mxu0 %v1834_v63  ;;  %694 = vmatpush1.msra.mxu1 %v1527_v20  ;;  %v228_v20 = vld [vmem:[%s1706_s5 + $0x10] sm:$0xff] }
  0x58   : >> { %584 = vmatprep.subr.mxu0 %v1340_v3  ;;  %695 = vmatprep.subr.mxu1 %v1340_v3 }
  0x59   : >> { %585 = vmatpush1.msra.mxu0 %v1843_v1  ;;  %696 = vmatpush1.msra.mxu1 %v1541_v22  ;;  %v1910_v22 = vld [vmem:[%s2231_s1 + $0x238] sm:$0xff] }
  0x5a   : >> { %586 = vmatprep.subr.mxu0 %v1340_v3  ;;  %697 = vmatprep.subr.mxu1 %v1340_v3 }
  0x5b   : >> { %587 = vmatpush1.msra.mxu0 %v1852_v4  ;;  %698 = vmatpush1.msra.mxu1 %v1555_v24  ;;  %v1915_v24 = vld [vmem:[%s1706_s5 + $0x78] sm:$0xff] }
  0x5c   : >> { %588 = vmatprep.subr.mxu0 %v1340_v3  ;;  %699 = vmatprep.subr.mxu1 %v1340_v3 }
  0x5d   : >> { %589 = vmatpush1.msra.mxu0 %v1861_v6  ;;  %700 = vmatpush1.msra.mxu1 %v1569_v26  ;;  %v1919_v26 = vld [vmem:[%s1706_s5 + $0x70] sm:$0xff] }
  0x5e   : >> { %590 = vmatprep.subr.mxu0 %v1340_v3  ;;  %701 = vmatprep.subr.mxu1 %v1340_v3 }
  0x5f   : >> { %591 = vmatpush1.msra.mxu0 %v1870_v8  ;;  %702 = vmatpush1.msra.mxu1 %v1583_v28  ;;  %v1926_v28 = vld [vmem:[%s2231_s1 + $0x230] sm:$0xff] }
  0x60   : >> { %592 = vmatprep.subr.mxu0 %v1340_v3  ;;  %703 = vmatprep.subr.mxu1 %v1340_v3 }
  0x61   : >> { %593 = vmatpush1.msra.mxu0 %v1879_v10  ;;  %704 = vmatpush1.msra.mxu1 %v1597_v30  ;;  %v231_v30 = vld [vmem:[%s1706_s5 + $0x28] sm:$0xff] }
  0x62   : >> { %1191 = vmatprep.mubr.msk.f32.mxu0 %vm299_vm0, %v1884_v12  ;;  %594 = vmatprep.subr.mxu0 %v1340_v3 }
  0x63   : >> { %705 = vmatprep.subr.mxu1 %v1340_v3  ;;  %385 = vmatmul.mubr.f32.gmra.mxu0 %v1889_v14 }
  0x64   : >> { %595 = vmatpush1.msra.mxu0 %v1896_v16  ;;  %706 = vmatpush1.msra.mxu1 %v1611_v32  ;;  %v230_v32 = vld [vmem:[%s1706_s5 + $0x20] sm:$0xff] }
  0x65   : >> { %1196 = vmatprep.mubr.msk.f32.mxu1 %vm299_vm0, %v229_v18  ;;  %612 = vmatprep.subr.mxu0 %v1340_v3  ;;  %v233_v18 = vld [vmem:[%s1706_s5 + $0x38] sm:$0xff] }
  0x66   : >> { %723 = vmatprep.subr.mxu1 %v1340_v3  ;;  %490 = vmatmul.mubr.f32.gmra.mxu1 %v228_v20  ;;  %v232_v20 = vld [vmem:[%s1706_s5 + $0x30] sm:$0xff] }
  0x67   : >> { %613 = vmatpush2.msra.mxu0 %v1910_v22  ;;  %724 = vmatpush2.msra.mxu1 %v1625_v34  ;;  %v1940_v34 = vld [vmem:[%s2231_s1 + $0x228] sm:$0xff] }
  0x68   : >> { %1192 = vmatprep.mubr.msk.f32.mxu0 %vm299_vm0, %v1915_v24  ;;  %614 = vmatprep.subr.mxu0 %v1340_v3 }
  0x69   : >> { %725 = vmatprep.subr.mxu1 %v1340_v3  ;;  %390 = vmatmul.mubr.f32.gmra.mxu0 %v1919_v26 }
  0x6a   : >> { %615 = vmatpush2.msra.mxu0 %v1926_v28  ;;  %726 = vmatpush2.msra.mxu1 %v1639_v36  ;;  %v1956_v36 = vld [vmem:[%s2231_s1 + $0x220] sm:$0xff] }
  0x6b   : >> { %1197 = vmatprep.mubr.msk.f32.mxu1 %vm299_vm0, %v231_v30  ;;  %616 = vmatprep.subr.mxu0 %v1340_v3  ;;  %v1975_v30 = vld [vmem:[%s1706_s5 + $0x98] sm:$0xf] }
  0x6c   : >> { %727 = vmatprep.subr.mxu1 %v1340_v3  ;;  %495 = vmatmul.mubr.f32.gmra.mxu1 %v230_v32  ;;  %v1979_v32 = vld [vmem:[%s1706_s5 + $0x90] sm:$0xf] }
  0x6d   : >> { %617 = vmatpush2.msra.mxu0 %v1940_v34  ;;  %728 = vmatpush2.msra.mxu1 %v1653_v38  ;;  %v1970_v38 = vld [vmem:[%s2231_s1 + $0x218] sm:$0xff]  ;;  %2237 = vst [vmem:[#allocation3_spill] sm:$0xff] %v1979_v32 }
  0x6e   : >> { %1193 = vmatprep.mubr.msk.f32.mxu0 %vm299_vm0, %v1945_v52  ;;  %618 = vmatprep.subr.mxu0 %v1340_v3 }
  0x6f   : >> { %729 = vmatprep.subr.mxu1 %v1340_v3  ;;  %395 = vmatmul.mubr.f32.gmra.mxu0 %v1949_v53 }
  0x70   : >> { %619 = vmatpush2.msra.mxu0 %v1956_v36  ;;  %730 = vmatpush2.msra.mxu1 %v1667_v40  ;;  %v1986_v40 = vld [vmem:[%s2231_s1 + $0x210] sm:$0xff] }
  0x71   : >> { %1198 = vmatprep.mubr.msk.f32.mxu1 %vm299_vm0, %v233_v18  ;;  %620 = vmatprep.subr.mxu0 %v1340_v3  ;;  %v235_v18 = vld [vmem:[%s1706_s5 + $0x48] sm:$0xf] }
  0x72   : >> { %731 = vmatprep.subr.mxu1 %v1340_v3  ;;  %500 = vmatmul.mubr.f32.gmra.mxu1 %v232_v20  ;;  %v234_v20 = vld [vmem:[%s1706_s5 + $0x40] sm:$0xf] }
  0x73   : >> { %621 = vmatpush2.msra.mxu0 %v1970_v38  ;;  %732 = vmatpush2.msra.mxu1 %v1682_v42  ;;  %v2000_v42 = vld [vmem:[%s2231_s1 + $0x208] sm:$0xff] }
  0x74   : >> { %1194 = vmatprep.mubr.msk.f32.mxu0 %vm299_vm0, %v1975_v30  ;;  %622 = vmatprep.subr.mxu0 %v1340_v3 }
  0x75   : >> { %733 = vmatprep.subr.mxu1 %v1340_v3  ;;  %400 = vmatmul.mubr.f32.gmra.mxu0 %v1979_v32  ;;  %v1203_v32 = vld [vmem:[%s1706_s5 + $0xa8] sm:$0xff] }
  0x76   : >> { %623 = vmatpush2.msra.mxu0 %v1986_v40  ;;  %734 = vmatpush2.msra.mxu1 %v1696_v44  ;;  %v1202_v44 = vld [vmem:[%s1706_s5 + $0xa0] sm:$0xff] }
  0x77   : >> { %1199 = vmatprep.mubr.msk.f32.mxu1 %vm299_vm0, %v235_v18  ;;  %624 = vmatprep.subr.mxu0 %v1340_v3  ;;  %v2028_v18 = vld [vmem:[%s1706_s5 + $0xb0] sm:$0xff] }
  0x78   : >> { %735 = vmatprep.subr.mxu1 %v1340_v3  ;;  %505 = vmatmul.mubr.f32.gmra.mxu1 %v234_v20 }
  0x79   : >> { %625 = vmatpush2.msra.mxu0 %v2000_v42  ;;  %736 = vmatpush2.msra.mxu1 %v1713_v46  ;;  %v2023_v46 = vld [vmem:[%s1706_s5 + $0xb8] sm:$0xff] }
  0x7a   : >> { %626 = vmatprep.subr.mxu0 %v1340_v3  ;;  %737 = vmatprep.subr.mxu1 %v1340_v3 }
  0x7b   : >> { %627 = vmatpush2.msra.mxu0 %v2008_v0  ;;  %1236 = vmatprep.mubr.msk.f32.mxu0 %vm299_vm0, %v1203_v32 }
  0x7c   : >> { %738 = vmatpush2.msra.mxu1 %v1727_v48  ;;  %629 = vmatmul.mubr.f32.vlgmr.msra.gmra.mxu0 %v1202_v44  ;;  %v2045_v48 = vld [vmem:[%s1706_s5 + $0xc0] sm:$0xff] }
  0x7d   : >> { %1242 = vmatprep.mubr.msk.f32.mxu1 %vm299_vm0, %v1203_v32  ;;  %765 = vmatprep.subr.mxu0 %v1340_v3 }
  0x7e   : >> { %884 = vmatprep.subr.mxu1 %v1340_v3  ;;  %740 = vmatmul.mubr.f32.vlgmr.msra.gmra.mxu1 %v1202_v44 }
  0x7f   : >> { %766 = vmatpush1.msra.mxu0 %v1408_v2  ;;  %885 = vmatpush1.msra.mxu1 %v1754_v54  ;;  %v2040_v2 = vld [vmem:[%s1706_s5 + $0xc8] sm:$0xff] }
  0x80   : >> { %767 = vmatprep.subr.mxu0 %v1340_v3  ;;  %886 = vmatprep.subr.mxu1 %v1340_v3 }
  0x81   : >> { %1237 = vmatprep.mubr.msk.f32.mxu0 %vm299_vm0, %v2023_v46  ;;  %768 = vmatpush1.msra.mxu0 %v1420_v5  ;;  %v2057_v5 = vld [vmem:[%s1706_s5 + $0xd8] sm:$0xff] }
  0x82   : >> { %887 = vmatpush1.msra.mxu1 %v1762_v55  ;;  %634 = vmatmul.mubr.f32.gmra.mxu0 %v2028_v18 }
  0x83   : >> { %769 = vmatprep.subr.mxu0 %v1340_v3  ;;  %888 = vmatprep.subr.mxu1 %v1340_v3 }
  0x84   : >> { %770 = vmatpush1.msra.mxu0 %v1434_v7  ;;  %889 = vmatpush1.msra.mxu1 %v1771_v56  ;;  %v2062_v7 = vld [vmem:[%s1706_s5 + $0xd0] sm:$0xff] }
  0x85   : >> { %771 = vmatprep.subr.mxu0 %v1340_v3  ;;  %890 = vmatprep.subr.mxu1 %v1340_v3 }
  0x86   : >> { %1238 = vmatprep.mubr.msk.f32.mxu0 %vm299_vm0, %v2040_v2  ;;  %772 = vmatpush1.msra.mxu0 %v1448_v9  ;;  %v2074_v9 = vld [vmem:[%s1706_s5 + $0xe8] sm:$0xf] }
  0x87   : >> { %891 = vmatpush1.msra.mxu1 %v1780_v57  ;;  %639 = vmatmul.mubr.f32.gmra.mxu0 %v2045_v48 }
  0x88   : >> { %773 = vmatprep.subr.mxu0 %v1340_v3  ;;  %892 = vmatprep.subr.mxu1 %v1340_v3 }
  0x89   : >> { %774 = vmatpush1.msra.mxu0 %v1462_v11  ;;  %893 = vmatpush1.msra.mxu1 %v1789_v58  ;;  %v2079_v11 = vld [vmem:[%s1706_s5 + $0xe0] sm:$0xf] }
  0x8a   : >> { %775 = vmatprep.subr.mxu0 %v1340_v3  ;;  %894 = vmatprep.subr.mxu1 %v1340_v3 }
  0x8b   : >> { %1239 = vmatprep.mubr.msk.f32.mxu0 %vm299_vm0, %v2057_v5  ;;  %776 = vmatpush1.msra.mxu0 %v1476_v13  ;;  %v1255_v13 = vld [vmem:[%s1706_s5 + $0xf8] sm:$0xff] }
  0x8c   : >> { %895 = vmatpush1.msra.mxu1 %v1798_v59  ;;  %644 = vmatmul.mubr.f32.gmra.mxu0 %v2062_v7 }
  0x8d   : >> { %777 = vmatprep.subr.mxu0 %v1340_v3  ;;  %896 = vmatprep.subr.mxu1 %v1340_v3 }
  0x8e   : >> { %778 = vmatpush1.msra.mxu0 %v1490_v15  ;;  %897 = vmatpush1.msra.mxu1 %v1807_v60  ;;  %v1254_v15 = vld [vmem:[%s1706_s5 + $0xf0] sm:$0xff] }
  0x8f   : >> { %779 = vmatprep.subr.mxu0 %v1340_v3  ;;  %898 = vmatprep.subr.mxu1 %v1340_v3 }
  0x90   : >> { %1240 = vmatprep.mubr.msk.f32.mxu0 %vm299_vm0, %v2074_v9  ;;  %780 = vmatpush1.msra.mxu0 %v1504_v17  ;;  %v1257_v17 = vld [vmem:[%s1706_s5 + $0x108] sm:$0xff] }
  0x91   : >> { %899 = vmatpush1.msra.mxu1 %v1816_v61  ;;  %649 = vmatmul.mubr.f32.gmra.mxu0 %v2079_v11 }
  0x92   : >> { %781 = vmatprep.subr.mxu0 %v1340_v3  ;;  %900 = vmatprep.subr.mxu1 %v1340_v3 }
  0x93   : >> { %782 = vmatpush1.msra.mxu0 %v1518_v19  ;;  %901 = vmatpush1.msra.mxu1 %v1825_v62  ;;  %v1259_v19 = vld [vmem:[%s1706_s5 + $0x118] sm:$0xff] }
  0x94   : >> { %783 = vmatprep.subr.mxu0 %v1340_v3  ;;  %902 = vmatprep.subr.mxu1 %v1340_v3 }
  0x95   : >> { %784 = vmatpush1.msra.mxu0 %v1532_v21  ;;  %903 = vmatpush1.msra.mxu1 %v1834_v63  ;;  %v1261_v21 = vld [vmem:[%s1706_s5 + $0x128] sm:$0xff] }
  0x96   : >> { %785 = vmatprep.subr.mxu0 %v1340_v3  ;;  %904 = vmatprep.subr.mxu1 %v1340_v3 }
  0x97   : >> { %786 = vmatpush1.msra.mxu0 %v1546_v23  ;;  %905 = vmatpush1.msra.mxu1 %v1843_v1  ;;  %v1260_v23 = vld [vmem:[%s1706_s5 + $0x120] sm:$0xff] }
  0x98   : >> { %787 = vmatprep.subr.mxu0 %v1340_v3  ;;  %906 = vmatprep.subr.mxu1 %v1340_v3 }
  0x99   : >> { %788 = vmatpush1.msra.mxu0 %v1560_v25  ;;  %907 = vmatpush1.msra.mxu1 %v1852_v4  ;;  %v1263_v25 = vld [vmem:[%s1706_s5 + $0x138] sm:$0xf] }
  0x9a   : >> { %789 = vmatprep.subr.mxu0 %v1340_v3  ;;  %908 = vmatprep.subr.mxu1 %v1340_v3 }
  0x9b   : >> { %790 = vmatpush1.msra.mxu0 %v1574_v27  ;;  %909 = vmatpush1.msra.mxu1 %v1861_v6  ;;  %v1262_v27 = vld [vmem:[%s1706_s5 + $0x130] sm:$0xf] }
  0x9c   : >> { %791 = vmatprep.subr.mxu0 %v1340_v3  ;;  %910 = vmatprep.subr.mxu1 %v1340_v3 }
  0x9d   : >> { %792 = vmatpush1.msra.mxu0 %v1588_v29  ;;  %911 = vmatpush1.msra.mxu1 %v1870_v8  ;;  %v2238_v29 = vld [vmem:[#allocation3_spill] sm:$0xff] }
  0x9e   : >> { %793 = vmatprep.subr.mxu0 %v1340_v3  ;;  %912 = vmatprep.subr.mxu1 %v1340_v3 }
  0x9f   : >> { %794 = vmatpush1.msra.mxu0 %v1602_v31  ;;  %913 = vmatpush1.msra.mxu1 %v1879_v10 }
  0xa0   : >> { %795 = vmatprep.subr.mxu0 %v1340_v3  ;;  %914 = vmatprep.subr.mxu1 %v1340_v3 }
  0xa1   : >> { %1243 = vmatprep.mubr.msk.f32.mxu1 %vm299_vm0, %v2023_v46  ;;  %796 = vmatpush1.msra.mxu0 %v1616_v33 }
  0xa2   : >> { %915 = vmatpush1.msra.mxu1 %v1896_v16  ;;  %813 = vmatprep.subr.mxu0 %v1340_v3 }
  0xa3   : >> { %745 = vmatmul.mubr.f32.gmra.mxu1 %v2028_v18  ;;  %932 = vmatprep.subr.mxu1 %v1340_v3 }
  0xa4   : >> { %814 = vmatpush2.msra.mxu0 %v1630_v35  ;;  %933 = vmatpush2.msra.mxu1 %v1910_v22 }
  0xa5   : >> { %815 = vmatprep.subr.mxu0 %v1340_v3  ;;  %934 = vmatprep.subr.mxu1 %v1340_v3 }
  0xa6   : >> { %1244 = vmatprep.mubr.msk.f32.mxu1 %vm299_vm0, %v2040_v2  ;;  %816 = vmatpush2.msra.mxu0 %v1644_v37 }
  0xa7   : >> { %935 = vmatpush2.msra.mxu1 %v1926_v28  ;;  %817 = vmatprep.subr.mxu0 %v1340_v3 }
  0xa8   : >> { %750 = vmatmul.mubr.f32.gmra.mxu1 %v2045_v48  ;;  %936 = vmatprep.subr.mxu1 %v1340_v3 }
  0xa9   : >> { %818 = vmatpush2.msra.mxu0 %v1658_v39  ;;  %937 = vmatpush2.msra.mxu1 %v1940_v34 }
  0xaa   : >> { %819 = vmatprep.subr.mxu0 %v1340_v3  ;;  %938 = vmatprep.subr.mxu1 %v1340_v3 }
  0xab   : >> { %1245 = vmatprep.mubr.msk.f32.mxu1 %vm299_vm0, %v2057_v5  ;;  %820 = vmatpush2.msra.mxu0 %v1672_v41 }
  0xac   : >> { %939 = vmatpush2.msra.mxu1 %v1956_v36  ;;  %821 = vmatprep.subr.mxu0 %v1340_v3 }
  0xad   : >> { %755 = vmatmul.mubr.f32.gmra.mxu1 %v2062_v7  ;;  %940 = vmatprep.subr.mxu1 %v1340_v3 }
  0xae   : >> { %822 = vmatpush2.msra.mxu0 %v1687_v43  ;;  %941 = vmatpush2.msra.mxu1 %v1970_v38 }
  0xaf   : >> { %823 = vmatprep.subr.mxu0 %v1340_v3  ;;  %942 = vmatprep.subr.mxu1 %v1340_v3 }
  0xb0   : >> { %1246 = vmatprep.mubr.msk.f32.mxu1 %vm299_vm0, %v2074_v9  ;;  %824 = vmatpush2.msra.mxu0 %v1701_v45  ;;  %v2239_v9 = vld [vmem:[#allocation2_spill] sm:$0xff] }
  0xb1   : >> { %943 = vmatpush2.msra.mxu1 %v1986_v40  ;;  %825 = vmatprep.subr.mxu0 %v1340_v3 }
  0xb2   : >> { %760 = vmatmul.mubr.f32.gmra.mxu1 %v2079_v11  ;;  %944 = vmatprep.subr.mxu1 %v1340_v3 }
  0xb3   : >> { %826 = vmatpush2.msra.mxu0 %v1718_v47  ;;  %945 = vmatpush2.msra.mxu1 %v2000_v42 }
  0xb4   : >> { %827 = vmatprep.subr.mxu0 %v1340_v3  ;;  %946 = vmatprep.subr.mxu1 %v1340_v3  ;;  %v1256_v3 = vld [vmem:[%s1706_s5 + $0x100] sm:$0xff] }
  0xb5   : >> { %828 = vmatpush2.msra.mxu0 %v1737_v50  ;;  %1247 = vmatprep.mubr.msk.f32.mxu0 %vm299_vm0, %v1730_v49 }
  0xb6   : >> { %947 = vmatpush2.msra.mxu1 %v2008_v0  ;;  %1264 = vmatprep.mubr.msk.f32.mxu1 %vm299_vm0, %v1255_v13  ;;  %v1258_v0 = vld [vmem:[%s1706_s5 + $0x110] sm:$0xff]  ;;  %s1341_s5 = smov 64  }
  0xb7   : >> { %830 = vmatmul.mubr.f32.vlgmr.msra.gmra.mxu0 %v1740_v51  ;;  %949 = vmatmul.mubr.f32.vlgmr.msra.gmra.mxu1 %v1254_v15 }
  0xb8   : >> { %1248 = vmatprep.mubr.msk.f32.mxu0 %vm299_vm0, %v1884_v12  ;;  %1265 = vmatprep.mubr.msk.f32.mxu1 %vm299_vm0, %v1257_v17 }
  0xbb   : >> { %835 = vmatmul.mubr.f32.gmra.mxu0 %v1889_v14  ;;  %954 = vmatmul.mubr.f32.gmra.mxu1 %v1256_v3 }
  0xbc   : >> { %1249 = vmatprep.mubr.msk.f32.mxu0 %vm299_vm0, %v1915_v24  ;;  %1266 = vmatprep.mubr.msk.f32.mxu1 %vm299_vm0, %v1259_v19 }
  0xbf   : >> { %840 = vmatmul.mubr.f32.gmra.mxu0 %v1919_v26  ;;  %959 = vmatmul.mubr.f32.gmra.mxu1 %v1258_v0 }
  0xc0   : >> { %1250 = vmatprep.mubr.msk.f32.mxu0 %vm299_vm0, %v1945_v52  ;;  %1267 = vmatprep.mubr.msk.f32.mxu1 %vm299_vm0, %v1261_v21 }
  0xc3   : >> { %845 = vmatmul.mubr.f32.gmra.mxu0 %v1949_v53  ;;  %964 = vmatmul.mubr.f32.gmra.mxu1 %v1260_v23 }
  0xc4   : >> { %1251 = vmatprep.mubr.msk.f32.mxu0 %vm299_vm0, %v1975_v30  ;;  %1268 = vmatprep.mubr.msk.f32.mxu1 %vm299_vm0, %v1263_v25 }
  0xc7   : >> { %850 = vmatmul.mubr.f32.gmra.mxu0 %v2238_v29  ;;  %969 = vmatmul.mubr.f32.gmra.mxu1 %v1262_v27 }
 0x102   : >> { %v381_v31 = vpop.f32.mrf.mxu0 }
 0x104   : >> { %v486_v33 = vpop.f32.mrf.mxu1  ;;  %v383_v35 = vpop.f32.mrf.mxu0 }
 0x105   : >> { %v487_v37 = vadd.f32 %v486_v33, %v381_v31 }
 0x106   : >> { %v488_v39 = vpop.f32.mrf.mxu1 }
 0x123   : >> { %v386_v41 = vpop.f32.mrf.mxu0 }
 0x125   : >> { %v388_v43 = vpop.f32.mrf.mxu0 }
 0x126   : >> { %v491_v45 = vpop.f32.mrf.mxu1 }
 0x127   : >> { %v492_v47 = vadd.f32 %v491_v45, %v386_v41 }
 0x128   : >> { %v493_v49 = vpop.f32.mrf.mxu1 }
 0x129   : >> { %v391_v50 = vpop.f32.mrf.mxu0 }
 0x12b   : >> { %v393_v51 = vpop.f32.mrf.mxu0 }
 0x12c   : >> { %v496_v54 = vpop.f32.mrf.mxu1 }
 0x12d   : >> { %v497_v55 = vadd.f32 %v496_v54, %v391_v50 }
 0x12e   : >> { %v498_v56 = vpop.f32.mrf.mxu1 }
 0x12f   : >> { %v396_v57 = vpop.f32.mrf.mxu0 }
 0x131   : >> { %v398_v58 = vpop.f32.mrf.mxu0 }
 0x132   : >> { %v501_v59 = vpop.f32.mrf.mxu1 }
 0x133   : >> { %v502_v60 = vadd.f32 %v501_v59, %v396_v57 }
 0x134   : >> { %v503_v61 = vpop.f32.mrf.mxu1 }
 0x135   : >> { %v401_v62 = vpop.f32.mrf.mxu0 }
 0x137   : >> { %v403_v63 = vpop.f32.mrf.mxu0 }
 0x138   : >> { %v506_v1 = vpop.f32.mrf.mxu1 }
 0x139   : >> { %v2194_v4 = vadd.f32 %v506_v1, %v401_v62 }
 0x13a   : >> { %v508_v6 = vpop.f32.mrf.mxu1 }
 0x13c   : >> { %v630_v8 = vpop.f32.mrf.mxu0 }
 0x13d   : >> { %v654_v46 = vadd.f32 %v630_v8, %v487_v37 }
 0x13e   : >> { %v741_v10 = vpop.f32.mrf.mxu1  ;;  %v632_v12 = vpop.f32.mrf.mxu0 }
 0x13f   : >> { %v665_v11 = vadd.f32 %v2239_v9, %v654_v46 }
 0x140   : >> { %v743_v14 = vpop.f32.mrf.mxu1 }
 0x141   : >> { %v670_v27 = vmax.f32 %v665_v11, 0.0 }
 0x142   : >> { %v635_v16 = vpop.f32.mrf.mxu0 }
 0x143   : >> { %v655_v13 = vadd.f32 %v635_v16, %v492_v47 }
 0x144   : >> { %v637_v22 = vpop.f32.mrf.mxu0 }
 0x145   : >> { %v666_v29 = vadd.f32 %v2239_v9, %v655_v13 }
 0x147   : >> { %v640_v24 = vpop.f32.mrf.mxu0  ;;  %v671_v50 = vmax.f32 %v666_v29, 0.0 }
 0x148   : >> { %v656_v21 = vadd.f32 %v640_v24, %v497_v55 }
 0x149   : >> { %v642_v26 = vpop.f32.mrf.mxu0 }
 0x14a   : >> { %v667_v45 = vadd.f32 %v2239_v9, %v656_v21 }
 0x14c   : >> { %v645_v28 = vpop.f32.mrf.mxu0  ;;  %v672_v62 = vmax.f32 %v667_v45, 0.0 }
 0x14d   : >> { %v657_v51 = vadd.f32 %v645_v28, %v502_v60 }
 0x14e   : >> { %v647_v34 = vpop.f32.mrf.mxu0 }
 0x14f   : >> { %v668_v6 = vadd.f32 %v2239_v9, %v657_v51 }
 0x151   : >> { %v650_v52 = vpop.f32.mrf.mxu0  ;;  %v673_v34 = vmax.f32 %v668_v6, 0.0 }
 0x152   : >> { %v658_v8 = vadd.f32 %v650_v52, %v2194_v4 }
 0x153   : >> { %v652_v53 = vpop.f32.mrf.mxu0 }
 0x154   : >> { %v669_v53 = vadd.f32 %v2239_v9, %v658_v8 }
 0x163   : >> { %v746_v36 = vpop.f32.mrf.mxu1 }
 0x165   : >> { %v748_v38 = vpop.f32.mrf.mxu1 }
 0x168   : >> { %v751_v30 = vpop.f32.mrf.mxu1 }
 0x16a   : >> { %v753_v32 = vpop.f32.mrf.mxu1 }
 0x16d   : >> { %v756_v40 = vpop.f32.mrf.mxu1 }
 0x16f   : >> { %v758_v20 = vpop.f32.mrf.mxu1 }
 0x172   : >> { %v761_v42 = vpop.f32.mrf.mxu1 }
 0x174   : >> { %v763_v44 = vpop.f32.mrf.mxu1 }
 0x177   : >> { %v831_v18 = vpop.f32.mrf.mxu0  ;;  %v950_v2 = vpop.f32.mrf.mxu1 }
 0x178   : >> { %v832_v48 = vadd.f32 %v831_v18, %v741_v10 }
 0x179   : >> { %v833_v5 = vpop.f32.mrf.mxu0  ;;  %v952_v7 = vpop.f32.mrf.mxu1 }
 0x17a   : >> { %v974_v15 = vadd.f32 %v950_v2, %v832_v48 }
 0x17b   : >> { %v836_v17 = vpop.f32.mrf.mxu0  ;;  %v955_v3 = vpop.f32.mrf.mxu1 }
 0x17c   : >> { %v979_v19 = vadd.f32 %v2239_v9, %v974_v15  ;;  %v837_v0 = vadd.f32 %v836_v17, %v746_v36 }
 0x17d   : >> { %v838_v23 = vpop.f32.mrf.mxu0  ;;  %v957_v25 = vpop.f32.mrf.mxu1 }
 0x17e   : >> { %v984_v31 = vmax.f32 %v979_v19, 0.0  ;;  %v975_v33 = vadd.f32 %v955_v3, %v837_v0 }
 0x17f   : >> { %v841_v35 = vpop.f32.mrf.mxu0  ;;  %v960_v37 = vpop.f32.mrf.mxu1 }
 0x180   : >> { %v980_v39 = vadd.f32 %v2239_v9, %v975_v33  ;;  %v842_v41 = vadd.f32 %v841_v35, %v751_v30  ;;  %v989_v43 = vmax.f32 %v670_v27, %v984_v31  ;;  %v674_v30 = vmax.f32 %v669_v53, 0.0 }
 0x181   : >> { %v843_v47 = vpop.f32.mrf.mxu0  ;;  %v962_v49 = vpop.f32.mrf.mxu1 }
 0x182   : >> { %v985_v54 = vmax.f32 %v980_v39, 0.0  ;;  %v976_v55 = vadd.f32 %v960_v37, %v842_v41  ;;  %999 = vrot.lane.b32.xlu0 %v989_v43, %s1341_s5 }
 0x183   : >> { %v846_v56 = vpop.f32.mrf.mxu0  ;;  %v965_v57 = vpop.f32.mrf.mxu1 }
 0x184   : >> { %v990_v58 = vmax.f32 %v671_v50, %v985_v54  ;;  %v981_v59 = vadd.f32 %v2239_v9, %v976_v55  ;;  %v847_v61 = vadd.f32 %v846_v56, %v756_v40 }
 0x185   : >> { %v848_v63 = vpop.f32.mrf.mxu0  ;;  %v967_v1 = vpop.f32.mrf.mxu1 }
 0x186   : >> { %v986_v10 = vmax.f32 %v981_v59, 0.0  ;;  %v977_v60 = vadd.f32 %v965_v57, %v847_v61  ;;  %1001 = vrot.lane.b32.xlu0 %v990_v58, %s1341_s5 }
 0x187   : >> { %v851_v12 = vpop.f32.mrf.mxu0  ;;  %v970_v14 = vpop.f32.mrf.mxu1 }
 0x188   : >> { %v982_v16 = vadd.f32 %v2239_v9, %v977_v60  ;;  %v852_v22 = vadd.f32 %v851_v12, %v761_v42  ;;  %v991_v24 = vmax.f32 %v672_v62, %v986_v10 }
 0x189   : >> { %v853_v26 = vpop.f32.mrf.mxu0  ;;  %v972_v28 = vpop.f32.mrf.mxu1 }
 0x18a   : >> { %v987_v36 = vmax.f32 %v982_v16, 0.0  ;;  %v978_v38 = vadd.f32 %v970_v14, %v852_v22  ;;  %1003 = vrot.lane.b32.xlu1 %v991_v24, %s1341_s5 }
 0x18c   : >> { %v992_v4 = vmax.f32 %v673_v34, %v987_v36  ;;  %v983_v52 = vadd.f32 %v2239_v9, %v978_v38 }
 0x18e   : >> { %v988_v32 = vmax.f32 %v983_v52, 0.0  ;;  %1005 = vrot.lane.b32.xlu1 %v992_v4, %s1341_s5 }
 0x190   : >> { %v993_v40 = vmax.f32 %v674_v30, %v988_v32 }
 0x192   : >> { %1007 = vrot.lane.b32.xlu0 %v993_v40, %s1341_s5 }
 0x1f4   : >> { %v1000_v20 = vpop.permute.xlu0 %999 }
 0x1f5   : >> { %v1014_v42 = vmax.f32 %v989_v43, %v1000_v20 }
 0x1f7   : >> { %1021 = vst.msk [vmem:[%s1020_s29] sm:$0xff] %vm299_vm0, %v1014_v42 }
 0x1f8   : >> { %v1002_v44 = vpop.permute.xlu0 %1001 }
 0x1f9   : >> { %v1015_v46 = vmax.f32 %v990_v58, %v1002_v44 }
 0x1fb   : >> { %1022 = vst.msk [vmem:[%s1020_s29 + $0x8] sm:$0xff] %vm299_vm0, %v1015_v46 }
 0x1fc   : >> { %v1004_v18 = vpop.permute.xlu1 %1003 }
 0x1fd   : >> { %v1016_v2 = vmax.f32 %v991_v24, %v1004_v18 }
 0x1ff   : >> { %1023 = vst.msk [vmem:[%s1020_s29 + $0x10] sm:$0xff] %vm299_vm0, %v1016_v2 }
 0x200   : >> { %v1006_v48 = vpop.permute.xlu1 %1005 }
 0x201   : >> { %v1017_v5 = vmax.f32 %v992_v4, %v1006_v48 }
 0x203   : >> { %1024 = vst.msk [vmem:[%s1020_s29 + $0x18] sm:$0xff] %vm299_vm0, %v1017_v5  ;;  %220 = sbr.rel (!%p218_p5) target bundleno = 17 (0x11), region = 76 }
 0x204   : >> { %v1008_v7 = vpop.permute.xlu0 %1007 }
 0x205   : >> { %v1018_v11 = vmax.f32 %v993_v40, %v1008_v7 }
 0x207   : >> { %1026 = vst.msk [vmem:[%s1020_s29 + $0x20] sm:$0xf] %vm1025_vm1, %v1018_v11 }
 0x208 PF: > { %s13_s14 = sadd.s32 1, %s1334_s14   ;;  %s2240_s12 = smov %s1330_s13 }
 0x209   : > { %p10_p6 = scmp.ge.s32.totalorder %s13_s14, 4   ;;  %s2241_s13 = smov %s2243_s15 }
 0x20b   :  { %12 = sbr.rel (!%p10_p6) target bundleno = 2 (0x2), region = 87 }

// kernel: forward.7
= control target key start
LH: loop header
LB: loop body
LE: loop exit
PB: predicated region body
PF: predicated region fallthrough
CT: control target
= control target key end

     0   :  { %s2208_s12 = smov 0   ;;  %s2210_s13 = smov 0   ;;  %s4307_s0 = inlined_call_operand.vmem [shape: f32[2,38,18,384], index: 0, kind: input, shape index: {}]   ;;  %s4308_s1 = inlined_call_operand.vmem [shape: f32[3,384,256], index: 1, kind: input, shape index: {}]   ;;  %s4309_s2 = inlined_call_operand.vmem [shape: f32[1,256], index: 2, kind: input, shape index: {}]   ;;  %s4310_s3 = inlined_call_operand.vmem [shape: f32[2,18,18,128], index: 3, kind: output, shape index: {}]  }
   0x1   :  { %s2212_s14 = smov 0  }
   0x2 LB: > { %s25_s15 = sadd.s32 1, %s2177_s13  ;;  %p1742_p0 = scmp.ge.s32.totalorder %s2181_s14, 1  ;;  %s2181_s14 = sphi %s2212_s14, %s13_s14   ;;  %s2177_s13 = sphi %s2210_s13, %s4650_s13   ;;  %s2173_s12 = sphi %s2208_s12, %s4649_s12  }
   0x3   : > { %p27_p1 = scmp.ge.s32.totalorder %s25_s15, 2  ;;  %p159_p2 = scmp.lt.s32.totalorder %s2181_s14, 3 }
   0x5   : > { %s4652_s15 = smov (%p27_p1, %s25_s15), 0  ;;  %p160_p3 = pnand %p1742_p0, %p159_p2 }
   0x6   : > { %p194_p4 = scmp.lt.s32.totalorder (!%p160_p3), %s2173_s12, 1  ;;  %s2241_s26 = smov (!%p160_p3), 0  }
   0x7   : > { %163 = sbr.rel (%p160_p3) target bundleno = 554 (0x22a), region = 32 }
   0xc   : > { %v2229_v0 = vld [vmem:[%s4309_s2] sm:$0x3]  ;;  %s4654_s12 = smov (!%p194_p4, %s2173_s12), 1 }
   0xd   : > { %4418 = vst [vmem:[#allocation2_spill] sm:$0xff] %v2229_v0  ;;  %s1976_s18 = smul.u32 2736, %s4654_s12 }
   0xe   : > { %s1977_s19 = smul.u32 432, %s4654_s12 }
   0xf   : > { %s2234_s22 = scalar_lea.vmem %s4307_s0, %s1976_s18 }
  0x10   : > { %s2239_s25 = scalar_lea.vmem %s4310_s3, %s1977_s19 }
  0x11 LB: >> { %v1790_v1 = vld [vmem:[%s4308_s1 + $0x3f8] sm:$0xff]  ;;  %v1789_v3 = vld [vmem:[%s4308_s1 + $0x3f0] sm:$0xff]  ;;  %v1788_v5 = vld [vmem:[%s4308_s1 + $0x3e8] sm:$0xff]  ;;  %s1975_s30 = smul.u32 144, %s2185_s26  ;;  %s2185_s26 = sphi %s2241_s26, %s221_s26  }
  0x12   : >> { %v1854_v2 = vld [vmem:[%s4308_s1 + $0x5f8] sm:$0xff]  ;;  %441 = vmatprep.subr.mxu0 %v1790_v1  ;;  %v1853_v4 = vld [vmem:[%s4308_s1 + $0x5f0] sm:$0xff]  ;;  %v1852_v6 = vld [vmem:[%s4308_s1 + $0x5e8] sm:$0xff] }
  0x13   : >> { %524 = vmatprep.subr.mxu1 %v1854_v2  ;;  %442 = vmatpush1.msra.mxu0 %v1789_v3  ;;  %v1787_v7 = vld [vmem:[%s4308_s1 + $0x3e0] sm:$0xff]  ;;  %v1786_v9 = vld [vmem:[%s4308_s1 + $0x3d8] sm:$0xff]  ;;  %v1785_v11 = vld [vmem:[%s4308_s1 + $0x3d0] sm:$0xff]  ;;  %s2434_s24 = scalar_lea.vmem %s2234_s22, %s1975_s30 }
  0x14   : >> { %525 = vmatpush1.msra.mxu1 %v1853_v4  ;;  %v1851_v8 = vld [vmem:[%s4308_s1 + $0x5e0] sm:$0xff]  ;;  %443 = vmatprep.subr.mxu0 %v1788_v5  ;;  %v1850_v10 = vld [vmem:[%s4308_s1 + $0x5d8] sm:$0xff]  ;;  %v1849_v12 = vld [vmem:[%s4308_s1 + $0x5d0] sm:$0xff] }
  0x15   : >> { %526 = vmatprep.subr.mxu1 %v1852_v6  ;;  %444 = vmatpush1.msra.mxu0 %v1787_v7  ;;  %v1784_v13 = vld [vmem:[%s4308_s1 + $0x3c8] sm:$0xff]  ;;  %v1783_v15 = vld [vmem:[%s4308_s1 + $0x3c0] sm:$0xff]  ;;  %v1782_v17 = vld [vmem:[%s4308_s1 + $0x3b8] sm:$0xff]  ;;  %v4313_v7 = vmov 0.0  }
  0x16   : >> { %527 = vmatpush1.msra.mxu1 %v1851_v8  ;;  %v1848_v14 = vld [vmem:[%s4308_s1 + $0x5c8] sm:$0xff]  ;;  %445 = vmatprep.subr.mxu0 %v1786_v9  ;;  %v1847_v16 = vld [vmem:[%s4308_s1 + $0x5c0] sm:$0xff]  ;;  %v1846_v18 = vld [vmem:[%s4308_s1 + $0x5b8] sm:$0xff] }
  0x17   : >> { %528 = vmatprep.subr.mxu1 %v1850_v10  ;;  %446 = vmatpush1.msra.mxu0 %v1785_v11  ;;  %v1781_v19 = vld [vmem:[%s4308_s1 + $0x3b0] sm:$0xff]  ;;  %v1780_v21 = vld [vmem:[%s4308_s1 + $0x3a8] sm:$0xff]  ;;  %v1779_v23 = vld [vmem:[%s4308_s1 + $0x3a0] sm:$0xff] }
  0x18   : >> { %529 = vmatpush1.msra.mxu1 %v1849_v12  ;;  %447 = vmatprep.subr.mxu0 %v1784_v13  ;;  %v1845_v20 = vld [vmem:[%s4308_s1 + $0x5b0] sm:$0xff]  ;;  %v1844_v22 = vld [vmem:[%s4308_s1 + $0x5a8] sm:$0xff]  ;;  %v1843_v24 = vld [vmem:[%s4308_s1 + $0x5a0] sm:$0xff] }
  0x19   : >> { %530 = vmatprep.subr.mxu1 %v1848_v14  ;;  %448 = vmatpush1.msra.mxu0 %v1783_v15  ;;  %v1778_v25 = vld [vmem:[%s4308_s1 + $0x398] sm:$0xff]  ;;  %v1777_v27 = vld [vmem:[%s4308_s1 + $0x390] sm:$0xff]  ;;  %v1776_v29 = vld [vmem:[%s4308_s1 + $0x388] sm:$0xff] }
  0x1a   : >> { %531 = vmatpush1.msra.mxu1 %v1847_v16  ;;  %449 = vmatprep.subr.mxu0 %v1782_v17  ;;  %v1842_v26 = vld [vmem:[%s4308_s1 + $0x598] sm:$0xff]  ;;  %v1841_v28 = vld [vmem:[%s4308_s1 + $0x590] sm:$0xff]  ;;  %v1840_v30 = vld [vmem:[%s4308_s1 + $0x588] sm:$0xff] }
  0x1b   : >> { %532 = vmatprep.subr.mxu1 %v1846_v18  ;;  %450 = vmatpush1.msra.mxu0 %v1781_v19  ;;  %v1775_v31 = vld [vmem:[%s4308_s1 + $0x380] sm:$0xff]  ;;  %v1774_v33 = vld [vmem:[%s4308_s1 + $0x378] sm:$0xff]  ;;  %v1773_v35 = vld [vmem:[%s4308_s1 + $0x370] sm:$0xff] }
  0x1c   : >> { %533 = vmatpush1.msra.mxu1 %v1845_v20  ;;  %451 = vmatprep.subr.mxu0 %v1780_v21  ;;  %v1839_v32 = vld [vmem:[%s4308_s1 + $0x580] sm:$0xff]  ;;  %v1838_v34 = vld [vmem:[%s4308_s1 + $0x578] sm:$0xff]  ;;  %v1837_v36 = vld [vmem:[%s4308_s1 + $0x570] sm:$0xff] }
  0x1d   : >> { %534 = vmatprep.subr.mxu1 %v1844_v22  ;;  %452 = vmatpush1.msra.mxu0 %v1779_v23  ;;  %v1772_v37 = vld [vmem:[%s4308_s1 + $0x368] sm:$0xff]  ;;  %v1771_v39 = vld [vmem:[%s4308_s1 + $0x360] sm:$0xff]  ;;  %v1770_v41 = vld [vmem:[%s4308_s1 + $0x358] sm:$0xff] }
  0x1e   : >> { %535 = vmatpush1.msra.mxu1 %v1843_v24  ;;  %453 = vmatprep.subr.mxu0 %v1778_v25  ;;  %v1836_v38 = vld [vmem:[%s4308_s1 + $0x568] sm:$0xff]  ;;  %v1835_v40 = vld [vmem:[%s4308_s1 + $0x560] sm:$0xff]  ;;  %v1834_v42 = vld [vmem:[%s4308_s1 + $0x558] sm:$0xff] }
  0x1f   : >> { %536 = vmatprep.subr.mxu1 %v1842_v26  ;;  %454 = vmatpush1.msra.mxu0 %v1777_v27  ;;  %v1769_v43 = vld [vmem:[%s4308_s1 + $0x350] sm:$0xff]  ;;  %v1768_v45 = vld [vmem:[%s4308_s1 + $0x348] sm:$0xff]  ;;  %v1767_v47 = vld [vmem:[%s4308_s1 + $0x340] sm:$0xff] }
  0x20   : >> { %537 = vmatpush1.msra.mxu1 %v1841_v28  ;;  %455 = vmatprep.subr.mxu0 %v1776_v29  ;;  %v1833_v44 = vld [vmem:[%s4308_s1 + $0x550] sm:$0xff]  ;;  %v1832_v46 = vld [vmem:[%s4308_s1 + $0x548] sm:$0xff]  ;;  %v1831_v48 = vld [vmem:[%s4308_s1 + $0x540] sm:$0xff] }
  0x21   : >> { %538 = vmatprep.subr.mxu1 %v1840_v30  ;;  %456 = vmatpush1.msra.mxu0 %v1775_v31  ;;  %v1766_v49 = vld [vmem:[%s4308_s1 + $0x338] sm:$0xff]  ;;  %v1765_v51 = vld [vmem:[%s4308_s1 + $0x330] sm:$0xff]  ;;  %v1764_v53 = vld [vmem:[%s4308_s1 + $0x328] sm:$0xff] }
  0x22   : >> { %539 = vmatpush1.msra.mxu1 %v1839_v32  ;;  %457 = vmatprep.subr.mxu0 %v1774_v33  ;;  %v1830_v50 = vld [vmem:[%s4308_s1 + $0x538] sm:$0xff]  ;;  %v1829_v52 = vld [vmem:[%s4308_s1 + $0x530] sm:$0xff]  ;;  %v1828_v54 = vld [vmem:[%s4308_s1 + $0x528] sm:$0xff] }
  0x23   : >> { %540 = vmatprep.subr.mxu1 %v1838_v34  ;;  %458 = vmatpush1.msra.mxu0 %v1773_v35  ;;  %v1763_v55 = vld [vmem:[%s4308_s1 + $0x320] sm:$0xff]  ;;  %v1762_v57 = vld [vmem:[%s4308_s1 + $0x318] sm:$0xff]  ;;  %v1761_v59 = vld [vmem:[%s4308_s1 + $0x310] sm:$0xff] }
  0x24   : >> { %541 = vmatpush1.msra.mxu1 %v1837_v36  ;;  %459 = vmatprep.subr.mxu0 %v1772_v37  ;;  %v1827_v56 = vld [vmem:[%s4308_s1 + $0x520] sm:$0xff]  ;;  %v1826_v58 = vld [vmem:[%s4308_s1 + $0x518] sm:$0xff]  ;;  %v1825_v60 = vld [vmem:[%s4308_s1 + $0x510] sm:$0xff] }
  0x25   : >> { %542 = vmatprep.subr.mxu1 %v1836_v38  ;;  %460 = vmatpush1.msra.mxu0 %v1771_v39  ;;  %v1760_v61 = vld [vmem:[%s4308_s1 + $0x308] sm:$0xff]  ;;  %v1759_v63 = vld [vmem:[%s4308_s1 + $0x300] sm:$0xff]  ;;  %v1822_v2 = vld [vmem:[%s4308_s1 + $0x4f8] sm:$0xff] }
  0x26   : >> { %543 = vmatpush1.msra.mxu1 %v1835_v40  ;;  %461 = vmatprep.subr.mxu0 %v1770_v41  ;;  %v1824_v62 = vld [vmem:[%s4308_s1 + $0x508] sm:$0xff]  ;;  %v1823_v1 = vld [vmem:[%s4308_s1 + $0x500] sm:$0xff]  ;;  %v1752_v3 = vld [vmem:[%s2434_s24 + $0x58] sm:$0xff] }
  0x27   : >> { %544 = vmatprep.subr.mxu1 %v1834_v42  ;;  %462 = vmatpush1.msra.mxu0 %v1769_v43  ;;  %v266_v4 = vld [vmem:[%s4308_s1 + $0xf8] sm:$0xff]  ;;  %v1821_v5 = vld [vmem:[%s4308_s1 + $0x4f0] sm:$0xff]  ;;  %v1820_v8 = vld [vmem:[%s4308_s1 + $0x4e8] sm:$0xff] }
  0x28   : >> { %545 = vmatpush1.msra.mxu1 %v1833_v44  ;;  %463 = vmatprep.subr.mxu0 %v1768_v45  ;;  %v265_v6 = vld [vmem:[%s4308_s1 + $0xf0] sm:$0xff]  ;;  %v264_v9 = vld [vmem:[%s4308_s1 + $0xe8] sm:$0xff]  ;;  %v1819_v10 = vld [vmem:[%s4308_s1 + $0x4e0] sm:$0xff] }
  0x29   : >> { %546 = vmatprep.subr.mxu1 %v1832_v46  ;;  %464 = vmatpush1.msra.mxu0 %v1767_v47  ;;  %v263_v11 = vld [vmem:[%s4308_s1 + $0xe0] sm:$0xff]  ;;  %v1818_v12 = vld [vmem:[%s4308_s1 + $0x4d8] sm:$0xff]  ;;  %v1817_v14 = vld [vmem:[%s4308_s1 + $0x4d0] sm:$0xff] }
  0x2a   : >> { %547 = vmatpush1.msra.mxu1 %v1831_v48  ;;  %465 = vmatprep.subr.mxu0 %v1766_v49  ;;  %v262_v13 = vld [vmem:[%s4308_s1 + $0xd8] sm:$0xff]  ;;  %v261_v15 = vld [vmem:[%s4308_s1 + $0xd0] sm:$0xff]  ;;  %v1816_v16 = vld [vmem:[%s4308_s1 + $0x4c8] sm:$0xff] }
  0x2b   : >> { %548 = vmatprep.subr.mxu1 %v1830_v50  ;;  %466 = vmatpush1.msra.mxu0 %v1765_v51  ;;  %v260_v17 = vld [vmem:[%s4308_s1 + $0xc8] sm:$0xff]  ;;  %v1815_v18 = vld [vmem:[%s4308_s1 + $0x4c0] sm:$0xff]  ;;  %v1814_v20 = vld [vmem:[%s4308_s1 + $0x4b8] sm:$0xff] }
  0x2c   : >> { %549 = vmatpush1.msra.mxu1 %v1829_v52  ;;  %467 = vmatprep.subr.mxu0 %v1764_v53  ;;  %v259_v19 = vld [vmem:[%s4308_s1 + $0xc0] sm:$0xff]  ;;  %v258_v21 = vld [vmem:[%s4308_s1 + $0xb8] sm:$0xff]  ;;  %v1813_v22 = vld [vmem:[%s4308_s1 + $0x4b0] sm:$0xff] }
  0x2d   : >> { %550 = vmatprep.subr.mxu1 %v1828_v54  ;;  %468 = vmatpush1.msra.mxu0 %v1763_v55  ;;  %v257_v23 = vld [vmem:[%s4308_s1 + $0xb0] sm:$0xff]  ;;  %v1812_v24 = vld [vmem:[%s4308_s1 + $0x4a8] sm:$0xff]  ;;  %v1811_v26 = vld [vmem:[%s4308_s1 + $0x4a0] sm:$0xff] }
  0x2e   : >> { %551 = vmatpush1.msra.mxu1 %v1827_v56  ;;  %469 = vmatprep.subr.mxu0 %v1762_v57  ;;  %v256_v25 = vld [vmem:[%s4308_s1 + $0xa8] sm:$0xff]  ;;  %v255_v27 = vld [vmem:[%s4308_s1 + $0xa0] sm:$0xff]  ;;  %v1810_v28 = vld [vmem:[%s4308_s1 + $0x498] sm:$0xff] }
  0x2f   : >> { %552 = vmatprep.subr.mxu1 %v1826_v58  ;;  %470 = vmatpush1.msra.mxu0 %v1761_v59  ;;  %v254_v29 = vld [vmem:[%s4308_s1 + $0x98] sm:$0xff]  ;;  %v1809_v30 = vld [vmem:[%s4308_s1 + $0x490] sm:$0xff]  ;;  %v1808_v32 = vld [vmem:[%s4308_s1 + $0x488] sm:$0xff] }
  0x30   : >> { %553 = vmatpush1.msra.mxu1 %v1825_v60  ;;  %471 = vmatprep.subr.mxu0 %v1760_v61  ;;  %v253_v31 = vld [vmem:[%s4308_s1 + $0x90] sm:$0xff]  ;;  %v252_v33 = vld [vmem:[%s4308_s1 + $0x88] sm:$0xff]  ;;  %v1807_v34 = vld [vmem:[%s4308_s1 + $0x480] sm:$0xff] }
  0x31   : >> { %554 = vmatprep.subr.mxu1 %v1824_v62  ;;  %472 = vmatpush1.msra.mxu0 %v1759_v63  ;;  %v251_v35 = vld [vmem:[%s4308_s1 + $0x80] sm:$0xff]  ;;  %v1806_v36 = vld [vmem:[%s4308_s1 + $0x478] sm:$0xff]  ;;  %v2549_v38 = vld [vmem:[%s4308_s1 + $0x470] sm:$0xff] }
  0x32   : >> { %555 = vmatpush1.msra.mxu1 %v1823_v1  ;;  %588 = vmatprep.mubr.f32.mxu1 %v4313_v7  ;;  %v250_v37 = vld [vmem:[%s4308_s1 + $0x78] sm:$0xff]  ;;  %v249_v39 = vld [vmem:[%s4308_s1 + $0x70] sm:$0xff]  ;;  %v2557_v40 = vld [vmem:[%s4308_s1 + $0x468] sm:$0xff] }
  0x33   : >> { %473 = vmatprep.subr.mxu0 %v1822_v2  ;;  %589 = vmatmul.mubr.f32.vlgmr.msra.gmra.mxu1 %v1752_v3  ;;  %v248_v41 = vld [vmem:[%s4308_s1 + $0x68] sm:$0xff]  ;;  %v2565_v42 = vld [vmem:[%s4308_s1 + $0x460] sm:$0xff]  ;;  %v2574_v44 = vld [vmem:[%s4308_s1 + $0x458] sm:$0xff] }
  0x34   : >> { %607 = vmatprep.subr.mxu1 %v266_v4  ;;  %474 = vmatpush2.msra.mxu0 %v1821_v5  ;;  %v247_v43 = vld [vmem:[%s4308_s1 + $0x60] sm:$0xff]  ;;  %v246_v45 = vld [vmem:[%s4308_s1 + $0x58] sm:$0xff]  ;;  %v2583_v46 = vld [vmem:[%s4308_s1 + $0x450] sm:$0xff] }
  0x35   : >> { %608 = vmatpush1.msra.mxu1 %v265_v6  ;;  %475 = vmatprep.subr.mxu0 %v1820_v8  ;;  %v245_v47 = vld [vmem:[%s4308_s1 + $0x50] sm:$0xff]  ;;  %v2592_v48 = vld [vmem:[%s4308_s1 + $0x448] sm:$0xff]  ;;  %v2601_v50 = vld [vmem:[%s4308_s1 + $0x440] sm:$0xff] }
  0x36   : >> { %609 = vmatprep.subr.mxu1 %v264_v9  ;;  %476 = vmatpush2.msra.mxu0 %v1819_v10  ;;  %v244_v49 = vld [vmem:[%s4308_s1 + $0x48] sm:$0xff]  ;;  %v243_v51 = vld [vmem:[%s4308_s1 + $0x40] sm:$0xff]  ;;  %v2610_v52 = vld [vmem:[%s4308_s1 + $0x438] sm:$0xff] }
  0x37   : >> { %610 = vmatpush1.msra.mxu1 %v263_v11  ;;  %477 = vmatprep.subr.mxu0 %v1818_v12  ;;  %v242_v53 = vld [vmem:[%s4308_s1 + $0x38] sm:$0xff]  ;;  %v2619_v54 = vld [vmem:[%s4308_s1 + $0x430] sm:$0xff]  ;;  %v2628_v56 = vld [vmem:[%s4308_s1 + $0x428] sm:$0xff] }
  0x38   : >> { %611 = vmatprep.subr.mxu1 %v262_v13  ;;  %478 = vmatpush2.msra.mxu0 %v1817_v14  ;;  %v241_v55 = vld [vmem:[%s4308_s1 + $0x30] sm:$0xff]  ;;  %v240_v57 = vld [vmem:[%s4308_s1 + $0x28] sm:$0xff]  ;;  %v2637_v58 = vld [vmem:[%s4308_s1 + $0x420] sm:$0xff] }
  0x39   : >> { %612 = vmatpush1.msra.mxu1 %v261_v15  ;;  %479 = vmatprep.subr.mxu0 %v1816_v16  ;;  %v239_v59 = vld [vmem:[%s4308_s1 + $0x20] sm:$0xff]  ;;  %v2646_v60 = vld [vmem:[%s4308_s1 + $0x418] sm:$0xff]  ;;  %v2655_v62 = vld [vmem:[%s4308_s1 + $0x410] sm:$0xff] }
  0x3a   : >> { %613 = vmatprep.subr.mxu1 %v260_v17  ;;  %480 = vmatpush2.msra.mxu0 %v1815_v18  ;;  %v238_v61 = vld [vmem:[%s4308_s1 + $0x18] sm:$0xff]  ;;  %v237_v63 = vld [vmem:[%s4308_s1 + $0x10] sm:$0xff]  ;;  %v2664_v1 = vld [vmem:[%s4308_s1 + $0x408] sm:$0xff] }
  0x3b   : >> { %614 = vmatpush1.msra.mxu1 %v259_v19  ;;  %481 = vmatprep.subr.mxu0 %v1814_v20  ;;  %v236_v2 = vld [vmem:[%s4308_s1 + $0x8] sm:$0xff]  ;;  %v2673_v3 = vld [vmem:[%s4308_s1 + $0x400] sm:$0xff]  ;;  %v1751_v4 = vld [vmem:[%s2434_s24 + $0x50] sm:$0xff] }
  0x3c   : >> { %615 = vmatprep.subr.mxu1 %v258_v21  ;;  %482 = vmatpush2.msra.mxu0 %v1813_v22  ;;  %v235_v5 = vld [vmem:[%s4308_s1] sm:$0xff]  ;;  %v1750_v6 = vld [vmem:[%s2434_s24 + $0x48] sm:$0xff]  ;;  %v298_v8 = vld [vmem:[%s4308_s1 + $0x1f8] sm:$0xff] }
  0x3d   : >> { %616 = vmatpush1.msra.mxu1 %v257_v23  ;;  %483 = vmatprep.subr.mxu0 %v1812_v24  ;;  %v2688_v9 = vld [vmem:[%s4308_s1 + $0x2f8] sm:$0xff]  ;;  %v297_v10 = vld [vmem:[%s4308_s1 + $0x1f0] sm:$0xff]  ;;  %v296_v12 = vld [vmem:[%s4308_s1 + $0x1e8] sm:$0xff] }
  0x3e   : >> { %617 = vmatprep.subr.mxu1 %v256_v25  ;;  %484 = vmatpush2.msra.mxu0 %v1811_v26  ;;  %v2697_v11 = vld [vmem:[%s4308_s1 + $0x2f0] sm:$0xff]  ;;  %v2705_v13 = vld [vmem:[%s4308_s1 + $0x2e8] sm:$0xff]  ;;  %v295_v14 = vld [vmem:[%s4308_s1 + $0x1e0] sm:$0xff] }
  0x3f   : >> { %618 = vmatpush1.msra.mxu1 %v255_v27  ;;  %485 = vmatprep.subr.mxu0 %v1810_v28  ;;  %v2714_v15 = vld [vmem:[%s4308_s1 + $0x2e0] sm:$0xff]  ;;  %v294_v16 = vld [vmem:[%s4308_s1 + $0x1d8] sm:$0xff]  ;;  %v293_v18 = vld [vmem:[%s4308_s1 + $0x1d0] sm:$0xff] }
  0x40   : >> { %619 = vmatprep.subr.mxu1 %v254_v29  ;;  %486 = vmatpush2.msra.mxu0 %v1809_v30  ;;  %v2723_v17 = vld [vmem:[%s4308_s1 + $0x2d8] sm:$0xff]  ;;  %v2732_v19 = vld [vmem:[%s4308_s1 + $0x2d0] sm:$0xff]  ;;  %v292_v20 = vld [vmem:[%s4308_s1 + $0x1c8] sm:$0xff] }
  0x41   : >> { %620 = vmatpush1.msra.mxu1 %v253_v31  ;;  %487 = vmatprep.subr.mxu0 %v1808_v32  ;;  %v2741_v21 = vld [vmem:[%s4308_s1 + $0x2c8] sm:$0xff]  ;;  %v291_v22 = vld [vmem:[%s4308_s1 + $0x1c0] sm:$0xff]  ;;  %v290_v24 = vld [vmem:[%s4308_s1 + $0x1b8] sm:$0xff] }
  0x42   : >> { %621 = vmatprep.subr.mxu1 %v252_v33  ;;  %488 = vmatpush2.msra.mxu0 %v1807_v34  ;;  %v2750_v23 = vld [vmem:[%s4308_s1 + $0x2c0] sm:$0xff]  ;;  %v2759_v25 = vld [vmem:[%s4308_s1 + $0x2b8] sm:$0xff]  ;;  %v289_v26 = vld [vmem:[%s4308_s1 + $0x1b0] sm:$0xff] }
  0x43   : >> { %622 = vmatpush1.msra.mxu1 %v251_v35  ;;  %489 = vmatprep.subr.mxu0 %v1806_v36  ;;  %v2768_v27 = vld [vmem:[%s4308_s1 + $0x2b0] sm:$0xff]  ;;  %v288_v28 = vld [vmem:[%s4308_s1 + $0x1a8] sm:$0xff]  ;;  %v287_v30 = vld [vmem:[%s4308_s1 + $0x1a0] sm:$0xff] }
  0x44   : >> { %623 = vmatprep.subr.mxu1 %v250_v37  ;;  %490 = vmatpush2.msra.mxu0 %v2549_v38  ;;  %v2777_v29 = vld [vmem:[%s4308_s1 + $0x2a8] sm:$0xff]  ;;  %v2786_v31 = vld [vmem:[%s4308_s1 + $0x2a0] sm:$0xff]  ;;  %v286_v32 = vld [vmem:[%s4308_s1 + $0x198] sm:$0xff] }
  0x45   : >> { %624 = vmatpush1.msra.mxu1 %v249_v39  ;;  %491 = vmatprep.subr.mxu0 %v2557_v40  ;;  %v2795_v33 = vld [vmem:[%s4308_s1 + $0x298] sm:$0xff]  ;;  %v285_v34 = vld [vmem:[%s4308_s1 + $0x190] sm:$0xff]  ;;  %v284_v36 = vld [vmem:[%s4308_s1 + $0x188] sm:$0xff] }
  0x46   : >> { %625 = vmatprep.subr.mxu1 %v248_v41  ;;  %492 = vmatpush2.msra.mxu0 %v2565_v42  ;;  %v2804_v35 = vld [vmem:[%s4308_s1 + $0x290] sm:$0xff]  ;;  %v2813_v37 = vld [vmem:[%s4308_s1 + $0x288] sm:$0xff]  ;;  %v283_v39 = vld [vmem:[%s4308_s1 + $0x180] sm:$0xff] }
  0x47   : >> { %626 = vmatpush1.msra.mxu1 %v247_v43  ;;  %493 = vmatprep.subr.mxu0 %v2574_v44  ;;  %v2822_v41 = vld [vmem:[%s4308_s1 + $0x280] sm:$0xff]  ;;  %v282_v43 = vld [vmem:[%s4308_s1 + $0x178] sm:$0xff]  ;;  %v3026_v0 = vld [vmem:[%s4308_s1 + $0x6f0] sm:$0xff] }
  0x48   : >> { %627 = vmatprep.subr.mxu1 %v246_v45  ;;  %494 = vmatpush2.msra.mxu0 %v2583_v46  ;;  %v2831_v45 = vld [vmem:[%s4308_s1 + $0x278] sm:$0xff] }
  0x49   : >> { %628 = vmatpush1.msra.mxu1 %v245_v47  ;;  %495 = vmatprep.subr.mxu0 %v2592_v48  ;;  %v281_v47 = vld [vmem:[%s4308_s1 + $0x170] sm:$0xff] }
  0x4a   : >> { %629 = vmatprep.subr.mxu1 %v244_v49  ;;  %496 = vmatpush2.msra.mxu0 %v2601_v50  ;;  %v2840_v49 = vld [vmem:[%s4308_s1 + $0x270] sm:$0xff] }
  0x4b   : >> { %630 = vmatpush1.msra.mxu1 %v243_v51  ;;  %497 = vmatprep.subr.mxu0 %v2610_v52  ;;  %v280_v51 = vld [vmem:[%s4308_s1 + $0x168] sm:$0xff] }
  0x4c   : >> { %631 = vmatprep.subr.mxu1 %v242_v53  ;;  %498 = vmatpush2.msra.mxu0 %v2619_v54  ;;  %v2849_v53 = vld [vmem:[%s4308_s1 + $0x268] sm:$0xff] }
  0x4d   : >> { %632 = vmatpush1.msra.mxu1 %v241_v55  ;;  %499 = vmatprep.subr.mxu0 %v2628_v56  ;;  %v279_v55 = vld [vmem:[%s4308_s1 + $0x160] sm:$0xff] }
  0x4e   : >> { %633 = vmatprep.subr.mxu1 %v240_v57  ;;  %500 = vmatpush2.msra.mxu0 %v2637_v58  ;;  %v2858_v57 = vld [vmem:[%s4308_s1 + $0x260] sm:$0xff] }
  0x4f   : >> { %634 = vmatpush1.msra.mxu1 %v239_v59  ;;  %501 = vmatprep.subr.mxu0 %v2646_v60  ;;  %v278_v59 = vld [vmem:[%s4308_s1 + $0x158] sm:$0xff] }
  0x50   : >> { %635 = vmatprep.subr.mxu1 %v238_v61  ;;  %502 = vmatpush2.msra.mxu0 %v2655_v62  ;;  %v2867_v61 = vld [vmem:[%s4308_s1 + $0x258] sm:$0xff] }
  0x51   : >> { %636 = vmatpush1.msra.mxu1 %v237_v63  ;;  %503 = vmatprep.subr.mxu0 %v2664_v1  ;;  %v277_v63 = vld [vmem:[%s4308_s1 + $0x150] sm:$0xff] }
  0x52   : >> { %637 = vmatprep.subr.mxu1 %v236_v2  ;;  %504 = vmatpush2.msra.mxu0 %v2673_v3  ;;  %v2876_v2 = vld [vmem:[%s4308_s1 + $0x250] sm:$0xff] }
  0x53   : >> { %505 = vmatprep.mubr.f32.mxu0 %v1751_v4  ;;  %638 = vmatpush1.msra.mxu1 %v235_v5  ;;  %v1754_v4 = vld [vmem:[%s2434_s24 + $0x68] sm:$0xff] }
  0x54   : >> { %506 = vmatmul.mubr.f32.vlgmr.msra.gmra.mxu0 %v1750_v6  ;;  %639 = vmatprep.subr.mxu1 %v298_v8  ;;  %v2884_v5 = vld [vmem:[%s4308_s1 + $0x148] sm:$0xff]  ;;  %v1753_v8 = vld [vmem:[%s2434_s24 + $0x60] sm:$0xff] }
  0x55   : >> { %690 = vmatprep.subr.mxu0 %v2688_v9  ;;  %640 = vmatpush2.msra.mxu1 %v297_v10  ;;  %4419 = vst [vmem:[#allocation3_spill] sm:$0xff] %v2884_v5  ;;  %v2889_v6 = vld [vmem:[%s4308_s1 + $0x248] sm:$0xff]  ;;  %v1755_v10 = vld [vmem:[%s2434_s24 + $0x70] sm:$0xff] }
  0x56   : >> { %691 = vmatpush1.msra.mxu0 %v2697_v11  ;;  %641 = vmatprep.subr.mxu1 %v296_v12  ;;  %v2898_v12 = vld [vmem:[%s4308_s1 + $0x140] sm:$0xff] }
  0x57   : >> { %692 = vmatprep.subr.mxu0 %v2705_v13  ;;  %642 = vmatpush2.msra.mxu1 %v295_v14  ;;  %4420 = vst [vmem:[#allocation4_spill] sm:$0xff] %v2898_v12  ;;  %v2903_v14 = vld [vmem:[%s4308_s1 + $0x240] sm:$0xff] }
  0x58   : >> { %693 = vmatpush1.msra.mxu0 %v2714_v15  ;;  %643 = vmatprep.subr.mxu1 %v294_v16  ;;  %v2910_v16 = vld [vmem:[%s4308_s1 + $0x138] sm:$0xff] }
  0x59   : >> { %694 = vmatprep.subr.mxu0 %v2723_v17  ;;  %644 = vmatpush2.msra.mxu1 %v293_v18  ;;  %4421 = vst [vmem:[#allocation5_spill] sm:$0xff] %v2910_v16  ;;  %v2915_v18 = vld [vmem:[%s4308_s1 + $0x238] sm:$0xff] }
  0x5a   : >> { %695 = vmatpush1.msra.mxu0 %v2732_v19  ;;  %645 = vmatprep.subr.mxu1 %v292_v20  ;;  %v2920_v20 = vld [vmem:[%s4308_s1 + $0x130] sm:$0xff] }
  0x5b   : >> { %696 = vmatprep.subr.mxu0 %v2741_v21  ;;  %646 = vmatpush2.msra.mxu1 %v291_v22  ;;  %4422 = vst [vmem:[#allocation6_spill] sm:$0xff] %v2920_v20  ;;  %v2925_v22 = vld [vmem:[%s4308_s1 + $0x230] sm:$0xff] }
  0x5c   : >> { %697 = vmatpush1.msra.mxu0 %v2750_v23  ;;  %647 = vmatprep.subr.mxu1 %v290_v24  ;;  %v1757_v24 = vld [vmem:[%s2434_s24 + $0x80] sm:$0x3] }
  0x5d   : >> { %698 = vmatprep.subr.mxu0 %v2759_v25  ;;  %648 = vmatpush2.msra.mxu1 %v289_v26  ;;  %v2935_v26 = vld [vmem:[%s4308_s1 + $0x128] sm:$0xff] }
  0x5e   : >> { %699 = vmatpush1.msra.mxu0 %v2768_v27  ;;  %649 = vmatprep.subr.mxu1 %v288_v28  ;;  %4423 = vst [vmem:[#allocation7_spill] sm:$0xff] %v2935_v26  ;;  %v2940_v28 = vld [vmem:[%s4308_s1 + $0x228] sm:$0xff] }
  0x5f   : >> { %700 = vmatprep.subr.mxu0 %v2777_v29  ;;  %650 = vmatpush2.msra.mxu1 %v287_v30  ;;  %v1756_v30 = vld [vmem:[%s2434_s24 + $0x78] sm:$0x3] }
  0x60   : >> { %701 = vmatpush1.msra.mxu0 %v2786_v31  ;;  %651 = vmatprep.subr.mxu1 %v286_v32  ;;  %v1758_v32 = vld [vmem:[%s2434_s24 + $0x88] sm:$0x3] }
  0x61   : >> { %702 = vmatprep.subr.mxu0 %v2795_v33  ;;  %652 = vmatpush2.msra.mxu1 %v285_v34  ;;  %v2950_v34 = vld [vmem:[%s4308_s1 + $0x120] sm:$0xff] }
  0x62   : >> { %703 = vmatpush1.msra.mxu0 %v2804_v35  ;;  %653 = vmatprep.subr.mxu1 %v284_v36  ;;  %4424 = vst [vmem:[#allocation8_spill] sm:$0xff] %v2950_v34  ;;  %v2955_v36 = vld [vmem:[%s4308_s1 + $0x220] sm:$0xff] }
  0x63   : >> { %704 = vmatprep.subr.mxu0 %v2813_v37  ;;  %654 = vmatpush2.msra.mxu1 %v283_v39  ;;  %v2962_v39 = vld [vmem:[%s4308_s1 + $0x118] sm:$0xff] }
  0x64   : >> { %705 = vmatpush1.msra.mxu0 %v2822_v41  ;;  %655 = vmatprep.subr.mxu1 %v282_v43  ;;  %4425 = vst [vmem:[#allocation9_spill] sm:$0xff] %v2962_v39  ;;  %v2967_v43 = vld [vmem:[%s4308_s1 + $0x218] sm:$0xff] }
  0x65   : >> { %706 = vmatprep.subr.mxu0 %v2831_v45  ;;  %656 = vmatpush2.msra.mxu1 %v281_v47  ;;  %v2972_v47 = vld [vmem:[%s4308_s1 + $0x110] sm:$0xff] }
  0x66   : >> { %707 = vmatpush1.msra.mxu0 %v2840_v49  ;;  %657 = vmatprep.subr.mxu1 %v280_v51  ;;  %4426 = vst [vmem:[#allocation10_spill] sm:$0xff] %v2972_v47  ;;  %v2977_v51 = vld [vmem:[%s4308_s1 + $0x210] sm:$0xff] }
  0x67   : >> { %708 = vmatprep.subr.mxu0 %v2849_v53  ;;  %658 = vmatpush2.msra.mxu1 %v279_v55  ;;  %v2984_v55 = vld [vmem:[%s4308_s1 + $0x108] sm:$0xff] }
  0x68   : >> { %709 = vmatpush1.msra.mxu0 %v2858_v57  ;;  %659 = vmatprep.subr.mxu1 %v278_v59  ;;  %4427 = vst [vmem:[#allocation11_spill] sm:$0xff] %v2984_v55  ;;  %v2989_v59 = vld [vmem:[%s4308_s1 + $0x208] sm:$0xff] }
  0x69   : >> { %710 = vmatprep.subr.mxu0 %v2867_v61  ;;  %660 = vmatpush2.msra.mxu1 %v277_v63  ;;  %v2996_v63 = vld [vmem:[%s4308_s1 + $0x100] sm:$0xff] }
  0x6a   : >> { %711 = vmatpush1.msra.mxu0 %v2876_v2  ;;  %511 = vmatprep.mubr.f32.mxu0 %v1754_v4  ;;  %4428 = vst [vmem:[#allocation12_spill] sm:$0xff] %v2996_v63  ;;  %v227_v4 = vld [vmem:[%s2434_s24 + $0x8] sm:$0xff] }
  0x6b   : >> { %594 = vmatprep.mubr.f32.mxu1 %v4313_v7  ;;  %661 = vmatprep.subr.mxu1 %v2884_v5  ;;  %v234_v5 = vld [vmem:[%s2434_s24 + $0x40] sm:$0x3] }
  0x6c   : >> { %712 = vmatprep.subr.mxu0 %v2889_v6  ;;  %512 = vmatmul.mubr.f32.gmra.mxu0 %v1753_v8  ;;  %v3004_v8 = vld [vmem:[%s4308_s1 + $0x200] sm:$0xff] }
  0x6d   : >> { %595 = vmatmul.mubr.f32.gmra.mxu1 %v1755_v10  ;;  %713 = vmatpush1.msra.mxu0 %v2903_v14  ;;  %v226_v10 = vld [vmem:[%s2434_s24] sm:$0xff] }
  0x6e   : >> { %662 = vmatpush2.msra.mxu1 %v2898_v12  ;;  %714 = vmatprep.subr.mxu0 %v2915_v18  ;;  %v232_v12 = vld [vmem:[%s2434_s24 + $0x30] sm:$0x3] }
  0x6f   : >> { %663 = vmatprep.subr.mxu1 %v2910_v16  ;;  %715 = vmatpush1.msra.mxu0 %v2925_v22  ;;  %v3113_v16 = vld [vmem:[%s4308_s1 + $0x6b8] sm:$0xff] }
  0x70   : >> { %664 = vmatpush2.msra.mxu1 %v2920_v20  ;;  %517 = vmatprep.mubr.f32.mxu0 %v1757_v24  ;;  %v228_v24 = vld [vmem:[%s2434_s24 + $0x10] sm:$0xff]  ;;  %v233_v20 = vld [vmem:[%s2434_s24 + $0x38] sm:$0x3]  ;;  %4444 = vst [vmem:[#allocation27_spill] sm:$0xff] %v3113_v16 }
  0x71   : >> { %600 = vmatprep.mubr.f32.mxu1 %v4313_v7  ;;  %665 = vmatprep.subr.mxu1 %v2935_v26  ;;  %v4441_v26 = vmov 0.0  }
  0x72   : >> { %716 = vmatprep.subr.mxu0 %v2940_v28  ;;  %518 = vmatmul.mubr.f32.gmra.mxu0 %v1756_v30  ;;  %v3014_v30 = vld [vmem:[%s4308_s1 + $0x6f8] sm:$0xff] }
  0x73   : >> { %601 = vmatmul.mubr.f32.gmra.mxu1 %v1758_v32  ;;  %717 = vmatpush1.msra.mxu0 %v2955_v36  ;;  %v3019_v32 = vld [vmem:[%s4308_s1 + $0x8f8] sm:$0xff] }
  0x74   : >> { %666 = vmatpush2.msra.mxu1 %v2950_v34  ;;  %718 = vmatprep.subr.mxu0 %v2967_v43  ;;  %4429 = vst [vmem:[#allocation13_spill] sm:$0xff] %v3019_v32  ;;  %v231_v34 = vld [vmem:[%s2434_s24 + $0x28] sm:$0xff] }
  0x75   : >> { %667 = vmatprep.subr.mxu1 %v2962_v39  ;;  %719 = vmatpush1.msra.mxu0 %v2977_v51  ;;  %v3075_v39 = vld [vmem:[%s4308_s1 + $0x6d0] sm:$0xff] }
  0x76   : >> { %668 = vmatpush2.msra.mxu1 %v2972_v47  ;;  %720 = vmatprep.subr.mxu0 %v2989_v59  ;;  %v229_v47 = vld [vmem:[%s2434_s24 + $0x18] sm:$0xff]  ;;  %4437 = vst [vmem:[#allocation21_spill] sm:$0xff] %v3075_v39 }
  0x77   : >> { %669 = vmatprep.subr.mxu1 %v2984_v55  ;;  %671 = vmatprep.mubr.f32.mxu1 %v227_v4  ;;  %v3031_v4 = vld [vmem:[%s4308_s1 + $0x8f0] sm:$0xff]  ;;  %v230_v55 = vld [vmem:[%s2434_s24 + $0x20] sm:$0xff] }
  0x78   : >> { %670 = vmatpush2.msra.mxu1 %v2996_v63  ;;  %721 = vmatpush1.msra.mxu0 %v3004_v8  ;;  %4430 = vst [vmem:[#allocation14_spill] sm:$0xff] %v3031_v4  ;;  %v3036_v63 = vld [vmem:[%s4308_s1 + $0x6e8] sm:$0xff] }
  0x79   : >> { %754 = vmatprep.mubr.f32.mxu0 %v4313_v7  ;;  %672 = vmatmul.mubr.f32.vlgmr.msra.gmra.mxu1 %v226_v10  ;;  %4431 = vst [vmem:[#allocation15_spill] sm:$0xff] %v3036_v63  ;;  %v3041_v7 = vld [vmem:[%s4308_s1 + $0x8e8] sm:$0xff]  ;;  %v3049_v10 = vld [vmem:[%s4308_s1 + $0x6e0] sm:$0xff] }
  0x7a   : >> { %755 = vmatmul.mubr.f32.vlgmr.msra.gmra.mxu0 %v228_v24  ;;  %4432 = vst [vmem:[#allocation16_spill] sm:$0xff] %v3041_v7  ;;  %883 = vmatprep.subr.mxu0 %v3014_v30  ;;  %4433 = vst [vmem:[#allocation17_spill] sm:$0xff] %v3049_v10  ;;  %v3056_v24 = vld [vmem:[%s4308_s1 + $0x8e0] sm:$0xff] }
  0x7b   : >> { %966 = vmatprep.subr.mxu1 %v3019_v32  ;;  %884 = vmatpush1.msra.mxu0 %v3026_v0  ;;  %4434 = vst [vmem:[#allocation18_spill] sm:$0xff] %v3056_v24  ;;  %v3061_v32 = vld [vmem:[%s4308_s1 + $0x6d8] sm:$0xff] }
  0x7c   : >> { %967 = vmatpush1.msra.mxu1 %v3031_v4  ;;  %4435 = vst [vmem:[#allocation19_spill] sm:$0xff] %v3061_v32  ;;  %885 = vmatprep.subr.mxu0 %v3036_v63  ;;  %v3069_v4 = vld [vmem:[%s4308_s1 + $0x8d8] sm:$0xff]  ;;  %v2063_v63 = vld [vmem:[%s4308_s1 + $0x4a8] sm:$0xff] }
  0x7d   : >> { %968 = vmatprep.subr.mxu1 %v3041_v7  ;;  %4436 = vst [vmem:[#allocation20_spill] sm:$0xff] %v3069_v4  ;;  %677 = vmatprep.mubr.f32.mxu1 %v230_v55  ;;  %v3082_v7 = vld [vmem:[%s4308_s1 + $0x8d0] sm:$0xff]  ;;  %v3089_v55 = vld [vmem:[%s4308_s1 + $0x6c8] sm:$0xff] }
  0x7e   : >> { %886 = vmatpush1.msra.mxu0 %v3049_v10  ;;  %969 = vmatpush1.msra.mxu1 %v3056_v24  ;;  %4438 = vst [vmem:[#allocation22_spill] sm:$0xff] %v3082_v7  ;;  %4439 = vst [vmem:[#allocation23_spill] sm:$0xff] %v3089_v55  ;;  %v3094_v24 = vld [vmem:[%s4308_s1 + $0x8c8] sm:$0xff]  ;;  %v3768_v10 = vld [vmem:[%s2434_s24 + $0xd0] sm:$0x3] }
  0x7f   : >> { %887 = vmatprep.subr.mxu0 %v3061_v32  ;;  %678 = vmatmul.mubr.f32.gmra.mxu1 %v229_v47  ;;  %4440 = vst [vmem:[#allocation24_spill] sm:$0xff] %v3094_v24  ;;  %v3102_v47 = vld [vmem:[%s4308_s1 + $0x6c0] sm:$0xff] }
  0x80   : >> { %970 = vmatprep.subr.mxu1 %v3069_v4  ;;  %760 = vmatprep.mubr.f32.mxu0 %v4441_v26  ;;  %4442 = vst [vmem:[#allocation25_spill] sm:$0xff] %v3102_v47  ;;  %v3108_v4 = vld [vmem:[%s4308_s1 + $0x8c0] sm:$0xff] }
  0x81   : >> { %888 = vmatpush1.msra.mxu0 %v3075_v39  ;;  %971 = vmatpush1.msra.mxu1 %v3082_v7  ;;  %4443 = vst [vmem:[#allocation26_spill] sm:$0xff] %v3108_v4  ;;  %v3121_v7 = vld [vmem:[%s4308_s1 + $0x8b8] sm:$0xff]  ;;  %v2054_v39 = vld [vmem:[%s4308_s1 + $0x5d0] sm:$0xff]  ;;  %v3765_v32 = vld [vmem:[%s2434_s24 + $0xc0] sm:$0x3] }
  0x82   : >> { %761 = vmatmul.mubr.f32.gmra.mxu0 %v231_v34  ;;  %889 = vmatprep.subr.mxu0 %v3089_v55  ;;  %4445 = vst [vmem:[#allocation28_spill] sm:$0xff] %v3121_v7  ;;  %v3127_v34 = vld [vmem:[%s4308_s1 + $0x6b0] sm:$0xff]  ;;  %v3731_v55 = vld [vmem:[%s2434_s24 + $0xb8] sm:$0xff] }
  0x83   : >> { %972 = vmatprep.subr.mxu1 %v3094_v24  ;;  %683 = vmatprep.mubr.f32.mxu1 %v233_v20  ;;  %4446 = vst [vmem:[#allocation29_spill] sm:$0xff] %v3127_v34  ;;  %v3134_v24 = vld [vmem:[%s4308_s1 + $0x8b0] sm:$0xff]  ;;  %v3141_v20 = vld [vmem:[%s4308_s1 + $0x6a8] sm:$0xff] }
  0x84   : >> { %890 = vmatpush1.msra.mxu0 %v3102_v47  ;;  %973 = vmatpush1.msra.mxu1 %v3108_v4  ;;  %4447 = vst [vmem:[#allocation30_spill] sm:$0xff] %v3134_v24  ;;  %4448 = vst [vmem:[#allocation31_spill] sm:$0xff] %v3141_v20  ;;  %v3146_v4 = vld [vmem:[%s4308_s1 + $0x8a8] sm:$0xff]  ;;  %v3176_v47 = vld [vmem:[%s4308_s1 + $0x690] sm:$0xff] }
  0x85   : >> { %891 = vmatprep.subr.mxu0 %v3113_v16  ;;  %684 = vmatmul.mubr.f32.gmra.mxu1 %v232_v12  ;;  %4449 = vst [vmem:[#allocation32_spill] sm:$0xff] %v3146_v4  ;;  %v3153_v12 = vld [vmem:[%s4308_s1 + $0x6a0] sm:$0xff]  ;;  %v3164_v16 = vld [vmem:[%s4308_s1 + $0x698] sm:$0xff]  ;;  %4454 = vst [vmem:[#allocation37_spill] sm:$0xff] %v3176_v47 }
  0x86   : >> { %974 = vmatprep.subr.mxu1 %v3121_v7  ;;  %766 = vmatprep.mubr.f32.mxu0 %v4441_v26  ;;  %4450 = vst [vmem:[#allocation33_spill] sm:$0xff] %v3153_v12  ;;  %v3158_v7 = vld [vmem:[%s4308_s1 + $0x8a0] sm:$0xff]  ;;  %4452 = vst [vmem:[#allocation35_spill] sm:$0xff] %v3164_v16 }
  0x87   : >> { %892 = vmatpush1.msra.mxu0 %v3127_v34  ;;  %4451 = vst [vmem:[#allocation34_spill] sm:$0xff] %v3158_v7  ;;  %975 = vmatpush1.msra.mxu1 %v3134_v24  ;;  %v3169_v34 = vld [vmem:[%s4308_s1 + $0x898] sm:$0xff]  ;;  %v3188_v24 = vld [vmem:[%s4308_s1 + $0x688] sm:$0xff] }
  0x88   : >> { %767 = vmatmul.mubr.f32.gmra.mxu0 %v234_v5  ;;  %4453 = vst [vmem:[#allocation36_spill] sm:$0xff] %v3169_v34  ;;  %893 = vmatprep.subr.mxu0 %v3141_v20  ;;  %v3181_v5 = vld [vmem:[%s4308_s1 + $0x890] sm:$0xff]  ;;  %4456 = vst [vmem:[#allocation39_spill] sm:$0xff] %v3188_v24  ;;  %v3728_v20 = vld [vmem:[%s2434_s24 + $0xa8] sm:$0xff] }
  0x89   : >> { %976 = vmatprep.subr.mxu1 %v3146_v4  ;;  %4455 = vst [vmem:[#allocation38_spill] sm:$0xff] %v3181_v5  ;;  %894 = vmatpush1.msra.mxu0 %v3153_v12  ;;  %v3193_v4 = vld [vmem:[%s4308_s1 + $0x888] sm:$0xff]  ;;  %v3200_v12 = vld [vmem:[%s4308_s1 + $0x680] sm:$0xff] }
  0x8a   : >> { %977 = vmatpush1.msra.mxu1 %v3158_v7  ;;  %4457 = vst [vmem:[#allocation40_spill] sm:$0xff] %v3193_v4  ;;  %895 = vmatprep.subr.mxu0 %v3164_v16  ;;  %4458 = vst [vmem:[#allocation41_spill] sm:$0xff] %v3200_v12  ;;  %v3205_v7 = vld [vmem:[%s4308_s1 + $0x880] sm:$0xff]  ;;  %v3212_v16 = vld [vmem:[%s4308_s1 + $0x678] sm:$0xff] }
  0x8b   : >> { %978 = vmatprep.subr.mxu1 %v3169_v34  ;;  %4459 = vst [vmem:[#allocation42_spill] sm:$0xff] %v3205_v7  ;;  %896 = vmatpush1.msra.mxu0 %v3176_v47  ;;  %4460 = vst [vmem:[#allocation43_spill] sm:$0xff] %v3212_v16  ;;  %v3217_v34 = vld [vmem:[%s4308_s1 + $0x878] sm:$0xff]  ;;  %v3224_v47 = vld [vmem:[%s4308_s1 + $0x670] sm:$0xff] }
  0x8c   : >> { %979 = vmatpush1.msra.mxu1 %v3181_v5  ;;  %4461 = vst [vmem:[#allocation44_spill] sm:$0xff] %v3217_v34  ;;  %897 = vmatprep.subr.mxu0 %v3188_v24  ;;  %4462 = vst [vmem:[#allocation45_spill] sm:$0xff] %v3224_v47  ;;  %v3229_v5 = vld [vmem:[%s4308_s1 + $0x870] sm:$0xff]  ;;  %v3236_v24 = vld [vmem:[%s4308_s1 + $0x668] sm:$0xff] }
  0x8d   : >> { %980 = vmatprep.subr.mxu1 %v3193_v4  ;;  %4463 = vst [vmem:[#allocation46_spill] sm:$0xff] %v3229_v5  ;;  %898 = vmatpush1.msra.mxu0 %v3200_v12  ;;  %4464 = vst [vmem:[#allocation47_spill] sm:$0xff] %v3236_v24  ;;  %v3241_v4 = vld [vmem:[%s4308_s1 + $0x868] sm:$0xff]  ;;  %v3248_v12 = vld [vmem:[%s4308_s1 + $0x660] sm:$0xff] }
  0x8e   : >> { %981 = vmatpush1.msra.mxu1 %v3205_v7  ;;  %4465 = vst [vmem:[#allocation48_spill] sm:$0xff] %v3241_v4  ;;  %899 = vmatprep.subr.mxu0 %v3212_v16  ;;  %4466 = vst [vmem:[#allocation49_spill] sm:$0xff] %v3248_v12  ;;  %v3253_v7 = vld [vmem:[%s4308_s1 + $0x860] sm:$0xff]  ;;  %v3260_v16 = vld [vmem:[%s4308_s1 + $0x658] sm:$0xff] }
  0x8f   : >> { %982 = vmatprep.subr.mxu1 %v3217_v34  ;;  %4467 = vst [vmem:[#allocation50_spill] sm:$0xff] %v3253_v7  ;;  %900 = vmatpush1.msra.mxu0 %v3224_v47  ;;  %4468 = vst [vmem:[#allocation51_spill] sm:$0xff] %v3260_v16  ;;  %v3265_v34 = vld [vmem:[%s4308_s1 + $0x858] sm:$0xff]  ;;  %v3272_v47 = vld [vmem:[%s4308_s1 + $0x650] sm:$0xff] }
  0x90   : >> { %983 = vmatpush1.msra.mxu1 %v3229_v5  ;;  %4469 = vst [vmem:[#allocation52_spill] sm:$0xff] %v3265_v34  ;;  %901 = vmatprep.subr.mxu0 %v3236_v24  ;;  %4470 = vst [vmem:[#allocation53_spill] sm:$0xff] %v3272_v47  ;;  %v3277_v5 = vld [vmem:[%s4308_s1 + $0x850] sm:$0xff]  ;;  %v3284_v24 = vld [vmem:[%s4308_s1 + $0x648] sm:$0xff] }
  0x91   : >> { %984 = vmatprep.subr.mxu1 %v3241_v4  ;;  %4471 = vst [vmem:[#allocation54_spill] sm:$0xff] %v3277_v5  ;;  %902 = vmatpush1.msra.mxu0 %v3248_v12  ;;  %4472 = vst [vmem:[#allocation55_spill] sm:$0xff] %v3284_v24  ;;  %v3289_v4 = vld [vmem:[%s4308_s1 + $0x848] sm:$0xff]  ;;  %v3296_v12 = vld [vmem:[%s4308_s1 + $0x640] sm:$0xff] }
  0x92   : >> { %985 = vmatpush1.msra.mxu1 %v3253_v7  ;;  %4473 = vst [vmem:[#allocation56_spill] sm:$0xff] %v3289_v4  ;;  %903 = vmatprep.subr.mxu0 %v3260_v16  ;;  %4474 = vst [vmem:[#allocation57_spill] sm:$0xff] %v3296_v12  ;;  %v3301_v7 = vld [vmem:[%s4308_s1 + $0x840] sm:$0xff]  ;;  %v3308_v16 = vld [vmem:[%s4308_s1 + $0x638] sm:$0xff] }
  0x93   : >> { %986 = vmatprep.subr.mxu1 %v3265_v34  ;;  %4475 = vst [vmem:[#allocation58_spill] sm:$0xff] %v3301_v7  ;;  %904 = vmatpush1.msra.mxu0 %v3272_v47  ;;  %4476 = vst [vmem:[#allocation59_spill] sm:$0xff] %v3308_v16  ;;  %v3313_v34 = vld [vmem:[%s4308_s1 + $0x838] sm:$0xff]  ;;  %v3320_v47 = vld [vmem:[%s4308_s1 + $0x630] sm:$0xff] }
  0x94   : >> { %987 = vmatpush1.msra.mxu1 %v3277_v5  ;;  %4477 = vst [vmem:[#allocation60_spill] sm:$0xff] %v3313_v34  ;;  %905 = vmatprep.subr.mxu0 %v3284_v24  ;;  %4478 = vst [vmem:[#allocation61_spill] sm:$0xff] %v3320_v47  ;;  %v3325_v5 = vld [vmem:[%s4308_s1 + $0x830] sm:$0xff]  ;;  %v3332_v24 = vld [vmem:[%s4308_s1 + $0x628] sm:$0xff] }
  0x95   : >> { %988 = vmatprep.subr.mxu1 %v3289_v4  ;;  %4479 = vst [vmem:[#allocation62_spill] sm:$0xff] %v3325_v5  ;;  %906 = vmatpush1.msra.mxu0 %v3296_v12  ;;  %4480 = vst [vmem:[#allocation63_spill] sm:$0xff] %v3332_v24  ;;  %v3337_v4 = vld [vmem:[%s4308_s1 + $0x828] sm:$0xff]  ;;  %v3344_v12 = vld [vmem:[%s4308_s1 + $0x620] sm:$0xff] }
  0x96   : >> { %989 = vmatpush1.msra.mxu1 %v3301_v7  ;;  %4481 = vst [vmem:[#allocation64_spill] sm:$0xff] %v3337_v4  ;;  %907 = vmatprep.subr.mxu0 %v3308_v16  ;;  %4482 = vst [vmem:[#allocation65_spill] sm:$0xff] %v3344_v12  ;;  %v3349_v7 = vld [vmem:[%s4308_s1 + $0x820] sm:$0xff]  ;;  %v3356_v16 = vld [vmem:[%s4308_s1 + $0x618] sm:$0xff] }
  0x97   : >> { %990 = vmatprep.subr.mxu1 %v3313_v34  ;;  %4483 = vst [vmem:[#allocation66_spill] sm:$0xff] %v3349_v7  ;;  %908 = vmatpush1.msra.mxu0 %v3320_v47  ;;  %4484 = vst [vmem:[#allocation67_spill] sm:$0xff] %v3356_v16  ;;  %v3361_v34 = vld [vmem:[%s4308_s1 + $0x818] sm:$0xff]  ;;  %v3368_v47 = vld [vmem:[%s4308_s1 + $0x610] sm:$0xff] }
  0x98   : >> { %991 = vmatpush1.msra.mxu1 %v3325_v5  ;;  %4485 = vst [vmem:[#allocation68_spill] sm:$0xff] %v3361_v34  ;;  %909 = vmatprep.subr.mxu0 %v3332_v24  ;;  %4486 = vst [vmem:[#allocation69_spill] sm:$0xff] %v3368_v47  ;;  %v3373_v5 = vld [vmem:[%s4308_s1 + $0x810] sm:$0xff]  ;;  %v3380_v24 = vld [vmem:[%s4308_s1 + $0x608] sm:$0xff] }
  0x99   : >> { %992 = vmatprep.subr.mxu1 %v3337_v4  ;;  %4487 = vst [vmem:[#allocation70_spill] sm:$0xff] %v3373_v5  ;;  %910 = vmatpush1.msra.mxu0 %v3344_v12  ;;  %4488 = vst [vmem:[#allocation71_spill] sm:$0xff] %v3380_v24  ;;  %v3385_v4 = vld [vmem:[%s4308_s1 + $0x808] sm:$0xff]  ;;  %v3392_v12 = vld [vmem:[%s4308_s1 + $0x600] sm:$0xff] }
  0x9a   : >> { %993 = vmatpush1.msra.mxu1 %v3349_v7  ;;  %4489 = vst [vmem:[#allocation72_spill] sm:$0xff] %v3385_v4  ;;  %911 = vmatprep.subr.mxu0 %v3356_v16  ;;  %4490 = vst [vmem:[#allocation73_spill] sm:$0xff] %v3392_v12  ;;  %v3397_v7 = vld [vmem:[%s4308_s1 + $0x800] sm:$0xff]  ;;  %v3404_v16 = vld [vmem:[%s4308_s1 + $0x7f8] sm:$0xff] }
  0x9b   : >> { %994 = vmatprep.subr.mxu1 %v3361_v34  ;;  %4491 = vst [vmem:[#allocation74_spill] sm:$0xff] %v3397_v7  ;;  %912 = vmatpush1.msra.mxu0 %v3368_v47  ;;  %4492 = vst [vmem:[#allocation75_spill] sm:$0xff] %v3404_v16  ;;  %v3409_v34 = vld [vmem:[%s2434_s24 + $0xa0] sm:$0xff]  ;;  %v3416_v47 = vld [vmem:[%s4308_s1 + $0x7f0] sm:$0xff] }
  0x9c   : >> { %995 = vmatpush1.msra.mxu1 %v3373_v5  ;;  %913 = vmatprep.subr.mxu0 %v3380_v24  ;;  %4493 = vst [vmem:[#allocation76_spill] sm:$0xff] %v3416_v47  ;;  %v3423_v5 = vld [vmem:[%s4308_s1 + $0x7e8] sm:$0xff]  ;;  %v3687_v24 = vld [vmem:[%s2434_s24 + $0x98] sm:$0xff] }
  0x9d   : >> { %996 = vmatprep.subr.mxu1 %v3385_v4  ;;  %914 = vmatpush1.msra.mxu0 %v3392_v12  ;;  %4494 = vst [vmem:[#allocation77_spill] sm:$0xff] %v3423_v5  ;;  %v3432_v4 = vld [vmem:[%s4308_s1 + $0x7e0] sm:$0xff]  ;;  %v3441_v12 = vld [vmem:[%s4308_s1 + $0x7d8] sm:$0xff] }
  0x9e   : >> { %997 = vmatpush1.msra.mxu1 %v3397_v7  ;;  %1030 = vmatprep.mubr.f32.mxu1 %v4441_v26  ;;  %v2011_v7 = vld [vmem:[%s4308_s1 + $0x3f8] sm:$0xff]  ;;  %4495 = vst [vmem:[#allocation78_spill] sm:$0xff] %v3432_v4  ;;  %4496 = vst [vmem:[#allocation79_spill] sm:$0xff] %v3441_v12 }
  0x9f   : >> { %915 = vmatprep.subr.mxu0 %v3404_v16  ;;  %1031 = vmatmul.mubr.f32.vlgmr.msra.gmra.mxu1 %v3409_v34  ;;  %v2012_v16 = vld [vmem:[%s4308_s1 + $0x3f0] sm:$0xff] }
  0xa0   : >> { %1078 = vmatprep.subr.mxu1 %v2011_v7  ;;  %916 = vmatpush2.msra.mxu0 %v3416_v47  ;;  %v2013_v7 = vld [vmem:[%s4308_s1 + $0x3e8] sm:$0xff]  ;;  %v3450_v47 = vld [vmem:[%s4308_s1 + $0x7d0] sm:$0xff] }
  0xa1   : >> { %1079 = vmatpush1.msra.mxu1 %v2012_v16  ;;  %917 = vmatprep.subr.mxu0 %v3423_v5  ;;  %4497 = vst [vmem:[#allocation80_spill] sm:$0xff] %v3450_v47  ;;  %v2014_v16 = vld [vmem:[%s4308_s1 + $0x3e0] sm:$0xff]  ;;  %v3459_v5 = vld [vmem:[%s4308_s1 + $0x7c8] sm:$0xff] }
  0xa2   : >> { %1080 = vmatprep.subr.mxu1 %v2013_v7  ;;  %918 = vmatpush2.msra.mxu0 %v3432_v4  ;;  %4498 = vst [vmem:[#allocation81_spill] sm:$0xff] %v3459_v5  ;;  %v2015_v7 = vld [vmem:[%s4308_s1 + $0x3d8] sm:$0xff]  ;;  %v3468_v4 = vld [vmem:[%s4308_s1 + $0x7c0] sm:$0xff] }
  0xa3   : >> { %1081 = vmatpush1.msra.mxu1 %v2014_v16  ;;  %919 = vmatprep.subr.mxu0 %v3441_v12  ;;  %4499 = vst [vmem:[#allocation82_spill] sm:$0xff] %v3468_v4  ;;  %v2016_v16 = vld [vmem:[%s4308_s1 + $0x3d0] sm:$0xff]  ;;  %v3477_v12 = vld [vmem:[%s4308_s1 + $0x7b8] sm:$0xff] }
  0xa4   : >> { %1082 = vmatprep.subr.mxu1 %v2015_v7  ;;  %920 = vmatpush2.msra.mxu0 %v3450_v47  ;;  %4500 = vst [vmem:[#allocation83_spill] sm:$0xff] %v3477_v12  ;;  %v2017_v7 = vld [vmem:[%s4308_s1 + $0x3c8] sm:$0xff]  ;;  %v3486_v47 = vld [vmem:[%s4308_s1 + $0x7b0] sm:$0xff] }
  0xa5   : >> { %1083 = vmatpush1.msra.mxu1 %v2016_v16  ;;  %921 = vmatprep.subr.mxu0 %v3459_v5  ;;  %4501 = vst [vmem:[#allocation84_spill] sm:$0xff] %v3486_v47  ;;  %v2018_v16 = vld [vmem:[%s4308_s1 + $0x3c0] sm:$0xff]  ;;  %v3495_v5 = vld [vmem:[%s4308_s1 + $0x7a8] sm:$0xff] }
  0xa6   : >> { %1084 = vmatprep.subr.mxu1 %v2017_v7  ;;  %922 = vmatpush2.msra.mxu0 %v3468_v4  ;;  %4502 = vst [vmem:[#allocation85_spill] sm:$0xff] %v3495_v5  ;;  %v2019_v7 = vld [vmem:[%s4308_s1 + $0x3b8] sm:$0xff]  ;;  %v3504_v4 = vld [vmem:[%s4308_s1 + $0x7a0] sm:$0xff] }
  0xa7   : >> { %1085 = vmatpush1.msra.mxu1 %v2018_v16  ;;  %923 = vmatprep.subr.mxu0 %v3477_v12  ;;  %4503 = vst [vmem:[#allocation86_spill] sm:$0xff] %v3504_v4  ;;  %v2020_v16 = vld [vmem:[%s4308_s1 + $0x3b0] sm:$0xff]  ;;  %v3513_v12 = vld [vmem:[%s4308_s1 + $0x798] sm:$0xff] }
  0xa8   : >> { %1086 = vmatprep.subr.mxu1 %v2019_v7  ;;  %924 = vmatpush2.msra.mxu0 %v3486_v47  ;;  %4504 = vst [vmem:[#allocation87_spill] sm:$0xff] %v3513_v12  ;;  %v2021_v7 = vld [vmem:[%s4308_s1 + $0x3a8] sm:$0xff]  ;;  %v3522_v47 = vld [vmem:[%s4308_s1 + $0x790] sm:$0xff] }
  0xa9   : >> { %1087 = vmatpush1.msra.mxu1 %v2020_v16  ;;  %925 = vmatprep.subr.mxu0 %v3495_v5  ;;  %4505 = vst [vmem:[#allocation88_spill] sm:$0xff] %v3522_v47  ;;  %v2022_v16 = vld [vmem:[%s4308_s1 + $0x3a0] sm:$0xff]  ;;  %v3531_v5 = vld [vmem:[%s4308_s1 + $0x788] sm:$0xff] }
  0xaa   : >> { %1088 = vmatprep.subr.mxu1 %v2021_v7  ;;  %926 = vmatpush2.msra.mxu0 %v3504_v4  ;;  %4506 = vst [vmem:[#allocation89_spill] sm:$0xff] %v3531_v5  ;;  %v2023_v7 = vld [vmem:[%s4308_s1 + $0x398] sm:$0xff]  ;;  %v3540_v4 = vld [vmem:[%s4308_s1 + $0x780] sm:$0xff] }
  0xab   : >> { %1089 = vmatpush1.msra.mxu1 %v2022_v16  ;;  %927 = vmatprep.subr.mxu0 %v3513_v12  ;;  %4507 = vst [vmem:[#allocation90_spill] sm:$0xff] %v3540_v4  ;;  %v2024_v16 = vld [vmem:[%s4308_s1 + $0x390] sm:$0xff]  ;;  %v3549_v12 = vld [vmem:[%s4308_s1 + $0x778] sm:$0xff] }
  0xac   : >> { %1090 = vmatprep.subr.mxu1 %v2023_v7  ;;  %928 = vmatpush2.msra.mxu0 %v3522_v47  ;;  %4508 = vst [vmem:[#allocation91_spill] sm:$0xff] %v3549_v12  ;;  %v2025_v7 = vld [vmem:[%s4308_s1 + $0x388] sm:$0xff]  ;;  %v3558_v47 = vld [vmem:[%s4308_s1 + $0x770] sm:$0xff] }
  0xad   : >> { %1091 = vmatpush1.msra.mxu1 %v2024_v16  ;;  %929 = vmatprep.subr.mxu0 %v3531_v5  ;;  %4509 = vst [vmem:[#allocation92_spill] sm:$0xff] %v3558_v47  ;;  %v2026_v16 = vld [vmem:[%s4308_s1 + $0x380] sm:$0xff]  ;;  %v3567_v5 = vld [vmem:[%s4308_s1 + $0x768] sm:$0xff] }
  0xae   : >> { %1092 = vmatprep.subr.mxu1 %v2025_v7  ;;  %930 = vmatpush2.msra.mxu0 %v3540_v4  ;;  %4510 = vst [vmem:[#allocation93_spill] sm:$0xff] %v3567_v5  ;;  %v2027_v7 = vld [vmem:[%s4308_s1 + $0x378] sm:$0xff]  ;;  %v3576_v4 = vld [vmem:[%s4308_s1 + $0x760] sm:$0xff] }
  0xaf   : >> { %1093 = vmatpush1.msra.mxu1 %v2026_v16  ;;  %931 = vmatprep.subr.mxu0 %v3549_v12  ;;  %4511 = vst [vmem:[#allocation94_spill] sm:$0xff] %v3576_v4  ;;  %v2028_v16 = vld [vmem:[%s4308_s1 + $0x370] sm:$0xff]  ;;  %v3585_v12 = vld [vmem:[%s4308_s1 + $0x758] sm:$0xff] }
  0xb0   : >> { %1094 = vmatprep.subr.mxu1 %v2027_v7  ;;  %932 = vmatpush2.msra.mxu0 %v3558_v47  ;;  %4512 = vst [vmem:[#allocation95_spill] sm:$0xff] %v3585_v12  ;;  %v2029_v7 = vld [vmem:[%s4308_s1 + $0x368] sm:$0xff]  ;;  %v3594_v47 = vld [vmem:[%s4308_s1 + $0x750] sm:$0xff] }
  0xb1   : >> { %1095 = vmatpush1.msra.mxu1 %v2028_v16  ;;  %933 = vmatprep.subr.mxu0 %v3567_v5  ;;  %4513 = vst [vmem:[#allocation96_spill] sm:$0xff] %v3594_v47  ;;  %v2030_v16 = vld [vmem:[%s4308_s1 + $0x360] sm:$0xff]  ;;  %v3603_v5 = vld [vmem:[%s4308_s1 + $0x748] sm:$0xff] }
  0xb2   : >> { %1096 = vmatprep.subr.mxu1 %v2029_v7  ;;  %934 = vmatpush2.msra.mxu0 %v3576_v4  ;;  %4514 = vst [vmem:[#allocation97_spill] sm:$0xff] %v3603_v5  ;;  %v2031_v7 = vld [vmem:[%s4308_s1 + $0x358] sm:$0xff]  ;;  %v3612_v4 = vld [vmem:[%s4308_s1 + $0x740] sm:$0xff] }
  0xb3   : >> { %1097 = vmatpush1.msra.mxu1 %v2030_v16  ;;  %935 = vmatprep.subr.mxu0 %v3585_v12  ;;  %4515 = vst [vmem:[#allocation98_spill] sm:$0xff] %v3612_v4  ;;  %v2032_v16 = vld [vmem:[%s4308_s1 + $0x350] sm:$0xff]  ;;  %v3621_v12 = vld [vmem:[%s4308_s1 + $0x738] sm:$0xff] }
  0xb4   : >> { %1098 = vmatprep.subr.mxu1 %v2031_v7  ;;  %936 = vmatpush2.msra.mxu0 %v3594_v47  ;;  %4516 = vst [vmem:[#allocation99_spill] sm:$0xff] %v3621_v12  ;;  %v2033_v7 = vld [vmem:[%s4308_s1 + $0x348] sm:$0xff]  ;;  %v3630_v47 = vld [vmem:[%s4308_s1 + $0x730] sm:$0xff] }
  0xb5   : >> { %1099 = vmatpush1.msra.mxu1 %v2032_v16  ;;  %937 = vmatprep.subr.mxu0 %v3603_v5  ;;  %4517 = vst [vmem:[#allocation100_spill] sm:$0xff] %v3630_v47  ;;  %v2034_v16 = vld [vmem:[%s4308_s1 + $0x340] sm:$0xff]  ;;  %v3639_v5 = vld [vmem:[%s4308_s1 + $0x728] sm:$0xff] }
  0xb6   : >> { %1100 = vmatprep.subr.mxu1 %v2033_v7  ;;  %938 = vmatpush2.msra.mxu0 %v3612_v4  ;;  %4518 = vst [vmem:[#allocation101_spill] sm:$0xff] %v3639_v5  ;;  %v2035_v7 = vld [vmem:[%s4308_s1 + $0x338] sm:$0xff]  ;;  %v3648_v4 = vld [vmem:[%s4308_s1 + $0x720] sm:$0xff] }
  0xb7   : >> { %1101 = vmatpush1.msra.mxu1 %v2034_v16  ;;  %939 = vmatprep.subr.mxu0 %v3621_v12  ;;  %4519 = vst [vmem:[#allocation102_spill] sm:$0xff] %v3648_v4  ;;  %v2036_v16 = vld [vmem:[%s4308_s1 + $0x330] sm:$0xff]  ;;  %v3657_v12 = vld [vmem:[%s4308_s1 + $0x718] sm:$0xff] }
  0xb8   : >> { %1102 = vmatprep.subr.mxu1 %v2035_v7  ;;  %940 = vmatpush2.msra.mxu0 %v3630_v47  ;;  %4520 = vst [vmem:[#allocation103_spill] sm:$0xff] %v3657_v12  ;;  %v2037_v7 = vld [vmem:[%s4308_s1 + $0x328] sm:$0xff]  ;;  %v3666_v47 = vld [vmem:[%s4308_s1 + $0x710] sm:$0xff] }
  0xb9   : >> { %1103 = vmatpush1.msra.mxu1 %v2036_v16  ;;  %941 = vmatprep.subr.mxu0 %v3639_v5  ;;  %4521 = vst [vmem:[#allocation104_spill] sm:$0xff] %v3666_v47  ;;  %v2038_v16 = vld [vmem:[%s4308_s1 + $0x320] sm:$0xff]  ;;  %v3675_v5 = vld [vmem:[%s4308_s1 + $0x708] sm:$0xff] }
  0xba   : >> { %1104 = vmatprep.subr.mxu1 %v2037_v7  ;;  %942 = vmatpush2.msra.mxu0 %v3648_v4  ;;  %4522 = vst [vmem:[#allocation105_spill] sm:$0xff] %v3675_v5  ;;  %v2039_v7 = vld [vmem:[%s4308_s1 + $0x318] sm:$0xff]  ;;  %v3684_v4 = vld [vmem:[%s4308_s1 + $0x700] sm:$0xff] }
  0xbb   : >> { %1105 = vmatpush1.msra.mxu1 %v2038_v16  ;;  %943 = vmatprep.subr.mxu0 %v3657_v12  ;;  %4523 = vst [vmem:[#allocation106_spill] sm:$0xff] %v3684_v4  ;;  %v2040_v16 = vld [vmem:[%s4308_s1 + $0x310] sm:$0xff] }
  0xbc   : >> { %1106 = vmatprep.subr.mxu1 %v2039_v7  ;;  %944 = vmatpush2.msra.mxu0 %v3666_v47  ;;  %v3694_v12 = vld [vmem:[%s2434_s24 + $0x90] sm:$0xff]  ;;  %v2041_v7 = vld [vmem:[%s4308_s1 + $0x308] sm:$0xff]  ;;  %v2042_v47 = vld [vmem:[%s4308_s1 + $0x300] sm:$0xff] }
  0xbd   : >> { %1107 = vmatpush1.msra.mxu1 %v2040_v16  ;;  %945 = vmatprep.subr.mxu0 %v3675_v5  ;;  %v2043_v16 = vld [vmem:[%s4308_s1 + $0x4f8] sm:$0xff]  ;;  %v2045_v5 = vld [vmem:[%s4308_s1 + $0x4f0] sm:$0xff] }
  0xbe   : >> { %1108 = vmatprep.subr.mxu1 %v2041_v7  ;;  %946 = vmatpush2.msra.mxu0 %v3684_v4  ;;  %v2044_v7 = vld [vmem:[%s4308_s1 + $0x5f8] sm:$0xff]  ;;  %v3713_v4 = vld [vmem:[%s2434_s24 + $0xb0] sm:$0xff] }
  0xbf   : >> { %947 = vmatprep.mubr.f32.mxu0 %v3687_v24  ;;  %1109 = vmatpush1.msra.mxu1 %v2042_v47  ;;  %v2046_v47 = vld [vmem:[%s4308_s1 + $0x5f0] sm:$0xff] }
  0xc0   : >> { %948 = vmatmul.mubr.f32.vlgmr.msra.gmra.mxu0 %v3694_v12  ;;  %1110 = vmatprep.subr.mxu1 %v2043_v16  ;;  %v2047_v16 = vld [vmem:[%s4308_s1 + $0x4e8] sm:$0xff] }
  0xc1   : >> { %1161 = vmatprep.subr.mxu0 %v2044_v7  ;;  %1111 = vmatpush2.msra.mxu1 %v2045_v5  ;;  %v2048_v7 = vld [vmem:[%s4308_s1 + $0x5e8] sm:$0xff]  ;;  %v2049_v5 = vld [vmem:[%s4308_s1 + $0x4e0] sm:$0xff] }
  0xc2   : >> { %1162 = vmatpush1.msra.mxu0 %v2046_v47  ;;  %1112 = vmatprep.subr.mxu1 %v2047_v16  ;;  %v2050_v47 = vld [vmem:[%s4308_s1 + $0x5e0] sm:$0xff]  ;;  %v2051_v16 = vld [vmem:[%s4308_s1 + $0x4d8] sm:$0xff] }
  0xc3   : >> { %1163 = vmatprep.subr.mxu0 %v2048_v7  ;;  %953 = vmatprep.mubr.f32.mxu0 %v3713_v4  ;;  %v2052_v7 = vld [vmem:[%s4308_s1 + $0x5d8] sm:$0xff] }
  0xc4   : >> { %1036 = vmatprep.mubr.f32.mxu1 %v4441_v26  ;;  %1113 = vmatpush2.msra.mxu1 %v2049_v5  ;;  %v3750_v5 = vld [vmem:[%s2434_s24 + $0xc8] sm:$0x3] }
  0xc5   : >> { %1164 = vmatpush1.msra.mxu0 %v2050_v47  ;;  %1037 = vmatmul.mubr.f32.gmra.mxu1 %v3731_v55  ;;  %v2053_v47 = vld [vmem:[%s4308_s1 + $0x4d0] sm:$0xff] }
  0xc6   : >> { %954 = vmatmul.mubr.f32.gmra.mxu0 %v3728_v20  ;;  %1114 = vmatprep.subr.mxu1 %v2051_v16  ;;  %v2055_v16 = vld [vmem:[%s4308_s1 + $0x4c8] sm:$0xff] }
  0xc7   : >> { %1165 = vmatprep.subr.mxu0 %v2052_v7  ;;  %1115 = vmatpush2.msra.mxu1 %v2053_v47  ;;  %v2056_v7 = vld [vmem:[%s4308_s1 + $0x5c8] sm:$0xff]  ;;  %v2058_v47 = vld [vmem:[%s4308_s1 + $0x5c0] sm:$0xff] }
  0xc8   : >> { %1166 = vmatpush1.msra.mxu0 %v2054_v39  ;;  %1116 = vmatprep.subr.mxu1 %v2055_v16  ;;  %v2057_v39 = vld [vmem:[%s4308_s1 + $0x4c0] sm:$0xff]  ;;  %v2059_v16 = vld [vmem:[%s4308_s1 + $0x4b8] sm:$0xff] }
  0xc9   : >> { %1167 = vmatprep.subr.mxu0 %v2056_v7  ;;  %959 = vmatprep.mubr.f32.mxu0 %v3750_v5  ;;  %v2060_v7 = vld [vmem:[%s4308_s1 + $0x5b8] sm:$0xff] }
  0xca   : >> { %1042 = vmatprep.mubr.f32.mxu1 %v4441_v26  ;;  %1117 = vmatpush2.msra.mxu1 %v2057_v39  ;;  %v2061_v39 = vld [vmem:[%s4308_s1 + $0x4b0] sm:$0xff] }
  0xcb   : >> { %1168 = vmatpush1.msra.mxu0 %v2058_v47  ;;  %1043 = vmatmul.mubr.f32.gmra.mxu1 %v3768_v10  ;;  %v2062_v47 = vld [vmem:[%s4308_s1 + $0x5b0] sm:$0xff] }
  0xcc   : >> { %960 = vmatmul.mubr.f32.gmra.mxu0 %v3765_v32  ;;  %1118 = vmatprep.subr.mxu1 %v2059_v16  ;;  %v2064_v16 = vld [vmem:[%s4308_s1 + $0x5a8] sm:$0xff] }
  0xcd   : >> { %1169 = vmatprep.subr.mxu0 %v2060_v7  ;;  %1119 = vmatpush2.msra.mxu1 %v2061_v39  ;;  %v2065_v7 = vld [vmem:[%s4308_s1 + $0x4a0] sm:$0xff] }
  0xce   : >> { %1170 = vmatpush1.msra.mxu0 %v2062_v47  ;;  %1120 = vmatprep.subr.mxu1 %v2063_v63  ;;  %v2066_v39 = vld [vmem:[%s4308_s1 + $0x5a0] sm:$0xff]  ;;  %v2067_v47 = vld [vmem:[%s4308_s1 + $0x498] sm:$0xff] }
  0xcf   : >> { %1171 = vmatprep.subr.mxu0 %v2064_v16  ;;  %1121 = vmatpush2.msra.mxu1 %v2065_v7  ;;  %v2068_v63 = vld [vmem:[%s4308_s1 + $0x598] sm:$0xff]  ;;  %v2069_v16 = vld [vmem:[%s4308_s1 + $0x490] sm:$0xff] }
  0xd0   : >> { %1172 = vmatpush1.msra.mxu0 %v2066_v39  ;;  %1122 = vmatprep.subr.mxu1 %v2067_v47  ;;  %v2070_v7 = vld [vmem:[%s4308_s1 + $0x590] sm:$0xff]  ;;  %v2071_v39 = vld [vmem:[%s4308_s1 + $0x488] sm:$0xff] }
  0xd1   : >> { %1173 = vmatprep.subr.mxu0 %v2068_v63  ;;  %1123 = vmatpush2.msra.mxu1 %v2069_v16  ;;  %v2072_v47 = vld [vmem:[%s4308_s1 + $0x588] sm:$0xff]  ;;  %v2073_v63 = vld [vmem:[%s4308_s1 + $0x480] sm:$0xff] }
  0xd2   : >> { %1174 = vmatpush1.msra.mxu0 %v2070_v7  ;;  %1124 = vmatprep.subr.mxu1 %v2071_v39  ;;  %v2074_v16 = vld [vmem:[%s4308_s1 + $0x580] sm:$0xff]  ;;  %v2075_v7 = vld [vmem:[%s4308_s1 + $0x478] sm:$0xff] }
  0xd3   : >> { %1175 = vmatprep.subr.mxu0 %v2072_v47  ;;  %1125 = vmatpush2.msra.mxu1 %v2073_v63  ;;  %v2076_v39 = vld [vmem:[%s4308_s1 + $0x578] sm:$0xff]  ;;  %v2077_v47 = vld [vmem:[%s4308_s1 + $0x570] sm:$0xff]  ;;  %v2078_v63 = vld [vmem:[%s4308_s1 + $0x568] sm:$0xff] }
  0xd4   : >> { %1176 = vmatpush1.msra.mxu0 %v2074_v16  ;;  %1126 = vmatprep.subr.mxu1 %v2075_v7  ;;  %v2079_v16 = vld [vmem:[%s4308_s1 + $0x560] sm:$0xff]  ;;  %v4529_v7 = vld [vmem:[#allocation25_spill] sm:$0xff] }
  0xd5   : >> { %1177 = vmatprep.subr.mxu0 %v2076_v39  ;;  %1127 = vmatpush2.msra.mxu1 %v2549_v38  ;;  %v2080_v38 = vld [vmem:[%s4308_s1 + $0x558] sm:$0xff] }
  0xd6   : >> { %1178 = vmatpush1.msra.mxu0 %v2077_v47  ;;  %1128 = vmatprep.subr.mxu1 %v2557_v40  ;;  %v2081_v40 = vld [vmem:[%s4308_s1 + $0x550] sm:$0xff]  ;;  %v2133_v39 = vld [vmem:[%s4308_s1 + $0x1b8] sm:$0xff]  ;;  %v4530_v47 = vld [vmem:[#allocation27_spill] sm:$0xff] }
  0xd7   : >> { %1179 = vmatprep.subr.mxu0 %v2078_v63  ;;  %1129 = vmatpush2.msra.mxu1 %v2565_v42  ;;  %v2082_v42 = vld [vmem:[%s4308_s1 + $0x548] sm:$0xff]  ;;  %v2134_v63 = vld [vmem:[%s4308_s1 + $0x1b0] sm:$0xff] }
  0xd8   : >> { %1180 = vmatpush1.msra.mxu0 %v2079_v16  ;;  %1130 = vmatprep.subr.mxu1 %v2574_v44  ;;  %v2083_v44 = vld [vmem:[%s4308_s1 + $0x540] sm:$0xff]  ;;  %v4531_v16 = vld [vmem:[#allocation29_spill] sm:$0xff] }
  0xd9   : >> { %1181 = vmatprep.subr.mxu0 %v2080_v38  ;;  %1131 = vmatpush2.msra.mxu1 %v2583_v46  ;;  %v2084_v46 = vld [vmem:[%s4308_s1 + $0x538] sm:$0xff]  ;;  %v2135_v38 = vld [vmem:[%s4308_s1 + $0x1a8] sm:$0xff] }
  0xda   : >> { %1182 = vmatpush1.msra.mxu0 %v2081_v40  ;;  %1132 = vmatprep.subr.mxu1 %v2592_v48  ;;  %v2085_v48 = vld [vmem:[%s4308_s1 + $0x530] sm:$0xff]  ;;  %v4532_v40 = vld [vmem:[#allocation31_spill] sm:$0xff] }
  0xdb   : >> { %1183 = vmatprep.subr.mxu0 %v2082_v42  ;;  %1133 = vmatpush2.msra.mxu1 %v2601_v50  ;;  %v2086_v50 = vld [vmem:[%s4308_s1 + $0x528] sm:$0xff]  ;;  %v2136_v42 = vld [vmem:[%s4308_s1 + $0x1a0] sm:$0xff] }
  0xdc   : >> { %1184 = vmatpush1.msra.mxu0 %v2083_v44  ;;  %1134 = vmatprep.subr.mxu1 %v2610_v52  ;;  %v2087_v52 = vld [vmem:[%s4308_s1 + $0x520] sm:$0xff]  ;;  %v4533_v44 = vld [vmem:[#allocation33_spill] sm:$0xff] }
  0xdd   : >> { %1185 = vmatprep.subr.mxu0 %v2084_v46  ;;  %1135 = vmatpush2.msra.mxu1 %v2619_v54  ;;  %v2088_v54 = vld [vmem:[%s4308_s1 + $0x518] sm:$0xff] }
  0xde   : >> { %1186 = vmatpush1.msra.mxu0 %v2085_v48  ;;  %1136 = vmatprep.subr.mxu1 %v2628_v56  ;;  %v2089_v56 = vld [vmem:[%s4308_s1 + $0x510] sm:$0xff]  ;;  %v2137_v46 = vld [vmem:[%s4308_s1 + $0x198] sm:$0xff]  ;;  %v4534_v48 = vld [vmem:[#allocation35_spill] sm:$0xff] }
  0xdf   : >> { %1187 = vmatprep.subr.mxu0 %v2086_v50  ;;  %1137 = vmatpush2.msra.mxu1 %v2637_v58  ;;  %v2090_v58 = vld [vmem:[%s4308_s1 + $0x508] sm:$0xff]  ;;  %v2138_v50 = vld [vmem:[%s4308_s1 + $0x190] sm:$0xff] }
  0xe0   : >> { %1188 = vmatpush1.msra.mxu0 %v2087_v52  ;;  %1138 = vmatprep.subr.mxu1 %v2646_v60  ;;  %v2091_v60 = vld [vmem:[%s4308_s1 + $0x500] sm:$0xff]  ;;  %v4535_v52 = vld [vmem:[#allocation37_spill] sm:$0xff] }
  0xe1   : >> { %1189 = vmatprep.subr.mxu0 %v2088_v54  ;;  %1139 = vmatpush2.msra.mxu1 %v2655_v62  ;;  %v2092_v62 = vld [vmem:[%s4308_s1 + $0xf8] sm:$0xff]  ;;  %v2139_v54 = vld [vmem:[%s4308_s1 + $0x188] sm:$0xff] }
  0xe2   : >> { %1190 = vmatpush1.msra.mxu0 %v2089_v56  ;;  %1140 = vmatprep.subr.mxu1 %v2664_v1  ;;  %v2093_v1 = vld [vmem:[%s4308_s1 + $0xf0] sm:$0xff]  ;;  %v4536_v56 = vld [vmem:[#allocation39_spill] sm:$0xff] }
  0xe3   : >> { %1191 = vmatprep.subr.mxu0 %v2090_v58  ;;  %1141 = vmatpush2.msra.mxu1 %v2673_v3  ;;  %v2094_v3 = vld [vmem:[%s4308_s1 + $0xe8] sm:$0xff]  ;;  %v2140_v58 = vld [vmem:[%s4308_s1 + $0x180] sm:$0xff] }
  0xe4   : >> { %1142 = vmatprep.mubr.f32.mxu1 %v3687_v24  ;;  %1192 = vmatpush1.msra.mxu0 %v2091_v60  ;;  %v2095_v24 = vld [vmem:[%s4308_s1 + $0xe0] sm:$0xff]  ;;  %v4537_v60 = vld [vmem:[#allocation41_spill] sm:$0xff] }
  0xe5   : >> { %1225 = vmatprep.mubr.f32.mxu0 %v4441_v26  ;;  %1143 = vmatmul.mubr.f32.vlgmr.msra.gmra.mxu1 %v3694_v12  ;;  %v4528_v12 = vld [vmem:[#allocation23_spill] sm:$0xff] }
  0xe6   : >> { %1226 = vmatmul.mubr.f32.vlgmr.msra.gmra.mxu0 %v3409_v34  ;;  %1244 = vmatprep.subr.mxu0 %v2092_v62  ;;  %v4527_v34 = vld [vmem:[#allocation21_spill] sm:$0xff] }
  0xe7   : >> { %1327 = vmatprep.subr.mxu1 %v2688_v9  ;;  %1245 = vmatpush1.msra.mxu0 %v2093_v1  ;;  %v2096_v9 = vld [vmem:[%s4308_s1 + $0xd8] sm:$0xff]  ;;  %v4538_v1 = vld [vmem:[#allocation43_spill] sm:$0xff] }
  0xe8   : >> { %1328 = vmatpush1.msra.mxu1 %v2697_v11  ;;  %1246 = vmatprep.subr.mxu0 %v2094_v3  ;;  %v2097_v11 = vld [vmem:[%s4308_s1 + $0xd0] sm:$0xff]  ;;  %v2141_v62 = vld [vmem:[%s4308_s1 + $0x178] sm:$0xff] }
  0xe9   : >> { %1329 = vmatprep.subr.mxu1 %v2705_v13  ;;  %1247 = vmatpush1.msra.mxu0 %v2095_v24  ;;  %v2098_v13 = vld [vmem:[%s4308_s1 + $0xc8] sm:$0xff]  ;;  %v2142_v3 = vld [vmem:[%s4308_s1 + $0x170] sm:$0xff]  ;;  %v4539_v24 = vld [vmem:[#allocation45_spill] sm:$0xff] }
  0xea   : >> { %1330 = vmatpush1.msra.mxu1 %v2714_v15  ;;  %1248 = vmatprep.subr.mxu0 %v2096_v9  ;;  %v2099_v15 = vld [vmem:[%s4308_s1 + $0xc0] sm:$0xff]  ;;  %v2143_v9 = vld [vmem:[%s4308_s1 + $0x168] sm:$0xff] }
  0xeb   : >> { %1331 = vmatprep.subr.mxu1 %v2723_v17  ;;  %1249 = vmatpush1.msra.mxu0 %v2097_v11  ;;  %v2100_v17 = vld [vmem:[%s4308_s1 + $0xb8] sm:$0xff]  ;;  %v4540_v11 = vld [vmem:[#allocation47_spill] sm:$0xff] }
  0xec   : >> { %1332 = vmatpush1.msra.mxu1 %v2732_v19  ;;  %1250 = vmatprep.subr.mxu0 %v2098_v13  ;;  %v2101_v19 = vld [vmem:[%s4308_s1 + $0xb0] sm:$0xff]  ;;  %v2144_v13 = vld [vmem:[%s4308_s1 + $0x160] sm:$0xff] }
  0xed   : >> { %1333 = vmatprep.subr.mxu1 %v2741_v21  ;;  %1251 = vmatpush1.msra.mxu0 %v2099_v15  ;;  %v2102_v21 = vld [vmem:[%s4308_s1 + $0xa8] sm:$0xff]  ;;  %v4541_v15 = vld [vmem:[#allocation49_spill] sm:$0xff] }
  0xee   : >> { %1334 = vmatpush1.msra.mxu1 %v2750_v23  ;;  %1252 = vmatprep.subr.mxu0 %v2100_v17  ;;  %v2103_v23 = vld [vmem:[%s4308_s1 + $0xa0] sm:$0xff]  ;;  %v2145_v17 = vld [vmem:[%s4308_s1 + $0x158] sm:$0xff] }
  0xef   : >> { %1335 = vmatprep.subr.mxu1 %v2759_v25  ;;  %1253 = vmatpush1.msra.mxu0 %v2101_v19  ;;  %v2104_v25 = vld [vmem:[%s4308_s1 + $0x98] sm:$0xff]  ;;  %v4542_v19 = vld [vmem:[#allocation51_spill] sm:$0xff] }
  0xf0   : >> { %1336 = vmatpush1.msra.mxu1 %v2768_v27  ;;  %1254 = vmatprep.subr.mxu0 %v2102_v21  ;;  %v2105_v27 = vld [vmem:[%s4308_s1 + $0x90] sm:$0xff] }
  0xf1   : >> { %1337 = vmatprep.subr.mxu1 %v2777_v29  ;;  %1255 = vmatpush1.msra.mxu0 %v2103_v23  ;;  %v2106_v29 = vld [vmem:[%s4308_s1 + $0x88] sm:$0xff]  ;;  %v2146_v21 = vld [vmem:[%s4308_s1 + $0x150] sm:$0xff]  ;;  %v4543_v23 = vld [vmem:[#allocation53_spill] sm:$0xff] }
  0xf2   : >> { %1338 = vmatpush1.msra.mxu1 %v2786_v31  ;;  %1256 = vmatprep.subr.mxu0 %v2104_v25  ;;  %v2107_v31 = vld [vmem:[%s4308_s1 + $0x80] sm:$0xff]  ;;  %v4544_v25 = vld [vmem:[#allocation3_spill] sm:$0xff] }
  0xf3   : >> { %1339 = vmatprep.subr.mxu1 %v2795_v33  ;;  %1257 = vmatpush1.msra.mxu0 %v2105_v27  ;;  %v2108_v33 = vld [vmem:[%s4308_s1 + $0x78] sm:$0xff]  ;;  %v4545_v27 = vld [vmem:[#allocation55_spill] sm:$0xff] }
  0xf4   : >> { %1340 = vmatpush1.msra.mxu1 %v2804_v35  ;;  %1258 = vmatprep.subr.mxu0 %v2106_v29  ;;  %v2109_v35 = vld [vmem:[%s4308_s1 + $0x70] sm:$0xff] }
  0xf5   : >> { %1341 = vmatprep.subr.mxu1 %v2813_v37  ;;  %1259 = vmatpush1.msra.mxu0 %v2107_v31  ;;  %v2110_v37 = vld [vmem:[%s4308_s1 + $0x68] sm:$0xff]  ;;  %v4546_v29 = vld [vmem:[#allocation4_spill] sm:$0xff]  ;;  %v4547_v31 = vld [vmem:[#allocation57_spill] sm:$0xff] }
  0xf6   : >> { %1342 = vmatpush1.msra.mxu1 %v2822_v41  ;;  %1260 = vmatprep.subr.mxu0 %v2108_v33  ;;  %v2111_v41 = vld [vmem:[%s4308_s1 + $0x60] sm:$0xff]  ;;  %v4548_v33 = vld [vmem:[#allocation5_spill] sm:$0xff] }
  0xf7   : >> { %1343 = vmatprep.subr.mxu1 %v2831_v45  ;;  %1261 = vmatpush1.msra.mxu0 %v2109_v35  ;;  %v2112_v45 = vld [vmem:[%s4308_s1 + $0x58] sm:$0xff]  ;;  %v4549_v35 = vld [vmem:[#allocation59_spill] sm:$0xff] }
  0xf8   : >> { %1344 = vmatpush1.msra.mxu1 %v2840_v49  ;;  %1262 = vmatprep.subr.mxu0 %v2110_v37  ;;  %v2113_v49 = vld [vmem:[%s4308_s1 + $0x50] sm:$0xff]  ;;  %v4550_v37 = vld [vmem:[#allocation6_spill] sm:$0xff] }
  0xf9   : >> { %1345 = vmatprep.subr.mxu1 %v2849_v53  ;;  %1263 = vmatpush1.msra.mxu0 %v2111_v41  ;;  %v2114_v53 = vld [vmem:[%s4308_s1 + $0x48] sm:$0xff]  ;;  %v4551_v41 = vld [vmem:[#allocation61_spill] sm:$0xff] }
  0xfa   : >> { %1346 = vmatpush1.msra.mxu1 %v2858_v57  ;;  %1264 = vmatprep.subr.mxu0 %v2112_v45  ;;  %v2115_v57 = vld [vmem:[%s4308_s1 + $0x40] sm:$0xff]  ;;  %v4552_v45 = vld [vmem:[#allocation7_spill] sm:$0xff] }
  0xfb   : >> { %1347 = vmatprep.subr.mxu1 %v2867_v61  ;;  %1265 = vmatpush1.msra.mxu0 %v2113_v49  ;;  %v2116_v61 = vld [vmem:[%s4308_s1 + $0x38] sm:$0xff]  ;;  %v4553_v49 = vld [vmem:[#allocation63_spill] sm:$0xff] }
  0xfc   : >> { %1348 = vmatpush1.msra.mxu1 %v2876_v2  ;;  %1148 = vmatprep.mubr.f32.mxu1 %v3713_v4  ;;  %v2117_v2 = vld [vmem:[%s4308_s1 + $0x30] sm:$0xff]  ;;  %v2128_v4 = vld [vmem:[%s4308_s1 + $0x1e0] sm:$0xff] }
  0xfd   : >> { %1231 = vmatprep.mubr.f32.mxu0 %v4441_v26  ;;  %1266 = vmatprep.subr.mxu0 %v2114_v53  ;;  %v4554_v53 = vld [vmem:[#allocation8_spill] sm:$0xff] }
  0xfe   : >> { %1349 = vmatprep.subr.mxu1 %v2889_v6  ;;  %1149 = vmatmul.mubr.f32.gmra.mxu1 %v3728_v20  ;;  %v2118_v6 = vld [vmem:[%s4308_s1 + $0x28] sm:$0xff] }
  0xff   : >> { %1232 = vmatmul.mubr.f32.gmra.mxu0 %v3731_v55  ;;  %1350 = vmatpush1.msra.mxu1 %v2903_v14  ;;  %v2119_v14 = vld [vmem:[%s4308_s1 + $0x20] sm:$0xff]  ;;  %v2130_v55 = vld [vmem:[%s4308_s1 + $0x1d0] sm:$0xff]  ;;  %v2131_v20 = vld [vmem:[%s4308_s1 + $0x1c8] sm:$0xff] }
 0x100   : >> { %1267 = vmatpush1.msra.mxu0 %v2115_v57  ;;  %1351 = vmatprep.subr.mxu1 %v2915_v18  ;;  %v2120_v18 = vld [vmem:[%s4308_s1 + $0x18] sm:$0xff] }
 0x101   : >> { %1268 = vmatprep.subr.mxu0 %v2116_v61  ;;  %1352 = vmatpush1.msra.mxu1 %v2925_v22  ;;  %v2121_v22 = vld [vmem:[%s4308_s1 + $0x10] sm:$0xff]  ;;  %v4555_v57 = vld [vmem:[#allocation65_spill] sm:$0xff] }
 0x102   : >> { %1269 = vmatpush1.msra.mxu0 %v2117_v2  ;;  %1154 = vmatprep.mubr.f32.mxu1 %v3750_v5  ;;  %v2132_v5 = vld [vmem:[%s4308_s1 + $0x1c0] sm:$0xff]  ;;  %v4556_v61 = vld [vmem:[#allocation9_spill] sm:$0xff]  ;;  %v4557_v2 = vld [vmem:[#allocation67_spill] sm:$0xff] }
 0x103   : >> { %1237 = vmatprep.mubr.f32.mxu0 %v4441_v26  ;;  %1270 = vmatprep.subr.mxu0 %v2118_v6  ;;  %v4558_v6 = vld [vmem:[#allocation10_spill] sm:$0xff] }
 0x104   : >> { %1353 = vmatprep.subr.mxu1 %v2940_v28  ;;  %1155 = vmatmul.mubr.f32.gmra.mxu1 %v3765_v32  ;;  %v2122_v28 = vld [vmem:[%s4308_s1 + $0x8] sm:$0xff] }
 0x105   : >> { %1238 = vmatmul.mubr.f32.gmra.mxu0 %v3768_v10  ;;  %1354 = vmatpush1.msra.mxu1 %v2955_v36  ;;  %v2123_v36 = vld [vmem:[%s4308_s1] sm:$0xff]  ;;  %v4524_v32 = vld [vmem:[#allocation15_spill] sm:$0xff]  ;;  %v2129_v10 = vld [vmem:[%s4308_s1 + $0x1d8] sm:$0xff] }
 0x106   : >> { %1271 = vmatpush1.msra.mxu0 %v2119_v14  ;;  %1355 = vmatprep.subr.mxu1 %v2967_v43  ;;  %v2124_v43 = vld [vmem:[%s4308_s1 + $0x1f8] sm:$0xff] }
 0x107   : >> { %1272 = vmatprep.subr.mxu0 %v2120_v18  ;;  %1356 = vmatpush1.msra.mxu1 %v2977_v51  ;;  %v2125_v51 = vld [vmem:[%s2434_s24 + $0x58] sm:$0xff]  ;;  %v4560_v18 = vld [vmem:[#allocation11_spill] sm:$0xff] }
 0x108   : >> { %1273 = vmatpush1.msra.mxu0 %v2121_v22  ;;  %1357 = vmatprep.subr.mxu1 %v2989_v59  ;;  %v2126_v59 = vld [vmem:[%s4308_s1 + $0x1f0] sm:$0xff]  ;;  %v4559_v14 = vld [vmem:[#allocation69_spill] sm:$0xff]  ;;  %v4561_v22 = vld [vmem:[#allocation71_spill] sm:$0xff] }
 0x109   : >> { %1274 = vmatprep.subr.mxu0 %v2122_v28  ;;  %1358 = vmatpush1.msra.mxu1 %v3004_v8  ;;  %v2127_v8 = vld [vmem:[%s4308_s1 + $0x1e8] sm:$0xff]  ;;  %v4562_v28 = vld [vmem:[#allocation12_spill] sm:$0xff] }
 0x10a   : >> { %1275 = vmatpush1.msra.mxu0 %v2123_v36  ;;  %1391 = vmatprep.mubr.f32.mxu1 %v4441_v26  ;;  %v2147_v36 = vld [vmem:[%s2434_s24 + $0x50] sm:$0xff] }
 0x10b   : >> { %1276 = vmatprep.subr.mxu0 %v2124_v43  ;;  %1392 = vmatmul.mubr.f32.vlgmr.msra.gmra.mxu1 %v2125_v51  ;;  %v4563_v43 = vld [vmem:[#allocation73_spill] sm:$0xff]  ;;  %v2148_v51 = vld [vmem:[%s2434_s24 + $0x48] sm:$0xff] }
 0x10c   : >> { %1423 = vmatprep.subr.mxu1 %v3014_v30  ;;  %1277 = vmatpush2.msra.mxu0 %v2126_v59  ;;  %v4525_v30 = vld [vmem:[#allocation17_spill] sm:$0xff]  ;;  %v4564_v59 = vld [vmem:[#allocation75_spill] sm:$0xff] }
 0x10d   : >> { %1424 = vmatpush1.msra.mxu1 %v3026_v0  ;;  %1278 = vmatprep.subr.mxu0 %v2127_v8  ;;  %v4526_v0 = vld [vmem:[#allocation19_spill] sm:$0xff]  ;;  %v4565_v8 = vld [vmem:[#allocation13_spill] sm:$0xff] }
 0x10e   : >> { %1425 = vmatprep.subr.mxu1 %v4524_v32  ;;  %1279 = vmatpush2.msra.mxu0 %v2128_v4  ;;  %v4566_v32 = vld [vmem:[#allocation76_spill] sm:$0xff]  ;;  %v4567_v4 = vld [vmem:[#allocation14_spill] sm:$0xff] }
 0x10f   : >> { %1426 = vmatpush1.msra.mxu1 %v4525_v30  ;;  %1280 = vmatprep.subr.mxu0 %v2129_v10  ;;  %v4568_v30 = vld [vmem:[#allocation77_spill] sm:$0xff]  ;;  %v4569_v10 = vld [vmem:[#allocation16_spill] sm:$0xff] }
 0x110   : >> { %1427 = vmatprep.subr.mxu1 %v4526_v0  ;;  %1281 = vmatpush2.msra.mxu0 %v2130_v55  ;;  %v2149_v0 = vld [vmem:[%s2434_s24 + $0x68] sm:$0xff]  ;;  %v4570_v55 = vld [vmem:[#allocation78_spill] sm:$0xff] }
 0x111   : >> { %1428 = vmatpush1.msra.mxu1 %v4527_v34  ;;  %1282 = vmatprep.subr.mxu0 %v2131_v20  ;;  %v4571_v34 = vld [vmem:[#allocation18_spill] sm:$0xff]  ;;  %v4572_v20 = vld [vmem:[#allocation79_spill] sm:$0xff] }
 0x112   : >> { %1429 = vmatprep.subr.mxu1 %v4528_v12  ;;  %1283 = vmatpush2.msra.mxu0 %v2132_v5  ;;  %v2150_v12 = vld [vmem:[%s2434_s24 + $0x60] sm:$0xff]  ;;  %v4573_v5 = vld [vmem:[#allocation20_spill] sm:$0xff] }
 0x113   : >> { %1430 = vmatpush1.msra.mxu1 %v4529_v7  ;;  %1284 = vmatprep.subr.mxu0 %v2133_v39  ;;  %v4574_v7 = vld [vmem:[#allocation80_spill] sm:$0xff]  ;;  %v4575_v39 = vld [vmem:[#allocation22_spill] sm:$0xff] }
 0x114   : >> { %1431 = vmatprep.subr.mxu1 %v4530_v47  ;;  %1285 = vmatpush2.msra.mxu0 %v2134_v63  ;;  %v2151_v47 = vld [vmem:[%s2434_s24 + $0x70] sm:$0xff]  ;;  %v4576_v63 = vld [vmem:[#allocation81_spill] sm:$0xff] }
 0x115   : >> { %1432 = vmatpush1.msra.mxu1 %v4531_v16  ;;  %1286 = vmatprep.subr.mxu0 %v2135_v38  ;;  %v4577_v16 = vld [vmem:[#allocation24_spill] sm:$0xff]  ;;  %v2152_v38 = vld [vmem:[%s2434_s24 + $0x80] sm:$0x3] }
 0x116   : >> { %1433 = vmatprep.subr.mxu1 %v4532_v40  ;;  %1287 = vmatpush2.msra.mxu0 %v2136_v42  ;;  %v4578_v40 = vld [vmem:[#allocation82_spill] sm:$0xff] }
 0x117   : >> { %1434 = vmatpush1.msra.mxu1 %v4533_v44  ;;  %1288 = vmatprep.subr.mxu0 %v2137_v46  ;;  %v4579_v42 = vld [vmem:[#allocation26_spill] sm:$0xff]  ;;  %v4580_v44 = vld [vmem:[#allocation83_spill] sm:$0xff]  ;;  %v2153_v46 = vld [vmem:[%s2434_s24 + $0x78] sm:$0x3] }
 0x118   : >> { %1435 = vmatprep.subr.mxu1 %v4534_v48  ;;  %1289 = vmatpush2.msra.mxu0 %v2138_v50  ;;  %v4581_v48 = vld [vmem:[#allocation28_spill] sm:$0xff] }
 0x119   : >> { %1436 = vmatpush1.msra.mxu1 %v4535_v52  ;;  %1290 = vmatprep.subr.mxu0 %v2139_v54  ;;  %v4582_v50 = vld [vmem:[#allocation84_spill] sm:$0xff]  ;;  %v4583_v52 = vld [vmem:[#allocation30_spill] sm:$0xff]  ;;  %v2154_v54 = vld [vmem:[%s2434_s24 + $0x88] sm:$0x3] }
 0x11a   : >> { %1437 = vmatprep.subr.mxu1 %v4536_v56  ;;  %1291 = vmatpush2.msra.mxu0 %v2140_v58  ;;  %v4584_v56 = vld [vmem:[#allocation85_spill] sm:$0xff]  ;;  %v4585_v58 = vld [vmem:[#allocation32_spill] sm:$0xff] }
 0x11b   : >> { %1438 = vmatpush1.msra.mxu1 %v4537_v60  ;;  %1292 = vmatprep.subr.mxu0 %v2141_v62  ;;  %v4586_v60 = vld [vmem:[#allocation86_spill] sm:$0xff] }
 0x11c   : >> { %1439 = vmatprep.subr.mxu1 %v4538_v1  ;;  %1293 = vmatpush2.msra.mxu0 %v2142_v3  ;;  %v4587_v62 = vld [vmem:[#allocation34_spill] sm:$0xff]  ;;  %v4588_v1 = vld [vmem:[#allocation87_spill] sm:$0xff]  ;;  %v4589_v3 = vld [vmem:[#allocation36_spill] sm:$0xff] }
 0x11d   : >> { %1440 = vmatpush1.msra.mxu1 %v4539_v24  ;;  %1294 = vmatprep.subr.mxu0 %v2143_v9  ;;  %v4590_v24 = vld [vmem:[#allocation88_spill] sm:$0xff]  ;;  %v4591_v9 = vld [vmem:[#allocation38_spill] sm:$0xff] }
 0x11e   : >> { %1441 = vmatprep.subr.mxu1 %v4540_v11  ;;  %1295 = vmatpush2.msra.mxu0 %v2144_v13  ;;  %v4592_v11 = vld [vmem:[#allocation89_spill] sm:$0xff]  ;;  %v4593_v13 = vld [vmem:[#allocation40_spill] sm:$0xff] }
 0x11f   : >> { %1442 = vmatpush1.msra.mxu1 %v4541_v15  ;;  %1296 = vmatprep.subr.mxu0 %v2145_v17  ;;  %v4594_v15 = vld [vmem:[#allocation90_spill] sm:$0xff] }
 0x120   : >> { %1443 = vmatprep.subr.mxu1 %v4542_v19  ;;  %1297 = vmatpush2.msra.mxu0 %v2146_v21  ;;  %v4595_v17 = vld [vmem:[#allocation42_spill] sm:$0xff]  ;;  %v4596_v19 = vld [vmem:[#allocation91_spill] sm:$0xff]  ;;  %v4597_v21 = vld [vmem:[#allocation44_spill] sm:$0xff] }
 0x121   : >> { %1444 = vmatpush1.msra.mxu1 %v4543_v23  ;;  %1298 = vmatprep.subr.mxu0 %v4544_v25  ;;  %v4598_v23 = vld [vmem:[#allocation92_spill] sm:$0xff]  ;;  %v4599_v25 = vld [vmem:[#allocation46_spill] sm:$0xff] }
 0x122   : >> { %1445 = vmatprep.subr.mxu1 %v4545_v27  ;;  %1299 = vmatpush2.msra.mxu0 %v4546_v29  ;;  %v4600_v27 = vld [vmem:[#allocation93_spill] sm:$0xff]  ;;  %v4601_v29 = vld [vmem:[#allocation48_spill] sm:$0xff] }
 0x123   : >> { %1446 = vmatpush1.msra.mxu1 %v4547_v31  ;;  %1300 = vmatprep.subr.mxu0 %v4548_v33  ;;  %v4602_v31 = vld [vmem:[#allocation94_spill] sm:$0xff] }
 0x124   : >> { %1447 = vmatprep.subr.mxu1 %v4549_v35  ;;  %1301 = vmatpush2.msra.mxu0 %v4550_v37  ;;  %v4603_v33 = vld [vmem:[#allocation50_spill] sm:$0xff]  ;;  %v4604_v35 = vld [vmem:[#allocation95_spill] sm:$0xff]  ;;  %v4605_v37 = vld [vmem:[#allocation52_spill] sm:$0xff] }
 0x125   : >> { %1448 = vmatpush1.msra.mxu1 %v4551_v41  ;;  %1302 = vmatprep.subr.mxu0 %v4552_v45  ;;  %v4606_v41 = vld [vmem:[#allocation96_spill] sm:$0xff]  ;;  %v4607_v45 = vld [vmem:[#allocation54_spill] sm:$0xff] }
 0x126   : >> { %1449 = vmatprep.subr.mxu1 %v4553_v49  ;;  %1303 = vmatpush2.msra.mxu0 %v4554_v53  ;;  %v4608_v49 = vld [vmem:[#allocation97_spill] sm:$0xff]  ;;  %v4609_v53 = vld [vmem:[#allocation56_spill] sm:$0xff] }
 0x127   : >> { %1450 = vmatpush1.msra.mxu1 %v4555_v57  ;;  %1304 = vmatprep.subr.mxu0 %v4556_v61  ;;  %v4610_v57 = vld [vmem:[#allocation98_spill] sm:$0xff] }
 0x128   : >> { %1451 = vmatprep.subr.mxu1 %v4557_v2  ;;  %1305 = vmatpush2.msra.mxu0 %v4558_v6  ;;  %v4611_v61 = vld [vmem:[#allocation58_spill] sm:$0xff]  ;;  %v4612_v2 = vld [vmem:[#allocation99_spill] sm:$0xff]  ;;  %v4613_v6 = vld [vmem:[#allocation60_spill] sm:$0xff] }
 0x129   : >> { %1452 = vmatpush1.msra.mxu1 %v4559_v14  ;;  %1306 = vmatprep.subr.mxu0 %v4560_v18  ;;  %v4614_v14 = vld [vmem:[#allocation100_spill] sm:$0xff]  ;;  %v4615_v18 = vld [vmem:[#allocation62_spill] sm:$0xff] }
 0x12a   : >> { %1453 = vmatprep.subr.mxu1 %v4561_v22  ;;  %1307 = vmatpush2.msra.mxu0 %v4562_v28  ;;  %v4616_v22 = vld [vmem:[#allocation101_spill] sm:$0xff]  ;;  %v4617_v28 = vld [vmem:[#allocation64_spill] sm:$0xff] }
 0x12b   : >> { %1308 = vmatprep.mubr.f32.mxu0 %v2147_v36  ;;  %1454 = vmatpush1.msra.mxu1 %v4563_v43  ;;  %v4618_v36 = vld [vmem:[#allocation102_spill] sm:$0xff] }
 0x12c   : >> { %1309 = vmatmul.mubr.f32.vlgmr.msra.gmra.mxu0 %v2148_v51  ;;  %1455 = vmatprep.subr.mxu1 %v4564_v59  ;;  %v4619_v43 = vld [vmem:[#allocation66_spill] sm:$0xff]  ;;  %v4620_v51 = vld [vmem:[#allocation103_spill] sm:$0xff]  ;;  %v4621_v59 = vld [vmem:[#allocation68_spill] sm:$0xff] }
 0x12d   : >> { %1506 = vmatprep.subr.mxu0 %v4565_v8  ;;  %1456 = vmatpush2.msra.mxu1 %v4566_v32  ;;  %v1965_v8 = vld [vmem:[%s2434_s24 + $0xe0] sm:$0xff]  ;;  %v4622_v32 = vld [vmem:[#allocation104_spill] sm:$0xff] }
 0x12e   : >> { %1507 = vmatpush1.msra.mxu0 %v4567_v4  ;;  %1457 = vmatprep.subr.mxu1 %v4568_v30  ;;  %v4623_v4 = vld [vmem:[#allocation70_spill] sm:$0xff]  ;;  %v4624_v30 = vld [vmem:[#allocation105_spill] sm:$0xff] }
 0x12f   : >> { %1508 = vmatprep.subr.mxu0 %v4569_v10  ;;  %1314 = vmatprep.mubr.f32.mxu0 %v2149_v0  ;;  %v4625_v10 = vld [vmem:[#allocation72_spill] sm:$0xff]  ;;  %v1964_v0 = vld [vmem:[%s2434_s24 + $0xd8] sm:$0xff] }
 0x130   : >> { %1458 = vmatpush2.msra.mxu1 %v4570_v55  ;;  %1509 = vmatpush1.msra.mxu0 %v4571_v34  ;;  %v1966_v55 = vld [vmem:[%s2434_s24 + $0xe8] sm:$0xff]  ;;  %v4626_v34 = vld [vmem:[#allocation106_spill] sm:$0xff] }
 0x131   : >> { %1459 = vmatprep.subr.mxu1 %v4572_v20  ;;  %1315 = vmatmul.mubr.f32.gmra.mxu0 %v2150_v12  ;;  %v1968_v20 = vld [vmem:[%s2434_s24 + $0xf8] sm:$0xff]  ;;  %v4627_v12 = vld [vmem:[#allocation74_spill] sm:$0xff] }
 0x132   : >> { %1510 = vmatprep.subr.mxu0 %v4573_v5  ;;  %1397 = vmatprep.mubr.f32.mxu1 %v4441_v26  ;;  %v1967_v5 = vld [vmem:[%s2434_s24 + $0xf0] sm:$0xff] }
 0x133   : >> { %1460 = vmatpush2.msra.mxu1 %v4574_v7  ;;  %1511 = vmatpush1.msra.mxu0 %v4575_v39  ;;  %v1969_v7 = vld [vmem:[%s2434_s24 + $0x100] sm:$0xff]  ;;  %v1971_v39 = vld [vmem:[%s2434_s24 + $0x110] sm:$0x3] }
 0x134   : >> { %1398 = vmatmul.mubr.f32.gmra.mxu1 %v2151_v47  ;;  %1461 = vmatprep.subr.mxu1 %v4576_v63  ;;  %v1970_v47 = vld [vmem:[%s2434_s24 + $0x108] sm:$0x3]  ;;  %v1972_v63 = vld [vmem:[%s2434_s24 + $0x118] sm:$0x3]  ;;  %s1616_s24 = smul.u32 24, %s2185_s26  ;;  %s221_s26 = sadd.s32 1, %s2185_s26  }
 0x135   : >> { %1512 = vmatprep.subr.mxu0 %v4577_v16  ;;  %1320 = vmatprep.mubr.f32.mxu0 %v2152_v38  ;;  %v590_v16 = vpop.f32.mrf.mxu1  ;;  %v507_v38 = vpop.f32.mrf.mxu0  ;;  %p218_p5 = scmp.ge.s32.totalorder %s221_s26, 18  }
 0x136   : >> { %1462 = vmatpush2.msra.mxu1 %v4578_v40  ;;  %1513 = vmatpush1.msra.mxu0 %v4579_v42  ;;  %s1617_s29 = scalar_lea.vmem %s2239_s25, %s1616_s24 }
 0x137   : >> { %1463 = vmatprep.subr.mxu1 %v4580_v44  ;;  %1321 = vmatmul.mubr.f32.gmra.mxu0 %v2153_v46  ;;  %v592_v40 = vpop.f32.mrf.mxu1  ;;  %v509_v42 = vpop.f32.mrf.mxu0 }
 0x138   : >> { %1514 = vmatprep.subr.mxu0 %v4581_v48  ;;  %1403 = vmatprep.mubr.f32.mxu1 %v4441_v26 }
 0x139   : >> { %1464 = vmatpush2.msra.mxu1 %v4582_v50  ;;  %1515 = vmatpush1.msra.mxu0 %v4583_v52  ;;  %v513_v44 = vpop.f32.mrf.mxu0  ;;  %v596_v46 = vpop.f32.mrf.mxu1 }
 0x13a   : >> { %1404 = vmatmul.mubr.f32.gmra.mxu1 %v2154_v54  ;;  %1465 = vmatprep.subr.mxu1 %v4584_v56 }
 0x13b   : >> { %1516 = vmatprep.subr.mxu0 %v4585_v58  ;;  %1466 = vmatpush2.msra.mxu1 %v4586_v60  ;;  %v515_v48 = vpop.f32.mrf.mxu0  ;;  %v598_v50 = vpop.f32.mrf.mxu1 }
 0x13c   : >> { %1517 = vmatpush1.msra.mxu0 %v4587_v62  ;;  %1467 = vmatprep.subr.mxu1 %v4588_v1 }
 0x13d   : >> { %1518 = vmatprep.subr.mxu0 %v4589_v3  ;;  %1468 = vmatpush2.msra.mxu1 %v4590_v24  ;;  %v519_v52 = vpop.f32.mrf.mxu0  ;;  %v602_v54 = vpop.f32.mrf.mxu1 }
 0x13e   : >> { %1519 = vmatpush1.msra.mxu0 %v4591_v9  ;;  %1469 = vmatprep.subr.mxu1 %v4592_v11 }
 0x13f   : >> { %1520 = vmatprep.subr.mxu0 %v4593_v13  ;;  %1470 = vmatpush2.msra.mxu1 %v4594_v15  ;;  %v521_v56 = vpop.f32.mrf.mxu0  ;;  %v604_v58 = vpop.f32.mrf.mxu1 }
 0x140   : >> { %1521 = vmatpush1.msra.mxu0 %v4595_v17  ;;  %1471 = vmatprep.subr.mxu1 %v4596_v19 }
 0x141   : >> { %1522 = vmatprep.subr.mxu0 %v4597_v21  ;;  %1472 = vmatpush2.msra.mxu1 %v4598_v23  ;;  %v673_v60 = vpop.f32.mrf.mxu1  ;;  %v756_v62 = vpop.f32.mrf.mxu0 }
 0x142   : >> { %1523 = vmatpush1.msra.mxu0 %v4599_v25  ;;  %1473 = vmatprep.subr.mxu1 %v4600_v27 }
 0x143   : >> { %1524 = vmatprep.subr.mxu0 %v4601_v29  ;;  %1474 = vmatpush2.msra.mxu1 %v4602_v31  ;;  %v675_v1 = vpop.f32.mrf.mxu1 }
 0x144   : >> { %1525 = vmatpush1.msra.mxu0 %v4603_v33  ;;  %1475 = vmatprep.subr.mxu1 %v4604_v35 }
 0x145   : >> { %1526 = vmatprep.subr.mxu0 %v4605_v37  ;;  %1476 = vmatpush2.msra.mxu1 %v4606_v41  ;;  %v679_v24 = vpop.f32.mrf.mxu1 }
 0x146   : >> { %1527 = vmatpush1.msra.mxu0 %v4607_v45  ;;  %1477 = vmatprep.subr.mxu1 %v4608_v49 }
 0x147   : >> { %1528 = vmatprep.subr.mxu0 %v4609_v53  ;;  %1478 = vmatpush2.msra.mxu1 %v4610_v57  ;;  %v681_v11 = vpop.f32.mrf.mxu1 }
 0x148   : >> { %1529 = vmatpush1.msra.mxu0 %v4611_v61  ;;  %1479 = vmatprep.subr.mxu1 %v4612_v2 }
 0x149   : >> { %1530 = vmatprep.subr.mxu0 %v4613_v6  ;;  %1480 = vmatpush2.msra.mxu1 %v4614_v14  ;;  %v685_v15 = vpop.f32.mrf.mxu1 }
 0x14a   : >> { %1531 = vmatpush1.msra.mxu0 %v4615_v18  ;;  %1481 = vmatprep.subr.mxu1 %v4616_v22 }
 0x14b   : >> { %1532 = vmatprep.subr.mxu0 %v4617_v28  ;;  %1482 = vmatpush2.msra.mxu1 %v4618_v36  ;;  %v687_v19 = vpop.f32.mrf.mxu1 }
 0x14c   : >> { %1533 = vmatpush1.msra.mxu0 %v4619_v43  ;;  %1483 = vmatprep.subr.mxu1 %v4620_v51 }
 0x14d   : >> { %1534 = vmatprep.subr.mxu0 %v4621_v59  ;;  %1484 = vmatpush2.msra.mxu1 %v4622_v32 }
 0x14e   : >> { %1535 = vmatpush1.msra.mxu0 %v4623_v4  ;;  %1485 = vmatprep.subr.mxu1 %v4624_v30  ;;  %v1056_v30 = vlaneseq }
 0x14f   : >> { %1536 = vmatprep.subr.mxu0 %v4625_v10  ;;  %1486 = vmatpush2.msra.mxu1 %v4626_v34 }
 0x150   : >> { %1487 = vmatprep.mubr.f32.mxu1 %v1965_v8  ;;  %1537 = vmatpush1.msra.mxu0 %v4627_v12  ;;  %v1057_v34 = vshrl.u32 %v1056_v30, 7 }
 0x151   : >> { %1570 = vmatprep.mubr.f32.mxu0 %v4441_v26  ;;  %1488 = vmatmul.mubr.f32.vlgmr.msra.gmra.mxu1 %v1964_v0 }
 0x152   : >> { %1571 = vmatmul.mubr.f32.vlgmr.msra.gmra.mxu0 %v1966_v55  ;;  %1493 = vmatprep.mubr.f32.mxu1 %v1968_v20  ;;  %v591_v55 = vadd.f32 %v590_v16, %v507_v38  ;;  %v593_v20 = vadd.f32 %v592_v40, %v509_v42 }
 0x153   : >> { %1576 = vmatprep.mubr.f32.mxu0 %v4441_v26 }
 0x155   : >> { %1494 = vmatmul.mubr.f32.gmra.mxu1 %v1967_v5 }
 0x156   : >> { %1577 = vmatmul.mubr.f32.gmra.mxu0 %v1969_v7  ;;  %1499 = vmatprep.mubr.f32.mxu1 %v1971_v39  ;;  %v674_v7 = vadd.f32 %v673_v60, %v591_v55  ;;  %v676_v39 = vadd.f32 %v675_v1, %v593_v20  ;;  %v4638_v60 = vld [vmem:[#allocation2_spill] sm:$0xff] }
 0x157   : >> { %1582 = vmatprep.mubr.f32.mxu0 %v4441_v26  ;;  %v758_v26 = vpop.f32.mrf.mxu0 }
 0x158   : >> { %v759_v38 = vadd.f32 %v758_v26, %v676_v39 }
 0x159   : >> { %1500 = vmatmul.mubr.f32.gmra.mxu1 %v1970_v47  ;;  %v4230_v3 = vpop.f32.mrf.mxu0  ;;  %v597_v47 = vadd.f32 %v596_v46, %v513_v44 }
 0x15a   : >> { %1583 = vmatmul.mubr.f32.gmra.mxu0 %v1972_v63  ;;  %v1058_v63 = vsub.s32 0, %v1057_v34 }
 0x15b   : >> { %v4232_v9 = vpop.f32.mrf.mxu0  ;;  %v680_v40 = vadd.f32 %v679_v24, %v597_v47 }
 0x15c   : >> { %v4261_v1 = vrot.slane %v4638_v60, %v1058_v63 }
 0x15d   : >> { %v4234_v13 = vpop.f32.mrf.mxu0  ;;  %v763_v24 = vadd.f32 %v4230_v3, %v680_v40 }
 0x15f   : >> { %v4236_v17 = vpop.f32.mrf.mxu0  ;;  %v1032_v23 = vpop.f32.mrf.mxu1 }
 0x161   : >> { %v1034_v27 = vpop.f32.mrf.mxu1 }
 0x180   : >> { %v949_v21 = vpop.f32.mrf.mxu0 }
 0x182   : >> { %v951_v25 = vpop.f32.mrf.mxu0 }
 0x185   : >> { %v1038_v31 = vpop.f32.mrf.mxu1 }
 0x186   : >> { %v955_v29 = vpop.f32.mrf.mxu0 }
 0x187   : >> { %v1040_v35 = vpop.f32.mrf.mxu1 }
 0x188   : >> { %v957_v33 = vpop.f32.mrf.mxu0 }
 0x18b   : >> { %v4240_v41 = vpop.f32.mrf.mxu1 }
 0x18c   : >> { %v4238_v37 = vpop.f32.mrf.mxu0  ;;  %4629 = vst [vmem:[#allocation17_spill] sm:$0xff] %v4240_v41 }
 0x18d   : >> { %4628 = vst [vmem:[#allocation15_spill] sm:$0xff] %v4238_v37  ;;  %v4244_v49 = vpop.f32.mrf.mxu1  ;;  %v605_v37 = vadd.f32 %v604_v58, %v521_v56  ;;  %v1041_v58 = vadd.f32 %v1040_v35, %v957_v33 }
 0x18e   : >> { %v4242_v45 = vpop.f32.mrf.mxu0  ;;  %4631 = vst [vmem:[#allocation21_spill] sm:$0xff] %v4244_v49  ;;  %v1035_v49 = vadd.f32 %v1034_v27, %v951_v25 }
 0x18f   : >> { %4630 = vst [vmem:[#allocation19_spill] sm:$0xff] %v4242_v45 }
 0x1a5   : >> { %v1144_v53 = vpop.f32.mrf.mxu1 }
 0x1a6   : >> { %v1227_v57 = vpop.f32.mrf.mxu0 }
 0x1a7   : >> { %v1146_v61 = vpop.f32.mrf.mxu1  ;;  %v1228_v16 = vadd.f32 %v1227_v57, %v1144_v53 }
 0x1a8   : >> { %v1229_v2 = vpop.f32.mrf.mxu0 }
 0x1a9   : >> { %v1230_v44 = vadd.f32 %v1229_v2, %v1146_v61 }
 0x1be   : >> { %v1150_v6 = vpop.f32.mrf.mxu1 }
 0x1bf   : >> { %v1233_v14 = vpop.f32.mrf.mxu0 }
 0x1c0   : >> { %v1152_v18 = vpop.f32.mrf.mxu1 }
 0x1c1   : >> { %v1235_v22 = vpop.f32.mrf.mxu0 }
 0x1c4   : >> { %v4246_v28 = vpop.f32.mrf.mxu1 }
 0x1c5   : >> { %4632 = vst [vmem:[#allocation23_spill] sm:$0xff] %v4246_v28  ;;  %v4248_v36 = vpop.f32.mrf.mxu0  ;;  %v1033_v28 = vadd.f32 %v1032_v23, %v949_v21 }
 0x1c6   : >> { %4633 = vst [vmem:[#allocation25_spill] sm:$0xff] %v4248_v36  ;;  %v4250_v43 = vpop.f32.mrf.mxu1  ;;  %v603_v36 = vadd.f32 %v602_v54, %v519_v52  ;;  %v1039_v54 = vadd.f32 %v1038_v31, %v955_v29 }
 0x1c7   : >> { %4634 = vst [vmem:[#allocation27_spill] sm:$0xff] %v4250_v43  ;;  %v4252_v51 = vpop.f32.mrf.mxu0  ;;  %v1062_v43 = vsub.s32 1, %v1057_v34 }
 0x1c8   : >> { %4635 = vst [vmem:[#allocation29_spill] sm:$0xff] %v4252_v51  ;;  %v599_v51 = vadd.f32 %v598_v50, %v515_v48  ;;  %v686_v30 = vadd.f32 %v685_v15, %v603_v36  ;;  %v1050_v50 = vadd.f32 %v1035_v49, %v759_v38  ;;  %v1051_v33 = vadd.f32 %v1039_v54, %v763_v24 }
 0x1c9   : >> { %v4264_v52 = vrot.slane %v4638_v60, %v1062_v43 }
 0x1ca   : >> { %v682_v42 = vadd.f32 %v681_v11, %v599_v51  ;;  %v769_v15 = vadd.f32 %v4234_v13, %v686_v30 }
 0x1cb   : >> { %v1393_v8 = vpop.f32.mrf.mxu1  ;;  %v1067_v31 = vadd.f32 %v4264_v52, %v1050_v50 }
 0x1cc   : >> { %v765_v11 = vadd.f32 %v4232_v9, %v682_v42  ;;  %v4643_v36 = vld [vmem:[#allocation23_spill] sm:$0xff] }
 0x1cd   : >> { %v1395_v4 = vpop.f32.mrf.mxu1  ;;  %v4644_v43 = vld [vmem:[#allocation25_spill] sm:$0xff] }
 0x1ce   : >> { %v1052_v61 = vadd.f32 %v1041_v58, %v765_v11  ;;  %v1240_v51 = vadd.f32 %v4644_v43, %v4643_v36 }
 0x1d0   : >> { %v1069_v50 = vadd.f32 %v4264_v52, %v1052_v61 }
 0x1ec   : >> { %v1310_v59 = vpop.f32.mrf.mxu0 }
 0x1ed   : >> { %v1311_v46 = vadd.f32 %v1310_v59, %v1228_v16  ;;  %v4645_v59 = vld [vmem:[#allocation27_spill] sm:$0xff] }
 0x1ee   : >> { %v1312_v32 = vpop.f32.mrf.mxu0 }
 0x1ef   : >> { %v1313_v26 = vadd.f32 %v1312_v32, %v1230_v44 }
 0x1f1   : >> { %v1316_v10 = vpop.f32.mrf.mxu0  ;;  %v1396_v9 = vadd.f32 %v1395_v4, %v1313_v26 }
 0x1f3   : >> { %v1318_v12 = vpop.f32.mrf.mxu0 }
 0x1f4   : >> { %v4254_v0 = vpop.f32.mrf.mxu1 }
 0x1f5   : >> { %4636 = vst [vmem:[#allocation31_spill] sm:$0xff] %v4254_v0  ;;  %v757_v0 = vadd.f32 %v756_v62, %v674_v7  ;;  %v1234_v62 = vadd.f32 %v1233_v14, %v1150_v6  ;;  %v4639_v6 = vld [vmem:[#allocation15_spill] sm:$0xff]  ;;  %v4640_v14 = vld [vmem:[#allocation17_spill] sm:$0xff] }
 0x1f6   : >> { %v4256_v5 = vpop.f32.mrf.mxu1 }
 0x1f7   : >> { %4637 = vst [vmem:[#allocation33_spill] sm:$0xff] %v4256_v5  ;;  %v1322_v45 = vpop.f32.mrf.mxu0  ;;  %v688_v5 = vadd.f32 %v687_v19, %v605_v37  ;;  %v1049_v48 = vadd.f32 %v1033_v28, %v757_v0  ;;  %v1236_v19 = vadd.f32 %v1235_v22, %v1152_v18  ;;  %v1394_v37 = vadd.f32 %v1393_v8, %v1311_v46  ;;  %v4641_v22 = vld [vmem:[#allocation19_spill] sm:$0xff]  ;;  %v4646_v8 = vld [vmem:[#allocation29_spill] sm:$0xff] }
 0x1f8   : >> { %v1317_v49 = vadd.f32 %v1316_v10, %v1234_v62  ;;  %v1045_v18 = vadd.f32 %v4640_v14, %v4639_v6  ;;  %v1242_v32 = vadd.f32 %v4646_v8, %v4645_v59  ;;  %v1323_v7 = vadd.f32 %v1322_v45, %v1240_v51 }
 0x1f9   : >> { %v1324_v21 = vpop.f32.mrf.mxu0  ;;  %v771_v27 = vadd.f32 %v4236_v17, %v688_v5  ;;  %v1066_v29 = vadd.f32 %v4261_v1, %v1049_v48  ;;  %v1319_v35 = vadd.f32 %v1318_v12, %v1236_v19  ;;  %v4642_v17 = vld [vmem:[#allocation21_spill] sm:$0xff]  ;;  %v1073_v46 = vmax.f32 %v1067_v31, 0.0 }
 0x1fa   : >> { %v4258_v41 = vpop.f32.mrf.mxu1  ;;  %v1047_v28 = vadd.f32 %v4642_v17, %v4641_v22  ;;  %v1325_v63 = vadd.f32 %v1324_v21, %v1242_v32  ;;  %v1068_v48 = vadd.f32 %v4261_v1, %v1051_v33  ;;  %v1053_v54 = vadd.f32 %v1045_v18, %v769_v15 }
 0x1fb   : >> { %v1072_v5 = vmax.f32 %v1066_v29, 0.0  ;;  %v1406_v11 = vadd.f32 %v4258_v41, %v1323_v7 }
 0x1fc   : >> { %v1407_v56 = vpop.f32.mrf.mxu1  ;;  %v4647_v55 = vld [vmem:[#allocation31_spill] sm:$0xff]  ;;  %v1054_v45 = vadd.f32 %v1047_v28, %v771_v27  ;;  %v1074_v33 = vmax.f32 %v1068_v48, 0.0  ;;  %v1070_v27 = vadd.f32 %v4261_v1, %v1053_v54 }
 0x1fd   : >> { %v1400_v34 = vadd.f32 %v4647_v55, %v1317_v49  ;;  %v1408_v19 = vadd.f32 %v1407_v56, %v1325_v63 }
 0x1fe   : >> { %v4648_v39 = vld [vmem:[#allocation33_spill] sm:$0xff]  ;;  %v1076_v18 = vmax.f32 %v1070_v27, 0.0 }
 0x1ff   : >> { %v1402_v47 = vadd.f32 %v4648_v39, %v1319_v35  ;;  %v1075_v35 = vmax.f32 %v1069_v50, 0.0 }
 0x211   : >> { %v1489_v23 = vpop.f32.mrf.mxu1 }
 0x212   : >> { %v1572_v25 = vpop.f32.mrf.mxu0 }
 0x213   : >> { %v1573_v53 = vadd.f32 %v1572_v25, %v1489_v23  ;;  %v1491_v57 = vpop.f32.mrf.mxu1 }
 0x214   : >> { %v1574_v3 = vpop.f32.mrf.mxu0 }
 0x215   : >> { %v1589_v2 = vadd.f32 %v1573_v53, %v1394_v37  ;;  %v1575_v13 = vadd.f32 %v1574_v3, %v1491_v57  ;;  %v1495_v10 = vpop.f32.mrf.mxu1  ;;  %v1071_v3 = vadd.f32 %v4264_v52, %v1054_v45 }
 0x216   : >> { %v1578_v0 = vpop.f32.mrf.mxu0 }
 0x217   : >> { %v1595_v4 = vadd.f32 %v1589_v2, %v4261_v1  ;;  %v1590_v20 = vadd.f32 %v1575_v13, %v1396_v9  ;;  %v1579_v12 = vadd.f32 %v1578_v0, %v1495_v10  ;;  %v1497_v16 = vpop.f32.mrf.mxu1  ;;  %v1077_v22 = vmax.f32 %v1071_v3, 0.0 }
 0x218   : >> { %v1580_v38 = vpop.f32.mrf.mxu0 }
 0x219   : >> { %v1601_v40 = vmax.f32 %v1595_v4, 0.0  ;;  %v1596_v42 = vadd.f32 %v1590_v20, %v4264_v52  ;;  %v1591_v30 = vadd.f32 %v1579_v12, %v1400_v34  ;;  %v1581_v44 = vadd.f32 %v1580_v38, %v1497_v16  ;;  %v1501_v58 = vpop.f32.mrf.mxu1 }
 0x21a   : >> { %v1584_v62 = vpop.f32.mrf.mxu0 }
 0x21b   : >> { %v1602_v26 = vmax.f32 %v1596_v42, 0.0  ;;  %v1597_v21 = vadd.f32 %v1591_v30, %v4261_v1  ;;  %v1592_v24 = vadd.f32 %v1581_v44, %v1402_v47  ;;  %v1607_v23 = vmax.f32 %v1072_v5, %v1601_v40  ;;  %v1503_v37 = vpop.f32.mrf.mxu1 }
 0x21c   : >> { %v1585_v25 = vadd.f32 %v1584_v62, %v1501_v58  ;;  %v1586_v49 = vpop.f32.mrf.mxu0 }
 0x21d   : >> { %v1608_v53 = vmax.f32 %v1073_v46, %v1602_v26  ;;  %v1603_v29 = vmax.f32 %v1597_v21, 0.0  ;;  %v1598_v15 = vadd.f32 %v1592_v24, %v4264_v52  ;;  %v1587_v31 = vadd.f32 %v1586_v49, %v1503_v37 }
 0x21e   : >> { %v1593_v57 = vadd.f32 %v1585_v25, %v1406_v11 }
 0x21f   : >> { %v1613_v61 = vmax.f32 %v1607_v23, %v1608_v53  ;;  %v1604_v41 = vmax.f32 %v1598_v15, 0.0  ;;  %v1594_v56 = vadd.f32 %v1587_v31, %v1408_v19  ;;  %v1609_v2 = vmax.f32 %v1074_v33, %v1603_v29 }
 0x220   : >> { %v1599_v9 = vadd.f32 %v1593_v57, %v4261_v1 }
 0x221   : >> { %1618 = vst [vmem:[%s1617_s29] sm:$0xff] %v1613_v61  ;;  %v1610_v13 = vmax.f32 %v1075_v35, %v1604_v41  ;;  %v1600_v6 = vadd.f32 %v1594_v56, %v4264_v52 }
 0x222   : >> { %v1605_v14 = vmax.f32 %v1599_v9, 0.0 }
 0x223   : >> { %v1614_v17 = vmax.f32 %v1609_v2, %v1610_v13  ;;  %v1606_v28 = vmax.f32 %v1600_v6, 0.0 }
 0x224   : >> { %v1611_v36 = vmax.f32 %v1076_v18, %v1605_v14 }
 0x225   : >> { %1619 = vst [vmem:[%s1617_s29 + $0x8] sm:$0xff] %v1614_v17  ;;  %v1612_v43 = vmax.f32 %v1077_v22, %v1606_v28  ;;  %220 = sbr.rel (!%p218_p5) target bundleno = 17 (0x11), region = 76 }
 0x227   : >> { %v1615_v51 = vmax.f32 %v1611_v36, %v1612_v43 }
 0x229   : >> { %1620 = vst [vmem:[%s1617_s29 + $0x10] sm:$0x3] %v1615_v51 }
 0x22a PF: > { %s13_s14 = sadd.s32 1, %s2181_s14   ;;  %s4649_s12 = smov %s2177_s13 }
 0x22b   : > { %p10_p6 = scmp.ge.s32.totalorder %s13_s14, 4   ;;  %s4650_s13 = smov %s4652_s15 }
 0x22d   :  { %12 = sbr.rel (!%p10_p6) target bundleno = 2 (0x2), region = 87 }

// kernel: forward.9
= control target key start
LH: loop header
LB: loop body
LE: loop exit
PB: predicated region body
PF: predicated region fallthrough
CT: control target
= control target key end

     0   :  { %v339_v30 = vmov 1983009808   ;;  %v93_v32 = vlaneseq  ;;  %vm256_vm0 = vcmask 1024   ;;  %s561_s1 = inlined_call_operand.vmem [shape: f32[512,1], index: 1, kind: input, shape index: {}]   ;;  %s562_s0 = inlined_call_operand.vmem [shape: f32[2,512], index: 0, kind: input, shape index: {}]   ;;  %s563_s2 = inlined_call_operand.<no memory space> [shape: f32[1,1], index: 2, kind: input, shape index: {}]   ;;  %s564_s3 = inlined_call_operand.vmem [shape: f32[2,1], index: 3, kind: output, shape index: {}]  }
   0x1   :  { %v48_v0 = vld [vmem:[%s561_s1 + $0xf8] sm:$0xff]  ;;  %v47_v4 = vld [vmem:[%s561_s1 + $0xf0] sm:$0xff]  ;;  %v46_v8 = vld [vmem:[%s561_s1 + $0xe8] sm:$0xff]  ;;  %v91_v31 = vunpack.c.l.s4 %v339_v30 }
   0x2   :  { %v80_v1 = vld [vmem:[%s561_s1 + $0x1f8] sm:$0xff]  ;;  %263 = vmatprep.subr.mxu0 %v48_v0  ;;  %v79_v5 = vld [vmem:[%s561_s1 + $0x1f0] sm:$0xff]  ;;  %v78_v9 = vld [vmem:[%s561_s1 + $0x1e8] sm:$0xff]  ;;  %v94_v42 = vshrl.u32 %v93_v32, 7 }
   0x3   :  { %v32_v2 = vld [vmem:[%s561_s1 + $0x78] sm:$0xff]  ;;  %298 = vmatprep.subr.mxu1 %v80_v1  ;;  %v31_v6 = vld [vmem:[%s561_s1 + $0x70] sm:$0xff]  ;;  %v30_v10 = vld [vmem:[%s561_s1 + $0x68] sm:$0xff]  ;;  %v92_v41 = vunpack.c.0.s8 %v91_v31 }
   0x4   :  { %v64_v3 = vld [vmem:[%s561_s1 + $0x178] sm:$0xff]  ;;  %264 = vmatpush3.msra.mxu0 %v32_v2  ;;  %v63_v7 = vld [vmem:[%s561_s1 + $0x170] sm:$0xff]  ;;  %v62_v11 = vld [vmem:[%s561_s1 + $0x168] sm:$0xff] }
   0x5   :  { %299 = vmatpush3.msra.mxu1 %v64_v3  ;;  %265 = vmatprep.subr.mxu0 %v47_v4  ;;  %v45_v12 = vld [vmem:[%s561_s1 + $0xe0] sm:$0xff]  ;;  %v44_v16 = vld [vmem:[%s561_s1 + $0xd8] sm:$0xff]  ;;  %v43_v20 = vld [vmem:[%s561_s1 + $0xd0] sm:$0xff]  ;;  %v95_v51 = vsub.s32 %v92_v41, %v94_v42 }
   0x6   :  { %300 = vmatprep.subr.mxu1 %v79_v5  ;;  %266 = vmatpush3.msra.mxu0 %v31_v6  ;;  %v77_v13 = vld [vmem:[%s561_s1 + $0x1e0] sm:$0xff]  ;;  %v76_v17 = vld [vmem:[%s561_s1 + $0x1d8] sm:$0xff]  ;;  %v75_v21 = vld [vmem:[%s561_s1 + $0x1d0] sm:$0xff] }
   0x7   :  { %301 = vmatpush3.msra.mxu1 %v63_v7  ;;  %267 = vmatprep.subr.mxu0 %v46_v8  ;;  %v29_v14 = vld [vmem:[%s561_s1 + $0x60] sm:$0xff]  ;;  %v28_v18 = vld [vmem:[%s561_s1 + $0x58] sm:$0xff]  ;;  %v27_v22 = vld [vmem:[%s561_s1 + $0x50] sm:$0xff] }
   0x8   :  { %302 = vmatprep.subr.mxu1 %v78_v9  ;;  %v61_v15 = vld [vmem:[%s561_s1 + $0x160] sm:$0xff]  ;;  %268 = vmatpush3.msra.mxu0 %v30_v10  ;;  %v60_v19 = vld [vmem:[%s561_s1 + $0x158] sm:$0xff]  ;;  %v59_v23 = vld [vmem:[%s561_s1 + $0x150] sm:$0xff] }
   0x9   :  { %303 = vmatpush3.msra.mxu1 %v62_v11  ;;  %269 = vmatprep.subr.mxu0 %v45_v12  ;;  %v42_v24 = vld [vmem:[%s561_s1 + $0xc8] sm:$0xff]  ;;  %v41_v28 = vld [vmem:[%s561_s1 + $0xc0] sm:$0xff]  ;;  %v40_v35 = vld [vmem:[%s561_s1 + $0xb8] sm:$0xff]  ;;  %v8_v12 = vstv %s563_s2 }
   0xa   :  { %304 = vmatprep.subr.mxu1 %v77_v13  ;;  %270 = vmatpush3.msra.mxu0 %v29_v14  ;;  %v74_v25 = vld [vmem:[%s561_s1 + $0x1c8] sm:$0xff]  ;;  %v73_v29 = vld [vmem:[%s561_s1 + $0x1c0] sm:$0xff]  ;;  %v72_v36 = vld [vmem:[%s561_s1 + $0x1b8] sm:$0xff]  ;;  %9 = vst [vmem:[#allocation2] sm:$0x1] %v8_v12 }
   0xb   :  { %305 = vmatpush3.msra.mxu1 %v61_v15  ;;  %271 = vmatprep.subr.mxu0 %v44_v16  ;;  %v26_v26 = vld [vmem:[%s561_s1 + $0x48] sm:$0xff]  ;;  %v25_v33 = vld [vmem:[%s561_s1 + $0x40] sm:$0xff]  ;;  %v24_v37 = vld [vmem:[%s561_s1 + $0x38] sm:$0xff] }
   0xc   :  { %306 = vmatprep.subr.mxu1 %v76_v17  ;;  %272 = vmatpush3.msra.mxu0 %v28_v18  ;;  %v58_v27 = vld [vmem:[%s561_s1 + $0x148] sm:$0xff]  ;;  %v57_v34 = vld [vmem:[%s561_s1 + $0x140] sm:$0xff]  ;;  %v56_v38 = vld [vmem:[%s561_s1 + $0x138] sm:$0xff] }
   0xd   :  { %307 = vmatpush3.msra.mxu1 %v60_v19  ;;  %273 = vmatprep.subr.mxu0 %v43_v20  ;;  %v39_v39 = vld [vmem:[%s561_s1 + $0xb0] sm:$0xff]  ;;  %v38_v45 = vld [vmem:[%s561_s1 + $0xa8] sm:$0xff]  ;;  %v37_v49 = vld [vmem:[%s561_s1 + $0xa0] sm:$0xff] }
   0xe   :  { %308 = vmatprep.subr.mxu1 %v75_v21  ;;  %274 = vmatpush3.msra.mxu0 %v27_v22  ;;  %v71_v40 = vld [vmem:[%s561_s1 + $0x1b0] sm:$0xff]  ;;  %v70_v46 = vld [vmem:[%s561_s1 + $0x1a8] sm:$0xff]  ;;  %v69_v50 = vld [vmem:[%s561_s1 + $0x1a0] sm:$0xff] }
   0xf   :  { %309 = vmatpush3.msra.mxu1 %v59_v23  ;;  %275 = vmatprep.subr.mxu0 %v42_v24  ;;  %v23_v43 = vld [vmem:[%s561_s1 + $0x30] sm:$0xff]  ;;  %v22_v47 = vld [vmem:[%s561_s1 + $0x28] sm:$0xff]  ;;  %v21_v52 = vld [vmem:[%s561_s1 + $0x20] sm:$0xff] }
  0x10   :  { %310 = vmatprep.subr.mxu1 %v74_v25  ;;  %276 = vmatpush3.msra.mxu0 %v26_v26  ;;  %v55_v44 = vld [vmem:[%s561_s1 + $0x130] sm:$0xff]  ;;  %v54_v48 = vld [vmem:[%s561_s1 + $0x128] sm:$0xff]  ;;  %v53_v53 = vld [vmem:[%s561_s1 + $0x120] sm:$0xff] }
  0x11   :  { %311 = vmatpush3.msra.mxu1 %v58_v27  ;;  %277 = vmatprep.subr.mxu0 %v41_v28  ;;  %v16_v54 = vld [vmem:[%s562_s0] sm:$0xff]  ;;  %v36_v55 = vld [vmem:[%s561_s1 + $0x98] sm:$0xff]  ;;  %v35_v60 = vld [vmem:[%s561_s1 + $0x90] sm:$0xff] }
  0x12   :  { %312 = vmatprep.subr.mxu1 %v73_v29  ;;  %278 = vmatpush3.msra.mxu0 %v25_v33  ;;  %v68_v56 = vld [vmem:[%s561_s1 + $0x198] sm:$0xff]  ;;  %v89_v57 = vcombine.high %v16_v54, %v16_v54  ;;  %v67_v61 = vld [vmem:[%s561_s1 + $0x190] sm:$0xff]  ;;  %v96_v62 = vrot.slane %v16_v54, %v95_v51  ;;  %v34_v2 = vld [vmem:[%s561_s1 + $0x88] sm:$0xff] }
  0x13   :  { %313 = vmatpush3.msra.mxu1 %v57_v34  ;;  %279 = vmatprep.subr.mxu0 %v40_v35  ;;  %v20_v58 = vld [vmem:[%s561_s1 + $0x18] sm:$0xff]  ;;  %v19_v63 = vld [vmem:[%s561_s1 + $0x10] sm:$0xff]  ;;  %v66_v3 = vld [vmem:[%s561_s1 + $0x188] sm:$0xff] }
  0x14   :  { %314 = vmatprep.subr.mxu1 %v72_v36  ;;  %280 = vmatpush3.msra.mxu0 %v24_v37  ;;  %v52_v59 = vld [vmem:[%s561_s1 + $0x118] sm:$0xff]  ;;  %v51_v0 = vld [vmem:[%s561_s1 + $0x110] sm:$0xff]  ;;  %v103_v1 = vrot.slane %v89_v57, %v95_v51  ;;  %v18_v4 = vld [vmem:[%s561_s1 + $0x8] sm:$0xff]  ;;  %v104_v8 = vcombine.high %v96_v62, %v96_v62 }
  0x15   :  { %315 = vmatpush3.msra.mxu1 %v56_v38  ;;  %281 = vmatprep.subr.mxu0 %v39_v39  ;;  %v50_v5 = vld [vmem:[%s561_s1 + $0x108] sm:$0xff]  ;;  %v33_v6 = vld [vmem:[%s561_s1 + $0x80] sm:$0xff] }
  0x16   :  { %316 = vmatprep.subr.mxu1 %v71_v40  ;;  %282 = vmatpush3.msra.mxu0 %v23_v43  ;;  %v65_v7 = vld [vmem:[%s561_s1 + $0x180] sm:$0xff]  ;;  %v105_v10 = vcombine.high %v103_v1, %v103_v1 }
  0x17   :  { %317 = vmatpush3.msra.mxu1 %v55_v44  ;;  %283 = vmatprep.subr.mxu0 %v38_v45  ;;  %v17_v9 = vld [vmem:[%s561_s1] sm:$0xff] }
  0x18   :  { %318 = vmatprep.subr.mxu1 %v70_v46  ;;  %284 = vmatpush3.msra.mxu0 %v22_v47  ;;  %v49_v11 = vld [vmem:[%s561_s1 + $0x100] sm:$0xff] }
  0x19   :  { %319 = vmatpush3.msra.mxu1 %v54_v48  ;;  %285 = vmatprep.subr.mxu0 %v37_v49  ;;  %v262_v15 = vld [vmem:[#allocation2] ss:$0 sm:$0xff] }
  0x1a   :  { %320 = vmatprep.subr.mxu1 %v69_v50  ;;  %286 = vmatpush3.msra.mxu0 %v21_v52 }
  0x1b   :  { %321 = vmatpush3.msra.mxu1 %v53_v53  ;;  %287 = vmatprep.subr.mxu0 %v36_v55 }
  0x1c   :  { %322 = vmatprep.subr.mxu1 %v68_v56  ;;  %288 = vmatpush3.msra.mxu0 %v20_v58 }
  0x1d   :  { %323 = vmatpush3.msra.mxu1 %v52_v59  ;;  %289 = vmatprep.subr.mxu0 %v35_v60 }
  0x1e   :  { %324 = vmatprep.subr.mxu1 %v67_v61  ;;  %290 = vmatpush3.msra.mxu0 %v19_v63 }
  0x1f   :  { %325 = vmatpush3.msra.mxu1 %v51_v0  ;;  %291 = vmatprep.subr.mxu0 %v34_v2 }
  0x20   :  { %326 = vmatprep.subr.mxu1 %v66_v3  ;;  %292 = vmatpush3.msra.mxu0 %v18_v4 }
  0x21   :  { %327 = vmatpush3.msra.mxu1 %v50_v5  ;;  %293 = vmatprep.subr.mxu0 %v33_v6 }
  0x22   :  { %328 = vmatprep.subr.mxu1 %v65_v7  ;;  %294 = vmatpush3.msra.mxu0 %v17_v9 }
  0x23   :  { %174 = vmatprep.mubr.f32.mxu0 %v104_v8  ;;  %329 = vmatpush3.msra.mxu1 %v49_v11 }
  0x24   :  { %244 = vmatprep.mubr.f32.mxu1 %v105_v10  ;;  %175 = vmatmul.mubr.f32.vlgmr.msra.gmra.mxu0 %v96_v62 }
  0x25   :  { %245 = vmatmul.mubr.f32.vlgmr.msra.gmra.mxu1 %v103_v1 }
  0xe4   :  { %v295_v13 = vpop.f32.mrf.mxu0 }
  0xe5   :  { %v330_v14 = vpop.f32.mrf.mxu1 }
  0xe6   :  { %v296_v16 = vpop.f32.mrf.mxu0 }
  0xe7   :  { %v331_v17 = vpop.f32.mrf.mxu1  ;;  %v297_v18 = vadd.f32 %v296_v16, %v295_v13 }
  0xe8   :  { %v332_v20 = vadd.f32 %v331_v17, %v330_v14 }
  0xe9   :  { %v177_v19 = vadd.f32 %v297_v18, %v262_v15 }
  0xeb   :  { %v247_v21 = vadd.f32 %v332_v20, %v177_v19 }
  0xed   :  { %v250_v22 = vsub.f32 0.0, %v247_v21 }
  0xef   :  { %v251_v23 = vmul.f32 1.442695, %v250_v22 }
  0xf1   :  { %335 = vpow2.f32 %v251_v23 }
  0xfe   :  { %v336_v24 = vpop.eup %335 }
  0xff   :  { %v253_v25 = vadd.f32 1.0, %v336_v24 }
 0x101   :  { %337 = vrcp.f32 %v253_v25 }
 0x10e   :  { %v338_v26 = vpop.eup %337 }
 0x10f   :  { %257 = vst.msk [vmem:[%s564_s3] sm:$0x3] %vm256_vm0, %v338_v26 }

// kernel: forward.8
= control target key start
LH: loop header
LB: loop body
LE: loop exit
PB: predicated region body
PF: predicated region fallthrough
CT: control target
= control target key end

     0   :  { %s6831_s12 = smov 0   ;;  %s6833_s13 = smov 0   ;;  %s9335_s0 = inlined_call_operand.vmem [shape: f32[2,41472], index: 0, kind: input, shape index: {}]   ;;  %s9336_s1 = inlined_call_operand.vmem [shape: f32[41472,512], index: 1, kind: input, shape index: {}]   ;;  %s9337_s2 = inlined_call_operand.vmem [shape: f32[1,512], index: 2, kind: input, shape index: {}]   ;;  %s9338_s3 = inlined_call_operand.vmem [shape: f32[2,512], index: 3, kind: output, shape index: {}]  }
   0x1   :  { %s6835_s14 = smov 0   ;;  %s6837_s15 = smov 0  }
   0x2   :  { %s6839_s16 = smov 0   ;;  %s6841_s17 = smov 0  }
   0x3   :  { %s6843_s18 = smov 0  }
   0x4 LB: > { %s25_s19 = sadd.s32 1, %s6783_s16  ;;  %s28_s20 = sadd.s32 1, %s6787_s17  ;;  %s6791_s18 = sphi %s6843_s18, %s13_s18   ;;  %s6787_s17 = sphi %s6841_s17, %s9349_s17   ;;  %s6783_s16 = sphi %s6839_s16, %s9348_s16   ;;  %s6779_s15 = sphi %s6837_s15, %s9347_s15   ;;  %s6775_s14 = sphi %s6835_s14, %s9346_s14   ;;  %s6771_s13 = sphi %s6833_s13, %s9345_s13   ;;  %s6767_s12 = sphi %s6831_s12, %s9344_s12  }
   0x5   : > { %p26_p0 = scmp.ge.s32.totalorder %s25_s19, 9  ;;  %p76_p1 = scmp.ne.s32.totalorder %s6771_s13, %s6767_s12 }
   0x6   : > { %p77_p2 = scmp.eq.s32.totalorder %s6791_s18, 0  ;;  %s69_s24 = sadd.s32 1, %s6771_s13 }
   0x7   : > { %s9351_s19 = smov (%p26_p0, %s25_s19), 0  ;;  %s9353_s20 = smov (!%p26_p0, %s28_s20), %s6787_s17 }
   0x8   : > { %p78_p3 = por %p77_p2, %p76_p1  ;;  %p30_p4 = scmp.ge.s32.totalorder %s9353_s20, 2 }
   0x9   : > { %s64_s21 = ssub.s32 %s6783_s16, %s9351_s19  ;;  %p6604_p6 = scmp.ge.s32.totalorder %s6791_s18, 18 }
   0xa   : > { %s9355_s20 = smov (%p30_p4, %s9353_s20), 0 }
   0xb   : > { %s65_s22 = ssub.s32 %s6787_s17, %s9355_s20  ;;  %156 = sbr.rel (%p6604_p6) target bundleno = 601 (0x259), region = 16 }
   0xc   : > { %s66_s23 = sor.u32 %s65_s22, %s64_s21 }
   0xd   : > { %p67_p5 = scmp.eq.s32.totalorder %s66_s23, 0 }
   0xf   : > { %s6882_s25 = scalar_select %p67_p5, %s6771_s13, %s69_s24  }
  0x10   : > { %172 = sbr.rel (!%p78_p3) target bundleno = 601 (0x259), region = 24  ;;  %s174_s26 = sand.u32 (%p78_p3), 1, %s6771_s13  }
  0x11   : > { %s6886_s27 = smul.u32 (%p78_p3), 9216, %s174_s26  ;;  %s6605_s28 = sshll.u32 (%p78_p3), %s6787_s17, 1 }
  0x12   : > { %s6619_s29 = smul.u32 (%p78_p3), 2304, %s6783_s16  ;;  %s6903_s11 = smov (%p78_p3), 0  }
  0x13   : > { %s176_s8 = scalar_lea.vmem (%p78_p3), [#allocation3], %s6886_s27   ;;  %s6905_s21 = smov (%p78_p3), 0  }
  0x14   : > { %s180_s30 = sadd.s32 (%p78_p3), %s6619_s29, %s6605_s28  ;;  %s9339_s9 = smov (%p78_p3), %s176_s8 }
  0x15   : > { %s6607_s4 = sshll.u32 %s180_s30, 3 }
  0x16   : > { %s6893_s7 = scalar_lea.vmem %s9336_s1, %s6607_s4  }
  0x17   : > { %s9340_s10 = smov %s6893_s7 }
  0x18 LB: >> { %v198_v0 = vld [vmem:[%s6799_s10] sm:$0xff]  ;;  %s1350_s22 = sadd.s32 1, %s6803_s11  ;;  %s194_s21 = sadd.s32 1, %s6807_s21   ;;  %s6807_s21 = sphi %s6905_s21, %s194_s21   ;;  %s6803_s11 = sphi %s6903_s11, %s9343_s11   ;;  %s6799_s10 = sphi %s9340_s10, %s9342_s10   ;;  %s6795_s9 = sphi %s9339_s9, %s9341_s9  }
  0x19   : >> { %v200_v1 = vld [vmem:[%s6799_s10 + $0x20] sm:$0xff]  ;;  %199 = vst [vmem:[%s6795_s9] sm:$0xff] %v198_v0  ;;  %p1351_p7 = scmp.ge.s32.totalorder %s1350_s22, 2  ;;  %p191_p8 = scmp.ge.s32.totalorder %s194_s21, 2  }
  0x1a   : >> { %v202_v2 = vld [vmem:[%s6799_s10 + $0x40] sm:$0xff]  ;;  %201 = vst [vmem:[%s6795_s9 + $0x10] sm:$0xff] %v200_v1 }
  0x1b   : >> { %203 = vst [vmem:[%s6795_s9 + $0x20] sm:$0xff] %v202_v2  ;;  %v204_v3 = vld [vmem:[%s6799_s10 + $0x60] sm:$0xff]  ;;  %s9357_s22 = smov (%p1351_p7, %s1350_s22), 0 }
  0x1c   : >> { %v206_v4 = vld [vmem:[%s6799_s10 + $0x80] sm:$0xff]  ;;  %205 = vst [vmem:[%s6795_s9 + $0x30] sm:$0xff] %v204_v3  ;;  %s6608_s23 = sshll.u32 %s9357_s22, 3  ;;  %s9343_s11 = smov %s9357_s22 }
  0x1d   : >> { %v208_v5 = vld [vmem:[%s6799_s10 + $0xa0] sm:$0xff]  ;;  %207 = vst [vmem:[%s6795_s9 + $0x40] sm:$0xff] %v206_v4  ;;  %s7311_s24 = scalar_lea.vmem %s6893_s7, %s6608_s23   ;;  %s7315_s26 = scalar_lea.vmem %s176_s8, %s6608_s23 [#allocation3]  }
  0x1e   : >> { %209 = vst [vmem:[%s6795_s9 + $0x50] sm:$0xff] %v208_v5  ;;  %v210_v6 = vld [vmem:[%s6799_s10 + $0xc0] sm:$0xff] }
  0x1f   : >> { %v212_v7 = vld [vmem:[%s6799_s10 + $0xe0] sm:$0xff]  ;;  %211 = vst [vmem:[%s6795_s9 + $0x60] sm:$0xff] %v210_v6 }
  0x20   : >> { %v214_v8 = vld [vmem:[%s6799_s10 + $0x100] sm:$0xff]  ;;  %213 = vst [vmem:[%s6795_s9 + $0x70] sm:$0xff] %v212_v7 }
  0x21   : >> { %215 = vst [vmem:[%s6795_s9 + $0x80] sm:$0xff] %v214_v8  ;;  %v216_v9 = vld [vmem:[%s6799_s10 + $0x120] sm:$0xff] }
  0x22   : >> { %v218_v10 = vld [vmem:[%s6799_s10 + $0x140] sm:$0xff]  ;;  %217 = vst [vmem:[%s6795_s9 + $0x90] sm:$0xff] %v216_v9 }
  0x23   : >> { %v220_v11 = vld [vmem:[%s6799_s10 + $0x160] sm:$0xff]  ;;  %219 = vst [vmem:[%s6795_s9 + $0xa0] sm:$0xff] %v218_v10 }
  0x24   : >> { %221 = vst [vmem:[%s6795_s9 + $0xb0] sm:$0xff] %v220_v11  ;;  %v222_v12 = vld [vmem:[%s6799_s10 + $0x180] sm:$0xff] }
  0x25   : >> { %v224_v13 = vld [vmem:[%s6799_s10 + $0x1a0] sm:$0xff]  ;;  %223 = vst [vmem:[%s6795_s9 + $0xc0] sm:$0xff] %v222_v12 }
  0x26   : >> { %v226_v14 = vld [vmem:[%s6799_s10 + $0x1c0] sm:$0xff]  ;;  %225 = vst [vmem:[%s6795_s9 + $0xd0] sm:$0xff] %v224_v13 }
  0x27   : >> { %227 = vst [vmem:[%s6795_s9 + $0xe0] sm:$0xff] %v226_v14  ;;  %v228_v15 = vld [vmem:[%s6799_s10 + $0x1e0] sm:$0xff] }
  0x28   : >> { %v230_v16 = vld [vmem:[%s6799_s10 + $0x200] sm:$0xff]  ;;  %229 = vst [vmem:[%s6795_s9 + $0xf0] sm:$0xff] %v228_v15 }
  0x29   : >> { %v232_v17 = vld [vmem:[%s6799_s10 + $0x220] sm:$0xff]  ;;  %231 = vst [vmem:[%s6795_s9 + $0x100] sm:$0xff] %v230_v16 }
  0x2a   : >> { %233 = vst [vmem:[%s6795_s9 + $0x110] sm:$0xff] %v232_v17  ;;  %v234_v18 = vld [vmem:[%s6799_s10 + $0x240] sm:$0xff] }
  0x2b   : >> { %v236_v19 = vld [vmem:[%s6799_s10 + $0x260] sm:$0xff]  ;;  %235 = vst [vmem:[%s6795_s9 + $0x120] sm:$0xff] %v234_v18 }
  0x2c   : >> { %v238_v20 = vld [vmem:[%s6799_s10 + $0x280] sm:$0xff]  ;;  %237 = vst [vmem:[%s6795_s9 + $0x130] sm:$0xff] %v236_v19 }
  0x2d   : >> { %239 = vst [vmem:[%s6795_s9 + $0x140] sm:$0xff] %v238_v20  ;;  %v240_v21 = vld [vmem:[%s6799_s10 + $0x2a0] sm:$0xff] }
  0x2e   : >> { %v242_v22 = vld [vmem:[%s6799_s10 + $0x2c0] sm:$0xff]  ;;  %241 = vst [vmem:[%s6795_s9 + $0x150] sm:$0xff] %v240_v21 }
  0x2f   : >> { %v244_v23 = vld [vmem:[%s6799_s10 + $0x2e0] sm:$0xff]  ;;  %243 = vst [vmem:[%s6795_s9 + $0x160] sm:$0xff] %v242_v22 }
  0x30   : >> { %245 = vst [vmem:[%s6795_s9 + $0x170] sm:$0xff] %v244_v23  ;;  %v246_v24 = vld [vmem:[%s6799_s10 + $0x300] sm:$0xff] }
  0x31   : >> { %v248_v25 = vld [vmem:[%s6799_s10 + $0x320] sm:$0xff]  ;;  %247 = vst [vmem:[%s6795_s9 + $0x180] sm:$0xff] %v246_v24 }
  0x32   : >> { %v250_v26 = vld [vmem:[%s6799_s10 + $0x340] sm:$0xff]  ;;  %249 = vst [vmem:[%s6795_s9 + $0x190] sm:$0xff] %v248_v25 }
  0x33   : >> { %251 = vst [vmem:[%s6795_s9 + $0x1a0] sm:$0xff] %v250_v26  ;;  %v252_v27 = vld [vmem:[%s6799_s10 + $0x360] sm:$0xff] }
  0x34   : >> { %v254_v28 = vld [vmem:[%s6799_s10 + $0x380] sm:$0xff]  ;;  %253 = vst [vmem:[%s6795_s9 + $0x1b0] sm:$0xff] %v252_v27 }
  0x35   : >> { %v256_v29 = vld [vmem:[%s6799_s10 + $0x3a0] sm:$0xff]  ;;  %255 = vst [vmem:[%s6795_s9 + $0x1c0] sm:$0xff] %v254_v28 }
  0x36   : >> { %257 = vst [vmem:[%s6795_s9 + $0x1d0] sm:$0xff] %v256_v29  ;;  %v258_v30 = vld [vmem:[%s6799_s10 + $0x3c0] sm:$0xff] }
  0x37   : >> { %v260_v31 = vld [vmem:[%s6799_s10 + $0x3e0] sm:$0xff]  ;;  %259 = vst [vmem:[%s6795_s9 + $0x1e0] sm:$0xff] %v258_v30 }
  0x38   : >> { %v262_v32 = vld [vmem:[%s6799_s10 + $0x400] sm:$0xff]  ;;  %261 = vst [vmem:[%s6795_s9 + $0x1f0] sm:$0xff] %v260_v31 }
  0x39   : >> { %263 = vst [vmem:[%s6795_s9 + $0x200] sm:$0xff] %v262_v32  ;;  %v264_v33 = vld [vmem:[%s6799_s10 + $0x420] sm:$0xff] }
  0x3a   : >> { %v266_v34 = vld [vmem:[%s6799_s10 + $0x440] sm:$0xff]  ;;  %265 = vst [vmem:[%s6795_s9 + $0x210] sm:$0xff] %v264_v33 }
  0x3b   : >> { %v268_v35 = vld [vmem:[%s6799_s10 + $0x460] sm:$0xff]  ;;  %267 = vst [vmem:[%s6795_s9 + $0x220] sm:$0xff] %v266_v34 }
  0x3c   : >> { %269 = vst [vmem:[%s6795_s9 + $0x230] sm:$0xff] %v268_v35  ;;  %v270_v36 = vld [vmem:[%s6799_s10 + $0x480] sm:$0xff] }
  0x3d   : >> { %v272_v37 = vld [vmem:[%s6799_s10 + $0x4a0] sm:$0xff]  ;;  %271 = vst [vmem:[%s6795_s9 + $0x240] sm:$0xff] %v270_v36 }
  0x3e   : >> { %v274_v38 = vld [vmem:[%s6799_s10 + $0x4c0] sm:$0xff]  ;;  %273 = vst [vmem:[%s6795_s9 + $0x250] sm:$0xff] %v272_v37 }
  0x3f   : >> { %275 = vst [vmem:[%s6795_s9 + $0x260] sm:$0xff] %v274_v38  ;;  %v276_v39 = vld [vmem:[%s6799_s10 + $0x4e0] sm:$0xff] }
  0x40   : >> { %v278_v40 = vld [vmem:[%s6799_s10 + $0x500] sm:$0xff]  ;;  %277 = vst [vmem:[%s6795_s9 + $0x270] sm:$0xff] %v276_v39 }
  0x41   : >> { %v280_v41 = vld [vmem:[%s6799_s10 + $0x520] sm:$0xff]  ;;  %279 = vst [vmem:[%s6795_s9 + $0x280] sm:$0xff] %v278_v40 }
  0x42   : >> { %281 = vst [vmem:[%s6795_s9 + $0x290] sm:$0xff] %v280_v41  ;;  %v282_v42 = vld [vmem:[%s6799_s10 + $0x540] sm:$0xff] }
  0x43   : >> { %v284_v43 = vld [vmem:[%s6799_s10 + $0x560] sm:$0xff]  ;;  %283 = vst [vmem:[%s6795_s9 + $0x2a0] sm:$0xff] %v282_v42 }
  0x44   : >> { %v286_v44 = vld [vmem:[%s6799_s10 + $0x580] sm:$0xff]  ;;  %285 = vst [vmem:[%s6795_s9 + $0x2b0] sm:$0xff] %v284_v43 }
  0x45   : >> { %287 = vst [vmem:[%s6795_s9 + $0x2c0] sm:$0xff] %v286_v44  ;;  %v288_v45 = vld [vmem:[%s6799_s10 + $0x5a0] sm:$0xff] }
  0x46   : >> { %v290_v46 = vld [vmem:[%s6799_s10 + $0x5c0] sm:$0xff]  ;;  %289 = vst [vmem:[%s6795_s9 + $0x2d0] sm:$0xff] %v288_v45 }
  0x47   : >> { %v292_v47 = vld [vmem:[%s6799_s10 + $0x5e0] sm:$0xff]  ;;  %291 = vst [vmem:[%s6795_s9 + $0x2e0] sm:$0xff] %v290_v46 }
  0x48   : >> { %293 = vst [vmem:[%s6795_s9 + $0x2f0] sm:$0xff] %v292_v47  ;;  %v294_v48 = vld [vmem:[%s6799_s10 + $0x600] sm:$0xff] }
  0x49   : >> { %v296_v49 = vld [vmem:[%s6799_s10 + $0x620] sm:$0xff]  ;;  %295 = vst [vmem:[%s6795_s9 + $0x300] sm:$0xff] %v294_v48 }
  0x4a   : >> { %v298_v50 = vld [vmem:[%s6799_s10 + $0x640] sm:$0xff]  ;;  %297 = vst [vmem:[%s6795_s9 + $0x310] sm:$0xff] %v296_v49 }
  0x4b   : >> { %299 = vst [vmem:[%s6795_s9 + $0x320] sm:$0xff] %v298_v50  ;;  %v300_v51 = vld [vmem:[%s6799_s10 + $0x660] sm:$0xff] }
  0x4c   : >> { %v302_v52 = vld [vmem:[%s6799_s10 + $0x680] sm:$0xff]  ;;  %301 = vst [vmem:[%s6795_s9 + $0x330] sm:$0xff] %v300_v51 }
  0x4d   : >> { %v304_v53 = vld [vmem:[%s6799_s10 + $0x6a0] sm:$0xff]  ;;  %303 = vst [vmem:[%s6795_s9 + $0x340] sm:$0xff] %v302_v52 }
  0x4e   : >> { %305 = vst [vmem:[%s6795_s9 + $0x350] sm:$0xff] %v304_v53  ;;  %v306_v54 = vld [vmem:[%s6799_s10 + $0x6c0] sm:$0xff] }
  0x4f   : >> { %v308_v55 = vld [vmem:[%s6799_s10 + $0x6e0] sm:$0xff]  ;;  %307 = vst [vmem:[%s6795_s9 + $0x360] sm:$0xff] %v306_v54 }
  0x50   : >> { %v310_v56 = vld [vmem:[%s6799_s10 + $0x700] sm:$0xff]  ;;  %309 = vst [vmem:[%s6795_s9 + $0x370] sm:$0xff] %v308_v55 }
  0x51   : >> { %311 = vst [vmem:[%s6795_s9 + $0x380] sm:$0xff] %v310_v56  ;;  %v312_v57 = vld [vmem:[%s6799_s10 + $0x720] sm:$0xff] }
  0x52   : >> { %v314_v58 = vld [vmem:[%s6799_s10 + $0x740] sm:$0xff]  ;;  %313 = vst [vmem:[%s6795_s9 + $0x390] sm:$0xff] %v312_v57 }
  0x53   : >> { %v316_v59 = vld [vmem:[%s6799_s10 + $0x760] sm:$0xff]  ;;  %315 = vst [vmem:[%s6795_s9 + $0x3a0] sm:$0xff] %v314_v58 }
  0x54   : >> { %317 = vst [vmem:[%s6795_s9 + $0x3b0] sm:$0xff] %v316_v59  ;;  %v318_v60 = vld [vmem:[%s6799_s10 + $0x780] sm:$0xff] }
  0x55   : >> { %v320_v61 = vld [vmem:[%s6799_s10 + $0x7a0] sm:$0xff]  ;;  %319 = vst [vmem:[%s6795_s9 + $0x3c0] sm:$0xff] %v318_v60 }
  0x56   : >> { %v322_v62 = vld [vmem:[%s6799_s10 + $0x7c0] sm:$0xff]  ;;  %321 = vst [vmem:[%s6795_s9 + $0x3d0] sm:$0xff] %v320_v61 }
  0x57   : >> { %323 = vst [vmem:[%s6795_s9 + $0x3e0] sm:$0xff] %v322_v62  ;;  %v324_v63 = vld [vmem:[%s6799_s10 + $0x7e0] sm:$0xff] }
  0x58   : >> { %v326_v0 = vld [vmem:[%s6799_s10 + $0x800] sm:$0xff]  ;;  %325 = vst [vmem:[%s6795_s9 + $0x3f0] sm:$0xff] %v324_v63 }
  0x59   : >> { %v328_v1 = vld [vmem:[%s6799_s10 + $0x820] sm:$0xff]  ;;  %327 = vst [vmem:[%s6795_s9 + $0x400] sm:$0xff] %v326_v0 }
  0x5a   : >> { %329 = vst [vmem:[%s6795_s9 + $0x410] sm:$0xff] %v328_v1  ;;  %v330_v2 = vld [vmem:[%s6799_s10 + $0x840] sm:$0xff] }
  0x5b   : >> { %v332_v3 = vld [vmem:[%s6799_s10 + $0x860] sm:$0xff]  ;;  %331 = vst [vmem:[%s6795_s9 + $0x420] sm:$0xff] %v330_v2 }
  0x5c   : >> { %v334_v4 = vld [vmem:[%s6799_s10 + $0x880] sm:$0xff]  ;;  %333 = vst [vmem:[%s6795_s9 + $0x430] sm:$0xff] %v332_v3 }
  0x5d   : >> { %335 = vst [vmem:[%s6795_s9 + $0x440] sm:$0xff] %v334_v4  ;;  %v336_v5 = vld [vmem:[%s6799_s10 + $0x8a0] sm:$0xff] }
  0x5e   : >> { %v338_v6 = vld [vmem:[%s6799_s10 + $0x8c0] sm:$0xff]  ;;  %337 = vst [vmem:[%s6795_s9 + $0x450] sm:$0xff] %v336_v5 }
  0x5f   : >> { %v340_v7 = vld [vmem:[%s6799_s10 + $0x8e0] sm:$0xff]  ;;  %339 = vst [vmem:[%s6795_s9 + $0x460] sm:$0xff] %v338_v6 }
  0x60   : >> { %341 = vst [vmem:[%s6795_s9 + $0x470] sm:$0xff] %v340_v7  ;;  %v342_v8 = vld [vmem:[%s6799_s10 + $0x900] sm:$0xff] }
  0x61   : >> { %v344_v9 = vld [vmem:[%s6799_s10 + $0x920] sm:$0xff]  ;;  %343 = vst [vmem:[%s6795_s9 + $0x480] sm:$0xff] %v342_v8 }
  0x62   : >> { %v346_v10 = vld [vmem:[%s6799_s10 + $0x940] sm:$0xff]  ;;  %345 = vst [vmem:[%s6795_s9 + $0x490] sm:$0xff] %v344_v9 }
  0x63   : >> { %347 = vst [vmem:[%s6795_s9 + $0x4a0] sm:$0xff] %v346_v10  ;;  %v348_v11 = vld [vmem:[%s6799_s10 + $0x960] sm:$0xff] }
  0x64   : >> { %v350_v12 = vld [vmem:[%s6799_s10 + $0x980] sm:$0xff]  ;;  %349 = vst [vmem:[%s6795_s9 + $0x4b0] sm:$0xff] %v348_v11 }
  0x65   : >> { %v352_v13 = vld [vmem:[%s6799_s10 + $0x9a0] sm:$0xff]  ;;  %351 = vst [vmem:[%s6795_s9 + $0x4c0] sm:$0xff] %v350_v12 }
  0x66   : >> { %353 = vst [vmem:[%s6795_s9 + $0x4d0] sm:$0xff] %v352_v13  ;;  %v354_v14 = vld [vmem:[%s6799_s10 + $0x9c0] sm:$0xff] }
  0x67   : >> { %v356_v15 = vld [vmem:[%s6799_s10 + $0x9e0] sm:$0xff]  ;;  %355 = vst [vmem:[%s6795_s9 + $0x4e0] sm:$0xff] %v354_v14 }
  0x68   : >> { %v358_v16 = vld [vmem:[%s6799_s10 + $0xa00] sm:$0xff]  ;;  %357 = vst [vmem:[%s6795_s9 + $0x4f0] sm:$0xff] %v356_v15 }
  0x69   : >> { %359 = vst [vmem:[%s6795_s9 + $0x500] sm:$0xff] %v358_v16  ;;  %v360_v17 = vld [vmem:[%s6799_s10 + $0xa20] sm:$0xff] }
  0x6a   : >> { %v362_v18 = vld [vmem:[%s6799_s10 + $0xa40] sm:$0xff]  ;;  %361 = vst [vmem:[%s6795_s9 + $0x510] sm:$0xff] %v360_v17 }
  0x6b   : >> { %v364_v19 = vld [vmem:[%s6799_s10 + $0xa60] sm:$0xff]  ;;  %363 = vst [vmem:[%s6795_s9 + $0x520] sm:$0xff] %v362_v18 }
  0x6c   : >> { %365 = vst [vmem:[%s6795_s9 + $0x530] sm:$0xff] %v364_v19  ;;  %v366_v20 = vld [vmem:[%s6799_s10 + $0xa80] sm:$0xff] }
  0x6d   : >> { %v368_v21 = vld [vmem:[%s6799_s10 + $0xaa0] sm:$0xff]  ;;  %367 = vst [vmem:[%s6795_s9 + $0x540] sm:$0xff] %v366_v20 }
  0x6e   : >> { %v370_v22 = vld [vmem:[%s6799_s10 + $0xac0] sm:$0xff]  ;;  %369 = vst [vmem:[%s6795_s9 + $0x550] sm:$0xff] %v368_v21 }
  0x6f   : >> { %371 = vst [vmem:[%s6795_s9 + $0x560] sm:$0xff] %v370_v22  ;;  %v372_v23 = vld [vmem:[%s6799_s10 + $0xae0] sm:$0xff] }
  0x70   : >> { %v374_v24 = vld [vmem:[%s6799_s10 + $0xb00] sm:$0xff]  ;;  %373 = vst [vmem:[%s6795_s9 + $0x570] sm:$0xff] %v372_v23 }
  0x71   : >> { %v376_v25 = vld [vmem:[%s6799_s10 + $0xb20] sm:$0xff]  ;;  %375 = vst [vmem:[%s6795_s9 + $0x580] sm:$0xff] %v374_v24 }
  0x72   : >> { %377 = vst [vmem:[%s6795_s9 + $0x590] sm:$0xff] %v376_v25  ;;  %v378_v26 = vld [vmem:[%s6799_s10 + $0xb40] sm:$0xff] }
  0x73   : >> { %v380_v27 = vld [vmem:[%s6799_s10 + $0xb60] sm:$0xff]  ;;  %379 = vst [vmem:[%s6795_s9 + $0x5a0] sm:$0xff] %v378_v26 }
  0x74   : >> { %v382_v28 = vld [vmem:[%s6799_s10 + $0xb80] sm:$0xff]  ;;  %381 = vst [vmem:[%s6795_s9 + $0x5b0] sm:$0xff] %v380_v27 }
  0x75   : >> { %383 = vst [vmem:[%s6795_s9 + $0x5c0] sm:$0xff] %v382_v28  ;;  %v384_v29 = vld [vmem:[%s6799_s10 + $0xba0] sm:$0xff] }
  0x76   : >> { %v386_v30 = vld [vmem:[%s6799_s10 + $0xbc0] sm:$0xff]  ;;  %385 = vst [vmem:[%s6795_s9 + $0x5d0] sm:$0xff] %v384_v29 }
  0x77   : >> { %v388_v31 = vld [vmem:[%s6799_s10 + $0xbe0] sm:$0xff]  ;;  %387 = vst [vmem:[%s6795_s9 + $0x5e0] sm:$0xff] %v386_v30 }
  0x78   : >> { %389 = vst [vmem:[%s6795_s9 + $0x5f0] sm:$0xff] %v388_v31  ;;  %v390_v32 = vld [vmem:[%s6799_s10 + $0xc00] sm:$0xff] }
  0x79   : >> { %v392_v33 = vld [vmem:[%s6799_s10 + $0xc20] sm:$0xff]  ;;  %391 = vst [vmem:[%s6795_s9 + $0x600] sm:$0xff] %v390_v32 }
  0x7a   : >> { %v394_v34 = vld [vmem:[%s6799_s10 + $0xc40] sm:$0xff]  ;;  %393 = vst [vmem:[%s6795_s9 + $0x610] sm:$0xff] %v392_v33 }
  0x7b   : >> { %395 = vst [vmem:[%s6795_s9 + $0x620] sm:$0xff] %v394_v34  ;;  %v396_v35 = vld [vmem:[%s6799_s10 + $0xc60] sm:$0xff] }
  0x7c   : >> { %v398_v36 = vld [vmem:[%s6799_s10 + $0xc80] sm:$0xff]  ;;  %397 = vst [vmem:[%s6795_s9 + $0x630] sm:$0xff] %v396_v35 }
  0x7d   : >> { %v400_v37 = vld [vmem:[%s6799_s10 + $0xca0] sm:$0xff]  ;;  %399 = vst [vmem:[%s6795_s9 + $0x640] sm:$0xff] %v398_v36 }
  0x7e   : >> { %401 = vst [vmem:[%s6795_s9 + $0x650] sm:$0xff] %v400_v37  ;;  %v402_v38 = vld [vmem:[%s6799_s10 + $0xcc0] sm:$0xff] }
  0x7f   : >> { %v404_v39 = vld [vmem:[%s6799_s10 + $0xce0] sm:$0xff]  ;;  %403 = vst [vmem:[%s6795_s9 + $0x660] sm:$0xff] %v402_v38 }
  0x80   : >> { %v406_v40 = vld [vmem:[%s6799_s10 + $0xd00] sm:$0xff]  ;;  %405 = vst [vmem:[%s6795_s9 + $0x670] sm:$0xff] %v404_v39 }
  0x81   : >> { %407 = vst [vmem:[%s6795_s9 + $0x680] sm:$0xff] %v406_v40  ;;  %v408_v41 = vld [vmem:[%s6799_s10 + $0xd20] sm:$0xff] }
  0x82   : >> { %v410_v42 = vld [vmem:[%s6799_s10 + $0xd40] sm:$0xff]  ;;  %409 = vst [vmem:[%s6795_s9 + $0x690] sm:$0xff] %v408_v41 }
  0x83   : >> { %v412_v43 = vld [vmem:[%s6799_s10 + $0xd60] sm:$0xff]  ;;  %411 = vst [vmem:[%s6795_s9 + $0x6a0] sm:$0xff] %v410_v42 }
  0x84   : >> { %413 = vst [vmem:[%s6795_s9 + $0x6b0] sm:$0xff] %v412_v43  ;;  %v414_v44 = vld [vmem:[%s6799_s10 + $0xd80] sm:$0xff] }
  0x85   : >> { %v416_v45 = vld [vmem:[%s6799_s10 + $0xda0] sm:$0xff]  ;;  %415 = vst [vmem:[%s6795_s9 + $0x6c0] sm:$0xff] %v414_v44 }
  0x86   : >> { %v418_v46 = vld [vmem:[%s6799_s10 + $0xdc0] sm:$0xff]  ;;  %417 = vst [vmem:[%s6795_s9 + $0x6d0] sm:$0xff] %v416_v45 }
  0x87   : >> { %419 = vst [vmem:[%s6795_s9 + $0x6e0] sm:$0xff] %v418_v46  ;;  %v420_v47 = vld [vmem:[%s6799_s10 + $0xde0] sm:$0xff] }
  0x88   : >> { %v422_v48 = vld [vmem:[%s6799_s10 + $0xe00] sm:$0xff]  ;;  %421 = vst [vmem:[%s6795_s9 + $0x6f0] sm:$0xff] %v420_v47 }
  0x89   : >> { %v424_v49 = vld [vmem:[%s6799_s10 + $0xe20] sm:$0xff]  ;;  %423 = vst [vmem:[%s6795_s9 + $0x700] sm:$0xff] %v422_v48 }
  0x8a   : >> { %425 = vst [vmem:[%s6795_s9 + $0x710] sm:$0xff] %v424_v49  ;;  %v426_v50 = vld [vmem:[%s6799_s10 + $0xe40] sm:$0xff] }
  0x8b   : >> { %v428_v51 = vld [vmem:[%s6799_s10 + $0xe60] sm:$0xff]  ;;  %427 = vst [vmem:[%s6795_s9 + $0x720] sm:$0xff] %v426_v50 }
  0x8c   : >> { %v430_v52 = vld [vmem:[%s6799_s10 + $0xe80] sm:$0xff]  ;;  %429 = vst [vmem:[%s6795_s9 + $0x730] sm:$0xff] %v428_v51 }
  0x8d   : >> { %431 = vst [vmem:[%s6795_s9 + $0x740] sm:$0xff] %v430_v52  ;;  %v432_v53 = vld [vmem:[%s6799_s10 + $0xea0] sm:$0xff] }
  0x8e   : >> { %v434_v54 = vld [vmem:[%s6799_s10 + $0xec0] sm:$0xff]  ;;  %433 = vst [vmem:[%s6795_s9 + $0x750] sm:$0xff] %v432_v53 }
  0x8f   : >> { %v436_v55 = vld [vmem:[%s6799_s10 + $0xee0] sm:$0xff]  ;;  %435 = vst [vmem:[%s6795_s9 + $0x760] sm:$0xff] %v434_v54 }
  0x90   : >> { %437 = vst [vmem:[%s6795_s9 + $0x770] sm:$0xff] %v436_v55  ;;  %v438_v56 = vld [vmem:[%s6799_s10 + $0xf00] sm:$0xff] }
  0x91   : >> { %v440_v57 = vld [vmem:[%s6799_s10 + $0xf20] sm:$0xff]  ;;  %439 = vst [vmem:[%s6795_s9 + $0x780] sm:$0xff] %v438_v56 }
  0x92   : >> { %v442_v58 = vld [vmem:[%s6799_s10 + $0xf40] sm:$0xff]  ;;  %441 = vst [vmem:[%s6795_s9 + $0x790] sm:$0xff] %v440_v57 }
  0x93   : >> { %443 = vst [vmem:[%s6795_s9 + $0x7a0] sm:$0xff] %v442_v58  ;;  %v444_v59 = vld [vmem:[%s6799_s10 + $0xf60] sm:$0xff] }
  0x94   : >> { %v446_v60 = vld [vmem:[%s6799_s10 + $0xf80] sm:$0xff]  ;;  %445 = vst [vmem:[%s6795_s9 + $0x7b0] sm:$0xff] %v444_v59 }
  0x95   : >> { %v448_v61 = vld [vmem:[%s6799_s10 + $0xfa0] sm:$0xff]  ;;  %447 = vst [vmem:[%s6795_s9 + $0x7c0] sm:$0xff] %v446_v60 }
  0x96   : >> { %449 = vst [vmem:[%s6795_s9 + $0x7d0] sm:$0xff] %v448_v61  ;;  %v450_v62 = vld [vmem:[%s6799_s10 + $0xfc0] sm:$0xff] }
  0x97   : >> { %v452_v63 = vld [vmem:[%s6799_s10 + $0xfe0] sm:$0xff]  ;;  %451 = vst [vmem:[%s6795_s9 + $0x7e0] sm:$0xff] %v450_v62 }
  0x98   : >> { %v454_v0 = vld [vmem:[%s6799_s10 + $0x1000] sm:$0xff]  ;;  %453 = vst [vmem:[%s6795_s9 + $0x7f0] sm:$0xff] %v452_v63 }
  0x99   : >> { %455 = vst [vmem:[%s6795_s9 + $0x800] sm:$0xff] %v454_v0  ;;  %v456_v1 = vld [vmem:[%s6799_s10 + $0x1020] sm:$0xff] }
  0x9a   : >> { %v458_v2 = vld [vmem:[%s6799_s10 + $0x1040] sm:$0xff]  ;;  %457 = vst [vmem:[%s6795_s9 + $0x810] sm:$0xff] %v456_v1 }
  0x9b   : >> { %v460_v3 = vld [vmem:[%s6799_s10 + $0x1060] sm:$0xff]  ;;  %459 = vst [vmem:[%s6795_s9 + $0x820] sm:$0xff] %v458_v2 }
  0x9c   : >> { %461 = vst [vmem:[%s6795_s9 + $0x830] sm:$0xff] %v460_v3  ;;  %v462_v4 = vld [vmem:[%s6799_s10 + $0x1080] sm:$0xff] }
  0x9d   : >> { %v464_v5 = vld [vmem:[%s6799_s10 + $0x10a0] sm:$0xff]  ;;  %463 = vst [vmem:[%s6795_s9 + $0x840] sm:$0xff] %v462_v4 }
  0x9e   : >> { %v466_v6 = vld [vmem:[%s6799_s10 + $0x10c0] sm:$0xff]  ;;  %465 = vst [vmem:[%s6795_s9 + $0x850] sm:$0xff] %v464_v5 }
  0x9f   : >> { %467 = vst [vmem:[%s6795_s9 + $0x860] sm:$0xff] %v466_v6  ;;  %v468_v7 = vld [vmem:[%s6799_s10 + $0x10e0] sm:$0xff] }
  0xa0   : >> { %v470_v8 = vld [vmem:[%s6799_s10 + $0x1100] sm:$0xff]  ;;  %469 = vst [vmem:[%s6795_s9 + $0x870] sm:$0xff] %v468_v7 }
  0xa1   : >> { %v472_v9 = vld [vmem:[%s6799_s10 + $0x1120] sm:$0xff]  ;;  %471 = vst [vmem:[%s6795_s9 + $0x880] sm:$0xff] %v470_v8 }
  0xa2   : >> { %473 = vst [vmem:[%s6795_s9 + $0x890] sm:$0xff] %v472_v9  ;;  %v474_v10 = vld [vmem:[%s6799_s10 + $0x1140] sm:$0xff] }
  0xa3   : >> { %v476_v11 = vld [vmem:[%s6799_s10 + $0x1160] sm:$0xff]  ;;  %475 = vst [vmem:[%s6795_s9 + $0x8a0] sm:$0xff] %v474_v10 }
  0xa4   : >> { %v478_v12 = vld [vmem:[%s6799_s10 + $0x1180] sm:$0xff]  ;;  %477 = vst [vmem:[%s6795_s9 + $0x8b0] sm:$0xff] %v476_v11 }
  0xa5   : >> { %479 = vst [vmem:[%s6795_s9 + $0x8c0] sm:$0xff] %v478_v12  ;;  %v480_v13 = vld [vmem:[%s6799_s10 + $0x11a0] sm:$0xff] }
  0xa6   : >> { %v482_v14 = vld [vmem:[%s6799_s10 + $0x11c0] sm:$0xff]  ;;  %481 = vst [vmem:[%s6795_s9 + $0x8d0] sm:$0xff] %v480_v13 }
  0xa7   : >> { %v484_v15 = vld [vmem:[%s6799_s10 + $0x11e0] sm:$0xff]  ;;  %483 = vst [vmem:[%s6795_s9 + $0x8e0] sm:$0xff] %v482_v14 }
  0xa8   : >> { %485 = vst [vmem:[%s6795_s9 + $0x8f0] sm:$0xff] %v484_v15  ;;  %v486_v16 = vld [vmem:[%s6799_s10 + $0x1200] sm:$0xff] }
  0xa9   : >> { %v488_v17 = vld [vmem:[%s6799_s10 + $0x1220] sm:$0xff]  ;;  %487 = vst [vmem:[%s6795_s9 + $0x900] sm:$0xff] %v486_v16 }
  0xaa   : >> { %v490_v18 = vld [vmem:[%s6799_s10 + $0x1240] sm:$0xff]  ;;  %489 = vst [vmem:[%s6795_s9 + $0x910] sm:$0xff] %v488_v17 }
  0xab   : >> { %491 = vst [vmem:[%s6795_s9 + $0x920] sm:$0xff] %v490_v18  ;;  %v492_v19 = vld [vmem:[%s6799_s10 + $0x1260] sm:$0xff] }
  0xac   : >> { %v494_v20 = vld [vmem:[%s6799_s10 + $0x1280] sm:$0xff]  ;;  %493 = vst [vmem:[%s6795_s9 + $0x930] sm:$0xff] %v492_v19 }
  0xad   : >> { %v496_v21 = vld [vmem:[%s6799_s10 + $0x12a0] sm:$0xff]  ;;  %495 = vst [vmem:[%s6795_s9 + $0x940] sm:$0xff] %v494_v20 }
  0xae   : >> { %497 = vst [vmem:[%s6795_s9 + $0x950] sm:$0xff] %v496_v21  ;;  %v498_v22 = vld [vmem:[%s6799_s10 + $0x12c0] sm:$0xff] }
  0xaf   : >> { %v500_v23 = vld [vmem:[%s6799_s10 + $0x12e0] sm:$0xff]  ;;  %499 = vst [vmem:[%s6795_s9 + $0x960] sm:$0xff] %v498_v22 }
  0xb0   : >> { %v502_v24 = vld [vmem:[%s6799_s10 + $0x1300] sm:$0xff]  ;;  %501 = vst [vmem:[%s6795_s9 + $0x970] sm:$0xff] %v500_v23 }
  0xb1   : >> { %503 = vst [vmem:[%s6795_s9 + $0x980] sm:$0xff] %v502_v24  ;;  %v504_v25 = vld [vmem:[%s6799_s10 + $0x1320] sm:$0xff] }
  0xb2   : >> { %v506_v26 = vld [vmem:[%s6799_s10 + $0x1340] sm:$0xff]  ;;  %505 = vst [vmem:[%s6795_s9 + $0x990] sm:$0xff] %v504_v25 }
  0xb3   : >> { %v508_v27 = vld [vmem:[%s6799_s10 + $0x1360] sm:$0xff]  ;;  %507 = vst [vmem:[%s6795_s9 + $0x9a0] sm:$0xff] %v506_v26 }
  0xb4   : >> { %509 = vst [vmem:[%s6795_s9 + $0x9b0] sm:$0xff] %v508_v27  ;;  %v510_v28 = vld [vmem:[%s6799_s10 + $0x1380] sm:$0xff] }
  0xb5   : >> { %v512_v29 = vld [vmem:[%s6799_s10 + $0x13a0] sm:$0xff]  ;;  %511 = vst [vmem:[%s6795_s9 + $0x9c0] sm:$0xff] %v510_v28 }
  0xb6   : >> { %v514_v30 = vld [vmem:[%s6799_s10 + $0x13c0] sm:$0xff]  ;;  %513 = vst [vmem:[%s6795_s9 + $0x9d0] sm:$0xff] %v512_v29 }
  0xb7   : >> { %515 = vst [vmem:[%s6795_s9 + $0x9e0] sm:$0xff] %v514_v30  ;;  %v516_v31 = vld [vmem:[%s6799_s10 + $0x13e0] sm:$0xff] }
  0xb8   : >> { %v518_v32 = vld [vmem:[%s6799_s10 + $0x1400] sm:$0xff]  ;;  %517 = vst [vmem:[%s6795_s9 + $0x9f0] sm:$0xff] %v516_v31 }
  0xb9   : >> { %v520_v33 = vld [vmem:[%s6799_s10 + $0x1420] sm:$0xff]  ;;  %519 = vst [vmem:[%s6795_s9 + $0xa00] sm:$0xff] %v518_v32 }
  0xba   : >> { %521 = vst [vmem:[%s6795_s9 + $0xa10] sm:$0xff] %v520_v33  ;;  %v522_v34 = vld [vmem:[%s6799_s10 + $0x1440] sm:$0xff] }
  0xbb   : >> { %v524_v35 = vld [vmem:[%s6799_s10 + $0x1460] sm:$0xff]  ;;  %523 = vst [vmem:[%s6795_s9 + $0xa20] sm:$0xff] %v522_v34 }
  0xbc   : >> { %v526_v36 = vld [vmem:[%s6799_s10 + $0x1480] sm:$0xff]  ;;  %525 = vst [vmem:[%s6795_s9 + $0xa30] sm:$0xff] %v524_v35 }
  0xbd   : >> { %527 = vst [vmem:[%s6795_s9 + $0xa40] sm:$0xff] %v526_v36  ;;  %v528_v37 = vld [vmem:[%s6799_s10 + $0x14a0] sm:$0xff] }
  0xbe   : >> { %v530_v38 = vld [vmem:[%s6799_s10 + $0x14c0] sm:$0xff]  ;;  %529 = vst [vmem:[%s6795_s9 + $0xa50] sm:$0xff] %v528_v37 }
  0xbf   : >> { %v532_v39 = vld [vmem:[%s6799_s10 + $0x14e0] sm:$0xff]  ;;  %531 = vst [vmem:[%s6795_s9 + $0xa60] sm:$0xff] %v530_v38 }
  0xc0   : >> { %533 = vst [vmem:[%s6795_s9 + $0xa70] sm:$0xff] %v532_v39  ;;  %v534_v40 = vld [vmem:[%s6799_s10 + $0x1500] sm:$0xff] }
  0xc1   : >> { %v536_v41 = vld [vmem:[%s6799_s10 + $0x1520] sm:$0xff]  ;;  %535 = vst [vmem:[%s6795_s9 + $0xa80] sm:$0xff] %v534_v40 }
  0xc2   : >> { %v538_v42 = vld [vmem:[%s6799_s10 + $0x1540] sm:$0xff]  ;;  %537 = vst [vmem:[%s6795_s9 + $0xa90] sm:$0xff] %v536_v41 }
  0xc3   : >> { %539 = vst [vmem:[%s6795_s9 + $0xaa0] sm:$0xff] %v538_v42  ;;  %v540_v43 = vld [vmem:[%s6799_s10 + $0x1560] sm:$0xff] }
  0xc4   : >> { %v542_v44 = vld [vmem:[%s6799_s10 + $0x1580] sm:$0xff]  ;;  %541 = vst [vmem:[%s6795_s9 + $0xab0] sm:$0xff] %v540_v43 }
  0xc5   : >> { %v544_v45 = vld [vmem:[%s6799_s10 + $0x15a0] sm:$0xff]  ;;  %543 = vst [vmem:[%s6795_s9 + $0xac0] sm:$0xff] %v542_v44 }
  0xc6   : >> { %545 = vst [vmem:[%s6795_s9 + $0xad0] sm:$0xff] %v544_v45  ;;  %v546_v46 = vld [vmem:[%s6799_s10 + $0x15c0] sm:$0xff] }
  0xc7   : >> { %v548_v47 = vld [vmem:[%s6799_s10 + $0x15e0] sm:$0xff]  ;;  %547 = vst [vmem:[%s6795_s9 + $0xae0] sm:$0xff] %v546_v46 }
  0xc8   : >> { %v550_v48 = vld [vmem:[%s6799_s10 + $0x1600] sm:$0xff]  ;;  %549 = vst [vmem:[%s6795_s9 + $0xaf0] sm:$0xff] %v548_v47 }
  0xc9   : >> { %551 = vst [vmem:[%s6795_s9 + $0xb00] sm:$0xff] %v550_v48  ;;  %v552_v49 = vld [vmem:[%s6799_s10 + $0x1620] sm:$0xff] }
  0xca   : >> { %v554_v50 = vld [vmem:[%s6799_s10 + $0x1640] sm:$0xff]  ;;  %553 = vst [vmem:[%s6795_s9 + $0xb10] sm:$0xff] %v552_v49 }
  0xcb   : >> { %v556_v51 = vld [vmem:[%s6799_s10 + $0x1660] sm:$0xff]  ;;  %555 = vst [vmem:[%s6795_s9 + $0xb20] sm:$0xff] %v554_v50 }
  0xcc   : >> { %557 = vst [vmem:[%s6795_s9 + $0xb30] sm:$0xff] %v556_v51  ;;  %v558_v52 = vld [vmem:[%s6799_s10 + $0x1680] sm:$0xff] }
  0xcd   : >> { %v560_v53 = vld [vmem:[%s6799_s10 + $0x16a0] sm:$0xff]  ;;  %559 = vst [vmem:[%s6795_s9 + $0xb40] sm:$0xff] %v558_v52 }
  0xce   : >> { %v562_v54 = vld [vmem:[%s6799_s10 + $0x16c0] sm:$0xff]  ;;  %561 = vst [vmem:[%s6795_s9 + $0xb50] sm:$0xff] %v560_v53 }
  0xcf   : >> { %563 = vst [vmem:[%s6795_s9 + $0xb60] sm:$0xff] %v562_v54  ;;  %v564_v55 = vld [vmem:[%s6799_s10 + $0x16e0] sm:$0xff] }
  0xd0   : >> { %v566_v56 = vld [vmem:[%s6799_s10 + $0x1700] sm:$0xff]  ;;  %565 = vst [vmem:[%s6795_s9 + $0xb70] sm:$0xff] %v564_v55 }
  0xd1   : >> { %v568_v57 = vld [vmem:[%s6799_s10 + $0x1720] sm:$0xff]  ;;  %567 = vst [vmem:[%s6795_s9 + $0xb80] sm:$0xff] %v566_v56 }
  0xd2   : >> { %569 = vst [vmem:[%s6795_s9 + $0xb90] sm:$0xff] %v568_v57  ;;  %v570_v58 = vld [vmem:[%s6799_s10 + $0x1740] sm:$0xff] }
  0xd3   : >> { %v572_v59 = vld [vmem:[%s6799_s10 + $0x1760] sm:$0xff]  ;;  %571 = vst [vmem:[%s6795_s9 + $0xba0] sm:$0xff] %v570_v58 }
  0xd4   : >> { %v574_v60 = vld [vmem:[%s6799_s10 + $0x1780] sm:$0xff]  ;;  %573 = vst [vmem:[%s6795_s9 + $0xbb0] sm:$0xff] %v572_v59 }
  0xd5   : >> { %575 = vst [vmem:[%s6795_s9 + $0xbc0] sm:$0xff] %v574_v60  ;;  %v576_v61 = vld [vmem:[%s6799_s10 + $0x17a0] sm:$0xff] }
  0xd6   : >> { %v578_v62 = vld [vmem:[%s6799_s10 + $0x17c0] sm:$0xff]  ;;  %577 = vst [vmem:[%s6795_s9 + $0xbd0] sm:$0xff] %v576_v61 }
  0xd7   : >> { %v580_v63 = vld [vmem:[%s6799_s10 + $0x17e0] sm:$0xff]  ;;  %579 = vst [vmem:[%s6795_s9 + $0xbe0] sm:$0xff] %v578_v62 }
  0xd8   : >> { %581 = vst [vmem:[%s6795_s9 + $0xbf0] sm:$0xff] %v580_v63  ;;  %v582_v0 = vld [vmem:[%s6799_s10 + $0x1800] sm:$0xff] }
  0xd9   : >> { %v584_v1 = vld [vmem:[%s6799_s10 + $0x1820] sm:$0xff]  ;;  %583 = vst [vmem:[%s6795_s9 + $0xc00] sm:$0xff] %v582_v0 }
  0xda   : >> { %v586_v2 = vld [vmem:[%s6799_s10 + $0x1840] sm:$0xff]  ;;  %585 = vst [vmem:[%s6795_s9 + $0xc10] sm:$0xff] %v584_v1 }
  0xdb   : >> { %587 = vst [vmem:[%s6795_s9 + $0xc20] sm:$0xff] %v586_v2  ;;  %v588_v3 = vld [vmem:[%s6799_s10 + $0x1860] sm:$0xff] }
  0xdc   : >> { %v590_v4 = vld [vmem:[%s6799_s10 + $0x1880] sm:$0xff]  ;;  %589 = vst [vmem:[%s6795_s9 + $0xc30] sm:$0xff] %v588_v3 }
  0xdd   : >> { %v592_v5 = vld [vmem:[%s6799_s10 + $0x18a0] sm:$0xff]  ;;  %591 = vst [vmem:[%s6795_s9 + $0xc40] sm:$0xff] %v590_v4 }
  0xde   : >> { %593 = vst [vmem:[%s6795_s9 + $0xc50] sm:$0xff] %v592_v5  ;;  %v594_v6 = vld [vmem:[%s6799_s10 + $0x18c0] sm:$0xff] }
  0xdf   : >> { %v596_v7 = vld [vmem:[%s6799_s10 + $0x18e0] sm:$0xff]  ;;  %595 = vst [vmem:[%s6795_s9 + $0xc60] sm:$0xff] %v594_v6 }
  0xe0   : >> { %v598_v8 = vld [vmem:[%s6799_s10 + $0x1900] sm:$0xff]  ;;  %597 = vst [vmem:[%s6795_s9 + $0xc70] sm:$0xff] %v596_v7 }
  0xe1   : >> { %599 = vst [vmem:[%s6795_s9 + $0xc80] sm:$0xff] %v598_v8  ;;  %v600_v9 = vld [vmem:[%s6799_s10 + $0x1920] sm:$0xff] }
  0xe2   : >> { %v602_v10 = vld [vmem:[%s6799_s10 + $0x1940] sm:$0xff]  ;;  %601 = vst [vmem:[%s6795_s9 + $0xc90] sm:$0xff] %v600_v9 }
  0xe3   : >> { %v604_v11 = vld [vmem:[%s6799_s10 + $0x1960] sm:$0xff]  ;;  %603 = vst [vmem:[%s6795_s9 + $0xca0] sm:$0xff] %v602_v10 }
  0xe4   : >> { %605 = vst [vmem:[%s6795_s9 + $0xcb0] sm:$0xff] %v604_v11  ;;  %v606_v12 = vld [vmem:[%s6799_s10 + $0x1980] sm:$0xff] }
  0xe5   : >> { %v608_v13 = vld [vmem:[%s6799_s10 + $0x19a0] sm:$0xff]  ;;  %607 = vst [vmem:[%s6795_s9 + $0xcc0] sm:$0xff] %v606_v12 }
  0xe6   : >> { %v610_v14 = vld [vmem:[%s6799_s10 + $0x19c0] sm:$0xff]  ;;  %609 = vst [vmem:[%s6795_s9 + $0xcd0] sm:$0xff] %v608_v13 }
  0xe7   : >> { %611 = vst [vmem:[%s6795_s9 + $0xce0] sm:$0xff] %v610_v14  ;;  %v612_v15 = vld [vmem:[%s6799_s10 + $0x19e0] sm:$0xff] }
  0xe8   : >> { %v614_v16 = vld [vmem:[%s6799_s10 + $0x1a00] sm:$0xff]  ;;  %613 = vst [vmem:[%s6795_s9 + $0xcf0] sm:$0xff] %v612_v15 }
  0xe9   : >> { %v616_v17 = vld [vmem:[%s6799_s10 + $0x1a20] sm:$0xff]  ;;  %615 = vst [vmem:[%s6795_s9 + $0xd00] sm:$0xff] %v614_v16 }
  0xea   : >> { %617 = vst [vmem:[%s6795_s9 + $0xd10] sm:$0xff] %v616_v17  ;;  %v618_v18 = vld [vmem:[%s6799_s10 + $0x1a40] sm:$0xff] }
  0xeb   : >> { %v620_v19 = vld [vmem:[%s6799_s10 + $0x1a60] sm:$0xff]  ;;  %619 = vst [vmem:[%s6795_s9 + $0xd20] sm:$0xff] %v618_v18 }
  0xec   : >> { %v622_v20 = vld [vmem:[%s6799_s10 + $0x1a80] sm:$0xff]  ;;  %621 = vst [vmem:[%s6795_s9 + $0xd30] sm:$0xff] %v620_v19 }
  0xed   : >> { %623 = vst [vmem:[%s6795_s9 + $0xd40] sm:$0xff] %v622_v20  ;;  %v624_v21 = vld [vmem:[%s6799_s10 + $0x1aa0] sm:$0xff] }
  0xee   : >> { %v626_v22 = vld [vmem:[%s6799_s10 + $0x1ac0] sm:$0xff]  ;;  %625 = vst [vmem:[%s6795_s9 + $0xd50] sm:$0xff] %v624_v21 }
  0xef   : >> { %v628_v23 = vld [vmem:[%s6799_s10 + $0x1ae0] sm:$0xff]  ;;  %627 = vst [vmem:[%s6795_s9 + $0xd60] sm:$0xff] %v626_v22 }
  0xf0   : >> { %629 = vst [vmem:[%s6795_s9 + $0xd70] sm:$0xff] %v628_v23  ;;  %v630_v24 = vld [vmem:[%s6799_s10 + $0x1b00] sm:$0xff] }
  0xf1   : >> { %v632_v25 = vld [vmem:[%s6799_s10 + $0x1b20] sm:$0xff]  ;;  %631 = vst [vmem:[%s6795_s9 + $0xd80] sm:$0xff] %v630_v24 }
  0xf2   : >> { %v634_v26 = vld [vmem:[%s6799_s10 + $0x1b40] sm:$0xff]  ;;  %633 = vst [vmem:[%s6795_s9 + $0xd90] sm:$0xff] %v632_v25 }
  0xf3   : >> { %635 = vst [vmem:[%s6795_s9 + $0xda0] sm:$0xff] %v634_v26  ;;  %v636_v27 = vld [vmem:[%s6799_s10 + $0x1b60] sm:$0xff] }
  0xf4   : >> { %v638_v28 = vld [vmem:[%s6799_s10 + $0x1b80] sm:$0xff]  ;;  %637 = vst [vmem:[%s6795_s9 + $0xdb0] sm:$0xff] %v636_v27 }
  0xf5   : >> { %v640_v29 = vld [vmem:[%s6799_s10 + $0x1ba0] sm:$0xff]  ;;  %639 = vst [vmem:[%s6795_s9 + $0xdc0] sm:$0xff] %v638_v28 }
  0xf6   : >> { %641 = vst [vmem:[%s6795_s9 + $0xdd0] sm:$0xff] %v640_v29  ;;  %v642_v30 = vld [vmem:[%s6799_s10 + $0x1bc0] sm:$0xff] }
  0xf7   : >> { %v644_v31 = vld [vmem:[%s6799_s10 + $0x1be0] sm:$0xff]  ;;  %643 = vst [vmem:[%s6795_s9 + $0xde0] sm:$0xff] %v642_v30 }
  0xf8   : >> { %v646_v32 = vld [vmem:[%s6799_s10 + $0x1c00] sm:$0xff]  ;;  %645 = vst [vmem:[%s6795_s9 + $0xdf0] sm:$0xff] %v644_v31 }
  0xf9   : >> { %647 = vst [vmem:[%s6795_s9 + $0xe00] sm:$0xff] %v646_v32  ;;  %v648_v33 = vld [vmem:[%s6799_s10 + $0x1c20] sm:$0xff] }
  0xfa   : >> { %v650_v34 = vld [vmem:[%s6799_s10 + $0x1c40] sm:$0xff]  ;;  %649 = vst [vmem:[%s6795_s9 + $0xe10] sm:$0xff] %v648_v33 }
  0xfb   : >> { %v652_v35 = vld [vmem:[%s6799_s10 + $0x1c60] sm:$0xff]  ;;  %651 = vst [vmem:[%s6795_s9 + $0xe20] sm:$0xff] %v650_v34 }
  0xfc   : >> { %653 = vst [vmem:[%s6795_s9 + $0xe30] sm:$0xff] %v652_v35  ;;  %v654_v36 = vld [vmem:[%s6799_s10 + $0x1c80] sm:$0xff] }
  0xfd   : >> { %v656_v37 = vld [vmem:[%s6799_s10 + $0x1ca0] sm:$0xff]  ;;  %655 = vst [vmem:[%s6795_s9 + $0xe40] sm:$0xff] %v654_v36 }
  0xfe   : >> { %v658_v38 = vld [vmem:[%s6799_s10 + $0x1cc0] sm:$0xff]  ;;  %657 = vst [vmem:[%s6795_s9 + $0xe50] sm:$0xff] %v656_v37 }
  0xff   : >> { %659 = vst [vmem:[%s6795_s9 + $0xe60] sm:$0xff] %v658_v38  ;;  %v660_v39 = vld [vmem:[%s6799_s10 + $0x1ce0] sm:$0xff] }
 0x100   : >> { %v662_v40 = vld [vmem:[%s6799_s10 + $0x1d00] sm:$0xff]  ;;  %661 = vst [vmem:[%s6795_s9 + $0xe70] sm:$0xff] %v660_v39 }
 0x101   : >> { %v664_v41 = vld [vmem:[%s6799_s10 + $0x1d20] sm:$0xff]  ;;  %663 = vst [vmem:[%s6795_s9 + $0xe80] sm:$0xff] %v662_v40 }
 0x102   : >> { %665 = vst [vmem:[%s6795_s9 + $0xe90] sm:$0xff] %v664_v41  ;;  %v666_v42 = vld [vmem:[%s6799_s10 + $0x1d40] sm:$0xff] }
 0x103   : >> { %v668_v43 = vld [vmem:[%s6799_s10 + $0x1d60] sm:$0xff]  ;;  %667 = vst [vmem:[%s6795_s9 + $0xea0] sm:$0xff] %v666_v42 }
 0x104   : >> { %v670_v44 = vld [vmem:[%s6799_s10 + $0x1d80] sm:$0xff]  ;;  %669 = vst [vmem:[%s6795_s9 + $0xeb0] sm:$0xff] %v668_v43 }
 0x105   : >> { %671 = vst [vmem:[%s6795_s9 + $0xec0] sm:$0xff] %v670_v44  ;;  %v672_v45 = vld [vmem:[%s6799_s10 + $0x1da0] sm:$0xff] }
 0x106   : >> { %v674_v46 = vld [vmem:[%s6799_s10 + $0x1dc0] sm:$0xff]  ;;  %673 = vst [vmem:[%s6795_s9 + $0xed0] sm:$0xff] %v672_v45 }
 0x107   : >> { %v676_v47 = vld [vmem:[%s6799_s10 + $0x1de0] sm:$0xff]  ;;  %675 = vst [vmem:[%s6795_s9 + $0xee0] sm:$0xff] %v674_v46 }
 0x108   : >> { %677 = vst [vmem:[%s6795_s9 + $0xef0] sm:$0xff] %v676_v47  ;;  %v678_v48 = vld [vmem:[%s6799_s10 + $0x1e00] sm:$0xff] }
 0x109   : >> { %v680_v49 = vld [vmem:[%s6799_s10 + $0x1e20] sm:$0xff]  ;;  %679 = vst [vmem:[%s6795_s9 + $0xf00] sm:$0xff] %v678_v48 }
 0x10a   : >> { %v682_v50 = vld [vmem:[%s6799_s10 + $0x1e40] sm:$0xff]  ;;  %681 = vst [vmem:[%s6795_s9 + $0xf10] sm:$0xff] %v680_v49 }
 0x10b   : >> { %683 = vst [vmem:[%s6795_s9 + $0xf20] sm:$0xff] %v682_v50  ;;  %v684_v51 = vld [vmem:[%s6799_s10 + $0x1e60] sm:$0xff] }
 0x10c   : >> { %v686_v52 = vld [vmem:[%s6799_s10 + $0x1e80] sm:$0xff]  ;;  %685 = vst [vmem:[%s6795_s9 + $0xf30] sm:$0xff] %v684_v51 }
 0x10d   : >> { %v688_v53 = vld [vmem:[%s6799_s10 + $0x1ea0] sm:$0xff]  ;;  %687 = vst [vmem:[%s6795_s9 + $0xf40] sm:$0xff] %v686_v52 }
 0x10e   : >> { %689 = vst [vmem:[%s6795_s9 + $0xf50] sm:$0xff] %v688_v53  ;;  %v690_v54 = vld [vmem:[%s6799_s10 + $0x1ec0] sm:$0xff] }
 0x10f   : >> { %v692_v55 = vld [vmem:[%s6799_s10 + $0x1ee0] sm:$0xff]  ;;  %691 = vst [vmem:[%s6795_s9 + $0xf60] sm:$0xff] %v690_v54 }
 0x110   : >> { %v694_v56 = vld [vmem:[%s6799_s10 + $0x1f00] sm:$0xff]  ;;  %693 = vst [vmem:[%s6795_s9 + $0xf70] sm:$0xff] %v692_v55 }
 0x111   : >> { %695 = vst [vmem:[%s6795_s9 + $0xf80] sm:$0xff] %v694_v56  ;;  %v696_v57 = vld [vmem:[%s6799_s10 + $0x1f20] sm:$0xff] }
 0x112   : >> { %v698_v58 = vld [vmem:[%s6799_s10 + $0x1f40] sm:$0xff]  ;;  %697 = vst [vmem:[%s6795_s9 + $0xf90] sm:$0xff] %v696_v57 }
 0x113   : >> { %v700_v59 = vld [vmem:[%s6799_s10 + $0x1f60] sm:$0xff]  ;;  %699 = vst [vmem:[%s6795_s9 + $0xfa0] sm:$0xff] %v698_v58 }
 0x114   : >> { %701 = vst [vmem:[%s6795_s9 + $0xfb0] sm:$0xff] %v700_v59  ;;  %v702_v60 = vld [vmem:[%s6799_s10 + $0x1f80] sm:$0xff] }
 0x115   : >> { %v704_v61 = vld [vmem:[%s6799_s10 + $0x1fa0] sm:$0xff]  ;;  %703 = vst [vmem:[%s6795_s9 + $0xfc0] sm:$0xff] %v702_v60 }
 0x116   : >> { %v706_v62 = vld [vmem:[%s6799_s10 + $0x1fc0] sm:$0xff]  ;;  %705 = vst [vmem:[%s6795_s9 + $0xfd0] sm:$0xff] %v704_v61 }
 0x117   : >> { %707 = vst [vmem:[%s6795_s9 + $0xfe0] sm:$0xff] %v706_v62  ;;  %v708_v63 = vld [vmem:[%s6799_s10 + $0x1fe0] sm:$0xff] }
 0x118   : >> { %v710_v0 = vld [vmem:[%s6799_s10 + $0x2000] sm:$0xff]  ;;  %709 = vst [vmem:[%s6795_s9 + $0xff0] sm:$0xff] %v708_v63 }
 0x119   : >> { %v712_v1 = vld [vmem:[%s6799_s10 + $0x2020] sm:$0xff]  ;;  %711 = vst [vmem:[%s6795_s9 + $0x1000] sm:$0xff] %v710_v0 }
 0x11a   : >> { %713 = vst [vmem:[%s6795_s9 + $0x1010] sm:$0xff] %v712_v1  ;;  %v714_v2 = vld [vmem:[%s6799_s10 + $0x2040] sm:$0xff] }
 0x11b   : >> { %v716_v3 = vld [vmem:[%s6799_s10 + $0x2060] sm:$0xff]  ;;  %715 = vst [vmem:[%s6795_s9 + $0x1020] sm:$0xff] %v714_v2 }
 0x11c   : >> { %v718_v4 = vld [vmem:[%s6799_s10 + $0x2080] sm:$0xff]  ;;  %717 = vst [vmem:[%s6795_s9 + $0x1030] sm:$0xff] %v716_v3 }
 0x11d   : >> { %719 = vst [vmem:[%s6795_s9 + $0x1040] sm:$0xff] %v718_v4  ;;  %v720_v5 = vld [vmem:[%s6799_s10 + $0x20a0] sm:$0xff] }
 0x11e   : >> { %v722_v6 = vld [vmem:[%s6799_s10 + $0x20c0] sm:$0xff]  ;;  %721 = vst [vmem:[%s6795_s9 + $0x1050] sm:$0xff] %v720_v5 }
 0x11f   : >> { %v724_v7 = vld [vmem:[%s6799_s10 + $0x20e0] sm:$0xff]  ;;  %723 = vst [vmem:[%s6795_s9 + $0x1060] sm:$0xff] %v722_v6 }
 0x120   : >> { %725 = vst [vmem:[%s6795_s9 + $0x1070] sm:$0xff] %v724_v7  ;;  %v726_v8 = vld [vmem:[%s6799_s10 + $0x2100] sm:$0xff] }
 0x121   : >> { %v728_v9 = vld [vmem:[%s6799_s10 + $0x2120] sm:$0xff]  ;;  %727 = vst [vmem:[%s6795_s9 + $0x1080] sm:$0xff] %v726_v8 }
 0x122   : >> { %v730_v10 = vld [vmem:[%s6799_s10 + $0x2140] sm:$0xff]  ;;  %729 = vst [vmem:[%s6795_s9 + $0x1090] sm:$0xff] %v728_v9 }
 0x123   : >> { %731 = vst [vmem:[%s6795_s9 + $0x10a0] sm:$0xff] %v730_v10  ;;  %v732_v11 = vld [vmem:[%s6799_s10 + $0x2160] sm:$0xff] }
 0x124   : >> { %v734_v12 = vld [vmem:[%s6799_s10 + $0x2180] sm:$0xff]  ;;  %733 = vst [vmem:[%s6795_s9 + $0x10b0] sm:$0xff] %v732_v11 }
 0x125   : >> { %v736_v13 = vld [vmem:[%s6799_s10 + $0x21a0] sm:$0xff]  ;;  %735 = vst [vmem:[%s6795_s9 + $0x10c0] sm:$0xff] %v734_v12 }
 0x126   : >> { %737 = vst [vmem:[%s6795_s9 + $0x10d0] sm:$0xff] %v736_v13  ;;  %v738_v14 = vld [vmem:[%s6799_s10 + $0x21c0] sm:$0xff] }
 0x127   : >> { %v740_v15 = vld [vmem:[%s6799_s10 + $0x21e0] sm:$0xff]  ;;  %739 = vst [vmem:[%s6795_s9 + $0x10e0] sm:$0xff] %v738_v14 }
 0x128   : >> { %v742_v16 = vld [vmem:[%s6799_s10 + $0x2200] sm:$0xff]  ;;  %741 = vst [vmem:[%s6795_s9 + $0x10f0] sm:$0xff] %v740_v15 }
 0x129   : >> { %743 = vst [vmem:[%s6795_s9 + $0x1100] sm:$0xff] %v742_v16  ;;  %v744_v17 = vld [vmem:[%s6799_s10 + $0x2220] sm:$0xff] }
 0x12a   : >> { %v746_v18 = vld [vmem:[%s6799_s10 + $0x2240] sm:$0xff]  ;;  %745 = vst [vmem:[%s6795_s9 + $0x1110] sm:$0xff] %v744_v17 }
 0x12b   : >> { %v748_v19 = vld [vmem:[%s6799_s10 + $0x2260] sm:$0xff]  ;;  %747 = vst [vmem:[%s6795_s9 + $0x1120] sm:$0xff] %v746_v18 }
 0x12c   : >> { %749 = vst [vmem:[%s6795_s9 + $0x1130] sm:$0xff] %v748_v19  ;;  %v750_v20 = vld [vmem:[%s6799_s10 + $0x2280] sm:$0xff] }
 0x12d   : >> { %v752_v21 = vld [vmem:[%s6799_s10 + $0x22a0] sm:$0xff]  ;;  %751 = vst [vmem:[%s6795_s9 + $0x1140] sm:$0xff] %v750_v20 }
 0x12e   : >> { %v754_v22 = vld [vmem:[%s6799_s10 + $0x22c0] sm:$0xff]  ;;  %753 = vst [vmem:[%s6795_s9 + $0x1150] sm:$0xff] %v752_v21 }
 0x12f   : >> { %755 = vst [vmem:[%s6795_s9 + $0x1160] sm:$0xff] %v754_v22  ;;  %v756_v23 = vld [vmem:[%s6799_s10 + $0x22e0] sm:$0xff] }
 0x130   : >> { %v758_v24 = vld [vmem:[%s6799_s10 + $0x2300] sm:$0xff]  ;;  %757 = vst [vmem:[%s6795_s9 + $0x1170] sm:$0xff] %v756_v23 }
 0x131   : >> { %v760_v25 = vld [vmem:[%s6799_s10 + $0x2320] sm:$0xff]  ;;  %759 = vst [vmem:[%s6795_s9 + $0x1180] sm:$0xff] %v758_v24 }
 0x132   : >> { %761 = vst [vmem:[%s6795_s9 + $0x1190] sm:$0xff] %v760_v25  ;;  %v762_v26 = vld [vmem:[%s6799_s10 + $0x2340] sm:$0xff] }
 0x133   : >> { %v764_v27 = vld [vmem:[%s6799_s10 + $0x2360] sm:$0xff]  ;;  %763 = vst [vmem:[%s6795_s9 + $0x11a0] sm:$0xff] %v762_v26 }
 0x134   : >> { %v766_v28 = vld [vmem:[%s6799_s10 + $0x2380] sm:$0xff]  ;;  %765 = vst [vmem:[%s6795_s9 + $0x11b0] sm:$0xff] %v764_v27 }
 0x135   : >> { %767 = vst [vmem:[%s6795_s9 + $0x11c0] sm:$0xff] %v766_v28  ;;  %v768_v29 = vld [vmem:[%s6799_s10 + $0x23a0] sm:$0xff] }
 0x136   : >> { %v770_v30 = vld [vmem:[%s6799_s10 + $0x23c0] sm:$0xff]  ;;  %769 = vst [vmem:[%s6795_s9 + $0x11d0] sm:$0xff] %v768_v29 }
 0x137   : >> { %v772_v31 = vld [vmem:[%s6799_s10 + $0x23e0] sm:$0xff]  ;;  %771 = vst [vmem:[%s6795_s9 + $0x11e0] sm:$0xff] %v770_v30 }
 0x138   : >> { %773 = vst [vmem:[%s6795_s9 + $0x11f0] sm:$0xff] %v772_v31  ;;  %v774_v32 = vld [vmem:[%s6799_s10 + $0x2400] sm:$0xff] }
 0x139   : >> { %v776_v33 = vld [vmem:[%s6799_s10 + $0x2420] sm:$0xff]  ;;  %775 = vst [vmem:[%s6795_s9 + $0x1200] sm:$0xff] %v774_v32 }
 0x13a   : >> { %v778_v34 = vld [vmem:[%s6799_s10 + $0x2440] sm:$0xff]  ;;  %777 = vst [vmem:[%s6795_s9 + $0x1210] sm:$0xff] %v776_v33 }
 0x13b   : >> { %779 = vst [vmem:[%s6795_s9 + $0x1220] sm:$0xff] %v778_v34  ;;  %v780_v35 = vld [vmem:[%s6799_s10 + $0x2460] sm:$0xff] }
 0x13c   : >> { %v782_v36 = vld [vmem:[%s6799_s10 + $0x2480] sm:$0xff]  ;;  %781 = vst [vmem:[%s6795_s9 + $0x1230] sm:$0xff] %v780_v35 }
 0x13d   : >> { %v784_v37 = vld [vmem:[%s6799_s10 + $0x24a0] sm:$0xff]  ;;  %783 = vst [vmem:[%s6795_s9 + $0x1240] sm:$0xff] %v782_v36 }
 0x13e   : >> { %785 = vst [vmem:[%s6795_s9 + $0x1250] sm:$0xff] %v784_v37  ;;  %v786_v38 = vld [vmem:[%s6799_s10 + $0x24c0] sm:$0xff] }
 0x13f   : >> { %v788_v39 = vld [vmem:[%s6799_s10 + $0x24e0] sm:$0xff]  ;;  %787 = vst [vmem:[%s6795_s9 + $0x1260] sm:$0xff] %v786_v38 }
 0x140   : >> { %v790_v40 = vld [vmem:[%s6799_s10 + $0x2500] sm:$0xff]  ;;  %789 = vst [vmem:[%s6795_s9 + $0x1270] sm:$0xff] %v788_v39 }
 0x141   : >> { %791 = vst [vmem:[%s6795_s9 + $0x1280] sm:$0xff] %v790_v40  ;;  %v792_v41 = vld [vmem:[%s6799_s10 + $0x2520] sm:$0xff] }
 0x142   : >> { %v794_v42 = vld [vmem:[%s6799_s10 + $0x2540] sm:$0xff]  ;;  %793 = vst [vmem:[%s6795_s9 + $0x1290] sm:$0xff] %v792_v41 }
 0x143   : >> { %v796_v43 = vld [vmem:[%s6799_s10 + $0x2560] sm:$0xff]  ;;  %795 = vst [vmem:[%s6795_s9 + $0x12a0] sm:$0xff] %v794_v42 }
 0x144   : >> { %797 = vst [vmem:[%s6795_s9 + $0x12b0] sm:$0xff] %v796_v43  ;;  %v798_v44 = vld [vmem:[%s6799_s10 + $0x2580] sm:$0xff] }
 0x145   : >> { %v800_v45 = vld [vmem:[%s6799_s10 + $0x25a0] sm:$0xff]  ;;  %799 = vst [vmem:[%s6795_s9 + $0x12c0] sm:$0xff] %v798_v44 }
 0x146   : >> { %v802_v46 = vld [vmem:[%s6799_s10 + $0x25c0] sm:$0xff]  ;;  %801 = vst [vmem:[%s6795_s9 + $0x12d0] sm:$0xff] %v800_v45 }
 0x147   : >> { %803 = vst [vmem:[%s6795_s9 + $0x12e0] sm:$0xff] %v802_v46  ;;  %v804_v47 = vld [vmem:[%s6799_s10 + $0x25e0] sm:$0xff] }
 0x148   : >> { %v806_v48 = vld [vmem:[%s6799_s10 + $0x2600] sm:$0xff]  ;;  %805 = vst [vmem:[%s6795_s9 + $0x12f0] sm:$0xff] %v804_v47 }
 0x149   : >> { %v808_v49 = vld [vmem:[%s6799_s10 + $0x2620] sm:$0xff]  ;;  %807 = vst [vmem:[%s6795_s9 + $0x1300] sm:$0xff] %v806_v48 }
 0x14a   : >> { %809 = vst [vmem:[%s6795_s9 + $0x1310] sm:$0xff] %v808_v49  ;;  %v810_v50 = vld [vmem:[%s6799_s10 + $0x2640] sm:$0xff] }
 0x14b   : >> { %v812_v51 = vld [vmem:[%s6799_s10 + $0x2660] sm:$0xff]  ;;  %811 = vst [vmem:[%s6795_s9 + $0x1320] sm:$0xff] %v810_v50 }
 0x14c   : >> { %v814_v52 = vld [vmem:[%s6799_s10 + $0x2680] sm:$0xff]  ;;  %813 = vst [vmem:[%s6795_s9 + $0x1330] sm:$0xff] %v812_v51 }
 0x14d   : >> { %815 = vst [vmem:[%s6795_s9 + $0x1340] sm:$0xff] %v814_v52  ;;  %v816_v53 = vld [vmem:[%s6799_s10 + $0x26a0] sm:$0xff] }
 0x14e   : >> { %v818_v54 = vld [vmem:[%s6799_s10 + $0x26c0] sm:$0xff]  ;;  %817 = vst [vmem:[%s6795_s9 + $0x1350] sm:$0xff] %v816_v53 }
 0x14f   : >> { %v820_v55 = vld [vmem:[%s6799_s10 + $0x26e0] sm:$0xff]  ;;  %819 = vst [vmem:[%s6795_s9 + $0x1360] sm:$0xff] %v818_v54 }
 0x150   : >> { %821 = vst [vmem:[%s6795_s9 + $0x1370] sm:$0xff] %v820_v55  ;;  %v822_v56 = vld [vmem:[%s6799_s10 + $0x2700] sm:$0xff] }
 0x151   : >> { %v824_v57 = vld [vmem:[%s6799_s10 + $0x2720] sm:$0xff]  ;;  %823 = vst [vmem:[%s6795_s9 + $0x1380] sm:$0xff] %v822_v56 }
 0x152   : >> { %v826_v58 = vld [vmem:[%s6799_s10 + $0x2740] sm:$0xff]  ;;  %825 = vst [vmem:[%s6795_s9 + $0x1390] sm:$0xff] %v824_v57 }
 0x153   : >> { %827 = vst [vmem:[%s6795_s9 + $0x13a0] sm:$0xff] %v826_v58  ;;  %v828_v59 = vld [vmem:[%s6799_s10 + $0x2760] sm:$0xff] }
 0x154   : >> { %v830_v60 = vld [vmem:[%s6799_s10 + $0x2780] sm:$0xff]  ;;  %829 = vst [vmem:[%s6795_s9 + $0x13b0] sm:$0xff] %v828_v59 }
 0x155   : >> { %v832_v61 = vld [vmem:[%s6799_s10 + $0x27a0] sm:$0xff]  ;;  %831 = vst [vmem:[%s6795_s9 + $0x13c0] sm:$0xff] %v830_v60 }
 0x156   : >> { %833 = vst [vmem:[%s6795_s9 + $0x13d0] sm:$0xff] %v832_v61  ;;  %v834_v62 = vld [vmem:[%s6799_s10 + $0x27c0] sm:$0xff] }
 0x157   : >> { %v836_v63 = vld [vmem:[%s6799_s10 + $0x27e0] sm:$0xff]  ;;  %835 = vst [vmem:[%s6795_s9 + $0x13e0] sm:$0xff] %v834_v62 }
 0x158   : >> { %v838_v0 = vld [vmem:[%s6799_s10 + $0x2800] sm:$0xff]  ;;  %837 = vst [vmem:[%s6795_s9 + $0x13f0] sm:$0xff] %v836_v63 }
 0x159   : >> { %839 = vst [vmem:[%s6795_s9 + $0x1400] sm:$0xff] %v838_v0  ;;  %v840_v1 = vld [vmem:[%s6799_s10 + $0x2820] sm:$0xff] }
 0x15a   : >> { %v842_v2 = vld [vmem:[%s6799_s10 + $0x2840] sm:$0xff]  ;;  %841 = vst [vmem:[%s6795_s9 + $0x1410] sm:$0xff] %v840_v1 }
 0x15b   : >> { %v844_v3 = vld [vmem:[%s6799_s10 + $0x2860] sm:$0xff]  ;;  %843 = vst [vmem:[%s6795_s9 + $0x1420] sm:$0xff] %v842_v2 }
 0x15c   : >> { %845 = vst [vmem:[%s6795_s9 + $0x1430] sm:$0xff] %v844_v3  ;;  %v846_v4 = vld [vmem:[%s6799_s10 + $0x2880] sm:$0xff] }
 0x15d   : >> { %v848_v5 = vld [vmem:[%s6799_s10 + $0x28a0] sm:$0xff]  ;;  %847 = vst [vmem:[%s6795_s9 + $0x1440] sm:$0xff] %v846_v4 }
 0x15e   : >> { %v850_v6 = vld [vmem:[%s6799_s10 + $0x28c0] sm:$0xff]  ;;  %849 = vst [vmem:[%s6795_s9 + $0x1450] sm:$0xff] %v848_v5 }
 0x15f   : >> { %851 = vst [vmem:[%s6795_s9 + $0x1460] sm:$0xff] %v850_v6  ;;  %v852_v7 = vld [vmem:[%s6799_s10 + $0x28e0] sm:$0xff] }
 0x160   : >> { %v854_v8 = vld [vmem:[%s6799_s10 + $0x2900] sm:$0xff]  ;;  %853 = vst [vmem:[%s6795_s9 + $0x1470] sm:$0xff] %v852_v7 }
 0x161   : >> { %v856_v9 = vld [vmem:[%s6799_s10 + $0x2920] sm:$0xff]  ;;  %855 = vst [vmem:[%s6795_s9 + $0x1480] sm:$0xff] %v854_v8 }
 0x162   : >> { %857 = vst [vmem:[%s6795_s9 + $0x1490] sm:$0xff] %v856_v9  ;;  %v858_v10 = vld [vmem:[%s6799_s10 + $0x2940] sm:$0xff] }
 0x163   : >> { %v860_v11 = vld [vmem:[%s6799_s10 + $0x2960] sm:$0xff]  ;;  %859 = vst [vmem:[%s6795_s9 + $0x14a0] sm:$0xff] %v858_v10 }
 0x164   : >> { %v862_v12 = vld [vmem:[%s6799_s10 + $0x2980] sm:$0xff]  ;;  %861 = vst [vmem:[%s6795_s9 + $0x14b0] sm:$0xff] %v860_v11 }
 0x165   : >> { %863 = vst [vmem:[%s6795_s9 + $0x14c0] sm:$0xff] %v862_v12  ;;  %v864_v13 = vld [vmem:[%s6799_s10 + $0x29a0] sm:$0xff] }
 0x166   : >> { %v866_v14 = vld [vmem:[%s6799_s10 + $0x29c0] sm:$0xff]  ;;  %865 = vst [vmem:[%s6795_s9 + $0x14d0] sm:$0xff] %v864_v13 }
 0x167   : >> { %v868_v15 = vld [vmem:[%s6799_s10 + $0x29e0] sm:$0xff]  ;;  %867 = vst [vmem:[%s6795_s9 + $0x14e0] sm:$0xff] %v866_v14 }
 0x168   : >> { %869 = vst [vmem:[%s6795_s9 + $0x14f0] sm:$0xff] %v868_v15  ;;  %v870_v16 = vld [vmem:[%s6799_s10 + $0x2a00] sm:$0xff] }
 0x169   : >> { %v872_v17 = vld [vmem:[%s6799_s10 + $0x2a20] sm:$0xff]  ;;  %871 = vst [vmem:[%s6795_s9 + $0x1500] sm:$0xff] %v870_v16 }
 0x16a   : >> { %v874_v18 = vld [vmem:[%s6799_s10 + $0x2a40] sm:$0xff]  ;;  %873 = vst [vmem:[%s6795_s9 + $0x1510] sm:$0xff] %v872_v17 }
 0x16b   : >> { %875 = vst [vmem:[%s6795_s9 + $0x1520] sm:$0xff] %v874_v18  ;;  %v876_v19 = vld [vmem:[%s6799_s10 + $0x2a60] sm:$0xff] }
 0x16c   : >> { %v878_v20 = vld [vmem:[%s6799_s10 + $0x2a80] sm:$0xff]  ;;  %877 = vst [vmem:[%s6795_s9 + $0x1530] sm:$0xff] %v876_v19 }
 0x16d   : >> { %v880_v21 = vld [vmem:[%s6799_s10 + $0x2aa0] sm:$0xff]  ;;  %879 = vst [vmem:[%s6795_s9 + $0x1540] sm:$0xff] %v878_v20 }
 0x16e   : >> { %881 = vst [vmem:[%s6795_s9 + $0x1550] sm:$0xff] %v880_v21  ;;  %v882_v22 = vld [vmem:[%s6799_s10 + $0x2ac0] sm:$0xff] }
 0x16f   : >> { %v884_v23 = vld [vmem:[%s6799_s10 + $0x2ae0] sm:$0xff]  ;;  %883 = vst [vmem:[%s6795_s9 + $0x1560] sm:$0xff] %v882_v22 }
 0x170   : >> { %v886_v24 = vld [vmem:[%s6799_s10 + $0x2b00] sm:$0xff]  ;;  %885 = vst [vmem:[%s6795_s9 + $0x1570] sm:$0xff] %v884_v23 }
 0x171   : >> { %887 = vst [vmem:[%s6795_s9 + $0x1580] sm:$0xff] %v886_v24  ;;  %v888_v25 = vld [vmem:[%s6799_s10 + $0x2b20] sm:$0xff] }
 0x172   : >> { %v890_v26 = vld [vmem:[%s6799_s10 + $0x2b40] sm:$0xff]  ;;  %889 = vst [vmem:[%s6795_s9 + $0x1590] sm:$0xff] %v888_v25 }
 0x173   : >> { %v892_v27 = vld [vmem:[%s6799_s10 + $0x2b60] sm:$0xff]  ;;  %891 = vst [vmem:[%s6795_s9 + $0x15a0] sm:$0xff] %v890_v26 }
 0x174   : >> { %893 = vst [vmem:[%s6795_s9 + $0x15b0] sm:$0xff] %v892_v27  ;;  %v894_v28 = vld [vmem:[%s6799_s10 + $0x2b80] sm:$0xff] }
 0x175   : >> { %v896_v29 = vld [vmem:[%s6799_s10 + $0x2ba0] sm:$0xff]  ;;  %895 = vst [vmem:[%s6795_s9 + $0x15c0] sm:$0xff] %v894_v28 }
 0x176   : >> { %v898_v30 = vld [vmem:[%s6799_s10 + $0x2bc0] sm:$0xff]  ;;  %897 = vst [vmem:[%s6795_s9 + $0x15d0] sm:$0xff] %v896_v29 }
 0x177   : >> { %899 = vst [vmem:[%s6795_s9 + $0x15e0] sm:$0xff] %v898_v30  ;;  %v900_v31 = vld [vmem:[%s6799_s10 + $0x2be0] sm:$0xff] }
 0x178   : >> { %v902_v32 = vld [vmem:[%s6799_s10 + $0x2c00] sm:$0xff]  ;;  %901 = vst [vmem:[%s6795_s9 + $0x15f0] sm:$0xff] %v900_v31 }
 0x179   : >> { %v904_v33 = vld [vmem:[%s6799_s10 + $0x2c20] sm:$0xff]  ;;  %903 = vst [vmem:[%s6795_s9 + $0x1600] sm:$0xff] %v902_v32 }
 0x17a   : >> { %905 = vst [vmem:[%s6795_s9 + $0x1610] sm:$0xff] %v904_v33  ;;  %v906_v34 = vld [vmem:[%s6799_s10 + $0x2c40] sm:$0xff] }
 0x17b   : >> { %v908_v35 = vld [vmem:[%s6799_s10 + $0x2c60] sm:$0xff]  ;;  %907 = vst [vmem:[%s6795_s9 + $0x1620] sm:$0xff] %v906_v34 }
 0x17c   : >> { %v910_v36 = vld [vmem:[%s6799_s10 + $0x2c80] sm:$0xff]  ;;  %909 = vst [vmem:[%s6795_s9 + $0x1630] sm:$0xff] %v908_v35 }
 0x17d   : >> { %911 = vst [vmem:[%s6795_s9 + $0x1640] sm:$0xff] %v910_v36  ;;  %v912_v37 = vld [vmem:[%s6799_s10 + $0x2ca0] sm:$0xff] }
 0x17e   : >> { %v914_v38 = vld [vmem:[%s6799_s10 + $0x2cc0] sm:$0xff]  ;;  %913 = vst [vmem:[%s6795_s9 + $0x1650] sm:$0xff] %v912_v37 }
 0x17f   : >> { %v916_v39 = vld [vmem:[%s6799_s10 + $0x2ce0] sm:$0xff]  ;;  %915 = vst [vmem:[%s6795_s9 + $0x1660] sm:$0xff] %v914_v38 }
 0x180   : >> { %917 = vst [vmem:[%s6795_s9 + $0x1670] sm:$0xff] %v916_v39  ;;  %v918_v40 = vld [vmem:[%s6799_s10 + $0x2d00] sm:$0xff] }
 0x181   : >> { %v920_v41 = vld [vmem:[%s6799_s10 + $0x2d20] sm:$0xff]  ;;  %919 = vst [vmem:[%s6795_s9 + $0x1680] sm:$0xff] %v918_v40 }
 0x182   : >> { %v922_v42 = vld [vmem:[%s6799_s10 + $0x2d40] sm:$0xff]  ;;  %921 = vst [vmem:[%s6795_s9 + $0x1690] sm:$0xff] %v920_v41 }
 0x183   : >> { %923 = vst [vmem:[%s6795_s9 + $0x16a0] sm:$0xff] %v922_v42  ;;  %v924_v43 = vld [vmem:[%s6799_s10 + $0x2d60] sm:$0xff] }
 0x184   : >> { %v926_v44 = vld [vmem:[%s6799_s10 + $0x2d80] sm:$0xff]  ;;  %925 = vst [vmem:[%s6795_s9 + $0x16b0] sm:$0xff] %v924_v43 }
 0x185   : >> { %v928_v45 = vld [vmem:[%s6799_s10 + $0x2da0] sm:$0xff]  ;;  %927 = vst [vmem:[%s6795_s9 + $0x16c0] sm:$0xff] %v926_v44 }
 0x186   : >> { %929 = vst [vmem:[%s6795_s9 + $0x16d0] sm:$0xff] %v928_v45  ;;  %v930_v46 = vld [vmem:[%s6799_s10 + $0x2dc0] sm:$0xff] }
 0x187   : >> { %v932_v47 = vld [vmem:[%s6799_s10 + $0x2de0] sm:$0xff]  ;;  %931 = vst [vmem:[%s6795_s9 + $0x16e0] sm:$0xff] %v930_v46 }
 0x188   : >> { %v934_v48 = vld [vmem:[%s6799_s10 + $0x2e00] sm:$0xff]  ;;  %933 = vst [vmem:[%s6795_s9 + $0x16f0] sm:$0xff] %v932_v47 }
 0x189   : >> { %935 = vst [vmem:[%s6795_s9 + $0x1700] sm:$0xff] %v934_v48  ;;  %v936_v49 = vld [vmem:[%s6799_s10 + $0x2e20] sm:$0xff] }
 0x18a   : >> { %v938_v50 = vld [vmem:[%s6799_s10 + $0x2e40] sm:$0xff]  ;;  %937 = vst [vmem:[%s6795_s9 + $0x1710] sm:$0xff] %v936_v49 }
 0x18b   : >> { %v940_v51 = vld [vmem:[%s6799_s10 + $0x2e60] sm:$0xff]  ;;  %939 = vst [vmem:[%s6795_s9 + $0x1720] sm:$0xff] %v938_v50 }
 0x18c   : >> { %941 = vst [vmem:[%s6795_s9 + $0x1730] sm:$0xff] %v940_v51  ;;  %v942_v52 = vld [vmem:[%s6799_s10 + $0x2e80] sm:$0xff] }
 0x18d   : >> { %v944_v53 = vld [vmem:[%s6799_s10 + $0x2ea0] sm:$0xff]  ;;  %943 = vst [vmem:[%s6795_s9 + $0x1740] sm:$0xff] %v942_v52 }
 0x18e   : >> { %v946_v54 = vld [vmem:[%s6799_s10 + $0x2ec0] sm:$0xff]  ;;  %945 = vst [vmem:[%s6795_s9 + $0x1750] sm:$0xff] %v944_v53 }
 0x18f   : >> { %947 = vst [vmem:[%s6795_s9 + $0x1760] sm:$0xff] %v946_v54  ;;  %v948_v55 = vld [vmem:[%s6799_s10 + $0x2ee0] sm:$0xff] }
 0x190   : >> { %v950_v56 = vld [vmem:[%s6799_s10 + $0x2f00] sm:$0xff]  ;;  %949 = vst [vmem:[%s6795_s9 + $0x1770] sm:$0xff] %v948_v55 }
 0x191   : >> { %v952_v57 = vld [vmem:[%s6799_s10 + $0x2f20] sm:$0xff]  ;;  %951 = vst [vmem:[%s6795_s9 + $0x1780] sm:$0xff] %v950_v56 }
 0x192   : >> { %953 = vst [vmem:[%s6795_s9 + $0x1790] sm:$0xff] %v952_v57  ;;  %v954_v58 = vld [vmem:[%s6799_s10 + $0x2f40] sm:$0xff] }
 0x193   : >> { %v956_v59 = vld [vmem:[%s6799_s10 + $0x2f60] sm:$0xff]  ;;  %955 = vst [vmem:[%s6795_s9 + $0x17a0] sm:$0xff] %v954_v58 }
 0x194   : >> { %v958_v60 = vld [vmem:[%s6799_s10 + $0x2f80] sm:$0xff]  ;;  %957 = vst [vmem:[%s6795_s9 + $0x17b0] sm:$0xff] %v956_v59 }
 0x195   : >> { %959 = vst [vmem:[%s6795_s9 + $0x17c0] sm:$0xff] %v958_v60  ;;  %v960_v61 = vld [vmem:[%s6799_s10 + $0x2fa0] sm:$0xff] }
 0x196   : >> { %v962_v62 = vld [vmem:[%s6799_s10 + $0x2fc0] sm:$0xff]  ;;  %961 = vst [vmem:[%s6795_s9 + $0x17d0] sm:$0xff] %v960_v61 }
 0x197   : >> { %v964_v63 = vld [vmem:[%s6799_s10 + $0x2fe0] sm:$0xff]  ;;  %963 = vst [vmem:[%s6795_s9 + $0x17e0] sm:$0xff] %v962_v62 }
 0x198   : >> { %965 = vst [vmem:[%s6795_s9 + $0x17f0] sm:$0xff] %v964_v63  ;;  %v966_v0 = vld [vmem:[%s6799_s10 + $0x3000] sm:$0xff] }
 0x199   : >> { %v968_v1 = vld [vmem:[%s6799_s10 + $0x3020] sm:$0xff]  ;;  %967 = vst [vmem:[%s6795_s9 + $0x1800] sm:$0xff] %v966_v0 }
 0x19a   : >> { %v970_v2 = vld [vmem:[%s6799_s10 + $0x3040] sm:$0xff]  ;;  %969 = vst [vmem:[%s6795_s9 + $0x1810] sm:$0xff] %v968_v1 }
 0x19b   : >> { %971 = vst [vmem:[%s6795_s9 + $0x1820] sm:$0xff] %v970_v2  ;;  %v972_v3 = vld [vmem:[%s6799_s10 + $0x3060] sm:$0xff] }
 0x19c   : >> { %v974_v4 = vld [vmem:[%s6799_s10 + $0x3080] sm:$0xff]  ;;  %973 = vst [vmem:[%s6795_s9 + $0x1830] sm:$0xff] %v972_v3 }
 0x19d   : >> { %v976_v5 = vld [vmem:[%s6799_s10 + $0x30a0] sm:$0xff]  ;;  %975 = vst [vmem:[%s6795_s9 + $0x1840] sm:$0xff] %v974_v4 }
 0x19e   : >> { %977 = vst [vmem:[%s6795_s9 + $0x1850] sm:$0xff] %v976_v5  ;;  %v978_v6 = vld [vmem:[%s6799_s10 + $0x30c0] sm:$0xff] }
 0x19f   : >> { %v980_v7 = vld [vmem:[%s6799_s10 + $0x30e0] sm:$0xff]  ;;  %979 = vst [vmem:[%s6795_s9 + $0x1860] sm:$0xff] %v978_v6 }
 0x1a0   : >> { %v982_v8 = vld [vmem:[%s6799_s10 + $0x3100] sm:$0xff]  ;;  %981 = vst [vmem:[%s6795_s9 + $0x1870] sm:$0xff] %v980_v7 }
 0x1a1   : >> { %983 = vst [vmem:[%s6795_s9 + $0x1880] sm:$0xff] %v982_v8  ;;  %v984_v9 = vld [vmem:[%s6799_s10 + $0x3120] sm:$0xff] }
 0x1a2   : >> { %v986_v10 = vld [vmem:[%s6799_s10 + $0x3140] sm:$0xff]  ;;  %985 = vst [vmem:[%s6795_s9 + $0x1890] sm:$0xff] %v984_v9 }
 0x1a3   : >> { %v988_v11 = vld [vmem:[%s6799_s10 + $0x3160] sm:$0xff]  ;;  %987 = vst [vmem:[%s6795_s9 + $0x18a0] sm:$0xff] %v986_v10 }
 0x1a4   : >> { %989 = vst [vmem:[%s6795_s9 + $0x18b0] sm:$0xff] %v988_v11  ;;  %v990_v12 = vld [vmem:[%s6799_s10 + $0x3180] sm:$0xff] }
 0x1a5   : >> { %v992_v13 = vld [vmem:[%s6799_s10 + $0x31a0] sm:$0xff]  ;;  %991 = vst [vmem:[%s6795_s9 + $0x18c0] sm:$0xff] %v990_v12 }
 0x1a6   : >> { %v994_v14 = vld [vmem:[%s6799_s10 + $0x31c0] sm:$0xff]  ;;  %993 = vst [vmem:[%s6795_s9 + $0x18d0] sm:$0xff] %v992_v13 }
 0x1a7   : >> { %995 = vst [vmem:[%s6795_s9 + $0x18e0] sm:$0xff] %v994_v14  ;;  %v996_v15 = vld [vmem:[%s6799_s10 + $0x31e0] sm:$0xff] }
 0x1a8   : >> { %v998_v16 = vld [vmem:[%s6799_s10 + $0x3200] sm:$0xff]  ;;  %997 = vst [vmem:[%s6795_s9 + $0x18f0] sm:$0xff] %v996_v15 }
 0x1a9   : >> { %v1000_v17 = vld [vmem:[%s6799_s10 + $0x3220] sm:$0xff]  ;;  %999 = vst [vmem:[%s6795_s9 + $0x1900] sm:$0xff] %v998_v16 }
 0x1aa   : >> { %1001 = vst [vmem:[%s6795_s9 + $0x1910] sm:$0xff] %v1000_v17  ;;  %v1002_v18 = vld [vmem:[%s6799_s10 + $0x3240] sm:$0xff] }
 0x1ab   : >> { %v1004_v19 = vld [vmem:[%s6799_s10 + $0x3260] sm:$0xff]  ;;  %1003 = vst [vmem:[%s6795_s9 + $0x1920] sm:$0xff] %v1002_v18 }
 0x1ac   : >> { %v1006_v20 = vld [vmem:[%s6799_s10 + $0x3280] sm:$0xff]  ;;  %1005 = vst [vmem:[%s6795_s9 + $0x1930] sm:$0xff] %v1004_v19 }
 0x1ad   : >> { %1007 = vst [vmem:[%s6795_s9 + $0x1940] sm:$0xff] %v1006_v20  ;;  %v1008_v21 = vld [vmem:[%s6799_s10 + $0x32a0] sm:$0xff] }
 0x1ae   : >> { %v1010_v22 = vld [vmem:[%s6799_s10 + $0x32c0] sm:$0xff]  ;;  %1009 = vst [vmem:[%s6795_s9 + $0x1950] sm:$0xff] %v1008_v21 }
 0x1af   : >> { %v1012_v23 = vld [vmem:[%s6799_s10 + $0x32e0] sm:$0xff]  ;;  %1011 = vst [vmem:[%s6795_s9 + $0x1960] sm:$0xff] %v1010_v22 }
 0x1b0   : >> { %1013 = vst [vmem:[%s6795_s9 + $0x1970] sm:$0xff] %v1012_v23  ;;  %v1014_v24 = vld [vmem:[%s6799_s10 + $0x3300] sm:$0xff] }
 0x1b1   : >> { %v1016_v25 = vld [vmem:[%s6799_s10 + $0x3320] sm:$0xff]  ;;  %1015 = vst [vmem:[%s6795_s9 + $0x1980] sm:$0xff] %v1014_v24 }
 0x1b2   : >> { %v1018_v26 = vld [vmem:[%s6799_s10 + $0x3340] sm:$0xff]  ;;  %1017 = vst [vmem:[%s6795_s9 + $0x1990] sm:$0xff] %v1016_v25 }
 0x1b3   : >> { %1019 = vst [vmem:[%s6795_s9 + $0x19a0] sm:$0xff] %v1018_v26  ;;  %v1020_v27 = vld [vmem:[%s6799_s10 + $0x3360] sm:$0xff] }
 0x1b4   : >> { %v1022_v28 = vld [vmem:[%s6799_s10 + $0x3380] sm:$0xff]  ;;  %1021 = vst [vmem:[%s6795_s9 + $0x19b0] sm:$0xff] %v1020_v27 }
 0x1b5   : >> { %v1024_v29 = vld [vmem:[%s6799_s10 + $0x33a0] sm:$0xff]  ;;  %1023 = vst [vmem:[%s6795_s9 + $0x19c0] sm:$0xff] %v1022_v28 }
 0x1b6   : >> { %1025 = vst [vmem:[%s6795_s9 + $0x19d0] sm:$0xff] %v1024_v29  ;;  %v1026_v30 = vld [vmem:[%s6799_s10 + $0x33c0] sm:$0xff] }
 0x1b7   : >> { %v1028_v31 = vld [vmem:[%s6799_s10 + $0x33e0] sm:$0xff]  ;;  %1027 = vst [vmem:[%s6795_s9 + $0x19e0] sm:$0xff] %v1026_v30 }
 0x1b8   : >> { %v1030_v32 = vld [vmem:[%s6799_s10 + $0x3400] sm:$0xff]  ;;  %1029 = vst [vmem:[%s6795_s9 + $0x19f0] sm:$0xff] %v1028_v31 }
 0x1b9   : >> { %1031 = vst [vmem:[%s6795_s9 + $0x1a00] sm:$0xff] %v1030_v32  ;;  %v1032_v33 = vld [vmem:[%s6799_s10 + $0x3420] sm:$0xff] }
 0x1ba   : >> { %v1034_v34 = vld [vmem:[%s6799_s10 + $0x3440] sm:$0xff]  ;;  %1033 = vst [vmem:[%s6795_s9 + $0x1a10] sm:$0xff] %v1032_v33 }
 0x1bb   : >> { %v1036_v35 = vld [vmem:[%s6799_s10 + $0x3460] sm:$0xff]  ;;  %1035 = vst [vmem:[%s6795_s9 + $0x1a20] sm:$0xff] %v1034_v34 }
 0x1bc   : >> { %1037 = vst [vmem:[%s6795_s9 + $0x1a30] sm:$0xff] %v1036_v35  ;;  %v1038_v36 = vld [vmem:[%s6799_s10 + $0x3480] sm:$0xff] }
 0x1bd   : >> { %v1040_v37 = vld [vmem:[%s6799_s10 + $0x34a0] sm:$0xff]  ;;  %1039 = vst [vmem:[%s6795_s9 + $0x1a40] sm:$0xff] %v1038_v36 }
 0x1be   : >> { %v1042_v38 = vld [vmem:[%s6799_s10 + $0x34c0] sm:$0xff]  ;;  %1041 = vst [vmem:[%s6795_s9 + $0x1a50] sm:$0xff] %v1040_v37 }
 0x1bf   : >> { %1043 = vst [vmem:[%s6795_s9 + $0x1a60] sm:$0xff] %v1042_v38  ;;  %v1044_v39 = vld [vmem:[%s6799_s10 + $0x34e0] sm:$0xff] }
 0x1c0   : >> { %v1046_v40 = vld [vmem:[%s6799_s10 + $0x3500] sm:$0xff]  ;;  %1045 = vst [vmem:[%s6795_s9 + $0x1a70] sm:$0xff] %v1044_v39 }
 0x1c1   : >> { %v1048_v41 = vld [vmem:[%s6799_s10 + $0x3520] sm:$0xff]  ;;  %1047 = vst [vmem:[%s6795_s9 + $0x1a80] sm:$0xff] %v1046_v40 }
 0x1c2   : >> { %1049 = vst [vmem:[%s6795_s9 + $0x1a90] sm:$0xff] %v1048_v41  ;;  %v1050_v42 = vld [vmem:[%s6799_s10 + $0x3540] sm:$0xff] }
 0x1c3   : >> { %v1052_v43 = vld [vmem:[%s6799_s10 + $0x3560] sm:$0xff]  ;;  %1051 = vst [vmem:[%s6795_s9 + $0x1aa0] sm:$0xff] %v1050_v42 }
 0x1c4   : >> { %v1054_v44 = vld [vmem:[%s6799_s10 + $0x3580] sm:$0xff]  ;;  %1053 = vst [vmem:[%s6795_s9 + $0x1ab0] sm:$0xff] %v1052_v43 }
 0x1c5   : >> { %1055 = vst [vmem:[%s6795_s9 + $0x1ac0] sm:$0xff] %v1054_v44  ;;  %v1056_v45 = vld [vmem:[%s6799_s10 + $0x35a0] sm:$0xff] }
 0x1c6   : >> { %v1058_v46 = vld [vmem:[%s6799_s10 + $0x35c0] sm:$0xff]  ;;  %1057 = vst [vmem:[%s6795_s9 + $0x1ad0] sm:$0xff] %v1056_v45 }
 0x1c7   : >> { %v1060_v47 = vld [vmem:[%s6799_s10 + $0x35e0] sm:$0xff]  ;;  %1059 = vst [vmem:[%s6795_s9 + $0x1ae0] sm:$0xff] %v1058_v46 }
 0x1c8   : >> { %1061 = vst [vmem:[%s6795_s9 + $0x1af0] sm:$0xff] %v1060_v47  ;;  %v1062_v48 = vld [vmem:[%s6799_s10 + $0x3600] sm:$0xff] }
 0x1c9   : >> { %v1064_v49 = vld [vmem:[%s6799_s10 + $0x3620] sm:$0xff]  ;;  %1063 = vst [vmem:[%s6795_s9 + $0x1b00] sm:$0xff] %v1062_v48 }
 0x1ca   : >> { %v1066_v50 = vld [vmem:[%s6799_s10 + $0x3640] sm:$0xff]  ;;  %1065 = vst [vmem:[%s6795_s9 + $0x1b10] sm:$0xff] %v1064_v49 }
 0x1cb   : >> { %1067 = vst [vmem:[%s6795_s9 + $0x1b20] sm:$0xff] %v1066_v50  ;;  %v1068_v51 = vld [vmem:[%s6799_s10 + $0x3660] sm:$0xff] }
 0x1cc   : >> { %v1070_v52 = vld [vmem:[%s6799_s10 + $0x3680] sm:$0xff]  ;;  %1069 = vst [vmem:[%s6795_s9 + $0x1b30] sm:$0xff] %v1068_v51 }
 0x1cd   : >> { %v1072_v53 = vld [vmem:[%s6799_s10 + $0x36a0] sm:$0xff]  ;;  %1071 = vst [vmem:[%s6795_s9 + $0x1b40] sm:$0xff] %v1070_v52 }
 0x1ce   : >> { %1073 = vst [vmem:[%s6795_s9 + $0x1b50] sm:$0xff] %v1072_v53  ;;  %v1074_v54 = vld [vmem:[%s6799_s10 + $0x36c0] sm:$0xff] }
 0x1cf   : >> { %v1076_v55 = vld [vmem:[%s6799_s10 + $0x36e0] sm:$0xff]  ;;  %1075 = vst [vmem:[%s6795_s9 + $0x1b60] sm:$0xff] %v1074_v54 }
 0x1d0   : >> { %v1078_v56 = vld [vmem:[%s6799_s10 + $0x3700] sm:$0xff]  ;;  %1077 = vst [vmem:[%s6795_s9 + $0x1b70] sm:$0xff] %v1076_v55 }
 0x1d1   : >> { %1079 = vst [vmem:[%s6795_s9 + $0x1b80] sm:$0xff] %v1078_v56  ;;  %v1080_v57 = vld [vmem:[%s6799_s10 + $0x3720] sm:$0xff] }
 0x1d2   : >> { %v1082_v58 = vld [vmem:[%s6799_s10 + $0x3740] sm:$0xff]  ;;  %1081 = vst [vmem:[%s6795_s9 + $0x1b90] sm:$0xff] %v1080_v57 }
 0x1d3   : >> { %v1084_v59 = vld [vmem:[%s6799_s10 + $0x3760] sm:$0xff]  ;;  %1083 = vst [vmem:[%s6795_s9 + $0x1ba0] sm:$0xff] %v1082_v58 }
 0x1d4   : >> { %1085 = vst [vmem:[%s6795_s9 + $0x1bb0] sm:$0xff] %v1084_v59  ;;  %v1086_v60 = vld [vmem:[%s6799_s10 + $0x3780] sm:$0xff] }
 0x1d5   : >> { %v1088_v61 = vld [vmem:[%s6799_s10 + $0x37a0] sm:$0xff]  ;;  %1087 = vst [vmem:[%s6795_s9 + $0x1bc0] sm:$0xff] %v1086_v60 }
 0x1d6   : >> { %v1090_v62 = vld [vmem:[%s6799_s10 + $0x37c0] sm:$0xff]  ;;  %1089 = vst [vmem:[%s6795_s9 + $0x1bd0] sm:$0xff] %v1088_v61 }
 0x1d7   : >> { %1091 = vst [vmem:[%s6795_s9 + $0x1be0] sm:$0xff] %v1090_v62  ;;  %v1092_v63 = vld [vmem:[%s6799_s10 + $0x37e0] sm:$0xff] }
 0x1d8   : >> { %v1094_v0 = vld [vmem:[%s6799_s10 + $0x3800] sm:$0xff]  ;;  %1093 = vst [vmem:[%s6795_s9 + $0x1bf0] sm:$0xff] %v1092_v63 }
 0x1d9   : >> { %v1096_v1 = vld [vmem:[%s6799_s10 + $0x3820] sm:$0xff]  ;;  %1095 = vst [vmem:[%s6795_s9 + $0x1c00] sm:$0xff] %v1094_v0 }
 0x1da   : >> { %1097 = vst [vmem:[%s6795_s9 + $0x1c10] sm:$0xff] %v1096_v1  ;;  %v1098_v2 = vld [vmem:[%s6799_s10 + $0x3840] sm:$0xff] }
 0x1db   : >> { %v1100_v3 = vld [vmem:[%s6799_s10 + $0x3860] sm:$0xff]  ;;  %1099 = vst [vmem:[%s6795_s9 + $0x1c20] sm:$0xff] %v1098_v2 }
 0x1dc   : >> { %v1102_v4 = vld [vmem:[%s6799_s10 + $0x3880] sm:$0xff]  ;;  %1101 = vst [vmem:[%s6795_s9 + $0x1c30] sm:$0xff] %v1100_v3 }
 0x1dd   : >> { %1103 = vst [vmem:[%s6795_s9 + $0x1c40] sm:$0xff] %v1102_v4  ;;  %v1104_v5 = vld [vmem:[%s6799_s10 + $0x38a0] sm:$0xff] }
 0x1de   : >> { %v1106_v6 = vld [vmem:[%s6799_s10 + $0x38c0] sm:$0xff]  ;;  %1105 = vst [vmem:[%s6795_s9 + $0x1c50] sm:$0xff] %v1104_v5 }
 0x1df   : >> { %v1108_v7 = vld [vmem:[%s6799_s10 + $0x38e0] sm:$0xff]  ;;  %1107 = vst [vmem:[%s6795_s9 + $0x1c60] sm:$0xff] %v1106_v6 }
 0x1e0   : >> { %1109 = vst [vmem:[%s6795_s9 + $0x1c70] sm:$0xff] %v1108_v7  ;;  %v1110_v8 = vld [vmem:[%s6799_s10 + $0x3900] sm:$0xff] }
 0x1e1   : >> { %v1112_v9 = vld [vmem:[%s6799_s10 + $0x3920] sm:$0xff]  ;;  %1111 = vst [vmem:[%s6795_s9 + $0x1c80] sm:$0xff] %v1110_v8 }
 0x1e2   : >> { %v1114_v10 = vld [vmem:[%s6799_s10 + $0x3940] sm:$0xff]  ;;  %1113 = vst [vmem:[%s6795_s9 + $0x1c90] sm:$0xff] %v1112_v9 }
 0x1e3   : >> { %1115 = vst [vmem:[%s6795_s9 + $0x1ca0] sm:$0xff] %v1114_v10  ;;  %v1116_v11 = vld [vmem:[%s6799_s10 + $0x3960] sm:$0xff] }
 0x1e4   : >> { %v1118_v12 = vld [vmem:[%s6799_s10 + $0x3980] sm:$0xff]  ;;  %1117 = vst [vmem:[%s6795_s9 + $0x1cb0] sm:$0xff] %v1116_v11 }
 0x1e5   : >> { %v1120_v13 = vld [vmem:[%s6799_s10 + $0x39a0] sm:$0xff]  ;;  %1119 = vst [vmem:[%s6795_s9 + $0x1cc0] sm:$0xff] %v1118_v12 }
 0x1e6   : >> { %1121 = vst [vmem:[%s6795_s9 + $0x1cd0] sm:$0xff] %v1120_v13  ;;  %v1122_v14 = vld [vmem:[%s6799_s10 + $0x39c0] sm:$0xff] }
 0x1e7   : >> { %v1124_v15 = vld [vmem:[%s6799_s10 + $0x39e0] sm:$0xff]  ;;  %1123 = vst [vmem:[%s6795_s9 + $0x1ce0] sm:$0xff] %v1122_v14 }
 0x1e8   : >> { %v1126_v16 = vld [vmem:[%s6799_s10 + $0x3a00] sm:$0xff]  ;;  %1125 = vst [vmem:[%s6795_s9 + $0x1cf0] sm:$0xff] %v1124_v15 }
 0x1e9   : >> { %1127 = vst [vmem:[%s6795_s9 + $0x1d00] sm:$0xff] %v1126_v16  ;;  %v1128_v17 = vld [vmem:[%s6799_s10 + $0x3a20] sm:$0xff] }
 0x1ea   : >> { %v1130_v18 = vld [vmem:[%s6799_s10 + $0x3a40] sm:$0xff]  ;;  %1129 = vst [vmem:[%s6795_s9 + $0x1d10] sm:$0xff] %v1128_v17 }
 0x1eb   : >> { %v1132_v19 = vld [vmem:[%s6799_s10 + $0x3a60] sm:$0xff]  ;;  %1131 = vst [vmem:[%s6795_s9 + $0x1d20] sm:$0xff] %v1130_v18 }
 0x1ec   : >> { %1133 = vst [vmem:[%s6795_s9 + $0x1d30] sm:$0xff] %v1132_v19  ;;  %v1134_v20 = vld [vmem:[%s6799_s10 + $0x3a80] sm:$0xff] }
 0x1ed   : >> { %v1136_v21 = vld [vmem:[%s6799_s10 + $0x3aa0] sm:$0xff]  ;;  %1135 = vst [vmem:[%s6795_s9 + $0x1d40] sm:$0xff] %v1134_v20 }
 0x1ee   : >> { %v1138_v22 = vld [vmem:[%s6799_s10 + $0x3ac0] sm:$0xff]  ;;  %1137 = vst [vmem:[%s6795_s9 + $0x1d50] sm:$0xff] %v1136_v21 }
 0x1ef   : >> { %1139 = vst [vmem:[%s6795_s9 + $0x1d60] sm:$0xff] %v1138_v22  ;;  %v1140_v23 = vld [vmem:[%s6799_s10 + $0x3ae0] sm:$0xff] }
 0x1f0   : >> { %v1142_v24 = vld [vmem:[%s6799_s10 + $0x3b00] sm:$0xff]  ;;  %1141 = vst [vmem:[%s6795_s9 + $0x1d70] sm:$0xff] %v1140_v23 }
 0x1f1   : >> { %v1144_v25 = vld [vmem:[%s6799_s10 + $0x3b20] sm:$0xff]  ;;  %1143 = vst [vmem:[%s6795_s9 + $0x1d80] sm:$0xff] %v1142_v24 }
 0x1f2   : >> { %1145 = vst [vmem:[%s6795_s9 + $0x1d90] sm:$0xff] %v1144_v25  ;;  %v1146_v26 = vld [vmem:[%s6799_s10 + $0x3b40] sm:$0xff] }
 0x1f3   : >> { %v1148_v27 = vld [vmem:[%s6799_s10 + $0x3b60] sm:$0xff]  ;;  %1147 = vst [vmem:[%s6795_s9 + $0x1da0] sm:$0xff] %v1146_v26 }
 0x1f4   : >> { %v1150_v28 = vld [vmem:[%s6799_s10 + $0x3b80] sm:$0xff]  ;;  %1149 = vst [vmem:[%s6795_s9 + $0x1db0] sm:$0xff] %v1148_v27 }
 0x1f5   : >> { %1151 = vst [vmem:[%s6795_s9 + $0x1dc0] sm:$0xff] %v1150_v28  ;;  %v1152_v29 = vld [vmem:[%s6799_s10 + $0x3ba0] sm:$0xff] }
 0x1f6   : >> { %v1154_v30 = vld [vmem:[%s6799_s10 + $0x3bc0] sm:$0xff]  ;;  %1153 = vst [vmem:[%s6795_s9 + $0x1dd0] sm:$0xff] %v1152_v29 }
 0x1f7   : >> { %v1156_v31 = vld [vmem:[%s6799_s10 + $0x3be0] sm:$0xff]  ;;  %1155 = vst [vmem:[%s6795_s9 + $0x1de0] sm:$0xff] %v1154_v30 }
 0x1f8   : >> { %1157 = vst [vmem:[%s6795_s9 + $0x1df0] sm:$0xff] %v1156_v31  ;;  %v1158_v32 = vld [vmem:[%s6799_s10 + $0x3c00] sm:$0xff] }
 0x1f9   : >> { %v1160_v33 = vld [vmem:[%s6799_s10 + $0x3c20] sm:$0xff]  ;;  %1159 = vst [vmem:[%s6795_s9 + $0x1e00] sm:$0xff] %v1158_v32 }
 0x1fa   : >> { %v1162_v34 = vld [vmem:[%s6799_s10 + $0x3c40] sm:$0xff]  ;;  %1161 = vst [vmem:[%s6795_s9 + $0x1e10] sm:$0xff] %v1160_v33 }
 0x1fb   : >> { %1163 = vst [vmem:[%s6795_s9 + $0x1e20] sm:$0xff] %v1162_v34  ;;  %v1164_v35 = vld [vmem:[%s6799_s10 + $0x3c60] sm:$0xff] }
 0x1fc   : >> { %v1166_v36 = vld [vmem:[%s6799_s10 + $0x3c80] sm:$0xff]  ;;  %1165 = vst [vmem:[%s6795_s9 + $0x1e30] sm:$0xff] %v1164_v35 }
 0x1fd   : >> { %v1168_v37 = vld [vmem:[%s6799_s10 + $0x3ca0] sm:$0xff]  ;;  %1167 = vst [vmem:[%s6795_s9 + $0x1e40] sm:$0xff] %v1166_v36 }
 0x1fe   : >> { %1169 = vst [vmem:[%s6795_s9 + $0x1e50] sm:$0xff] %v1168_v37  ;;  %v1170_v38 = vld [vmem:[%s6799_s10 + $0x3cc0] sm:$0xff] }
 0x1ff   : >> { %v1172_v39 = vld [vmem:[%s6799_s10 + $0x3ce0] sm:$0xff]  ;;  %1171 = vst [vmem:[%s6795_s9 + $0x1e60] sm:$0xff] %v1170_v38 }
 0x200   : >> { %v1174_v40 = vld [vmem:[%s6799_s10 + $0x3d00] sm:$0xff]  ;;  %1173 = vst [vmem:[%s6795_s9 + $0x1e70] sm:$0xff] %v1172_v39 }
 0x201   : >> { %1175 = vst [vmem:[%s6795_s9 + $0x1e80] sm:$0xff] %v1174_v40  ;;  %v1176_v41 = vld [vmem:[%s6799_s10 + $0x3d20] sm:$0xff] }
 0x202   : >> { %v1178_v42 = vld [vmem:[%s6799_s10 + $0x3d40] sm:$0xff]  ;;  %1177 = vst [vmem:[%s6795_s9 + $0x1e90] sm:$0xff] %v1176_v41 }
 0x203   : >> { %v1180_v43 = vld [vmem:[%s6799_s10 + $0x3d60] sm:$0xff]  ;;  %1179 = vst [vmem:[%s6795_s9 + $0x1ea0] sm:$0xff] %v1178_v42 }
 0x204   : >> { %1181 = vst [vmem:[%s6795_s9 + $0x1eb0] sm:$0xff] %v1180_v43  ;;  %v1182_v44 = vld [vmem:[%s6799_s10 + $0x3d80] sm:$0xff] }
 0x205   : >> { %v1184_v45 = vld [vmem:[%s6799_s10 + $0x3da0] sm:$0xff]  ;;  %1183 = vst [vmem:[%s6795_s9 + $0x1ec0] sm:$0xff] %v1182_v44 }
 0x206   : >> { %v1186_v46 = vld [vmem:[%s6799_s10 + $0x3dc0] sm:$0xff]  ;;  %1185 = vst [vmem:[%s6795_s9 + $0x1ed0] sm:$0xff] %v1184_v45 }
 0x207   : >> { %1187 = vst [vmem:[%s6795_s9 + $0x1ee0] sm:$0xff] %v1186_v46  ;;  %v1188_v47 = vld [vmem:[%s6799_s10 + $0x3de0] sm:$0xff] }
 0x208   : >> { %v1190_v48 = vld [vmem:[%s6799_s10 + $0x3e00] sm:$0xff]  ;;  %1189 = vst [vmem:[%s6795_s9 + $0x1ef0] sm:$0xff] %v1188_v47 }
 0x209   : >> { %v1192_v49 = vld [vmem:[%s6799_s10 + $0x3e20] sm:$0xff]  ;;  %1191 = vst [vmem:[%s6795_s9 + $0x1f00] sm:$0xff] %v1190_v48 }
 0x20a   : >> { %1193 = vst [vmem:[%s6795_s9 + $0x1f10] sm:$0xff] %v1192_v49  ;;  %v1194_v50 = vld [vmem:[%s6799_s10 + $0x3e40] sm:$0xff] }
 0x20b   : >> { %v1196_v51 = vld [vmem:[%s6799_s10 + $0x3e60] sm:$0xff]  ;;  %1195 = vst [vmem:[%s6795_s9 + $0x1f20] sm:$0xff] %v1194_v50 }
 0x20c   : >> { %v1198_v52 = vld [vmem:[%s6799_s10 + $0x3e80] sm:$0xff]  ;;  %1197 = vst [vmem:[%s6795_s9 + $0x1f30] sm:$0xff] %v1196_v51 }
 0x20d   : >> { %1199 = vst [vmem:[%s6795_s9 + $0x1f40] sm:$0xff] %v1198_v52  ;;  %v1200_v53 = vld [vmem:[%s6799_s10 + $0x3ea0] sm:$0xff] }
 0x20e   : >> { %v1202_v54 = vld [vmem:[%s6799_s10 + $0x3ec0] sm:$0xff]  ;;  %1201 = vst [vmem:[%s6795_s9 + $0x1f50] sm:$0xff] %v1200_v53 }
 0x20f   : >> { %v1204_v55 = vld [vmem:[%s6799_s10 + $0x3ee0] sm:$0xff]  ;;  %1203 = vst [vmem:[%s6795_s9 + $0x1f60] sm:$0xff] %v1202_v54 }
 0x210   : >> { %1205 = vst [vmem:[%s6795_s9 + $0x1f70] sm:$0xff] %v1204_v55  ;;  %v1206_v56 = vld [vmem:[%s6799_s10 + $0x3f00] sm:$0xff] }
 0x211   : >> { %v1208_v57 = vld [vmem:[%s6799_s10 + $0x3f20] sm:$0xff]  ;;  %1207 = vst [vmem:[%s6795_s9 + $0x1f80] sm:$0xff] %v1206_v56 }
 0x212   : >> { %v1210_v58 = vld [vmem:[%s6799_s10 + $0x3f40] sm:$0xff]  ;;  %1209 = vst [vmem:[%s6795_s9 + $0x1f90] sm:$0xff] %v1208_v57 }
 0x213   : >> { %1211 = vst [vmem:[%s6795_s9 + $0x1fa0] sm:$0xff] %v1210_v58  ;;  %v1212_v59 = vld [vmem:[%s6799_s10 + $0x3f60] sm:$0xff] }
 0x214   : >> { %v1214_v60 = vld [vmem:[%s6799_s10 + $0x3f80] sm:$0xff]  ;;  %1213 = vst [vmem:[%s6795_s9 + $0x1fb0] sm:$0xff] %v1212_v59 }
 0x215   : >> { %v1216_v61 = vld [vmem:[%s6799_s10 + $0x3fa0] sm:$0xff]  ;;  %1215 = vst [vmem:[%s6795_s9 + $0x1fc0] sm:$0xff] %v1214_v60 }
 0x216   : >> { %1217 = vst [vmem:[%s6795_s9 + $0x1fd0] sm:$0xff] %v1216_v61  ;;  %v1218_v62 = vld [vmem:[%s6799_s10 + $0x3fc0] sm:$0xff] }
 0x217   : >> { %v1220_v63 = vld [vmem:[%s6799_s10 + $0x3fe0] sm:$0xff]  ;;  %1219 = vst [vmem:[%s6795_s9 + $0x1fe0] sm:$0xff] %v1218_v62 }
 0x218   : >> { %v1222_v0 = vld [vmem:[%s6799_s10 + $0x4000] sm:$0xff]  ;;  %1221 = vst [vmem:[%s6795_s9 + $0x1ff0] sm:$0xff] %v1220_v63 }
 0x219   : >> { %1223 = vst [vmem:[%s6795_s9 + $0x2000] sm:$0xff] %v1222_v0  ;;  %v1224_v1 = vld [vmem:[%s6799_s10 + $0x4020] sm:$0xff] }
 0x21a   : >> { %v1226_v2 = vld [vmem:[%s6799_s10 + $0x4040] sm:$0xff]  ;;  %1225 = vst [vmem:[%s6795_s9 + $0x2010] sm:$0xff] %v1224_v1 }
 0x21b   : >> { %v1228_v3 = vld [vmem:[%s6799_s10 + $0x4060] sm:$0xff]  ;;  %1227 = vst [vmem:[%s6795_s9 + $0x2020] sm:$0xff] %v1226_v2 }
 0x21c   : >> { %1229 = vst [vmem:[%s6795_s9 + $0x2030] sm:$0xff] %v1228_v3  ;;  %v1230_v4 = vld [vmem:[%s6799_s10 + $0x4080] sm:$0xff] }
 0x21d   : >> { %v1232_v5 = vld [vmem:[%s6799_s10 + $0x40a0] sm:$0xff]  ;;  %1231 = vst [vmem:[%s6795_s9 + $0x2040] sm:$0xff] %v1230_v4 }
 0x21e   : >> { %v1234_v6 = vld [vmem:[%s6799_s10 + $0x40c0] sm:$0xff]  ;;  %1233 = vst [vmem:[%s6795_s9 + $0x2050] sm:$0xff] %v1232_v5 }
 0x21f   : >> { %1235 = vst [vmem:[%s6795_s9 + $0x2060] sm:$0xff] %v1234_v6  ;;  %v1236_v7 = vld [vmem:[%s6799_s10 + $0x40e0] sm:$0xff] }
 0x220   : >> { %v1238_v8 = vld [vmem:[%s6799_s10 + $0x4100] sm:$0xff]  ;;  %1237 = vst [vmem:[%s6795_s9 + $0x2070] sm:$0xff] %v1236_v7 }
 0x221   : >> { %v1240_v9 = vld [vmem:[%s6799_s10 + $0x4120] sm:$0xff]  ;;  %1239 = vst [vmem:[%s6795_s9 + $0x2080] sm:$0xff] %v1238_v8 }
 0x222   : >> { %1241 = vst [vmem:[%s6795_s9 + $0x2090] sm:$0xff] %v1240_v9  ;;  %v1242_v10 = vld [vmem:[%s6799_s10 + $0x4140] sm:$0xff] }
 0x223   : >> { %v1244_v11 = vld [vmem:[%s6799_s10 + $0x4160] sm:$0xff]  ;;  %1243 = vst [vmem:[%s6795_s9 + $0x20a0] sm:$0xff] %v1242_v10 }
 0x224   : >> { %v1246_v12 = vld [vmem:[%s6799_s10 + $0x4180] sm:$0xff]  ;;  %1245 = vst [vmem:[%s6795_s9 + $0x20b0] sm:$0xff] %v1244_v11 }
 0x225   : >> { %1247 = vst [vmem:[%s6795_s9 + $0x20c0] sm:$0xff] %v1246_v12  ;;  %v1248_v13 = vld [vmem:[%s6799_s10 + $0x41a0] sm:$0xff] }
 0x226   : >> { %v1250_v14 = vld [vmem:[%s6799_s10 + $0x41c0] sm:$0xff]  ;;  %1249 = vst [vmem:[%s6795_s9 + $0x20d0] sm:$0xff] %v1248_v13 }
 0x227   : >> { %v1252_v15 = vld [vmem:[%s6799_s10 + $0x41e0] sm:$0xff]  ;;  %1251 = vst [vmem:[%s6795_s9 + $0x20e0] sm:$0xff] %v1250_v14 }
 0x228   : >> { %1253 = vst [vmem:[%s6795_s9 + $0x20f0] sm:$0xff] %v1252_v15  ;;  %v1254_v16 = vld [vmem:[%s6799_s10 + $0x4200] sm:$0xff] }
 0x229   : >> { %v1256_v17 = vld [vmem:[%s6799_s10 + $0x4220] sm:$0xff]  ;;  %1255 = vst [vmem:[%s6795_s9 + $0x2100] sm:$0xff] %v1254_v16 }
 0x22a   : >> { %v1258_v18 = vld [vmem:[%s6799_s10 + $0x4240] sm:$0xff]  ;;  %1257 = vst [vmem:[%s6795_s9 + $0x2110] sm:$0xff] %v1256_v17 }
 0x22b   : >> { %1259 = vst [vmem:[%s6795_s9 + $0x2120] sm:$0xff] %v1258_v18  ;;  %v1260_v19 = vld [vmem:[%s6799_s10 + $0x4260] sm:$0xff] }
 0x22c   : >> { %v1262_v20 = vld [vmem:[%s6799_s10 + $0x4280] sm:$0xff]  ;;  %1261 = vst [vmem:[%s6795_s9 + $0x2130] sm:$0xff] %v1260_v19 }
 0x22d   : >> { %v1264_v21 = vld [vmem:[%s6799_s10 + $0x42a0] sm:$0xff]  ;;  %1263 = vst [vmem:[%s6795_s9 + $0x2140] sm:$0xff] %v1262_v20 }
 0x22e   : >> { %1265 = vst [vmem:[%s6795_s9 + $0x2150] sm:$0xff] %v1264_v21  ;;  %v1266_v22 = vld [vmem:[%s6799_s10 + $0x42c0] sm:$0xff] }
 0x22f   : >> { %v1268_v23 = vld [vmem:[%s6799_s10 + $0x42e0] sm:$0xff]  ;;  %1267 = vst [vmem:[%s6795_s9 + $0x2160] sm:$0xff] %v1266_v22 }
 0x230   : >> { %v1270_v24 = vld [vmem:[%s6799_s10 + $0x4300] sm:$0xff]  ;;  %1269 = vst [vmem:[%s6795_s9 + $0x2170] sm:$0xff] %v1268_v23 }
 0x231   : >> { %1271 = vst [vmem:[%s6795_s9 + $0x2180] sm:$0xff] %v1270_v24  ;;  %v1272_v25 = vld [vmem:[%s6799_s10 + $0x4320] sm:$0xff] }
 0x232   : >> { %v1274_v26 = vld [vmem:[%s6799_s10 + $0x4340] sm:$0xff]  ;;  %1273 = vst [vmem:[%s6795_s9 + $0x2190] sm:$0xff] %v1272_v25 }
 0x233   : >> { %v1276_v27 = vld [vmem:[%s6799_s10 + $0x4360] sm:$0xff]  ;;  %1275 = vst [vmem:[%s6795_s9 + $0x21a0] sm:$0xff] %v1274_v26 }
 0x234   : >> { %1277 = vst [vmem:[%s6795_s9 + $0x21b0] sm:$0xff] %v1276_v27  ;;  %v1278_v28 = vld [vmem:[%s6799_s10 + $0x4380] sm:$0xff] }
 0x235   : >> { %v1280_v29 = vld [vmem:[%s6799_s10 + $0x43a0] sm:$0xff]  ;;  %1279 = vst [vmem:[%s6795_s9 + $0x21c0] sm:$0xff] %v1278_v28 }
 0x236   : >> { %v1282_v30 = vld [vmem:[%s6799_s10 + $0x43c0] sm:$0xff]  ;;  %1281 = vst [vmem:[%s6795_s9 + $0x21d0] sm:$0xff] %v1280_v29 }
 0x237   : >> { %1283 = vst [vmem:[%s6795_s9 + $0x21e0] sm:$0xff] %v1282_v30  ;;  %v1284_v31 = vld [vmem:[%s6799_s10 + $0x43e0] sm:$0xff] }
 0x238   : >> { %v1286_v32 = vld [vmem:[%s6799_s10 + $0x4400] sm:$0xff]  ;;  %1285 = vst [vmem:[%s6795_s9 + $0x21f0] sm:$0xff] %v1284_v31 }
 0x239   : >> { %v1288_v33 = vld [vmem:[%s6799_s10 + $0x4420] sm:$0xff]  ;;  %1287 = vst [vmem:[%s6795_s9 + $0x2200] sm:$0xff] %v1286_v32 }
 0x23a   : >> { %1289 = vst [vmem:[%s6795_s9 + $0x2210] sm:$0xff] %v1288_v33  ;;  %v1290_v34 = vld [vmem:[%s6799_s10 + $0x4440] sm:$0xff] }
 0x23b   : >> { %v1292_v35 = vld [vmem:[%s6799_s10 + $0x4460] sm:$0xff]  ;;  %1291 = vst [vmem:[%s6795_s9 + $0x2220] sm:$0xff] %v1290_v34 }
 0x23c   : >> { %v1294_v36 = vld [vmem:[%s6799_s10 + $0x4480] sm:$0xff]  ;;  %1293 = vst [vmem:[%s6795_s9 + $0x2230] sm:$0xff] %v1292_v35 }
 0x23d   : >> { %1295 = vst [vmem:[%s6795_s9 + $0x2240] sm:$0xff] %v1294_v36  ;;  %v1296_v37 = vld [vmem:[%s6799_s10 + $0x44a0] sm:$0xff] }
 0x23e   : >> { %v1298_v38 = vld [vmem:[%s6799_s10 + $0x44c0] sm:$0xff]  ;;  %1297 = vst [vmem:[%s6795_s9 + $0x2250] sm:$0xff] %v1296_v37 }
 0x23f   : >> { %v1300_v39 = vld [vmem:[%s6799_s10 + $0x44e0] sm:$0xff]  ;;  %1299 = vst [vmem:[%s6795_s9 + $0x2260] sm:$0xff] %v1298_v38 }
 0x240   : >> { %1301 = vst [vmem:[%s6795_s9 + $0x2270] sm:$0xff] %v1300_v39  ;;  %v1302_v40 = vld [vmem:[%s6799_s10 + $0x4500] sm:$0xff] }
 0x241   : >> { %v1304_v41 = vld [vmem:[%s6799_s10 + $0x4520] sm:$0xff]  ;;  %1303 = vst [vmem:[%s6795_s9 + $0x2280] sm:$0xff] %v1302_v40 }
 0x242   : >> { %v1306_v42 = vld [vmem:[%s6799_s10 + $0x4540] sm:$0xff]  ;;  %1305 = vst [vmem:[%s6795_s9 + $0x2290] sm:$0xff] %v1304_v41 }
 0x243   : >> { %1307 = vst [vmem:[%s6795_s9 + $0x22a0] sm:$0xff] %v1306_v42  ;;  %v1308_v43 = vld [vmem:[%s6799_s10 + $0x4560] sm:$0xff] }
 0x244   : >> { %v1310_v44 = vld [vmem:[%s6799_s10 + $0x4580] sm:$0xff]  ;;  %1309 = vst [vmem:[%s6795_s9 + $0x22b0] sm:$0xff] %v1308_v43 }
 0x245   : >> { %v1312_v45 = vld [vmem:[%s6799_s10 + $0x45a0] sm:$0xff]  ;;  %1311 = vst [vmem:[%s6795_s9 + $0x22c0] sm:$0xff] %v1310_v44 }
 0x246   : >> { %1313 = vst [vmem:[%s6795_s9 + $0x22d0] sm:$0xff] %v1312_v45  ;;  %v1314_v46 = vld [vmem:[%s6799_s10 + $0x45c0] sm:$0xff] }
 0x247   : >> { %v1316_v47 = vld [vmem:[%s6799_s10 + $0x45e0] sm:$0xff]  ;;  %1315 = vst [vmem:[%s6795_s9 + $0x22e0] sm:$0xff] %v1314_v46 }
 0x248   : >> { %v1318_v48 = vld [vmem:[%s6799_s10 + $0x4600] sm:$0xff]  ;;  %1317 = vst [vmem:[%s6795_s9 + $0x22f0] sm:$0xff] %v1316_v47 }
 0x249   : >> { %1319 = vst [vmem:[%s6795_s9 + $0x2300] sm:$0xff] %v1318_v48  ;;  %v1320_v49 = vld [vmem:[%s6799_s10 + $0x4620] sm:$0xff] }
 0x24a   : >> { %v1322_v50 = vld [vmem:[%s6799_s10 + $0x4640] sm:$0xff]  ;;  %1321 = vst [vmem:[%s6795_s9 + $0x2310] sm:$0xff] %v1320_v49 }
 0x24b   : >> { %v1324_v51 = vld [vmem:[%s6799_s10 + $0x4660] sm:$0xff]  ;;  %1323 = vst [vmem:[%s6795_s9 + $0x2320] sm:$0xff] %v1322_v50 }
 0x24c   : >> { %1325 = vst [vmem:[%s6795_s9 + $0x2330] sm:$0xff] %v1324_v51  ;;  %v1326_v52 = vld [vmem:[%s6799_s10 + $0x4680] sm:$0xff] }
 0x24d   : >> { %v1328_v53 = vld [vmem:[%s6799_s10 + $0x46a0] sm:$0xff]  ;;  %1327 = vst [vmem:[%s6795_s9 + $0x2340] sm:$0xff] %v1326_v52 }
 0x24e   : >> { %v1330_v54 = vld [vmem:[%s6799_s10 + $0x46c0] sm:$0xff]  ;;  %1329 = vst [vmem:[%s6795_s9 + $0x2350] sm:$0xff] %v1328_v53 }
 0x24f   : >> { %1331 = vst [vmem:[%s6795_s9 + $0x2360] sm:$0xff] %v1330_v54  ;;  %v1332_v55 = vld [vmem:[%s6799_s10 + $0x46e0] sm:$0xff] }
 0x250   : >> { %v1334_v56 = vld [vmem:[%s6799_s10 + $0x4700] sm:$0xff]  ;;  %1333 = vst [vmem:[%s6795_s9 + $0x2370] sm:$0xff] %v1332_v55 }
 0x251   : >> { %v1336_v57 = vld [vmem:[%s6799_s10 + $0x4720] sm:$0xff]  ;;  %1335 = vst [vmem:[%s6795_s9 + $0x2380] sm:$0xff] %v1334_v56 }
 0x252   : >> { %1337 = vst [vmem:[%s6795_s9 + $0x2390] sm:$0xff] %v1336_v57  ;;  %v1338_v58 = vld [vmem:[%s6799_s10 + $0x4740] sm:$0xff] }
 0x253   : >> { %v1340_v59 = vld [vmem:[%s6799_s10 + $0x4760] sm:$0xff]  ;;  %1339 = vst [vmem:[%s6795_s9 + $0x23a0] sm:$0xff] %v1338_v58 }
 0x254   : >> { %v1342_v60 = vld [vmem:[%s6799_s10 + $0x4780] sm:$0xff]  ;;  %1341 = vst [vmem:[%s6795_s9 + $0x23b0] sm:$0xff] %v1340_v59  ;;  %193 = sbr.rel (!%p191_p8) target bundleno = 24 (0x18), region = 120 }
 0x255   : >> { %1343 = vst [vmem:[%s6795_s9 + $0x23c0] sm:$0xff] %v1342_v60  ;;  %v1344_v61 = vld [vmem:[%s6799_s10 + $0x47a0] sm:$0xff] }
 0x256   : >> { %v1346_v62 = vld [vmem:[%s6799_s10 + $0x47c0] sm:$0xff]  ;;  %1345 = vst [vmem:[%s6795_s9 + $0x23d0] sm:$0xff] %v1344_v61 }
 0x257   : >> { %v1348_v63 = vld [vmem:[%s6799_s10 + $0x47e0] sm:$0xff]  ;;  %1347 = vst [vmem:[%s6795_s9 + $0x23e0] sm:$0xff] %v1346_v62  ;;  %s9342_s10 = smov %s7311_s24 }
 0x258   : >> { %1349 = vst [vmem:[%s6795_s9 + $0x23f0] sm:$0xff] %v1348_v63  ;;  %s9341_s9 = smov %s7315_s26 }
 0x259 PF: > { %p6610_p9 = scmp.ge.s32.totalorder %s6791_s18, 1  ;;  %p3703_p10 = scmp.lt.s32.totalorder %s6791_s18, 19 }
 0x25b   : > { %p3704_p11 = pnand %p6610_p9, %p3703_p10 }
 0x25c   : > { %s3710_s28 = sand.u32 (!%p3704_p11), 1, %s6767_s12   ;;  %s3750_s29 = smul.u32 (!%p3704_p11), 36, %s6775_s14 }
 0x25d   : > { %3707 = sbr.rel (%p3704_p11) target bundleno = 1433 (0x599), region = 65  ;;  %s6612_s4 = sshll.u32 (!%p3704_p11), %s6779_s15, 1 }
 0x25e   : > { %s6621_s30 = smul.u32 (!%p3704_p11), 9216, %s3710_s28  ;;  %p3753_p12 = scmp.lt.s32.totalorder (!%p3704_p11), %s3750_s29, 323 }
 0x25f   : > { %p3763_p13 = scmp.lt.s32.totalorder (!%p3704_p11), %s6612_s4, 3  ;;  %p6615_p0 = scmp.ne.s32.totalorder (!%p3704_p11), %s6775_s14, 0 }
 0x260   : > { %s8116_s22 = scalar_lea.vmem (!%p3704_p11), [#allocation3], %s6621_s30 }
 0x262   : > { %s9359_s29 = smov (!%p3753_p12, %s3750_s29), 323  ;;  %s9361_s4 = smov (!%p3763_p13, %s6612_s4), 3 }
 0x263   : > { %s6611_s27 = sshll.u32 %s9359_s29, 1  ;;  %s3765_s12 = scalar_lea.vmem %s9337_s2, %s9361_s4 }
 0x264   : > { %s8104_s7 = scalar_lea.vmem %s9335_s0, %s6611_s27  ;;  %s6614_s10 = sshll.u32 %s9361_s4, 1 }
 0x265   : > { %s8114_s21 = scalar_lea.vmem %s9338_s3, %s6614_s10  ;;  %3780 = sbr.rel (%p6615_p0) target bundleno = 620 (0x26c), region = 73 }
 0x26a   : > { %v6809_v0 = vmov 0.0  }
 0x26b   : > { %3781 = vst [vmem:[#allocation2] sm:$0xf] %v6809_v0 }
 0x26c PF: > { %v3823_v1 = vld [vmem:[%s8116_s22 + $0xf8] sm:$0xff]  ;;  %v3822_v3 = vld [vmem:[%s8116_s22 + $0xf0] sm:$0xff]  ;;  %v3821_v5 = vld [vmem:[%s8116_s22 + $0xe8] sm:$0xff]  ;;  %p6616_p1 = scmp.ne.s32.totalorder %s6775_s14, 8 }
 0x26d   : > { %v3887_v2 = vld [vmem:[%s8116_s22 + $0x2f8] sm:$0xff]  ;;  %5142 = vmatprep.subr.mxu0 %v3823_v1  ;;  %v3886_v4 = vld [vmem:[%s8116_s22 + $0x2f0] sm:$0xff]  ;;  %v3885_v6 = vld [vmem:[%s8116_s22 + $0x2e8] sm:$0xff] }
 0x26e   : > { %5213 = vmatprep.subr.mxu1 %v3887_v2  ;;  %5143 = vmatpush1.msra.mxu0 %v3822_v3  ;;  %v3820_v7 = vld [vmem:[%s8116_s22 + $0xe0] sm:$0xff]  ;;  %v3819_v9 = vld [vmem:[%s8116_s22 + $0xd8] sm:$0xff]  ;;  %v3818_v11 = vld [vmem:[%s8116_s22 + $0xd0] sm:$0xff] }
 0x26f   : > { %5214 = vmatpush1.msra.mxu1 %v3886_v4  ;;  %v3884_v8 = vld [vmem:[%s8116_s22 + $0x2e0] sm:$0xff]  ;;  %5144 = vmatprep.subr.mxu0 %v3821_v5  ;;  %v3883_v10 = vld [vmem:[%s8116_s22 + $0x2d8] sm:$0xff]  ;;  %v3882_v12 = vld [vmem:[%s8116_s22 + $0x2d0] sm:$0xff] }
 0x270   : > { %5215 = vmatprep.subr.mxu1 %v3885_v6  ;;  %5145 = vmatpush1.msra.mxu0 %v3820_v7  ;;  %v3817_v13 = vld [vmem:[%s8116_s22 + $0xc8] sm:$0xff]  ;;  %v3816_v15 = vld [vmem:[%s8116_s22 + $0xc0] sm:$0xff]  ;;  %v3815_v17 = vld [vmem:[%s8116_s22 + $0xb8] sm:$0xff] }
 0x271   : > { %5216 = vmatpush1.msra.mxu1 %v3884_v8  ;;  %v3881_v14 = vld [vmem:[%s8116_s22 + $0x2c8] sm:$0xff]  ;;  %5146 = vmatprep.subr.mxu0 %v3819_v9  ;;  %v3880_v16 = vld [vmem:[%s8116_s22 + $0x2c0] sm:$0xff]  ;;  %v3879_v18 = vld [vmem:[%s8116_s22 + $0x2b8] sm:$0xff] }
 0x272   : > { %5217 = vmatprep.subr.mxu1 %v3883_v10  ;;  %5147 = vmatpush1.msra.mxu0 %v3818_v11  ;;  %v3814_v19 = vld [vmem:[%s8116_s22 + $0xb0] sm:$0xff]  ;;  %v3813_v21 = vld [vmem:[%s8116_s22 + $0xa8] sm:$0xff]  ;;  %v3812_v23 = vld [vmem:[%s8116_s22 + $0xa0] sm:$0xff] }
 0x273   : > { %5218 = vmatpush1.msra.mxu1 %v3882_v12  ;;  %5148 = vmatprep.subr.mxu0 %v3817_v13  ;;  %v3878_v20 = vld [vmem:[%s8116_s22 + $0x2b0] sm:$0xff]  ;;  %v3877_v22 = vld [vmem:[%s8116_s22 + $0x2a8] sm:$0xff]  ;;  %v3876_v24 = vld [vmem:[%s8116_s22 + $0x2a0] sm:$0xff] }
 0x274   : > { %5219 = vmatprep.subr.mxu1 %v3881_v14  ;;  %5149 = vmatpush1.msra.mxu0 %v3816_v15  ;;  %v3811_v25 = vld [vmem:[%s8116_s22 + $0x98] sm:$0xff]  ;;  %v3810_v27 = vld [vmem:[%s8116_s22 + $0x90] sm:$0xff]  ;;  %v3809_v29 = vld [vmem:[%s8116_s22 + $0x88] sm:$0xff] }
 0x275   : > { %5220 = vmatpush1.msra.mxu1 %v3880_v16  ;;  %5150 = vmatprep.subr.mxu0 %v3815_v17  ;;  %v3875_v26 = vld [vmem:[%s8116_s22 + $0x298] sm:$0xff]  ;;  %v3874_v28 = vld [vmem:[%s8116_s22 + $0x290] sm:$0xff]  ;;  %v3873_v30 = vld [vmem:[%s8116_s22 + $0x288] sm:$0xff] }
 0x276   : > { %5221 = vmatprep.subr.mxu1 %v3879_v18  ;;  %5151 = vmatpush1.msra.mxu0 %v3814_v19  ;;  %v3808_v31 = vld [vmem:[%s8116_s22 + $0x80] sm:$0xff]  ;;  %v3807_v33 = vld [vmem:[%s8116_s22 + $0x78] sm:$0xff]  ;;  %v3806_v35 = vld [vmem:[%s8116_s22 + $0x70] sm:$0xff] }
 0x277   : > { %5222 = vmatpush1.msra.mxu1 %v3878_v20  ;;  %5152 = vmatprep.subr.mxu0 %v3813_v21  ;;  %v3872_v32 = vld [vmem:[%s8116_s22 + $0x280] sm:$0xff]  ;;  %v3871_v34 = vld [vmem:[%s8116_s22 + $0x278] sm:$0xff]  ;;  %v3870_v36 = vld [vmem:[%s8116_s22 + $0x270] sm:$0xff] }
 0x278   : > { %5223 = vmatprep.subr.mxu1 %v3877_v22  ;;  %5153 = vmatpush1.msra.mxu0 %v3812_v23  ;;  %v3805_v37 = vld [vmem:[%s8116_s22 + $0x68] sm:$0xff]  ;;  %v3804_v39 = vld [vmem:[%s8116_s22 + $0x60] sm:$0xff]  ;;  %v3803_v41 = vld [vmem:[%s8116_s22 + $0x58] sm:$0xff] }
 0x279   : > { %5224 = vmatpush1.msra.mxu1 %v3876_v24  ;;  %5154 = vmatprep.subr.mxu0 %v3811_v25  ;;  %v3869_v38 = vld [vmem:[%s8116_s22 + $0x268] sm:$0xff]  ;;  %v3868_v40 = vld [vmem:[%s8116_s22 + $0x260] sm:$0xff]  ;;  %v3867_v42 = vld [vmem:[%s8116_s22 + $0x258] sm:$0xff] }
 0x27a   : > { %5225 = vmatprep.subr.mxu1 %v3875_v26  ;;  %5155 = vmatpush1.msra.mxu0 %v3810_v27  ;;  %v3802_v43 = vld [vmem:[%s8116_s22 + $0x50] sm:$0xff]  ;;  %v3801_v45 = vld [vmem:[%s8116_s22 + $0x48] sm:$0xff]  ;;  %v3800_v47 = vld [vmem:[%s8116_s22 + $0x40] sm:$0xff] }
 0x27b   : > { %5226 = vmatpush1.msra.mxu1 %v3874_v28  ;;  %5156 = vmatprep.subr.mxu0 %v3809_v29  ;;  %v3866_v44 = vld [vmem:[%s8116_s22 + $0x250] sm:$0xff]  ;;  %v3865_v46 = vld [vmem:[%s8116_s22 + $0x248] sm:$0xff]  ;;  %v3864_v48 = vld [vmem:[%s8116_s22 + $0x240] sm:$0xff] }
 0x27c   : > { %5227 = vmatprep.subr.mxu1 %v3873_v30  ;;  %5157 = vmatpush1.msra.mxu0 %v3808_v31  ;;  %v3799_v49 = vld [vmem:[%s8116_s22 + $0x38] sm:$0xff]  ;;  %v3798_v51 = vld [vmem:[%s8116_s22 + $0x30] sm:$0xff]  ;;  %v3797_v53 = vld [vmem:[%s8116_s22 + $0x28] sm:$0xff]  ;;  %v6810_v31 = vmov 1983009808  }
 0x27d   : > { %5228 = vmatpush1.msra.mxu1 %v3872_v32  ;;  %5158 = vmatprep.subr.mxu0 %v3807_v33  ;;  %v3863_v50 = vld [vmem:[%s8116_s22 + $0x238] sm:$0xff]  ;;  %v3862_v52 = vld [vmem:[%s8116_s22 + $0x230] sm:$0xff]  ;;  %v3861_v54 = vld [vmem:[%s8116_s22 + $0x228] sm:$0xff]  ;;  %v4955_v32 = vunpack.c.l.s4 %v6810_v31  ;;  %v4957_v33 = vlaneseq }
 0x27e   : > { %5229 = vmatprep.subr.mxu1 %v3871_v34  ;;  %5159 = vmatpush1.msra.mxu0 %v3806_v35  ;;  %v3796_v55 = vld [vmem:[%s8116_s22 + $0x20] sm:$0xff]  ;;  %v3795_v57 = vld [vmem:[%s8116_s22 + $0x18] sm:$0xff]  ;;  %v3794_v59 = vld [vmem:[%s8116_s22 + $0x10] sm:$0xff] }
 0x27f   : > { %5230 = vmatpush1.msra.mxu1 %v3870_v36  ;;  %5160 = vmatprep.subr.mxu0 %v3805_v37  ;;  %v3860_v56 = vld [vmem:[%s8116_s22 + $0x220] sm:$0xff]  ;;  %v3859_v58 = vld [vmem:[%s8116_s22 + $0x218] sm:$0xff]  ;;  %v3858_v60 = vld [vmem:[%s8116_s22 + $0x210] sm:$0xff] }
 0x280   : > { %5231 = vmatprep.subr.mxu1 %v3869_v38  ;;  %5161 = vmatpush1.msra.mxu0 %v3804_v39  ;;  %v3793_v61 = vld [vmem:[%s8116_s22 + $0x8] sm:$0xff]  ;;  %v3792_v63 = vld [vmem:[%s8116_s22] sm:$0xff]  ;;  %v3855_v1 = vld [vmem:[%s8116_s22 + $0x1f8] sm:$0xff] }
 0x281   : > { %5232 = vmatpush1.msra.mxu1 %v3868_v40  ;;  %5162 = vmatprep.subr.mxu0 %v3803_v41  ;;  %v3857_v62 = vld [vmem:[%s8116_s22 + $0x208] sm:$0xff]  ;;  %v3856_v0 = vld [vmem:[%s8116_s22 + $0x200] sm:$0xff]  ;;  %v3919_v2 = vld [vmem:[%s8116_s22 + $0x3f8] sm:$0xff] }
 0x282   : > { %5233 = vmatprep.subr.mxu1 %v3867_v42  ;;  %5163 = vmatpush1.msra.mxu0 %v3802_v43  ;;  %v3854_v3 = vld [vmem:[%s8116_s22 + $0x1f0] sm:$0xff]  ;;  %v3853_v5 = vld [vmem:[%s8116_s22 + $0x1e8] sm:$0xff]  ;;  %v3852_v7 = vld [vmem:[%s8116_s22 + $0x1e0] sm:$0xff]  ;;  %v4956_v42 = vunpack.c.0.s8 %v4955_v32  ;;  %v8221_v43 = vshrl.u32 %v4957_v33, 7 }
 0x283   : > { %5234 = vmatpush1.msra.mxu1 %v3866_v44  ;;  %5164 = vmatprep.subr.mxu0 %v3801_v45  ;;  %v3918_v4 = vld [vmem:[%s8116_s22 + $0x3f0] sm:$0xff]  ;;  %v3917_v6 = vld [vmem:[%s8116_s22 + $0x3e8] sm:$0xff]  ;;  %v3916_v8 = vld [vmem:[%s8116_s22 + $0x3e0] sm:$0xff] }
 0x284   : > { %5235 = vmatprep.subr.mxu1 %v3865_v46  ;;  %5165 = vmatpush1.msra.mxu0 %v3800_v47  ;;  %v3851_v9 = vld [vmem:[%s8116_s22 + $0x1d8] sm:$0xff]  ;;  %v3850_v11 = vld [vmem:[%s8116_s22 + $0x1d0] sm:$0xff]  ;;  %v3849_v13 = vld [vmem:[%s8116_s22 + $0x1c8] sm:$0xff] }
 0x285   : > { %5236 = vmatpush1.msra.mxu1 %v3864_v48  ;;  %5166 = vmatprep.subr.mxu0 %v3799_v49  ;;  %v3915_v10 = vld [vmem:[%s8116_s22 + $0x3d8] sm:$0xff]  ;;  %v3914_v12 = vld [vmem:[%s8116_s22 + $0x3d0] sm:$0xff]  ;;  %v3913_v14 = vld [vmem:[%s8116_s22 + $0x3c8] sm:$0xff] }
 0x286   : > { %5237 = vmatprep.subr.mxu1 %v3863_v50  ;;  %5167 = vmatpush1.msra.mxu0 %v3798_v51  ;;  %v3848_v15 = vld [vmem:[%s8116_s22 + $0x1c0] sm:$0xff]  ;;  %v3847_v17 = vld [vmem:[%s8116_s22 + $0x1b8] sm:$0xff]  ;;  %v3846_v19 = vld [vmem:[%s8116_s22 + $0x1b0] sm:$0xff] }
 0x287   : > { %5238 = vmatpush1.msra.mxu1 %v3862_v52  ;;  %5168 = vmatprep.subr.mxu0 %v3797_v53  ;;  %v3912_v16 = vld [vmem:[%s8116_s22 + $0x3c0] sm:$0xff]  ;;  %v3911_v18 = vld [vmem:[%s8116_s22 + $0x3b8] sm:$0xff]  ;;  %v3910_v20 = vld [vmem:[%s8116_s22 + $0x3b0] sm:$0xff]  ;;  %v8233_v53 = vsub.s32 %v4956_v42, %v8221_v43 }
 0x288   : > { %5239 = vmatprep.subr.mxu1 %v3861_v54  ;;  %5169 = vmatpush1.msra.mxu0 %v3796_v55  ;;  %v3845_v21 = vld [vmem:[%s8116_s22 + $0x1a8] sm:$0xff]  ;;  %v3844_v23 = vld [vmem:[%s8116_s22 + $0x1a0] sm:$0xff]  ;;  %v3843_v25 = vld [vmem:[%s8116_s22 + $0x198] sm:$0xff] }
 0x289   : > { %5240 = vmatpush1.msra.mxu1 %v3860_v56  ;;  %5170 = vmatprep.subr.mxu0 %v3795_v57  ;;  %v3909_v22 = vld [vmem:[%s8116_s22 + $0x3a8] sm:$0xff]  ;;  %v3908_v24 = vld [vmem:[%s8116_s22 + $0x3a0] sm:$0xff]  ;;  %v3907_v26 = vld [vmem:[%s8116_s22 + $0x398] sm:$0xff] }
 0x28a   : > { %5241 = vmatprep.subr.mxu1 %v3859_v58  ;;  %5171 = vmatpush1.msra.mxu0 %v3794_v59  ;;  %v3842_v27 = vld [vmem:[%s8116_s22 + $0x190] sm:$0xff]  ;;  %v3841_v29 = vld [vmem:[%s8116_s22 + $0x188] sm:$0xff]  ;;  %v3840_v34 = vld [vmem:[%s8116_s22 + $0x180] sm:$0xff] }
 0x28b   : > { %5242 = vmatpush1.msra.mxu1 %v3858_v60  ;;  %5172 = vmatprep.subr.mxu0 %v3793_v61  ;;  %v3906_v28 = vld [vmem:[%s8116_s22 + $0x390] sm:$0xff]  ;;  %v3905_v30 = vld [vmem:[%s8116_s22 + $0x388] sm:$0xff]  ;;  %v3904_v35 = vld [vmem:[%s8116_s22 + $0x380] sm:$0xff] }
 0x28c   : > { %5243 = vmatprep.subr.mxu1 %v3857_v62  ;;  %5173 = vmatpush1.msra.mxu0 %v3792_v63  ;;  %v3839_v36 = vld [vmem:[%s8116_s22 + $0x178] sm:$0xff]  ;;  %v3838_v38 = vld [vmem:[%s8116_s22 + $0x170] sm:$0xff]  ;;  %v3837_v40 = vld [vmem:[%s8116_s22 + $0x168] sm:$0xff] }
 0x28d   : > { %5244 = vmatpush1.msra.mxu1 %v3856_v0  ;;  %5174 = vmatprep.subr.mxu0 %v3855_v1  ;;  %v3903_v37 = vld [vmem:[%s8116_s22 + $0x378] sm:$0xff]  ;;  %v3902_v39 = vld [vmem:[%s8116_s22 + $0x370] sm:$0xff]  ;;  %v3901_v41 = vld [vmem:[%s8116_s22 + $0x368] sm:$0xff] }
 0x28e   : > { %5245 = vmatprep.subr.mxu1 %v3919_v2  ;;  %5175 = vmatpush2.msra.mxu0 %v3854_v3  ;;  %v3836_v44 = vld [vmem:[%s8116_s22 + $0x160] sm:$0xff]  ;;  %v3835_v46 = vld [vmem:[%s8116_s22 + $0x158] sm:$0xff]  ;;  %v3834_v49 = vld [vmem:[%s8116_s22 + $0x150] sm:$0xff] }
 0x28f   : > { %5246 = vmatpush2.msra.mxu1 %v3918_v4  ;;  %5176 = vmatprep.subr.mxu0 %v3853_v5  ;;  %v3900_v45 = vld [vmem:[%s8116_s22 + $0x360] sm:$0xff]  ;;  %v3899_v47 = vld [vmem:[%s8116_s22 + $0x358] sm:$0xff]  ;;  %v3898_v50 = vld [vmem:[%s8116_s22 + $0x350] sm:$0xff] }
 0x290   : > { %5247 = vmatprep.subr.mxu1 %v3917_v6  ;;  %5177 = vmatpush2.msra.mxu0 %v3852_v7  ;;  %v3783_v48 = vld [vmem:[%s8104_s7] sm:$0xff]  ;;  %v3833_v51 = vld [vmem:[%s8116_s22 + $0x148] sm:$0xff]  ;;  %v3830_v59 = vld [vmem:[%s8116_s22 + $0x130] sm:$0xff] }
 0x291   : > { %5248 = vmatpush2.msra.mxu1 %v3916_v8  ;;  %5178 = vmatprep.subr.mxu0 %v3851_v9  ;;  %v3897_v52 = vld [vmem:[%s8116_s22 + $0x348] sm:$0xff]  ;;  %v3832_v54 = vld [vmem:[%s8116_s22 + $0x140] sm:$0xff]  ;;  %v4953_v56 = vcombine.high %v3783_v48, %v3783_v48  ;;  %v3831_v57 = vld [vmem:[%s8116_s22 + $0x138] sm:$0xff]  ;;  %v4960_v63 = vrot.slane %v3783_v48, %v8233_v53 }
 0x292   : > { %5249 = vmatprep.subr.mxu1 %v3915_v10  ;;  %5179 = vmatpush2.msra.mxu0 %v3850_v11  ;;  %v3896_v55 = vld [vmem:[%s8116_s22 + $0x340] sm:$0xff]  ;;  %v3895_v58 = vld [vmem:[%s8116_s22 + $0x338] sm:$0xff]  ;;  %v3894_v60 = vld [vmem:[%s8116_s22 + $0x330] sm:$0xff] }
 0x293   : > { %5250 = vmatpush2.msra.mxu1 %v3914_v12  ;;  %5180 = vmatprep.subr.mxu0 %v3849_v13  ;;  %v3829_v61 = vld [vmem:[%s8116_s22 + $0x128] sm:$0xff]  ;;  %v3828_v0 = vld [vmem:[%s8116_s22 + $0x120] sm:$0xff]  ;;  %v4967_v2 = vrot.slane %v4953_v56, %v8233_v53  ;;  %v3827_v3 = vld [vmem:[%s8116_s22 + $0x118] sm:$0xff]  ;;  %v4968_v9 = vcombine.high %v4960_v63, %v4960_v63 }
 0x294   : > { %5251 = vmatprep.subr.mxu1 %v3913_v14  ;;  %5181 = vmatpush2.msra.mxu0 %v3848_v15  ;;  %v3893_v62 = vld [vmem:[%s8116_s22 + $0x328] sm:$0xff]  ;;  %v3892_v1 = vld [vmem:[%s8116_s22 + $0x320] sm:$0xff]  ;;  %v3891_v4 = vld [vmem:[%s8116_s22 + $0x318] sm:$0xff] }
 0x295   : > { %5252 = vmatpush2.msra.mxu1 %v3912_v16  ;;  %5182 = vmatprep.subr.mxu0 %v3847_v17  ;;  %v3826_v5 = vld [vmem:[%s8116_s22 + $0x110] sm:$0xff]  ;;  %v3825_v7 = vld [vmem:[%s8116_s22 + $0x108] sm:$0xff]  ;;  %v3824_v10 = vld [vmem:[%s8116_s22 + $0x100] sm:$0xff]  ;;  %v4969_v11 = vcombine.high %v4967_v2, %v4967_v2 }
 0x296   : > { %5253 = vmatprep.subr.mxu1 %v3911_v18  ;;  %5183 = vmatpush2.msra.mxu0 %v3846_v19  ;;  %v3890_v6 = vld [vmem:[%s8116_s22 + $0x310] sm:$0xff]  ;;  %v3889_v8 = vld [vmem:[%s8116_s22 + $0x308] sm:$0xff]  ;;  %v3888_v12 = vld [vmem:[%s8116_s22 + $0x300] sm:$0xff] }
 0x297   : > { %5254 = vmatpush2.msra.mxu1 %v3910_v20  ;;  %5184 = vmatprep.subr.mxu0 %v3845_v21  ;;  %v3951_v13 = vld [vmem:[%s8116_s22 + $0x4f8] sm:$0xff]  ;;  %v3950_v15 = vld [vmem:[%s8116_s22 + $0x4f0] sm:$0xff]  ;;  %v3949_v17 = vld [vmem:[%s8116_s22 + $0x4e8] sm:$0xff] }
 0x298   : > { %5255 = vmatprep.subr.mxu1 %v3909_v22  ;;  %5185 = vmatpush2.msra.mxu0 %v3844_v23  ;;  %v4015_v14 = vld [vmem:[%s8116_s22 + $0x6f8] sm:$0xff]  ;;  %v4014_v16 = vld [vmem:[%s8116_s22 + $0x6f0] sm:$0xff]  ;;  %v4013_v18 = vld [vmem:[%s8116_s22 + $0x6e8] sm:$0xff] }
 0x299   : > { %5256 = vmatpush2.msra.mxu1 %v3908_v24  ;;  %5186 = vmatprep.subr.mxu0 %v3843_v25  ;;  %v3948_v19 = vld [vmem:[%s8116_s22 + $0x4e0] sm:$0xff]  ;;  %v3947_v21 = vld [vmem:[%s8116_s22 + $0x4d8] sm:$0xff]  ;;  %v3946_v23 = vld [vmem:[%s8116_s22 + $0x4d0] sm:$0xff] }
 0x29a   : > { %5257 = vmatprep.subr.mxu1 %v3907_v26  ;;  %5187 = vmatpush2.msra.mxu0 %v3842_v27  ;;  %v4012_v20 = vld [vmem:[%s8116_s22 + $0x6e0] sm:$0xff]  ;;  %v4011_v22 = vld [vmem:[%s8116_s22 + $0x6d8] sm:$0xff]  ;;  %v4010_v24 = vld [vmem:[%s8116_s22 + $0x6d0] sm:$0xff] }
 0x29b   : > { %5258 = vmatpush2.msra.mxu1 %v3906_v28  ;;  %5188 = vmatprep.subr.mxu0 %v3841_v29  ;;  %v3945_v25 = vld [vmem:[%s8116_s22 + $0x4c8] sm:$0xff]  ;;  %v3944_v27 = vld [vmem:[%s8116_s22 + $0x4c0] sm:$0xff]  ;;  %v3943_v29 = vld [vmem:[%s8116_s22 + $0x4b8] sm:$0xff] }
 0x29c   : > { %5259 = vmatprep.subr.mxu1 %v3905_v30  ;;  %5189 = vmatpush2.msra.mxu0 %v3840_v34  ;;  %v4009_v26 = vld [vmem:[%s8116_s22 + $0x6c8] sm:$0xff]  ;;  %v4008_v28 = vld [vmem:[%s8116_s22 + $0x6c0] sm:$0xff]  ;;  %v4007_v30 = vld [vmem:[%s8116_s22 + $0x6b8] sm:$0xff] }
 0x29d   : > { %5260 = vmatpush2.msra.mxu1 %v3904_v35  ;;  %5190 = vmatprep.subr.mxu0 %v3839_v36  ;;  %v3942_v31 = vld [vmem:[%s8116_s22 + $0x4b0] sm:$0xff]  ;;  %v3941_v33 = vld [vmem:[%s8116_s22 + $0x4a8] sm:$0xff]  ;;  %v3940_v35 = vld [vmem:[%s8116_s22 + $0x4a0] sm:$0xff] }
 0x29e   : > { %5261 = vmatprep.subr.mxu1 %v3903_v37  ;;  %5191 = vmatpush2.msra.mxu0 %v3838_v38  ;;  %v4006_v32 = vld [vmem:[%s8116_s22 + $0x6b0] sm:$0xff]  ;;  %v4005_v34 = vld [vmem:[%s8116_s22 + $0x6a8] sm:$0xff]  ;;  %v4004_v36 = vld [vmem:[%s8116_s22 + $0x6a0] sm:$0xff] }
 0x29f   : > { %5262 = vmatpush2.msra.mxu1 %v3902_v39  ;;  %5192 = vmatprep.subr.mxu0 %v3837_v40  ;;  %v3939_v37 = vld [vmem:[%s8116_s22 + $0x498] sm:$0xff]  ;;  %v3938_v39 = vld [vmem:[%s8116_s22 + $0x490] sm:$0xff]  ;;  %v4001_v42 = vld [vmem:[%s8116_s22 + $0x688] sm:$0xff] }
 0x2a0   : > { %5263 = vmatprep.subr.mxu1 %v3901_v41  ;;  %5193 = vmatpush2.msra.mxu0 %v3836_v44  ;;  %v4003_v38 = vld [vmem:[%s8116_s22 + $0x698] sm:$0xff]  ;;  %v4002_v40 = vld [vmem:[%s8116_s22 + $0x690] sm:$0xff]  ;;  %v3937_v41 = vld [vmem:[%s8116_s22 + $0x488] sm:$0xff] }
 0x2a1   : > { %5264 = vmatpush2.msra.mxu1 %v3900_v45  ;;  %5194 = vmatprep.subr.mxu0 %v3835_v46  ;;  %v3936_v44 = vld [vmem:[%s8116_s22 + $0x480] sm:$0xff]  ;;  %v3935_v46 = vld [vmem:[%s8116_s22 + $0x478] sm:$0xff]  ;;  %v3934_v48 = vld [vmem:[%s8116_s22 + $0x470] sm:$0xff] }
 0x2a2   : > { %5265 = vmatprep.subr.mxu1 %v3899_v47  ;;  %5195 = vmatpush2.msra.mxu0 %v3834_v49  ;;  %v4000_v45 = vld [vmem:[%s8116_s22 + $0x680] sm:$0xff]  ;;  %v3999_v47 = vld [vmem:[%s8116_s22 + $0x678] sm:$0xff]  ;;  %v3998_v49 = vld [vmem:[%s8116_s22 + $0x670] sm:$0xff] }
 0x2a3   : > { %5266 = vmatpush2.msra.mxu1 %v3898_v50  ;;  %5196 = vmatprep.subr.mxu0 %v3833_v51  ;;  %v3933_v50 = vld [vmem:[%s8116_s22 + $0x468] sm:$0xff]  ;;  %v3995_v56 = vld [vmem:[%s8116_s22 + $0x658] sm:$0xff] }
 0x2a4   : > { %5267 = vmatprep.subr.mxu1 %v3897_v52  ;;  %5197 = vmatpush2.msra.mxu0 %v3832_v54  ;;  %v3997_v51 = vld [vmem:[%s8116_s22 + $0x668] sm:$0xff]  ;;  %v3932_v52 = vld [vmem:[%s8116_s22 + $0x460] sm:$0xff] }
 0x2a5   : > { %5268 = vmatpush2.msra.mxu1 %v3896_v55  ;;  %5198 = vmatprep.subr.mxu0 %v3831_v57  ;;  %v3996_v54 = vld [vmem:[%s8116_s22 + $0x660] sm:$0xff]  ;;  %v3931_v55 = vld [vmem:[%s8116_s22 + $0x458] sm:$0xff]  ;;  %v3930_v57 = vld [vmem:[%s8116_s22 + $0x450] sm:$0xff] }
 0x2a6   : > { %5269 = vmatprep.subr.mxu1 %v3895_v58  ;;  %5199 = vmatpush2.msra.mxu0 %v3830_v59  ;;  %v3994_v58 = vld [vmem:[%s8116_s22 + $0x650] sm:$0xff]  ;;  %v3929_v59 = vld [vmem:[%s8116_s22 + $0x448] sm:$0xff] }
 0x2a7   : > { %5270 = vmatpush2.msra.mxu1 %v3894_v60  ;;  %5200 = vmatprep.subr.mxu0 %v3829_v61  ;;  %v3993_v60 = vld [vmem:[%s8116_s22 + $0x648] sm:$0xff]  ;;  %v3928_v61 = vld [vmem:[%s8116_s22 + $0x440] sm:$0xff] }
 0x2a8   : > { %5271 = vmatprep.subr.mxu1 %v3893_v62  ;;  %5201 = vmatpush2.msra.mxu0 %v3828_v0  ;;  %v3992_v62 = vld [vmem:[%s8116_s22 + $0x640] sm:$0xff]  ;;  %v3991_v0 = vld [vmem:[%s8116_s22 + $0x638] sm:$0xff] }
 0x2a9   : > { %5272 = vmatpush2.msra.mxu1 %v3892_v1  ;;  %5202 = vmatprep.subr.mxu0 %v3827_v3  ;;  %v3926_v1 = vld [vmem:[%s8116_s22 + $0x430] sm:$0xff]  ;;  %v3925_v3 = vld [vmem:[%s8116_s22 + $0x428] sm:$0xff] }
 0x2aa   : > { %5273 = vmatprep.subr.mxu1 %v3891_v4  ;;  %5203 = vmatpush2.msra.mxu0 %v3826_v5  ;;  %v3989_v4 = vld [vmem:[%s8116_s22 + $0x628] sm:$0xff]  ;;  %v3924_v5 = vld [vmem:[%s8116_s22 + $0x420] sm:$0xff] }
 0x2ab   : > { %5274 = vmatpush2.msra.mxu1 %v3890_v6  ;;  %5204 = vmatprep.subr.mxu0 %v3825_v7  ;;  %v3988_v6 = vld [vmem:[%s8116_s22 + $0x620] sm:$0xff]  ;;  %v3923_v7 = vld [vmem:[%s8116_s22 + $0x418] sm:$0xff] }
 0x2ac   : > { %5275 = vmatprep.subr.mxu1 %v3889_v8  ;;  %5205 = vmatpush2.msra.mxu0 %v3824_v10  ;;  %v3987_v8 = vld [vmem:[%s8116_s22 + $0x618] sm:$0xff]  ;;  %v3986_v10 = vld [vmem:[%s8116_s22 + $0x610] sm:$0xff] }
 0x2ad   : > { %5206 = vmatprep.mubr.f32.mxu0 %v4968_v9  ;;  %5276 = vmatpush2.msra.mxu1 %v3888_v12  ;;  %v3922_v9 = vld [vmem:[%s8116_s22 + $0x410] sm:$0xff]  ;;  %v3985_v12 = vld [vmem:[%s8116_s22 + $0x608] sm:$0xff] }
 0x2ae   : > { %5277 = vmatprep.mubr.f32.mxu1 %v4969_v11  ;;  %5207 = vmatmul.mubr.f32.vlgmr.msra.gmra.mxu0 %v4960_v63  ;;  %v3927_v63 = vld [vmem:[%s8116_s22 + $0x438] sm:$0xff]  ;;  %v3921_v11 = vld [vmem:[%s8116_s22 + $0x408] sm:$0xff] }
 0x2af   : > { %5278 = vmatmul.mubr.f32.vlgmr.msra.gmra.mxu1 %v4967_v2  ;;  %5284 = vmatprep.subr.mxu0 %v3951_v13  ;;  %v3990_v2 = vld [vmem:[%s8116_s22 + $0x630] sm:$0xff]  ;;  %v3920_v13 = vld [vmem:[%s8116_s22 + $0x400] sm:$0xff] }
 0x2b0   : > { %5355 = vmatprep.subr.mxu1 %v4015_v14  ;;  %5285 = vmatpush1.msra.mxu0 %v3950_v15  ;;  %v3984_v14 = vld [vmem:[%s8116_s22 + $0x600] sm:$0xff]  ;;  %v3983_v15 = vld [vmem:[%s8116_s22 + $0x5f8] sm:$0xff] }
 0x2b1   : > { %5356 = vmatpush1.msra.mxu1 %v4014_v16  ;;  %5286 = vmatprep.subr.mxu0 %v3949_v17  ;;  %v4047_v16 = vld [vmem:[%s8116_s22 + $0x7f8] sm:$0xff]  ;;  %v3982_v17 = vld [vmem:[%s8116_s22 + $0x5f0] sm:$0xff] }
 0x2b2   : > { %5357 = vmatprep.subr.mxu1 %v4013_v18  ;;  %5287 = vmatpush1.msra.mxu0 %v3948_v19  ;;  %v4046_v18 = vld [vmem:[%s8116_s22 + $0x7f0] sm:$0xff]  ;;  %v3981_v19 = vld [vmem:[%s8116_s22 + $0x5e8] sm:$0xff] }
 0x2b3   : > { %5358 = vmatpush1.msra.mxu1 %v4012_v20  ;;  %5288 = vmatprep.subr.mxu0 %v3947_v21  ;;  %v4045_v20 = vld [vmem:[%s8116_s22 + $0x7e8] sm:$0xff]  ;;  %v3980_v21 = vld [vmem:[%s8116_s22 + $0x5e0] sm:$0xff] }
 0x2b4   : > { %5359 = vmatprep.subr.mxu1 %v4011_v22  ;;  %5289 = vmatpush1.msra.mxu0 %v3946_v23  ;;  %v4044_v22 = vld [vmem:[%s8116_s22 + $0x7e0] sm:$0xff]  ;;  %v3979_v23 = vld [vmem:[%s8116_s22 + $0x5d8] sm:$0xff] }
 0x2b5   : > { %5360 = vmatpush1.msra.mxu1 %v4010_v24  ;;  %5290 = vmatprep.subr.mxu0 %v3945_v25  ;;  %v4043_v24 = vld [vmem:[%s8116_s22 + $0x7d8] sm:$0xff]  ;;  %v3978_v25 = vld [vmem:[%s8116_s22 + $0x5d0] sm:$0xff] }
 0x2b6   : > { %5361 = vmatprep.subr.mxu1 %v4009_v26  ;;  %5291 = vmatpush1.msra.mxu0 %v3944_v27  ;;  %v4042_v26 = vld [vmem:[%s8116_s22 + $0x7d0] sm:$0xff]  ;;  %v3977_v27 = vld [vmem:[%s8116_s22 + $0x5c8] sm:$0xff] }
 0x2b7   : > { %5362 = vmatpush1.msra.mxu1 %v4008_v28  ;;  %5292 = vmatprep.subr.mxu0 %v3943_v29  ;;  %v4041_v28 = vld [vmem:[%s8116_s22 + $0x7c8] sm:$0xff]  ;;  %v3976_v29 = vld [vmem:[%s8116_s22 + $0x5c0] sm:$0xff] }
 0x2b8   : > { %5363 = vmatprep.subr.mxu1 %v4007_v30  ;;  %5293 = vmatpush1.msra.mxu0 %v3942_v31  ;;  %v4040_v30 = vld [vmem:[%s8116_s22 + $0x7c0] sm:$0xff]  ;;  %v3975_v31 = vld [vmem:[%s8116_s22 + $0x5b8] sm:$0xff] }
 0x2b9   : > { %5364 = vmatpush1.msra.mxu1 %v4006_v32  ;;  %5294 = vmatprep.subr.mxu0 %v3941_v33  ;;  %v4039_v32 = vld [vmem:[%s8116_s22 + $0x7b8] sm:$0xff]  ;;  %v3974_v33 = vld [vmem:[%s8116_s22 + $0x5b0] sm:$0xff] }
 0x2ba   : > { %5365 = vmatprep.subr.mxu1 %v4005_v34  ;;  %5295 = vmatpush1.msra.mxu0 %v3940_v35  ;;  %v4038_v34 = vld [vmem:[%s8116_s22 + $0x7b0] sm:$0xff]  ;;  %v3973_v35 = vld [vmem:[%s8116_s22 + $0x5a8] sm:$0xff] }
 0x2bb   : > { %5366 = vmatpush1.msra.mxu1 %v4004_v36  ;;  %5296 = vmatprep.subr.mxu0 %v3939_v37  ;;  %v4037_v36 = vld [vmem:[%s8116_s22 + $0x7a8] sm:$0xff]  ;;  %v3972_v37 = vld [vmem:[%s8116_s22 + $0x5a0] sm:$0xff] }
 0x2bc   : > { %5367 = vmatprep.subr.mxu1 %v4003_v38  ;;  %5297 = vmatpush1.msra.mxu0 %v3938_v39  ;;  %v4036_v38 = vld [vmem:[%s8116_s22 + $0x7a0] sm:$0xff]  ;;  %v3971_v39 = vld [vmem:[%s8116_s22 + $0x598] sm:$0xff] }
 0x2bd   : > { %5368 = vmatpush1.msra.mxu1 %v4002_v40  ;;  %5298 = vmatprep.subr.mxu0 %v3937_v41  ;;  %v4035_v40 = vld [vmem:[%s8116_s22 + $0x798] sm:$0xff]  ;;  %v3970_v41 = vld [vmem:[%s8116_s22 + $0x590] sm:$0xff] }
 0x2be   : > { %5369 = vmatprep.subr.mxu1 %v4001_v42  ;;  %5299 = vmatpush1.msra.mxu0 %v3936_v44  ;;  %v4034_v42 = vld [vmem:[%s8116_s22 + $0x790] sm:$0xff]  ;;  %v3969_v44 = vld [vmem:[%s8116_s22 + $0x588] sm:$0xff] }
 0x2bf   : > { %5370 = vmatpush1.msra.mxu1 %v4000_v45  ;;  %5300 = vmatprep.subr.mxu0 %v3935_v46  ;;  %v4033_v45 = vld [vmem:[%s8116_s22 + $0x788] sm:$0xff]  ;;  %v3968_v46 = vld [vmem:[%s8116_s22 + $0x580] sm:$0xff] }
 0x2c0   : > { %5371 = vmatprep.subr.mxu1 %v3999_v47  ;;  %5301 = vmatpush1.msra.mxu0 %v3934_v48  ;;  %v4032_v47 = vld [vmem:[%s8116_s22 + $0x780] sm:$0xff]  ;;  %v3967_v48 = vld [vmem:[%s8116_s22 + $0x578] sm:$0xff] }
 0x2c1   : > { %5372 = vmatpush1.msra.mxu1 %v3998_v49  ;;  %5302 = vmatprep.subr.mxu0 %v3933_v50  ;;  %v4031_v49 = vld [vmem:[%s8116_s22 + $0x778] sm:$0xff]  ;;  %v3966_v50 = vld [vmem:[%s8116_s22 + $0x570] sm:$0xff] }
 0x2c2   : > { %5373 = vmatprep.subr.mxu1 %v3997_v51  ;;  %5303 = vmatpush1.msra.mxu0 %v3932_v52  ;;  %v4030_v51 = vld [vmem:[%s8116_s22 + $0x770] sm:$0xff]  ;;  %v3965_v52 = vld [vmem:[%s8116_s22 + $0x568] sm:$0xff] }
 0x2c3   : > { %5374 = vmatpush1.msra.mxu1 %v3996_v54  ;;  %5304 = vmatprep.subr.mxu0 %v3931_v55  ;;  %v4029_v54 = vld [vmem:[%s8116_s22 + $0x768] sm:$0xff]  ;;  %v3964_v55 = vld [vmem:[%s8116_s22 + $0x560] sm:$0xff] }
 0x2c4   : > { %5375 = vmatprep.subr.mxu1 %v3995_v56  ;;  %5305 = vmatpush1.msra.mxu0 %v3930_v57  ;;  %v4028_v56 = vld [vmem:[%s8116_s22 + $0x760] sm:$0xff]  ;;  %v3963_v57 = vld [vmem:[%s8116_s22 + $0x558] sm:$0xff] }
 0x2c5   : > { %5376 = vmatpush1.msra.mxu1 %v3994_v58  ;;  %5306 = vmatprep.subr.mxu0 %v3929_v59  ;;  %v4027_v58 = vld [vmem:[%s8116_s22 + $0x758] sm:$0xff]  ;;  %v3962_v59 = vld [vmem:[%s8116_s22 + $0x550] sm:$0xff] }
 0x2c6   : > { %5377 = vmatprep.subr.mxu1 %v3993_v60  ;;  %5307 = vmatpush1.msra.mxu0 %v3928_v61  ;;  %v4026_v60 = vld [vmem:[%s8116_s22 + $0x750] sm:$0xff]  ;;  %v3784_v61 = vld [vmem:[%s8104_s7 + $0x8] sm:$0xff] }
 0x2c7   : > { %5378 = vmatpush1.msra.mxu1 %v3992_v62  ;;  %5308 = vmatprep.subr.mxu0 %v3927_v63  ;;  %v3961_v62 = vld [vmem:[%s8116_s22 + $0x548] sm:$0xff] }
 0x2c8   : > { %5379 = vmatprep.subr.mxu1 %v3991_v0  ;;  %5309 = vmatpush1.msra.mxu0 %v3926_v1  ;;  %v4025_v63 = vld [vmem:[%s8116_s22 + $0x748] sm:$0xff]  ;;  %v3960_v0 = vld [vmem:[%s8116_s22 + $0x540] sm:$0xff] }
 0x2c9   : > { %5380 = vmatpush1.msra.mxu1 %v3990_v2  ;;  %5310 = vmatprep.subr.mxu0 %v3925_v3  ;;  %v4024_v1 = vld [vmem:[%s8116_s22 + $0x740] sm:$0xff]  ;;  %v3959_v2 = vld [vmem:[%s8116_s22 + $0x538] sm:$0xff] }
 0x2ca   : > { %5381 = vmatprep.subr.mxu1 %v3989_v4  ;;  %5311 = vmatpush1.msra.mxu0 %v3924_v5  ;;  %v4023_v3 = vld [vmem:[%s8116_s22 + $0x738] sm:$0xff]  ;;  %v4970_v4 = vcombine.high %v3784_v61, %v3784_v61  ;;  %v3958_v5 = vld [vmem:[%s8116_s22 + $0x530] sm:$0xff] }
 0x2cb   : > { %5382 = vmatpush1.msra.mxu1 %v3988_v6  ;;  %5312 = vmatprep.subr.mxu0 %v3923_v7  ;;  %v4022_v6 = vld [vmem:[%s8116_s22 + $0x730] sm:$0xff]  ;;  %v3957_v7 = vld [vmem:[%s8116_s22 + $0x528] sm:$0xff] }
 0x2cc   : > { %5383 = vmatprep.subr.mxu1 %v3987_v8  ;;  %5313 = vmatpush1.msra.mxu0 %v3922_v9  ;;  %v4021_v8 = vld [vmem:[%s8116_s22 + $0x728] sm:$0xff]  ;;  %v4977_v9 = vrot.slane %v3784_v61, %v8233_v53 }
 0x2cd   : > { %5384 = vmatpush1.msra.mxu1 %v3986_v10  ;;  %5314 = vmatprep.subr.mxu0 %v3921_v11  ;;  %v3956_v10 = vld [vmem:[%s8116_s22 + $0x520] sm:$0xff]  ;;  %v4061_v61 = vld [vmem:[%s8116_s22 + $0x868] sm:$0xff] }
 0x2ce   : > { %5385 = vmatprep.subr.mxu1 %v3985_v12  ;;  %5315 = vmatpush1.msra.mxu0 %v3920_v13  ;;  %v4020_v11 = vld [vmem:[%s8116_s22 + $0x720] sm:$0xff]  ;;  %v3955_v12 = vld [vmem:[%s8116_s22 + $0x518] sm:$0xff] }
 0x2cf   : > { %5386 = vmatpush1.msra.mxu1 %v3984_v14  ;;  %5316 = vmatprep.subr.mxu0 %v3983_v15  ;;  %v4019_v13 = vld [vmem:[%s8116_s22 + $0x718] sm:$0xff]  ;;  %v4984_v14 = vrot.slane %v4970_v4, %v8233_v53  ;;  %v3954_v15 = vld [vmem:[%s8116_s22 + $0x510] sm:$0xff] }
 0x2d0   : > { %5387 = vmatprep.subr.mxu1 %v4047_v16  ;;  %5317 = vmatpush2.msra.mxu0 %v3982_v17  ;;  %v4018_v16 = vld [vmem:[%s8116_s22 + $0x710] sm:$0xff]  ;;  %v3953_v17 = vld [vmem:[%s8116_s22 + $0x508] sm:$0xff] }
 0x2d1   : > { %5388 = vmatpush2.msra.mxu1 %v4046_v18  ;;  %5318 = vmatprep.subr.mxu0 %v3981_v19  ;;  %v4017_v18 = vld [vmem:[%s8116_s22 + $0x708] sm:$0xff]  ;;  %v4985_v19 = vcombine.high %v4977_v9, %v4977_v9  ;;  %v4122_v4 = vld [vmem:[%s8116_s22 + $0xa50] sm:$0xff] }
 0x2d2   : > { %5389 = vmatprep.subr.mxu1 %v4045_v20  ;;  %5319 = vmatpush2.msra.mxu0 %v3980_v21  ;;  %v3952_v20 = vld [vmem:[%s8116_s22 + $0x500] sm:$0xff] }
 0x2d3   : > { %5390 = vmatpush2.msra.mxu1 %v4044_v22  ;;  %5320 = vmatprep.subr.mxu0 %v3979_v23  ;;  %v4016_v21 = vld [vmem:[%s8116_s22 + $0x700] sm:$0xff]  ;;  %v4986_v22 = vcombine.high %v4984_v14, %v4984_v14  ;;  %v4079_v23 = vld [vmem:[%s8116_s22 + $0x8f8] sm:$0xff] }
 0x2d4   : > { %5391 = vmatprep.subr.mxu1 %v4043_v24  ;;  %5321 = vmatpush2.msra.mxu0 %v3978_v25  ;;  %v4143_v24 = vld [vmem:[%s8116_s22 + $0xaf8] sm:$0xff]  ;;  %v4078_v25 = vld [vmem:[%s8116_s22 + $0x8f0] sm:$0xff] }
 0x2d5   : > { %5392 = vmatpush2.msra.mxu1 %v4042_v26  ;;  %5322 = vmatprep.subr.mxu0 %v3977_v27  ;;  %v4142_v26 = vld [vmem:[%s8116_s22 + $0xaf0] sm:$0xff]  ;;  %v4077_v27 = vld [vmem:[%s8116_s22 + $0x8e8] sm:$0xff] }
 0x2d6   : > { %5393 = vmatprep.subr.mxu1 %v4041_v28  ;;  %5323 = vmatpush2.msra.mxu0 %v3976_v29  ;;  %v4141_v28 = vld [vmem:[%s8116_s22 + $0xae8] sm:$0xff]  ;;  %v4076_v29 = vld [vmem:[%s8116_s22 + $0x8e0] sm:$0xff] }
 0x2d7   : > { %5394 = vmatpush2.msra.mxu1 %v4040_v30  ;;  %5324 = vmatprep.subr.mxu0 %v3975_v31  ;;  %v4140_v30 = vld [vmem:[%s8116_s22 + $0xae0] sm:$0xff]  ;;  %v4075_v31 = vld [vmem:[%s8116_s22 + $0x8d8] sm:$0xff] }
 0x2d8   : > { %5395 = vmatprep.subr.mxu1 %v4039_v32  ;;  %5325 = vmatpush2.msra.mxu0 %v3974_v33  ;;  %v4139_v32 = vld [vmem:[%s8116_s22 + $0xad8] sm:$0xff]  ;;  %v4074_v33 = vld [vmem:[%s8116_s22 + $0x8d0] sm:$0xff] }
 0x2d9   : > { %5396 = vmatpush2.msra.mxu1 %v4038_v34  ;;  %5326 = vmatprep.subr.mxu0 %v3973_v35  ;;  %v4138_v34 = vld [vmem:[%s8116_s22 + $0xad0] sm:$0xff]  ;;  %v4073_v35 = vld [vmem:[%s8116_s22 + $0x8c8] sm:$0xff] }
 0x2da   : > { %5397 = vmatprep.subr.mxu1 %v4037_v36  ;;  %5327 = vmatpush2.msra.mxu0 %v3972_v37  ;;  %v4137_v36 = vld [vmem:[%s8116_s22 + $0xac8] sm:$0xff]  ;;  %v4072_v37 = vld [vmem:[%s8116_s22 + $0x8c0] sm:$0xff] }
 0x2db   : > { %5398 = vmatpush2.msra.mxu1 %v4036_v38  ;;  %5328 = vmatprep.subr.mxu0 %v3971_v39  ;;  %v4136_v38 = vld [vmem:[%s8116_s22 + $0xac0] sm:$0xff]  ;;  %v4071_v39 = vld [vmem:[%s8116_s22 + $0x8b8] sm:$0xff] }
 0x2dc   : > { %5399 = vmatprep.subr.mxu1 %v4035_v40  ;;  %5329 = vmatpush2.msra.mxu0 %v3970_v41  ;;  %v4135_v40 = vld [vmem:[%s8116_s22 + $0xab8] sm:$0xff]  ;;  %v4070_v41 = vld [vmem:[%s8116_s22 + $0x8b0] sm:$0xff] }
 0x2dd   : > { %5400 = vmatpush2.msra.mxu1 %v4034_v42  ;;  %5330 = vmatprep.subr.mxu0 %v3969_v44  ;;  %v4134_v42 = vld [vmem:[%s8116_s22 + $0xab0] sm:$0xff]  ;;  %v4069_v44 = vld [vmem:[%s8116_s22 + $0x8a8] sm:$0xff] }
 0x2de   : > { %5401 = vmatprep.subr.mxu1 %v4033_v45  ;;  %5331 = vmatpush2.msra.mxu0 %v3968_v46  ;;  %v4133_v45 = vld [vmem:[%s8116_s22 + $0xaa8] sm:$0xff]  ;;  %v4068_v46 = vld [vmem:[%s8116_s22 + $0x8a0] sm:$0xff] }
 0x2df   : > { %5402 = vmatpush2.msra.mxu1 %v4032_v47  ;;  %5332 = vmatprep.subr.mxu0 %v3967_v48  ;;  %v4132_v47 = vld [vmem:[%s8116_s22 + $0xaa0] sm:$0xff]  ;;  %v4067_v48 = vld [vmem:[%s8116_s22 + $0x898] sm:$0xff] }
 0x2e0   : > { %5403 = vmatprep.subr.mxu1 %v4031_v49  ;;  %5333 = vmatpush2.msra.mxu0 %v3966_v50  ;;  %v4131_v49 = vld [vmem:[%s8116_s22 + $0xa98] sm:$0xff]  ;;  %v4066_v50 = vld [vmem:[%s8116_s22 + $0x890] sm:$0xff] }
 0x2e1   : > { %5404 = vmatpush2.msra.mxu1 %v4030_v51  ;;  %5334 = vmatprep.subr.mxu0 %v3965_v52  ;;  %v4130_v51 = vld [vmem:[%s8116_s22 + $0xa90] sm:$0xff]  ;;  %v4065_v52 = vld [vmem:[%s8116_s22 + $0x888] sm:$0xff] }
 0x2e2   : > { %5405 = vmatprep.subr.mxu1 %v4029_v54  ;;  %5335 = vmatpush2.msra.mxu0 %v3964_v55  ;;  %v4129_v54 = vld [vmem:[%s8116_s22 + $0xa88] sm:$0xff]  ;;  %v4064_v55 = vld [vmem:[%s8116_s22 + $0x880] sm:$0xff] }
 0x2e3   : > { %5406 = vmatpush2.msra.mxu1 %v4028_v56  ;;  %5336 = vmatprep.subr.mxu0 %v3963_v57  ;;  %v4128_v56 = vld [vmem:[%s8116_s22 + $0xa80] sm:$0xff]  ;;  %v4063_v57 = vld [vmem:[%s8116_s22 + $0x878] sm:$0xff] }
 0x2e4   : > { %5407 = vmatprep.subr.mxu1 %v4027_v58  ;;  %5337 = vmatpush2.msra.mxu0 %v3962_v59  ;;  %v4127_v58 = vld [vmem:[%s8116_s22 + $0xa78] sm:$0xff]  ;;  %v4062_v59 = vld [vmem:[%s8116_s22 + $0x870] sm:$0xff] }
 0x2e5   : > { %5408 = vmatpush2.msra.mxu1 %v4026_v60  ;;  %5338 = vmatprep.subr.mxu0 %v3961_v62  ;;  %v4126_v60 = vld [vmem:[%s8116_s22 + $0xa70] sm:$0xff]  ;;  %v4125_v62 = vld [vmem:[%s8116_s22 + $0xa68] sm:$0xff] }
 0x2e6   : > { %5409 = vmatprep.subr.mxu1 %v4025_v63  ;;  %5339 = vmatpush2.msra.mxu0 %v3960_v0  ;;  %v4060_v63 = vld [vmem:[%s8116_s22 + $0x860] sm:$0xff] }
 0x2e7   : > { %5410 = vmatpush2.msra.mxu1 %v4024_v1  ;;  %5340 = vmatprep.subr.mxu0 %v3959_v2  ;;  %v4124_v0 = vld [vmem:[%s8116_s22 + $0xa60] sm:$0xff]  ;;  %v4059_v1 = vld [vmem:[%s8116_s22 + $0x858] sm:$0xff] }
 0x2e8   : > { %5411 = vmatprep.subr.mxu1 %v4023_v3  ;;  %5341 = vmatpush2.msra.mxu0 %v3958_v5  ;;  %v4123_v2 = vld [vmem:[%s8116_s22 + $0xa58] sm:$0xff]  ;;  %v4058_v3 = vld [vmem:[%s8116_s22 + $0x850] sm:$0xff]  ;;  %v4057_v5 = vld [vmem:[%s8116_s22 + $0x848] sm:$0xff] }
 0x2e9   : > { %5412 = vmatpush2.msra.mxu1 %v4022_v6  ;;  %5342 = vmatprep.subr.mxu0 %v3957_v7  ;;  %v4121_v6 = vld [vmem:[%s8116_s22 + $0xa48] sm:$0xff]  ;;  %v4056_v7 = vld [vmem:[%s8116_s22 + $0x840] sm:$0xff] }
 0x2ea   : > { %5413 = vmatprep.subr.mxu1 %v4021_v8  ;;  %5343 = vmatpush2.msra.mxu0 %v3956_v10  ;;  %v4120_v8 = vld [vmem:[%s8116_s22 + $0xa40] sm:$0xff]  ;;  %v4119_v10 = vld [vmem:[%s8116_s22 + $0xa38] sm:$0xff] }
 0x2eb   : > { %5414 = vmatpush2.msra.mxu1 %v4020_v11  ;;  %5344 = vmatprep.subr.mxu0 %v3955_v12  ;;  %v4054_v11 = vld [vmem:[%s8116_s22 + $0x830] sm:$0xff] }
 0x2ec   : > { %5415 = vmatprep.subr.mxu1 %v4019_v13  ;;  %5345 = vmatpush2.msra.mxu0 %v3954_v15  ;;  %v4118_v12 = vld [vmem:[%s8116_s22 + $0xa30] sm:$0xff]  ;;  %v4053_v13 = vld [vmem:[%s8116_s22 + $0x828] sm:$0xff]  ;;  %v4052_v15 = vld [vmem:[%s8116_s22 + $0x820] sm:$0xff] }
 0x2ed   : > { %5416 = vmatpush2.msra.mxu1 %v4018_v16  ;;  %5346 = vmatprep.subr.mxu0 %v3953_v17  ;;  %v4116_v16 = vld [vmem:[%s8116_s22 + $0xa20] sm:$0xff]  ;;  %v4051_v17 = vld [vmem:[%s8116_s22 + $0x818] sm:$0xff] }
 0x2ee   : > { %5417 = vmatprep.subr.mxu1 %v4017_v18  ;;  %5347 = vmatpush2.msra.mxu0 %v3952_v20  ;;  %v4115_v18 = vld [vmem:[%s8116_s22 + $0xa18] sm:$0xff]  ;;  %v4114_v20 = vld [vmem:[%s8116_s22 + $0xa10] sm:$0xff] }
 0x2ef   : > { %5348 = vmatprep.mubr.f32.mxu0 %v4985_v19  ;;  %5418 = vmatpush2.msra.mxu1 %v4016_v21  ;;  %v4050_v19 = vld [vmem:[%s8116_s22 + $0x810] sm:$0xff]  ;;  %v4049_v21 = vld [vmem:[%s8116_s22 + $0x808] sm:$0xff] }
 0x2f0   : > { %5349 = vmatmul.mubr.f32.vlgmr.msra.gmra.mxu0 %v4977_v9  ;;  %5419 = vmatprep.mubr.f32.mxu1 %v4986_v22  ;;  %v4055_v9 = vld [vmem:[%s8116_s22 + $0x838] sm:$0xff]  ;;  %v4113_v22 = vld [vmem:[%s8116_s22 + $0xa08] sm:$0xff] }
 0x2f1   : > { %5426 = vmatprep.subr.mxu0 %v4079_v23  ;;  %5497 = vmatprep.subr.mxu1 %v4143_v24  ;;  %v4048_v23 = vld [vmem:[%s8116_s22 + $0x800] sm:$0xff] }
 0x2f2   : > { %5420 = vmatmul.mubr.f32.vlgmr.msra.gmra.mxu1 %v4984_v14  ;;  %5427 = vmatpush1.msra.mxu0 %v4078_v25  ;;  %v4117_v14 = vld [vmem:[%s8116_s22 + $0xa28] sm:$0xff]  ;;  %v4112_v24 = vld [vmem:[%s8116_s22 + $0xa00] sm:$0xff]  ;;  %v4111_v25 = vld [vmem:[%s8116_s22 + $0x9f8] sm:$0xff] }
 0x2f3   : > { %5498 = vmatpush1.msra.mxu1 %v4142_v26  ;;  %5428 = vmatprep.subr.mxu0 %v4077_v27  ;;  %v4175_v26 = vld [vmem:[%s8116_s22 + $0xbf8] sm:$0xff]  ;;  %v4110_v27 = vld [vmem:[%s8116_s22 + $0x9f0] sm:$0xff] }
 0x2f4   : > { %5499 = vmatprep.subr.mxu1 %v4141_v28  ;;  %5429 = vmatpush1.msra.mxu0 %v4076_v29  ;;  %v4174_v28 = vld [vmem:[%s8116_s22 + $0xbf0] sm:$0xff]  ;;  %v4109_v29 = vld [vmem:[%s8116_s22 + $0x9e8] sm:$0xff] }
 0x2f5   : > { %5500 = vmatpush1.msra.mxu1 %v4140_v30  ;;  %5430 = vmatprep.subr.mxu0 %v4075_v31  ;;  %v4173_v30 = vld [vmem:[%s8116_s22 + $0xbe8] sm:$0xff]  ;;  %v4108_v31 = vld [vmem:[%s8116_s22 + $0x9e0] sm:$0xff] }
 0x2f6   : > { %5501 = vmatprep.subr.mxu1 %v4139_v32  ;;  %5431 = vmatpush1.msra.mxu0 %v4074_v33  ;;  %v4172_v32 = vld [vmem:[%s8116_s22 + $0xbe0] sm:$0xff]  ;;  %v4107_v33 = vld [vmem:[%s8116_s22 + $0x9d8] sm:$0xff] }
 0x2f7   : > { %5502 = vmatpush1.msra.mxu1 %v4138_v34  ;;  %5432 = vmatprep.subr.mxu0 %v4073_v35  ;;  %v4171_v34 = vld [vmem:[%s8116_s22 + $0xbd8] sm:$0xff]  ;;  %v4106_v35 = vld [vmem:[%s8116_s22 + $0x9d0] sm:$0xff] }
 0x2f8   : > { %5503 = vmatprep.subr.mxu1 %v4137_v36  ;;  %5433 = vmatpush1.msra.mxu0 %v4072_v37  ;;  %v4170_v36 = vld [vmem:[%s8116_s22 + $0xbd0] sm:$0xff]  ;;  %v4105_v37 = vld [vmem:[%s8116_s22 + $0x9c8] sm:$0xff] }
 0x2f9   : > { %5504 = vmatpush1.msra.mxu1 %v4136_v38  ;;  %5434 = vmatprep.subr.mxu0 %v4071_v39  ;;  %v4169_v38 = vld [vmem:[%s8116_s22 + $0xbc8] sm:$0xff]  ;;  %v4104_v39 = vld [vmem:[%s8116_s22 + $0x9c0] sm:$0xff] }
 0x2fa   : > { %5505 = vmatprep.subr.mxu1 %v4135_v40  ;;  %5435 = vmatpush1.msra.mxu0 %v4070_v41  ;;  %v4168_v40 = vld [vmem:[%s8116_s22 + $0xbc0] sm:$0xff]  ;;  %v4103_v41 = vld [vmem:[%s8116_s22 + $0x9b8] sm:$0xff] }
 0x2fb   : > { %5506 = vmatpush1.msra.mxu1 %v4134_v42  ;;  %5436 = vmatprep.subr.mxu0 %v4069_v44  ;;  %v4167_v42 = vld [vmem:[%s8116_s22 + $0xbb8] sm:$0xff]  ;;  %v4102_v44 = vld [vmem:[%s8116_s22 + $0x9b0] sm:$0xff] }
 0x2fc   : > { %5507 = vmatprep.subr.mxu1 %v4133_v45  ;;  %5437 = vmatpush1.msra.mxu0 %v4068_v46  ;;  %v4166_v45 = vld [vmem:[%s8116_s22 + $0xbb0] sm:$0xff]  ;;  %v4101_v46 = vld [vmem:[%s8116_s22 + $0x9a8] sm:$0xff] }
 0x2fd   : > { %5508 = vmatpush1.msra.mxu1 %v4132_v47  ;;  %5438 = vmatprep.subr.mxu0 %v4067_v48  ;;  %v4165_v47 = vld [vmem:[%s8116_s22 + $0xba8] sm:$0xff]  ;;  %v4100_v48 = vld [vmem:[%s8116_s22 + $0x9a0] sm:$0xff] }
 0x2fe   : > { %5509 = vmatprep.subr.mxu1 %v4131_v49  ;;  %5439 = vmatpush1.msra.mxu0 %v4066_v50  ;;  %v4164_v49 = vld [vmem:[%s8116_s22 + $0xba0] sm:$0xff]  ;;  %v4099_v50 = vld [vmem:[%s8116_s22 + $0x998] sm:$0xff] }
 0x2ff   : > { %5510 = vmatpush1.msra.mxu1 %v4130_v51  ;;  %5440 = vmatprep.subr.mxu0 %v4065_v52  ;;  %v4163_v51 = vld [vmem:[%s8116_s22 + $0xb98] sm:$0xff]  ;;  %v4098_v52 = vld [vmem:[%s8116_s22 + $0x990] sm:$0xff] }
 0x300   : > { %5511 = vmatprep.subr.mxu1 %v4129_v54  ;;  %5441 = vmatpush1.msra.mxu0 %v4064_v55  ;;  %v4162_v54 = vld [vmem:[%s8116_s22 + $0xb90] sm:$0xff]  ;;  %v4097_v55 = vld [vmem:[%s8116_s22 + $0x988] sm:$0xff] }
 0x301   : > { %5512 = vmatpush1.msra.mxu1 %v4128_v56  ;;  %5442 = vmatprep.subr.mxu0 %v4063_v57  ;;  %v4161_v56 = vld [vmem:[%s8116_s22 + $0xb88] sm:$0xff]  ;;  %v4096_v57 = vld [vmem:[%s8116_s22 + $0x980] sm:$0xff] }
 0x302   : > { %5513 = vmatprep.subr.mxu1 %v4127_v58  ;;  %5443 = vmatpush1.msra.mxu0 %v4062_v59  ;;  %v4160_v58 = vld [vmem:[%s8116_s22 + $0xb80] sm:$0xff]  ;;  %v4095_v59 = vld [vmem:[%s8116_s22 + $0x978] sm:$0xff] }
 0x303   : > { %5514 = vmatpush1.msra.mxu1 %v4126_v60  ;;  %5444 = vmatprep.subr.mxu0 %v4061_v61  ;;  %v4159_v60 = vld [vmem:[%s8116_s22 + $0xb78] sm:$0xff]  ;;  %v4094_v61 = vld [vmem:[%s8116_s22 + $0x970] sm:$0xff] }
 0x304   : > { %5515 = vmatprep.subr.mxu1 %v4125_v62  ;;  %5445 = vmatpush1.msra.mxu0 %v4060_v63  ;;  %v4158_v62 = vld [vmem:[%s8116_s22 + $0xb70] sm:$0xff]  ;;  %v4093_v63 = vld [vmem:[%s8116_s22 + $0x968] sm:$0xff] }
 0x305   : > { %5516 = vmatpush1.msra.mxu1 %v4124_v0  ;;  %5446 = vmatprep.subr.mxu0 %v4059_v1  ;;  %v4157_v0 = vld [vmem:[%s8116_s22 + $0xb68] sm:$0xff]  ;;  %v4092_v1 = vld [vmem:[%s8116_s22 + $0x960] sm:$0xff] }
 0x306   : > { %5517 = vmatprep.subr.mxu1 %v4123_v2  ;;  %5447 = vmatpush1.msra.mxu0 %v4058_v3  ;;  %v4156_v2 = vld [vmem:[%s8116_s22 + $0xb60] sm:$0xff]  ;;  %v4091_v3 = vld [vmem:[%s8116_s22 + $0x958] sm:$0xff] }
 0x307   : > { %5518 = vmatpush1.msra.mxu1 %v4122_v4  ;;  %5448 = vmatprep.subr.mxu0 %v4057_v5  ;;  %v4155_v4 = vld [vmem:[%s8116_s22 + $0xb58] sm:$0xff]  ;;  %v4090_v5 = vld [vmem:[%s8116_s22 + $0x950] sm:$0xff] }
 0x308   : > { %5519 = vmatprep.subr.mxu1 %v4121_v6  ;;  %5449 = vmatpush1.msra.mxu0 %v4056_v7  ;;  %v4154_v6 = vld [vmem:[%s8116_s22 + $0xb50] sm:$0xff] }
 0x309   : > { %5520 = vmatpush1.msra.mxu1 %v4120_v8  ;;  %5450 = vmatprep.subr.mxu0 %v4055_v9  ;;  %v3785_v7 = vld [vmem:[%s8104_s7 + $0x10] sm:$0xff] }
 0x30a   : > { %5521 = vmatprep.subr.mxu1 %v4119_v10  ;;  %5451 = vmatpush1.msra.mxu0 %v4054_v11  ;;  %v4089_v8 = vld [vmem:[%s8116_s22 + $0x948] sm:$0xff]  ;;  %v4088_v10 = vld [vmem:[%s8116_s22 + $0x940] sm:$0xff] }
 0x30b   : > { %5522 = vmatpush1.msra.mxu1 %v4118_v12  ;;  %5452 = vmatprep.subr.mxu0 %v4053_v13  ;;  %v4153_v9 = vld [vmem:[%s8116_s22 + $0xb48] sm:$0xff]  ;;  %v4152_v11 = vld [vmem:[%s8116_s22 + $0xb40] sm:$0xff]  ;;  %v4087_v12 = vld [vmem:[%s8116_s22 + $0x938] sm:$0xff] }
 0x30c   : > { %5523 = vmatprep.subr.mxu1 %v4117_v14  ;;  %5453 = vmatpush1.msra.mxu0 %v4052_v15  ;;  %v4151_v13 = vld [vmem:[%s8116_s22 + $0xb38] sm:$0xff]  ;;  %v4987_v14 = vcombine.high %v3785_v7, %v3785_v7  ;;  %v4086_v15 = vld [vmem:[%s8116_s22 + $0x930] sm:$0xff] }
 0x30d   : > { %5524 = vmatpush1.msra.mxu1 %v4116_v16  ;;  %5454 = vmatprep.subr.mxu0 %v4051_v17  ;;  %v4150_v16 = vld [vmem:[%s8116_s22 + $0xb30] sm:$0xff]  ;;  %v4085_v17 = vld [vmem:[%s8116_s22 + $0x928] sm:$0xff] }
 0x30e   : > { %5525 = vmatprep.subr.mxu1 %v4115_v18  ;;  %5455 = vmatpush1.msra.mxu0 %v4050_v19  ;;  %v4149_v18 = vld [vmem:[%s8116_s22 + $0xb28] sm:$0xff]  ;;  %v4994_v19 = vrot.slane %v3785_v7, %v8233_v53 }
 0x30f   : > { %5526 = vmatpush1.msra.mxu1 %v4114_v20  ;;  %5456 = vmatprep.subr.mxu0 %v4049_v21  ;;  %v4084_v20 = vld [vmem:[%s8116_s22 + $0x920] sm:$0xff]  ;;  %v4189_v7 = vld [vmem:[%s8116_s22 + $0xc68] sm:$0xff] }
 0x310   : > { %5527 = vmatprep.subr.mxu1 %v4113_v22  ;;  %5457 = vmatpush1.msra.mxu0 %v4048_v23  ;;  %v4148_v21 = vld [vmem:[%s8116_s22 + $0xb20] sm:$0xff]  ;;  %v4083_v22 = vld [vmem:[%s8116_s22 + $0x918] sm:$0xff] }
 0x311   : > { %5528 = vmatpush1.msra.mxu1 %v4112_v24  ;;  %5458 = vmatprep.subr.mxu0 %v4111_v25  ;;  %v4147_v23 = vld [vmem:[%s8116_s22 + $0xb18] sm:$0xff]  ;;  %v5001_v24 = vrot.slane %v4987_v14, %v8233_v53  ;;  %v4082_v25 = vld [vmem:[%s8116_s22 + $0x910] sm:$0xff] }
 0x312   : > { %5529 = vmatprep.subr.mxu1 %v4175_v26  ;;  %5459 = vmatpush2.msra.mxu0 %v4110_v27  ;;  %v4146_v26 = vld [vmem:[%s8116_s22 + $0xb10] sm:$0xff]  ;;  %v4081_v27 = vld [vmem:[%s8116_s22 + $0x908] sm:$0xff] }
 0x313   : > { %5530 = vmatpush2.msra.mxu1 %v4174_v28  ;;  %5460 = vmatprep.subr.mxu0 %v4109_v29  ;;  %v4145_v28 = vld [vmem:[%s8116_s22 + $0xb08] sm:$0xff]  ;;  %v5002_v29 = vcombine.high %v4994_v19, %v4994_v19  ;;  %v4250_v14 = vld [vmem:[%s8116_s22 + $0xe50] sm:$0xff] }
 0x314   : > { %5531 = vmatprep.subr.mxu1 %v4173_v30  ;;  %5461 = vmatpush2.msra.mxu0 %v4108_v31  ;;  %v4080_v30 = vld [vmem:[%s8116_s22 + $0x900] sm:$0xff] }
 0x315   : > { %5532 = vmatpush2.msra.mxu1 %v4172_v32  ;;  %5462 = vmatprep.subr.mxu0 %v4107_v33  ;;  %v4144_v31 = vld [vmem:[%s8116_s22 + $0xb00] sm:$0xff]  ;;  %v5003_v32 = vcombine.high %v5001_v24, %v5001_v24  ;;  %v4207_v33 = vld [vmem:[%s8116_s22 + $0xcf8] sm:$0xff] }
 0x316   : > { %5533 = vmatprep.subr.mxu1 %v4171_v34  ;;  %5463 = vmatpush2.msra.mxu0 %v4106_v35  ;;  %v4271_v34 = vld [vmem:[%s8116_s22 + $0xef8] sm:$0xff]  ;;  %v4206_v35 = vld [vmem:[%s8116_s22 + $0xcf0] sm:$0xff] }
 0x317   : > { %5534 = vmatpush2.msra.mxu1 %v4170_v36  ;;  %5464 = vmatprep.subr.mxu0 %v4105_v37  ;;  %v4270_v36 = vld [vmem:[%s8116_s22 + $0xef0] sm:$0xff]  ;;  %v4205_v37 = vld [vmem:[%s8116_s22 + $0xce8] sm:$0xff] }
 0x318   : > { %5535 = vmatprep.subr.mxu1 %v4169_v38  ;;  %5465 = vmatpush2.msra.mxu0 %v4104_v39  ;;  %v4269_v38 = vld [vmem:[%s8116_s22 + $0xee8] sm:$0xff]  ;;  %v4204_v39 = vld [vmem:[%s8116_s22 + $0xce0] sm:$0xff] }
 0x319   : > { %5536 = vmatpush2.msra.mxu1 %v4168_v40  ;;  %5466 = vmatprep.subr.mxu0 %v4103_v41  ;;  %v4268_v40 = vld [vmem:[%s8116_s22 + $0xee0] sm:$0xff]  ;;  %v4203_v41 = vld [vmem:[%s8116_s22 + $0xcd8] sm:$0xff] }
 0x31a   : > { %5537 = vmatprep.subr.mxu1 %v4167_v42  ;;  %5467 = vmatpush2.msra.mxu0 %v4102_v44  ;;  %v4267_v42 = vld [vmem:[%s8116_s22 + $0xed8] sm:$0xff]  ;;  %v4202_v44 = vld [vmem:[%s8116_s22 + $0xcd0] sm:$0xff] }
 0x31b   : > { %5538 = vmatpush2.msra.mxu1 %v4166_v45  ;;  %5468 = vmatprep.subr.mxu0 %v4101_v46  ;;  %v4266_v45 = vld [vmem:[%s8116_s22 + $0xed0] sm:$0xff]  ;;  %v4201_v46 = vld [vmem:[%s8116_s22 + $0xcc8] sm:$0xff] }
 0x31c   : > { %5539 = vmatprep.subr.mxu1 %v4165_v47  ;;  %5469 = vmatpush2.msra.mxu0 %v4100_v48  ;;  %v4265_v47 = vld [vmem:[%s8116_s22 + $0xec8] sm:$0xff]  ;;  %v4200_v48 = vld [vmem:[%s8116_s22 + $0xcc0] sm:$0xff] }
 0x31d   : > { %5540 = vmatpush2.msra.mxu1 %v4164_v49  ;;  %5470 = vmatprep.subr.mxu0 %v4099_v50  ;;  %v4264_v49 = vld [vmem:[%s8116_s22 + $0xec0] sm:$0xff]  ;;  %v4199_v50 = vld [vmem:[%s8116_s22 + $0xcb8] sm:$0xff] }
 0x31e   : > { %5541 = vmatprep.subr.mxu1 %v4163_v51  ;;  %5471 = vmatpush2.msra.mxu0 %v4098_v52  ;;  %v4263_v51 = vld [vmem:[%s8116_s22 + $0xeb8] sm:$0xff]  ;;  %v4198_v52 = vld [vmem:[%s8116_s22 + $0xcb0] sm:$0xff] }
 0x31f   : > { %5542 = vmatpush2.msra.mxu1 %v4162_v54  ;;  %5472 = vmatprep.subr.mxu0 %v4097_v55  ;;  %v4262_v54 = vld [vmem:[%s8116_s22 + $0xeb0] sm:$0xff]  ;;  %v4197_v55 = vld [vmem:[%s8116_s22 + $0xca8] sm:$0xff] }
 0x320   : > { %5543 = vmatprep.subr.mxu1 %v4161_v56  ;;  %5473 = vmatpush2.msra.mxu0 %v4096_v57  ;;  %v4261_v56 = vld [vmem:[%s8116_s22 + $0xea8] sm:$0xff]  ;;  %v4196_v57 = vld [vmem:[%s8116_s22 + $0xca0] sm:$0xff] }
 0x321   : > { %5544 = vmatpush2.msra.mxu1 %v4160_v58  ;;  %5474 = vmatprep.subr.mxu0 %v4095_v59  ;;  %v4260_v58 = vld [vmem:[%s8116_s22 + $0xea0] sm:$0xff]  ;;  %v4195_v59 = vld [vmem:[%s8116_s22 + $0xc98] sm:$0xff] }
 0x322   : > { %5545 = vmatprep.subr.mxu1 %v4159_v60  ;;  %5475 = vmatpush2.msra.mxu0 %v4094_v61  ;;  %v4259_v60 = vld [vmem:[%s8116_s22 + $0xe98] sm:$0xff]  ;;  %v4194_v61 = vld [vmem:[%s8116_s22 + $0xc90] sm:$0xff] }
 0x323   : > { %5546 = vmatpush2.msra.mxu1 %v4158_v62  ;;  %5476 = vmatprep.subr.mxu0 %v4093_v63  ;;  %v4258_v62 = vld [vmem:[%s8116_s22 + $0xe90] sm:$0xff]  ;;  %v4193_v63 = vld [vmem:[%s8116_s22 + $0xc88] sm:$0xff] }
 0x324   : > { %5547 = vmatprep.subr.mxu1 %v4157_v0  ;;  %5477 = vmatpush2.msra.mxu0 %v4092_v1  ;;  %v4257_v0 = vld [vmem:[%s8116_s22 + $0xe88] sm:$0xff]  ;;  %v4192_v1 = vld [vmem:[%s8116_s22 + $0xc80] sm:$0xff] }
 0x325   : > { %5548 = vmatpush2.msra.mxu1 %v4156_v2  ;;  %5478 = vmatprep.subr.mxu0 %v4091_v3  ;;  %v4256_v2 = vld [vmem:[%s8116_s22 + $0xe80] sm:$0xff]  ;;  %v4191_v3 = vld [vmem:[%s8116_s22 + $0xc78] sm:$0xff] }
 0x326   : > { %5549 = vmatprep.subr.mxu1 %v4155_v4  ;;  %5479 = vmatpush2.msra.mxu0 %v4090_v5  ;;  %v4255_v4 = vld [vmem:[%s8116_s22 + $0xe78] sm:$0xff]  ;;  %v4190_v5 = vld [vmem:[%s8116_s22 + $0xc70] sm:$0xff] }
 0x327   : > { %5550 = vmatpush2.msra.mxu1 %v4154_v6  ;;  %5480 = vmatprep.subr.mxu0 %v4089_v8  ;;  %v4254_v6 = vld [vmem:[%s8116_s22 + $0xe70] sm:$0xff]  ;;  %v4253_v8 = vld [vmem:[%s8116_s22 + $0xe68] sm:$0xff] }
 0x328   : > { %5551 = vmatprep.subr.mxu1 %v4153_v9  ;;  %5481 = vmatpush2.msra.mxu0 %v4088_v10  ;;  %v4188_v9 = vld [vmem:[%s8116_s22 + $0xc60] sm:$0xff] }
 0x329   : > { %5552 = vmatpush2.msra.mxu1 %v4152_v11  ;;  %5482 = vmatprep.subr.mxu0 %v4087_v12  ;;  %v4252_v10 = vld [vmem:[%s8116_s22 + $0xe60] sm:$0xff]  ;;  %v4187_v11 = vld [vmem:[%s8116_s22 + $0xc58] sm:$0xff] }
 0x32a   : > { %5553 = vmatprep.subr.mxu1 %v4151_v13  ;;  %5483 = vmatpush2.msra.mxu0 %v4086_v15  ;;  %v4251_v12 = vld [vmem:[%s8116_s22 + $0xe58] sm:$0xff]  ;;  %v4186_v13 = vld [vmem:[%s8116_s22 + $0xc50] sm:$0xff]  ;;  %v4185_v15 = vld [vmem:[%s8116_s22 + $0xc48] sm:$0xff] }
 0x32b   : > { %5554 = vmatpush2.msra.mxu1 %v4150_v16  ;;  %5484 = vmatprep.subr.mxu0 %v4085_v17  ;;  %v4249_v16 = vld [vmem:[%s8116_s22 + $0xe48] sm:$0xff]  ;;  %v4184_v17 = vld [vmem:[%s8116_s22 + $0xc40] sm:$0xff] }
 0x32c   : > { %5555 = vmatprep.subr.mxu1 %v4149_v18  ;;  %5485 = vmatpush2.msra.mxu0 %v4084_v20  ;;  %v4248_v18 = vld [vmem:[%s8116_s22 + $0xe40] sm:$0xff]  ;;  %v4247_v20 = vld [vmem:[%s8116_s22 + $0xe38] sm:$0xff] }
 0x32d   : > { %5556 = vmatpush2.msra.mxu1 %v4148_v21  ;;  %5486 = vmatprep.subr.mxu0 %v4083_v22  ;;  %v4182_v21 = vld [vmem:[%s8116_s22 + $0xc30] sm:$0xff] }
 0x32e   : > { %5557 = vmatprep.subr.mxu1 %v4147_v23  ;;  %5487 = vmatpush2.msra.mxu0 %v4082_v25  ;;  %v4246_v22 = vld [vmem:[%s8116_s22 + $0xe30] sm:$0xff]  ;;  %v4181_v23 = vld [vmem:[%s8116_s22 + $0xc28] sm:$0xff]  ;;  %v4180_v25 = vld [vmem:[%s8116_s22 + $0xc20] sm:$0xff] }
 0x32f   : > { %5558 = vmatpush2.msra.mxu1 %v4146_v26  ;;  %5488 = vmatprep.subr.mxu0 %v4081_v27  ;;  %v4244_v26 = vld [vmem:[%s8116_s22 + $0xe20] sm:$0xff]  ;;  %v4179_v27 = vld [vmem:[%s8116_s22 + $0xc18] sm:$0xff] }
 0x330   : > { %5559 = vmatprep.subr.mxu1 %v4145_v28  ;;  %5489 = vmatpush2.msra.mxu0 %v4080_v30  ;;  %v4243_v28 = vld [vmem:[%s8116_s22 + $0xe18] sm:$0xff]  ;;  %v4242_v30 = vld [vmem:[%s8116_s22 + $0xe10] sm:$0xff] }
 0x331   : > { %5490 = vmatprep.mubr.f32.mxu0 %v5002_v29  ;;  %5560 = vmatpush2.msra.mxu1 %v4144_v31  ;;  %v4178_v29 = vld [vmem:[%s8116_s22 + $0xc10] sm:$0xff]  ;;  %v4177_v31 = vld [vmem:[%s8116_s22 + $0xc08] sm:$0xff] }
 0x332   : > { %5491 = vmatmul.mubr.f32.vlgmr.msra.gmra.mxu0 %v4994_v19  ;;  %5561 = vmatprep.mubr.f32.mxu1 %v5003_v32  ;;  %v4183_v19 = vld [vmem:[%s8116_s22 + $0xc38] sm:$0xff]  ;;  %v4241_v32 = vld [vmem:[%s8116_s22 + $0xe08] sm:$0xff] }
 0x333   : > { %5568 = vmatprep.subr.mxu0 %v4207_v33  ;;  %5639 = vmatprep.subr.mxu1 %v4271_v34  ;;  %v4176_v33 = vld [vmem:[%s8116_s22 + $0xc00] sm:$0xff] }
 0x334   : > { %5562 = vmatmul.mubr.f32.vlgmr.msra.gmra.mxu1 %v5001_v24  ;;  %5569 = vmatpush1.msra.mxu0 %v4206_v35  ;;  %v4245_v24 = vld [vmem:[%s8116_s22 + $0xe28] sm:$0xff]  ;;  %v4240_v34 = vld [vmem:[%s8116_s22 + $0xe00] sm:$0xff]  ;;  %v4239_v35 = vld [vmem:[%s8116_s22 + $0xdf8] sm:$0xff] }
 0x335   : > { %5640 = vmatpush1.msra.mxu1 %v4270_v36  ;;  %5570 = vmatprep.subr.mxu0 %v4205_v37  ;;  %v4303_v36 = vld [vmem:[%s8116_s22 + $0xff8] sm:$0xff]  ;;  %v4238_v37 = vld [vmem:[%s8116_s22 + $0xdf0] sm:$0xff] }
 0x336   : > { %5641 = vmatprep.subr.mxu1 %v4269_v38  ;;  %5571 = vmatpush1.msra.mxu0 %v4204_v39  ;;  %v4302_v38 = vld [vmem:[%s8116_s22 + $0xff0] sm:$0xff]  ;;  %v4237_v39 = vld [vmem:[%s8116_s22 + $0xde8] sm:$0xff] }
 0x337   : > { %5642 = vmatpush1.msra.mxu1 %v4268_v40  ;;  %5572 = vmatprep.subr.mxu0 %v4203_v41  ;;  %v4301_v40 = vld [vmem:[%s8116_s22 + $0xfe8] sm:$0xff]  ;;  %v4236_v41 = vld [vmem:[%s8116_s22 + $0xde0] sm:$0xff] }
 0x338   : > { %5643 = vmatprep.subr.mxu1 %v4267_v42  ;;  %5573 = vmatpush1.msra.mxu0 %v4202_v44  ;;  %v4300_v42 = vld [vmem:[%s8116_s22 + $0xfe0] sm:$0xff]  ;;  %v4235_v44 = vld [vmem:[%s8116_s22 + $0xdd8] sm:$0xff] }
 0x339   : > { %5644 = vmatpush1.msra.mxu1 %v4266_v45  ;;  %5574 = vmatprep.subr.mxu0 %v4201_v46  ;;  %v4299_v45 = vld [vmem:[%s8116_s22 + $0xfd8] sm:$0xff]  ;;  %v4234_v46 = vld [vmem:[%s8116_s22 + $0xdd0] sm:$0xff] }
 0x33a   : > { %5645 = vmatprep.subr.mxu1 %v4265_v47  ;;  %5575 = vmatpush1.msra.mxu0 %v4200_v48  ;;  %v4298_v47 = vld [vmem:[%s8116_s22 + $0xfd0] sm:$0xff]  ;;  %v4233_v48 = vld [vmem:[%s8116_s22 + $0xdc8] sm:$0xff] }
 0x33b   : > { %5646 = vmatpush1.msra.mxu1 %v4264_v49  ;;  %5576 = vmatprep.subr.mxu0 %v4199_v50  ;;  %v4297_v49 = vld [vmem:[%s8116_s22 + $0xfc8] sm:$0xff]  ;;  %v4232_v50 = vld [vmem:[%s8116_s22 + $0xdc0] sm:$0xff] }
 0x33c   : > { %5647 = vmatprep.subr.mxu1 %v4263_v51  ;;  %5577 = vmatpush1.msra.mxu0 %v4198_v52  ;;  %v4296_v51 = vld [vmem:[%s8116_s22 + $0xfc0] sm:$0xff]  ;;  %v4231_v52 = vld [vmem:[%s8116_s22 + $0xdb8] sm:$0xff] }
 0x33d   : > { %5648 = vmatpush1.msra.mxu1 %v4262_v54  ;;  %5578 = vmatprep.subr.mxu0 %v4197_v55  ;;  %v4295_v54 = vld [vmem:[%s8116_s22 + $0xfb8] sm:$0xff]  ;;  %v4230_v55 = vld [vmem:[%s8116_s22 + $0xdb0] sm:$0xff] }
 0x33e   : > { %5649 = vmatprep.subr.mxu1 %v4261_v56  ;;  %5579 = vmatpush1.msra.mxu0 %v4196_v57  ;;  %v4294_v56 = vld [vmem:[%s8116_s22 + $0xfb0] sm:$0xff]  ;;  %v4229_v57 = vld [vmem:[%s8116_s22 + $0xda8] sm:$0xff] }
 0x33f   : > { %5650 = vmatpush1.msra.mxu1 %v4260_v58  ;;  %5580 = vmatprep.subr.mxu0 %v4195_v59  ;;  %v4293_v58 = vld [vmem:[%s8116_s22 + $0xfa8] sm:$0xff]  ;;  %v4228_v59 = vld [vmem:[%s8116_s22 + $0xda0] sm:$0xff] }
 0x340   : > { %5651 = vmatprep.subr.mxu1 %v4259_v60  ;;  %5581 = vmatpush1.msra.mxu0 %v4194_v61  ;;  %v4292_v60 = vld [vmem:[%s8116_s22 + $0xfa0] sm:$0xff]  ;;  %v4227_v61 = vld [vmem:[%s8116_s22 + $0xd98] sm:$0xff] }
 0x341   : > { %5652 = vmatpush1.msra.mxu1 %v4258_v62  ;;  %5582 = vmatprep.subr.mxu0 %v4193_v63  ;;  %v4291_v62 = vld [vmem:[%s8116_s22 + $0xf98] sm:$0xff]  ;;  %v4226_v63 = vld [vmem:[%s8116_s22 + $0xd90] sm:$0xff] }
 0x342   : > { %5653 = vmatprep.subr.mxu1 %v4257_v0  ;;  %5583 = vmatpush1.msra.mxu0 %v4192_v1  ;;  %v4290_v0 = vld [vmem:[%s8116_s22 + $0xf90] sm:$0xff]  ;;  %v4225_v1 = vld [vmem:[%s8116_s22 + $0xd88] sm:$0xff] }
 0x343   : > { %5654 = vmatpush1.msra.mxu1 %v4256_v2  ;;  %5584 = vmatprep.subr.mxu0 %v4191_v3  ;;  %v4289_v2 = vld [vmem:[%s8116_s22 + $0xf88] sm:$0xff]  ;;  %v4224_v3 = vld [vmem:[%s8116_s22 + $0xd80] sm:$0xff] }
 0x344   : > { %5655 = vmatprep.subr.mxu1 %v4255_v4  ;;  %5585 = vmatpush1.msra.mxu0 %v4190_v5  ;;  %v4288_v4 = vld [vmem:[%s8116_s22 + $0xf80] sm:$0xff]  ;;  %v4223_v5 = vld [vmem:[%s8116_s22 + $0xd78] sm:$0xff] }
 0x345   : > { %5656 = vmatpush1.msra.mxu1 %v4254_v6  ;;  %5586 = vmatprep.subr.mxu0 %v4189_v7  ;;  %v4287_v6 = vld [vmem:[%s8116_s22 + $0xf78] sm:$0xff]  ;;  %v4222_v7 = vld [vmem:[%s8116_s22 + $0xd70] sm:$0xff] }
 0x346   : > { %5657 = vmatprep.subr.mxu1 %v4253_v8  ;;  %5587 = vmatpush1.msra.mxu0 %v4188_v9  ;;  %v4286_v8 = vld [vmem:[%s8116_s22 + $0xf70] sm:$0xff]  ;;  %v4221_v9 = vld [vmem:[%s8116_s22 + $0xd68] sm:$0xff] }
 0x347   : > { %5658 = vmatpush1.msra.mxu1 %v4252_v10  ;;  %5588 = vmatprep.subr.mxu0 %v4187_v11  ;;  %v4285_v10 = vld [vmem:[%s8116_s22 + $0xf68] sm:$0xff]  ;;  %v4220_v11 = vld [vmem:[%s8116_s22 + $0xd60] sm:$0xff] }
 0x348   : > { %5659 = vmatprep.subr.mxu1 %v4251_v12  ;;  %5589 = vmatpush1.msra.mxu0 %v4186_v13  ;;  %v4284_v12 = vld [vmem:[%s8116_s22 + $0xf60] sm:$0xff]  ;;  %v4219_v13 = vld [vmem:[%s8116_s22 + $0xd58] sm:$0xff] }
 0x349   : > { %5660 = vmatpush1.msra.mxu1 %v4250_v14  ;;  %5590 = vmatprep.subr.mxu0 %v4185_v15  ;;  %v4283_v14 = vld [vmem:[%s8116_s22 + $0xf58] sm:$0xff]  ;;  %v4218_v15 = vld [vmem:[%s8116_s22 + $0xd50] sm:$0xff] }
 0x34a   : > { %5661 = vmatprep.subr.mxu1 %v4249_v16  ;;  %5591 = vmatpush1.msra.mxu0 %v4184_v17  ;;  %v4282_v16 = vld [vmem:[%s8116_s22 + $0xf50] sm:$0xff] }
 0x34b   : > { %5662 = vmatpush1.msra.mxu1 %v4248_v18  ;;  %5592 = vmatprep.subr.mxu0 %v4183_v19  ;;  %v3786_v17 = vld [vmem:[%s8104_s7 + $0x18] sm:$0xff]  ;;  %v4217_v18 = vld [vmem:[%s8116_s22 + $0xd48] sm:$0xff] }
 0x34c   : > { %5663 = vmatprep.subr.mxu1 %v4247_v20  ;;  %5593 = vmatpush1.msra.mxu0 %v4182_v21  ;;  %v4281_v19 = vld [vmem:[%s8116_s22 + $0xf48] sm:$0xff]  ;;  %v4216_v20 = vld [vmem:[%s8116_s22 + $0xd40] sm:$0xff] }
 0x34d   : > { %5664 = vmatpush1.msra.mxu1 %v4246_v22  ;;  %5594 = vmatprep.subr.mxu0 %v4181_v23  ;;  %v4280_v21 = vld [vmem:[%s8116_s22 + $0xf40] sm:$0xff]  ;;  %v4215_v22 = vld [vmem:[%s8116_s22 + $0xd38] sm:$0xff] }
 0x34e   : > { %5665 = vmatprep.subr.mxu1 %v4245_v24  ;;  %5595 = vmatpush1.msra.mxu0 %v4180_v25  ;;  %v4279_v23 = vld [vmem:[%s8116_s22 + $0xf38] sm:$0xff]  ;;  %v5004_v24 = vcombine.high %v3786_v17, %v3786_v17  ;;  %v4214_v25 = vld [vmem:[%s8116_s22 + $0xd30] sm:$0xff] }
 0x34f   : > { %5666 = vmatpush1.msra.mxu1 %v4244_v26  ;;  %5596 = vmatprep.subr.mxu0 %v4179_v27  ;;  %v4278_v26 = vld [vmem:[%s8116_s22 + $0xf30] sm:$0xff]  ;;  %v4213_v27 = vld [vmem:[%s8116_s22 + $0xd28] sm:$0xff] }
 0x350   : > { %5667 = vmatprep.subr.mxu1 %v4243_v28  ;;  %5597 = vmatpush1.msra.mxu0 %v4178_v29  ;;  %v4277_v28 = vld [vmem:[%s8116_s22 + $0xf28] sm:$0xff]  ;;  %v5011_v29 = vrot.slane %v3786_v17, %v8233_v53 }
 0x351   : > { %5668 = vmatpush1.msra.mxu1 %v4242_v30  ;;  %5598 = vmatprep.subr.mxu0 %v4177_v31  ;;  %v4212_v30 = vld [vmem:[%s8116_s22 + $0xd20] sm:$0xff]  ;;  %v4317_v17 = vld [vmem:[%s8116_s22 + $0x1068] sm:$0xff] }
 0x352   : > { %5669 = vmatprep.subr.mxu1 %v4241_v32  ;;  %5599 = vmatpush1.msra.mxu0 %v4176_v33  ;;  %v4276_v31 = vld [vmem:[%s8116_s22 + $0xf20] sm:$0xff]  ;;  %v4211_v32 = vld [vmem:[%s8116_s22 + $0xd18] sm:$0xff] }
 0x353   : > { %5670 = vmatpush1.msra.mxu1 %v4240_v34  ;;  %5600 = vmatprep.subr.mxu0 %v4239_v35  ;;  %v4275_v33 = vld [vmem:[%s8116_s22 + $0xf18] sm:$0xff]  ;;  %v5018_v34 = vrot.slane %v5004_v24, %v8233_v53  ;;  %v4210_v35 = vld [vmem:[%s8116_s22 + $0xd10] sm:$0xff] }
 0x354   : > { %5671 = vmatprep.subr.mxu1 %v4303_v36  ;;  %5601 = vmatpush2.msra.mxu0 %v4238_v37  ;;  %v4274_v36 = vld [vmem:[%s8116_s22 + $0xf10] sm:$0xff]  ;;  %v4209_v37 = vld [vmem:[%s8116_s22 + $0xd08] sm:$0xff] }
 0x355   : > { %5672 = vmatpush2.msra.mxu1 %v4302_v38  ;;  %5602 = vmatprep.subr.mxu0 %v4237_v39  ;;  %v4273_v38 = vld [vmem:[%s8116_s22 + $0xf08] sm:$0xff]  ;;  %v5019_v39 = vcombine.high %v5011_v29, %v5011_v29  ;;  %v4378_v24 = vld [vmem:[%s8116_s22 + $0x1250] sm:$0xff] }
 0x356   : > { %5673 = vmatprep.subr.mxu1 %v4301_v40  ;;  %5603 = vmatpush2.msra.mxu0 %v4236_v41  ;;  %v4208_v40 = vld [vmem:[%s8116_s22 + $0xd00] sm:$0xff] }
 0x357   : > { %5674 = vmatpush2.msra.mxu1 %v4300_v42  ;;  %5604 = vmatprep.subr.mxu0 %v4235_v44  ;;  %v4272_v41 = vld [vmem:[%s8116_s22 + $0xf00] sm:$0xff]  ;;  %v5020_v42 = vcombine.high %v5018_v34, %v5018_v34  ;;  %v4335_v44 = vld [vmem:[%s8116_s22 + $0x10f8] sm:$0xff] }
 0x358   : > { %5675 = vmatprep.subr.mxu1 %v4299_v45  ;;  %5605 = vmatpush2.msra.mxu0 %v4234_v46  ;;  %v4399_v45 = vld [vmem:[%s8116_s22 + $0x12f8] sm:$0xff]  ;;  %v4334_v46 = vld [vmem:[%s8116_s22 + $0x10f0] sm:$0xff] }
 0x359   : > { %5676 = vmatpush2.msra.mxu1 %v4298_v47  ;;  %5606 = vmatprep.subr.mxu0 %v4233_v48  ;;  %v4398_v47 = vld [vmem:[%s8116_s22 + $0x12f0] sm:$0xff]  ;;  %v4333_v48 = vld [vmem:[%s8116_s22 + $0x10e8] sm:$0xff] }
 0x35a   : > { %5677 = vmatprep.subr.mxu1 %v4297_v49  ;;  %5607 = vmatpush2.msra.mxu0 %v4232_v50  ;;  %v4397_v49 = vld [vmem:[%s8116_s22 + $0x12e8] sm:$0xff]  ;;  %v4332_v50 = vld [vmem:[%s8116_s22 + $0x10e0] sm:$0xff] }
 0x35b   : > { %5678 = vmatpush2.msra.mxu1 %v4296_v51  ;;  %5608 = vmatprep.subr.mxu0 %v4231_v52  ;;  %v4396_v51 = vld [vmem:[%s8116_s22 + $0x12e0] sm:$0xff]  ;;  %v4331_v52 = vld [vmem:[%s8116_s22 + $0x10d8] sm:$0xff] }
 0x35c   : > { %5679 = vmatprep.subr.mxu1 %v4295_v54  ;;  %5609 = vmatpush2.msra.mxu0 %v4230_v55  ;;  %v4395_v54 = vld [vmem:[%s8116_s22 + $0x12d8] sm:$0xff]  ;;  %v4330_v55 = vld [vmem:[%s8116_s22 + $0x10d0] sm:$0xff] }
 0x35d   : > { %5680 = vmatpush2.msra.mxu1 %v4294_v56  ;;  %5610 = vmatprep.subr.mxu0 %v4229_v57  ;;  %v4394_v56 = vld [vmem:[%s8116_s22 + $0x12d0] sm:$0xff]  ;;  %v4329_v57 = vld [vmem:[%s8116_s22 + $0x10c8] sm:$0xff] }
 0x35e   : > { %5681 = vmatprep.subr.mxu1 %v4293_v58  ;;  %5611 = vmatpush2.msra.mxu0 %v4228_v59  ;;  %v4393_v58 = vld [vmem:[%s8116_s22 + $0x12c8] sm:$0xff]  ;;  %v4328_v59 = vld [vmem:[%s8116_s22 + $0x10c0] sm:$0xff] }
 0x35f   : > { %5682 = vmatpush2.msra.mxu1 %v4292_v60  ;;  %5612 = vmatprep.subr.mxu0 %v4227_v61  ;;  %v4392_v60 = vld [vmem:[%s8116_s22 + $0x12c0] sm:$0xff]  ;;  %v4327_v61 = vld [vmem:[%s8116_s22 + $0x10b8] sm:$0xff] }
 0x360   : > { %5683 = vmatprep.subr.mxu1 %v4291_v62  ;;  %5613 = vmatpush2.msra.mxu0 %v4226_v63  ;;  %v4391_v62 = vld [vmem:[%s8116_s22 + $0x12b8] sm:$0xff]  ;;  %v4326_v63 = vld [vmem:[%s8116_s22 + $0x10b0] sm:$0xff] }
 0x361   : > { %5684 = vmatpush2.msra.mxu1 %v4290_v0  ;;  %5614 = vmatprep.subr.mxu0 %v4225_v1  ;;  %v4390_v0 = vld [vmem:[%s8116_s22 + $0x12b0] sm:$0xff]  ;;  %v4325_v1 = vld [vmem:[%s8116_s22 + $0x10a8] sm:$0xff] }
 0x362   : > { %5685 = vmatprep.subr.mxu1 %v4289_v2  ;;  %5615 = vmatpush2.msra.mxu0 %v4224_v3  ;;  %v4389_v2 = vld [vmem:[%s8116_s22 + $0x12a8] sm:$0xff]  ;;  %v4324_v3 = vld [vmem:[%s8116_s22 + $0x10a0] sm:$0xff] }
 0x363   : > { %5686 = vmatpush2.msra.mxu1 %v4288_v4  ;;  %5616 = vmatprep.subr.mxu0 %v4223_v5  ;;  %v4388_v4 = vld [vmem:[%s8116_s22 + $0x12a0] sm:$0xff]  ;;  %v4323_v5 = vld [vmem:[%s8116_s22 + $0x1098] sm:$0xff] }
 0x364   : > { %5687 = vmatprep.subr.mxu1 %v4287_v6  ;;  %5617 = vmatpush2.msra.mxu0 %v4222_v7  ;;  %v4387_v6 = vld [vmem:[%s8116_s22 + $0x1298] sm:$0xff]  ;;  %v4322_v7 = vld [vmem:[%s8116_s22 + $0x1090] sm:$0xff] }
 0x365   : > { %5688 = vmatpush2.msra.mxu1 %v4286_v8  ;;  %5618 = vmatprep.subr.mxu0 %v4221_v9  ;;  %v4386_v8 = vld [vmem:[%s8116_s22 + $0x1290] sm:$0xff]  ;;  %v4321_v9 = vld [vmem:[%s8116_s22 + $0x1088] sm:$0xff] }
 0x366   : > { %5689 = vmatprep.subr.mxu1 %v4285_v10  ;;  %5619 = vmatpush2.msra.mxu0 %v4220_v11  ;;  %v4385_v10 = vld [vmem:[%s8116_s22 + $0x1288] sm:$0xff]  ;;  %v4320_v11 = vld [vmem:[%s8116_s22 + $0x1080] sm:$0xff] }
 0x367   : > { %5690 = vmatpush2.msra.mxu1 %v4284_v12  ;;  %5620 = vmatprep.subr.mxu0 %v4219_v13  ;;  %v4384_v12 = vld [vmem:[%s8116_s22 + $0x1280] sm:$0xff]  ;;  %v4319_v13 = vld [vmem:[%s8116_s22 + $0x1078] sm:$0xff] }
 0x368   : > { %5691 = vmatprep.subr.mxu1 %v4283_v14  ;;  %5621 = vmatpush2.msra.mxu0 %v4218_v15  ;;  %v4383_v14 = vld [vmem:[%s8116_s22 + $0x1278] sm:$0xff]  ;;  %v4318_v15 = vld [vmem:[%s8116_s22 + $0x1070] sm:$0xff] }
 0x369   : > { %5692 = vmatpush2.msra.mxu1 %v4282_v16  ;;  %5622 = vmatprep.subr.mxu0 %v4217_v18  ;;  %v4382_v16 = vld [vmem:[%s8116_s22 + $0x1270] sm:$0xff]  ;;  %v4381_v18 = vld [vmem:[%s8116_s22 + $0x1268] sm:$0xff] }
 0x36a   : > { %5693 = vmatprep.subr.mxu1 %v4281_v19  ;;  %5623 = vmatpush2.msra.mxu0 %v4216_v20  ;;  %v4316_v19 = vld [vmem:[%s8116_s22 + $0x1060] sm:$0xff] }
 0x36b   : > { %5694 = vmatpush2.msra.mxu1 %v4280_v21  ;;  %5624 = vmatprep.subr.mxu0 %v4215_v22  ;;  %v4380_v20 = vld [vmem:[%s8116_s22 + $0x1260] sm:$0xff]  ;;  %v4315_v21 = vld [vmem:[%s8116_s22 + $0x1058] sm:$0xff] }
 0x36c   : > { %5695 = vmatprep.subr.mxu1 %v4279_v23  ;;  %5625 = vmatpush2.msra.mxu0 %v4214_v25  ;;  %v4379_v22 = vld [vmem:[%s8116_s22 + $0x1258] sm:$0xff]  ;;  %v4314_v23 = vld [vmem:[%s8116_s22 + $0x1050] sm:$0xff]  ;;  %v4313_v25 = vld [vmem:[%s8116_s22 + $0x1048] sm:$0xff] }
 0x36d   : > { %5696 = vmatpush2.msra.mxu1 %v4278_v26  ;;  %5626 = vmatprep.subr.mxu0 %v4213_v27  ;;  %v4377_v26 = vld [vmem:[%s8116_s22 + $0x1248] sm:$0xff]  ;;  %v4312_v27 = vld [vmem:[%s8116_s22 + $0x1040] sm:$0xff] }
 0x36e   : > { %5697 = vmatprep.subr.mxu1 %v4277_v28  ;;  %5627 = vmatpush2.msra.mxu0 %v4212_v30  ;;  %v4376_v28 = vld [vmem:[%s8116_s22 + $0x1240] sm:$0xff]  ;;  %v4375_v30 = vld [vmem:[%s8116_s22 + $0x1238] sm:$0xff] }
 0x36f   : > { %5698 = vmatpush2.msra.mxu1 %v4276_v31  ;;  %5628 = vmatprep.subr.mxu0 %v4211_v32  ;;  %v4310_v31 = vld [vmem:[%s8116_s22 + $0x1030] sm:$0xff] }
 0x370   : > { %5699 = vmatprep.subr.mxu1 %v4275_v33  ;;  %5629 = vmatpush2.msra.mxu0 %v4210_v35  ;;  %v4374_v32 = vld [vmem:[%s8116_s22 + $0x1230] sm:$0xff]  ;;  %v4309_v33 = vld [vmem:[%s8116_s22 + $0x1028] sm:$0xff]  ;;  %v4308_v35 = vld [vmem:[%s8116_s22 + $0x1020] sm:$0xff] }
 0x371   : > { %5700 = vmatpush2.msra.mxu1 %v4274_v36  ;;  %5630 = vmatprep.subr.mxu0 %v4209_v37  ;;  %v4372_v36 = vld [vmem:[%s8116_s22 + $0x1220] sm:$0xff]  ;;  %v4307_v37 = vld [vmem:[%s8116_s22 + $0x1018] sm:$0xff] }
 0x372   : > { %5701 = vmatprep.subr.mxu1 %v4273_v38  ;;  %5631 = vmatpush2.msra.mxu0 %v4208_v40  ;;  %v4371_v38 = vld [vmem:[%s8116_s22 + $0x1218] sm:$0xff]  ;;  %v4370_v40 = vld [vmem:[%s8116_s22 + $0x1210] sm:$0xff] }
 0x373   : > { %5632 = vmatprep.mubr.f32.mxu0 %v5019_v39  ;;  %5702 = vmatpush2.msra.mxu1 %v4272_v41  ;;  %v4306_v39 = vld [vmem:[%s8116_s22 + $0x1010] sm:$0xff]  ;;  %v4305_v41 = vld [vmem:[%s8116_s22 + $0x1008] sm:$0xff] }
 0x374   : > { %5633 = vmatmul.mubr.f32.vlgmr.msra.gmra.mxu0 %v5011_v29  ;;  %5703 = vmatprep.mubr.f32.mxu1 %v5020_v42  ;;  %v4311_v29 = vld [vmem:[%s8116_s22 + $0x1038] sm:$0xff]  ;;  %v4369_v42 = vld [vmem:[%s8116_s22 + $0x1208] sm:$0xff] }
 0x375   : > { %5710 = vmatprep.subr.mxu0 %v4335_v44  ;;  %5781 = vmatprep.subr.mxu1 %v4399_v45  ;;  %v4304_v44 = vld [vmem:[%s8116_s22 + $0x1000] sm:$0xff] }
 0x376   : > { %5704 = vmatmul.mubr.f32.vlgmr.msra.gmra.mxu1 %v5018_v34  ;;  %5711 = vmatpush1.msra.mxu0 %v4334_v46  ;;  %v4373_v34 = vld [vmem:[%s8116_s22 + $0x1228] sm:$0xff]  ;;  %v4368_v45 = vld [vmem:[%s8116_s22 + $0x1200] sm:$0xff]  ;;  %v4367_v46 = vld [vmem:[%s8116_s22 + $0x11f8] sm:$0xff] }
 0x377   : > { %5782 = vmatpush1.msra.mxu1 %v4398_v47  ;;  %5712 = vmatprep.subr.mxu0 %v4333_v48  ;;  %v4431_v47 = vld [vmem:[%s8116_s22 + $0x13f8] sm:$0xff]  ;;  %v4366_v48 = vld [vmem:[%s8116_s22 + $0x11f0] sm:$0xff] }
 0x378   : > { %5783 = vmatprep.subr.mxu1 %v4397_v49  ;;  %5713 = vmatpush1.msra.mxu0 %v4332_v50  ;;  %v4430_v49 = vld [vmem:[%s8116_s22 + $0x13f0] sm:$0xff]  ;;  %v4365_v50 = vld [vmem:[%s8116_s22 + $0x11e8] sm:$0xff] }
 0x379   : > { %5784 = vmatpush1.msra.mxu1 %v4396_v51  ;;  %5714 = vmatprep.subr.mxu0 %v4331_v52  ;;  %v4429_v51 = vld [vmem:[%s8116_s22 + $0x13e8] sm:$0xff]  ;;  %v4364_v52 = vld [vmem:[%s8116_s22 + $0x11e0] sm:$0xff] }
 0x37a   : > { %5785 = vmatprep.subr.mxu1 %v4395_v54  ;;  %5715 = vmatpush1.msra.mxu0 %v4330_v55  ;;  %v4428_v54 = vld [vmem:[%s8116_s22 + $0x13e0] sm:$0xff]  ;;  %v4363_v55 = vld [vmem:[%s8116_s22 + $0x11d8] sm:$0xff] }
 0x37b   : > { %5786 = vmatpush1.msra.mxu1 %v4394_v56  ;;  %5716 = vmatprep.subr.mxu0 %v4329_v57  ;;  %v4427_v56 = vld [vmem:[%s8116_s22 + $0x13d8] sm:$0xff]  ;;  %v4362_v57 = vld [vmem:[%s8116_s22 + $0x11d0] sm:$0xff] }
 0x37c   : > { %5787 = vmatprep.subr.mxu1 %v4393_v58  ;;  %5717 = vmatpush1.msra.mxu0 %v4328_v59  ;;  %v4426_v58 = vld [vmem:[%s8116_s22 + $0x13d0] sm:$0xff]  ;;  %v4361_v59 = vld [vmem:[%s8116_s22 + $0x11c8] sm:$0xff] }
 0x37d   : > { %5788 = vmatpush1.msra.mxu1 %v4392_v60  ;;  %5718 = vmatprep.subr.mxu0 %v4327_v61  ;;  %v4425_v60 = vld [vmem:[%s8116_s22 + $0x13c8] sm:$0xff]  ;;  %v4360_v61 = vld [vmem:[%s8116_s22 + $0x11c0] sm:$0xff] }
 0x37e   : > { %5789 = vmatprep.subr.mxu1 %v4391_v62  ;;  %5719 = vmatpush1.msra.mxu0 %v4326_v63  ;;  %v4424_v62 = vld [vmem:[%s8116_s22 + $0x13c0] sm:$0xff]  ;;  %v4359_v63 = vld [vmem:[%s8116_s22 + $0x11b8] sm:$0xff] }
 0x37f   : > { %5790 = vmatpush1.msra.mxu1 %v4390_v0  ;;  %5720 = vmatprep.subr.mxu0 %v4325_v1  ;;  %v4423_v0 = vld [vmem:[%s8116_s22 + $0x13b8] sm:$0xff]  ;;  %v4358_v1 = vld [vmem:[%s8116_s22 + $0x11b0] sm:$0xff] }
 0x380   : > { %5791 = vmatprep.subr.mxu1 %v4389_v2  ;;  %5721 = vmatpush1.msra.mxu0 %v4324_v3  ;;  %v4422_v2 = vld [vmem:[%s8116_s22 + $0x13b0] sm:$0xff]  ;;  %v4357_v3 = vld [vmem:[%s8116_s22 + $0x11a8] sm:$0xff] }
 0x381   : > { %5792 = vmatpush1.msra.mxu1 %v4388_v4  ;;  %5722 = vmatprep.subr.mxu0 %v4323_v5  ;;  %v4421_v4 = vld [vmem:[%s8116_s22 + $0x13a8] sm:$0xff]  ;;  %v4356_v5 = vld [vmem:[%s8116_s22 + $0x11a0] sm:$0xff] }
 0x382   : > { %5793 = vmatprep.subr.mxu1 %v4387_v6  ;;  %5723 = vmatpush1.msra.mxu0 %v4322_v7  ;;  %v4420_v6 = vld [vmem:[%s8116_s22 + $0x13a0] sm:$0xff]  ;;  %v4355_v7 = vld [vmem:[%s8116_s22 + $0x1198] sm:$0xff] }
 0x383   : > { %5794 = vmatpush1.msra.mxu1 %v4386_v8  ;;  %5724 = vmatprep.subr.mxu0 %v4321_v9  ;;  %v4419_v8 = vld [vmem:[%s8116_s22 + $0x1398] sm:$0xff]  ;;  %v4354_v9 = vld [vmem:[%s8116_s22 + $0x1190] sm:$0xff] }
 0x384   : > { %5795 = vmatprep.subr.mxu1 %v4385_v10  ;;  %5725 = vmatpush1.msra.mxu0 %v4320_v11  ;;  %v4418_v10 = vld [vmem:[%s8116_s22 + $0x1390] sm:$0xff]  ;;  %v4353_v11 = vld [vmem:[%s8116_s22 + $0x1188] sm:$0xff] }
 0x385   : > { %5796 = vmatpush1.msra.mxu1 %v4384_v12  ;;  %5726 = vmatprep.subr.mxu0 %v4319_v13  ;;  %v4417_v12 = vld [vmem:[%s8116_s22 + $0x1388] sm:$0xff]  ;;  %v4352_v13 = vld [vmem:[%s8116_s22 + $0x1180] sm:$0xff] }
 0x386   : > { %5797 = vmatprep.subr.mxu1 %v4383_v14  ;;  %5727 = vmatpush1.msra.mxu0 %v4318_v15  ;;  %v4416_v14 = vld [vmem:[%s8116_s22 + $0x1380] sm:$0xff]  ;;  %v4351_v15 = vld [vmem:[%s8116_s22 + $0x1178] sm:$0xff] }
 0x387   : > { %5798 = vmatpush1.msra.mxu1 %v4382_v16  ;;  %5728 = vmatprep.subr.mxu0 %v4317_v17  ;;  %v4415_v16 = vld [vmem:[%s8116_s22 + $0x1378] sm:$0xff]  ;;  %v4350_v17 = vld [vmem:[%s8116_s22 + $0x1170] sm:$0xff] }
 0x388   : > { %5799 = vmatprep.subr.mxu1 %v4381_v18  ;;  %5729 = vmatpush1.msra.mxu0 %v4316_v19  ;;  %v4414_v18 = vld [vmem:[%s8116_s22 + $0x1370] sm:$0xff]  ;;  %v4349_v19 = vld [vmem:[%s8116_s22 + $0x1168] sm:$0xff] }
 0x389   : > { %5800 = vmatpush1.msra.mxu1 %v4380_v20  ;;  %5730 = vmatprep.subr.mxu0 %v4315_v21  ;;  %v4413_v20 = vld [vmem:[%s8116_s22 + $0x1368] sm:$0xff]  ;;  %v4348_v21 = vld [vmem:[%s8116_s22 + $0x1160] sm:$0xff] }
 0x38a   : > { %5801 = vmatprep.subr.mxu1 %v4379_v22  ;;  %5731 = vmatpush1.msra.mxu0 %v4314_v23  ;;  %v4412_v22 = vld [vmem:[%s8116_s22 + $0x1360] sm:$0xff]  ;;  %v4347_v23 = vld [vmem:[%s8116_s22 + $0x1158] sm:$0xff] }
 0x38b   : > { %5802 = vmatpush1.msra.mxu1 %v4378_v24  ;;  %5732 = vmatprep.subr.mxu0 %v4313_v25  ;;  %v4411_v24 = vld [vmem:[%s8116_s22 + $0x1358] sm:$0xff]  ;;  %v4346_v25 = vld [vmem:[%s8116_s22 + $0x1150] sm:$0xff] }
 0x38c   : > { %5803 = vmatprep.subr.mxu1 %v4377_v26  ;;  %5733 = vmatpush1.msra.mxu0 %v4312_v27  ;;  %v4410_v26 = vld [vmem:[%s8116_s22 + $0x1350] sm:$0xff]  ;;  %v3787_v27 = vld [vmem:[%s8104_s7 + $0x20] sm:$0xff] }
 0x38d   : > { %5804 = vmatpush1.msra.mxu1 %v4376_v28  ;;  %5734 = vmatprep.subr.mxu0 %v4311_v29  ;;  %v4345_v28 = vld [vmem:[%s8116_s22 + $0x1148] sm:$0xff] }
 0x38e   : > { %5805 = vmatprep.subr.mxu1 %v4375_v30  ;;  %5735 = vmatpush1.msra.mxu0 %v4310_v31  ;;  %v4409_v29 = vld [vmem:[%s8116_s22 + $0x1348] sm:$0xff]  ;;  %v4344_v30 = vld [vmem:[%s8116_s22 + $0x1140] sm:$0xff] }
 0x38f   : > { %5806 = vmatpush1.msra.mxu1 %v4374_v32  ;;  %5736 = vmatprep.subr.mxu0 %v4309_v33  ;;  %v4408_v31 = vld [vmem:[%s8116_s22 + $0x1340] sm:$0xff]  ;;  %v4343_v32 = vld [vmem:[%s8116_s22 + $0x1138] sm:$0xff] }
 0x390   : > { %5807 = vmatprep.subr.mxu1 %v4373_v34  ;;  %5737 = vmatpush1.msra.mxu0 %v4308_v35  ;;  %v4407_v33 = vld [vmem:[%s8116_s22 + $0x1338] sm:$0xff]  ;;  %v5021_v34 = vcombine.high %v3787_v27, %v3787_v27  ;;  %v4342_v35 = vld [vmem:[%s8116_s22 + $0x1130] sm:$0xff] }
 0x391   : > { %5808 = vmatpush1.msra.mxu1 %v4372_v36  ;;  %5738 = vmatprep.subr.mxu0 %v4307_v37  ;;  %v4406_v36 = vld [vmem:[%s8116_s22 + $0x1330] sm:$0xff]  ;;  %v4341_v37 = vld [vmem:[%s8116_s22 + $0x1128] sm:$0xff] }
 0x392   : > { %5809 = vmatprep.subr.mxu1 %v4371_v38  ;;  %5739 = vmatpush1.msra.mxu0 %v4306_v39  ;;  %v4405_v38 = vld [vmem:[%s8116_s22 + $0x1328] sm:$0xff]  ;;  %v5028_v39 = vrot.slane %v3787_v27, %v8233_v53 }
 0x393   : > { %5810 = vmatpush1.msra.mxu1 %v4370_v40  ;;  %5740 = vmatprep.subr.mxu0 %v4305_v41  ;;  %v4340_v40 = vld [vmem:[%s8116_s22 + $0x1120] sm:$0xff]  ;;  %v4445_v27 = vld [vmem:[%s8116_s22 + $0x1468] sm:$0xff] }
 0x394   : > { %5811 = vmatprep.subr.mxu1 %v4369_v42  ;;  %5741 = vmatpush1.msra.mxu0 %v4304_v44  ;;  %v4404_v41 = vld [vmem:[%s8116_s22 + $0x1320] sm:$0xff]  ;;  %v4339_v42 = vld [vmem:[%s8116_s22 + $0x1118] sm:$0xff] }
 0x395   : > { %5812 = vmatpush1.msra.mxu1 %v4368_v45  ;;  %5742 = vmatprep.subr.mxu0 %v4367_v46  ;;  %v4403_v44 = vld [vmem:[%s8116_s22 + $0x1318] sm:$0xff]  ;;  %v5035_v45 = vrot.slane %v5021_v34, %v8233_v53  ;;  %v4338_v46 = vld [vmem:[%s8116_s22 + $0x1110] sm:$0xff] }
 0x396   : > { %5813 = vmatprep.subr.mxu1 %v4431_v47  ;;  %5743 = vmatpush2.msra.mxu0 %v4366_v48  ;;  %v4402_v47 = vld [vmem:[%s8116_s22 + $0x1310] sm:$0xff]  ;;  %v4337_v48 = vld [vmem:[%s8116_s22 + $0x1108] sm:$0xff] }
 0x397   : > { %5814 = vmatpush2.msra.mxu1 %v4430_v49  ;;  %5744 = vmatprep.subr.mxu0 %v4365_v50  ;;  %v4401_v49 = vld [vmem:[%s8116_s22 + $0x1308] sm:$0xff]  ;;  %v5036_v50 = vcombine.high %v5028_v39, %v5028_v39  ;;  %v4506_v34 = vld [vmem:[%s8116_s22 + $0x1650] sm:$0xff] }
 0x398   : > { %5815 = vmatprep.subr.mxu1 %v4429_v51  ;;  %5745 = vmatpush2.msra.mxu0 %v4364_v52  ;;  %v4336_v51 = vld [vmem:[%s8116_s22 + $0x1100] sm:$0xff] }
 0x399   : > { %5816 = vmatpush2.msra.mxu1 %v4428_v54  ;;  %5746 = vmatprep.subr.mxu0 %v4363_v55  ;;  %v4400_v52 = vld [vmem:[%s8116_s22 + $0x1300] sm:$0xff]  ;;  %v5037_v54 = vcombine.high %v5035_v45, %v5035_v45  ;;  %v4463_v55 = vld [vmem:[%s8116_s22 + $0x14f8] sm:$0xff] }
 0x39a   : > { %5817 = vmatprep.subr.mxu1 %v4427_v56  ;;  %5747 = vmatpush2.msra.mxu0 %v4362_v57  ;;  %v4527_v56 = vld [vmem:[%s8116_s22 + $0x16f8] sm:$0xff]  ;;  %v4462_v57 = vld [vmem:[%s8116_s22 + $0x14f0] sm:$0xff] }
 0x39b   : > { %5818 = vmatpush2.msra.mxu1 %v4426_v58  ;;  %5748 = vmatprep.subr.mxu0 %v4361_v59  ;;  %v4526_v58 = vld [vmem:[%s8116_s22 + $0x16f0] sm:$0xff]  ;;  %v4461_v59 = vld [vmem:[%s8116_s22 + $0x14e8] sm:$0xff] }
 0x39c   : > { %5819 = vmatprep.subr.mxu1 %v4425_v60  ;;  %5749 = vmatpush2.msra.mxu0 %v4360_v61  ;;  %v4525_v60 = vld [vmem:[%s8116_s22 + $0x16e8] sm:$0xff]  ;;  %v4460_v61 = vld [vmem:[%s8116_s22 + $0x14e0] sm:$0xff] }
 0x39d   : > { %5820 = vmatpush2.msra.mxu1 %v4424_v62  ;;  %5750 = vmatprep.subr.mxu0 %v4359_v63  ;;  %v4524_v62 = vld [vmem:[%s8116_s22 + $0x16e0] sm:$0xff]  ;;  %v4459_v63 = vld [vmem:[%s8116_s22 + $0x14d8] sm:$0xff] }
 0x39e   : > { %5821 = vmatprep.subr.mxu1 %v4423_v0  ;;  %5751 = vmatpush2.msra.mxu0 %v4358_v1  ;;  %v4523_v0 = vld [vmem:[%s8116_s22 + $0x16d8] sm:$0xff]  ;;  %v4458_v1 = vld [vmem:[%s8116_s22 + $0x14d0] sm:$0xff] }
 0x39f   : > { %5822 = vmatpush2.msra.mxu1 %v4422_v2  ;;  %5752 = vmatprep.subr.mxu0 %v4357_v3  ;;  %v4522_v2 = vld [vmem:[%s8116_s22 + $0x16d0] sm:$0xff]  ;;  %v4457_v3 = vld [vmem:[%s8116_s22 + $0x14c8] sm:$0xff] }
 0x3a0   : > { %5823 = vmatprep.subr.mxu1 %v4421_v4  ;;  %5753 = vmatpush2.msra.mxu0 %v4356_v5  ;;  %v4521_v4 = vld [vmem:[%s8116_s22 + $0x16c8] sm:$0xff]  ;;  %v4456_v5 = vld [vmem:[%s8116_s22 + $0x14c0] sm:$0xff] }
 0x3a1   : > { %5824 = vmatpush2.msra.mxu1 %v4420_v6  ;;  %5754 = vmatprep.subr.mxu0 %v4355_v7  ;;  %v4520_v6 = vld [vmem:[%s8116_s22 + $0x16c0] sm:$0xff]  ;;  %v4455_v7 = vld [vmem:[%s8116_s22 + $0x14b8] sm:$0xff] }
 0x3a2   : > { %5825 = vmatprep.subr.mxu1 %v4419_v8  ;;  %5755 = vmatpush2.msra.mxu0 %v4354_v9  ;;  %v4519_v8 = vld [vmem:[%s8116_s22 + $0x16b8] sm:$0xff]  ;;  %v4454_v9 = vld [vmem:[%s8116_s22 + $0x14b0] sm:$0xff] }
 0x3a3   : > { %5826 = vmatpush2.msra.mxu1 %v4418_v10  ;;  %5756 = vmatprep.subr.mxu0 %v4353_v11  ;;  %v4518_v10 = vld [vmem:[%s8116_s22 + $0x16b0] sm:$0xff]  ;;  %v4453_v11 = vld [vmem:[%s8116_s22 + $0x14a8] sm:$0xff] }
 0x3a4   : > { %5827 = vmatprep.subr.mxu1 %v4417_v12  ;;  %5757 = vmatpush2.msra.mxu0 %v4352_v13  ;;  %v4517_v12 = vld [vmem:[%s8116_s22 + $0x16a8] sm:$0xff]  ;;  %v4452_v13 = vld [vmem:[%s8116_s22 + $0x14a0] sm:$0xff] }
 0x3a5   : > { %5828 = vmatpush2.msra.mxu1 %v4416_v14  ;;  %5758 = vmatprep.subr.mxu0 %v4351_v15  ;;  %v4516_v14 = vld [vmem:[%s8116_s22 + $0x16a0] sm:$0xff]  ;;  %v4451_v15 = vld [vmem:[%s8116_s22 + $0x1498] sm:$0xff] }
 0x3a6   : > { %5829 = vmatprep.subr.mxu1 %v4415_v16  ;;  %5759 = vmatpush2.msra.mxu0 %v4350_v17  ;;  %v4515_v16 = vld [vmem:[%s8116_s22 + $0x1698] sm:$0xff]  ;;  %v4450_v17 = vld [vmem:[%s8116_s22 + $0x1490] sm:$0xff] }
 0x3a7   : > { %5830 = vmatpush2.msra.mxu1 %v4414_v18  ;;  %5760 = vmatprep.subr.mxu0 %v4349_v19  ;;  %v4514_v18 = vld [vmem:[%s8116_s22 + $0x1690] sm:$0xff]  ;;  %v4449_v19 = vld [vmem:[%s8116_s22 + $0x1488] sm:$0xff] }
 0x3a8   : > { %5831 = vmatprep.subr.mxu1 %v4413_v20  ;;  %5761 = vmatpush2.msra.mxu0 %v4348_v21  ;;  %v4513_v20 = vld [vmem:[%s8116_s22 + $0x1688] sm:$0xff]  ;;  %v4448_v21 = vld [vmem:[%s8116_s22 + $0x1480] sm:$0xff] }
 0x3a9   : > { %5832 = vmatpush2.msra.mxu1 %v4412_v22  ;;  %5762 = vmatprep.subr.mxu0 %v4347_v23  ;;  %v4512_v22 = vld [vmem:[%s8116_s22 + $0x1680] sm:$0xff]  ;;  %v4447_v23 = vld [vmem:[%s8116_s22 + $0x1478] sm:$0xff] }
 0x3aa   : > { %5833 = vmatprep.subr.mxu1 %v4411_v24  ;;  %5763 = vmatpush2.msra.mxu0 %v4346_v25  ;;  %v4511_v24 = vld [vmem:[%s8116_s22 + $0x1678] sm:$0xff]  ;;  %v4446_v25 = vld [vmem:[%s8116_s22 + $0x1470] sm:$0xff] }
 0x3ab   : > { %5834 = vmatpush2.msra.mxu1 %v4410_v26  ;;  %5764 = vmatprep.subr.mxu0 %v4345_v28  ;;  %v4510_v26 = vld [vmem:[%s8116_s22 + $0x1670] sm:$0xff]  ;;  %v4509_v28 = vld [vmem:[%s8116_s22 + $0x1668] sm:$0xff] }
 0x3ac   : > { %5835 = vmatprep.subr.mxu1 %v4409_v29  ;;  %5765 = vmatpush2.msra.mxu0 %v4344_v30  ;;  %v4444_v29 = vld [vmem:[%s8116_s22 + $0x1460] sm:$0xff] }
 0x3ad   : > { %5836 = vmatpush2.msra.mxu1 %v4408_v31  ;;  %5766 = vmatprep.subr.mxu0 %v4343_v32  ;;  %v4508_v30 = vld [vmem:[%s8116_s22 + $0x1660] sm:$0xff]  ;;  %v4443_v31 = vld [vmem:[%s8116_s22 + $0x1458] sm:$0xff] }
 0x3ae   : > { %5837 = vmatprep.subr.mxu1 %v4407_v33  ;;  %5767 = vmatpush2.msra.mxu0 %v4342_v35  ;;  %v4507_v32 = vld [vmem:[%s8116_s22 + $0x1658] sm:$0xff]  ;;  %v4442_v33 = vld [vmem:[%s8116_s22 + $0x1450] sm:$0xff]  ;;  %v4441_v35 = vld [vmem:[%s8116_s22 + $0x1448] sm:$0xff] }
 0x3af   : > { %5838 = vmatpush2.msra.mxu1 %v4406_v36  ;;  %5768 = vmatprep.subr.mxu0 %v4341_v37  ;;  %v4505_v36 = vld [vmem:[%s8116_s22 + $0x1648] sm:$0xff]  ;;  %v4440_v37 = vld [vmem:[%s8116_s22 + $0x1440] sm:$0xff] }
 0x3b0   : > { %5839 = vmatprep.subr.mxu1 %v4405_v38  ;;  %5769 = vmatpush2.msra.mxu0 %v4340_v40  ;;  %v4504_v38 = vld [vmem:[%s8116_s22 + $0x1640] sm:$0xff]  ;;  %v4503_v40 = vld [vmem:[%s8116_s22 + $0x1638] sm:$0xff] }
 0x3b1   : > { %5840 = vmatpush2.msra.mxu1 %v4404_v41  ;;  %5770 = vmatprep.subr.mxu0 %v4339_v42  ;;  %v4438_v41 = vld [vmem:[%s8116_s22 + $0x1430] sm:$0xff] }
 0x3b2   : > { %5841 = vmatprep.subr.mxu1 %v4403_v44  ;;  %5771 = vmatpush2.msra.mxu0 %v4338_v46  ;;  %v4502_v42 = vld [vmem:[%s8116_s22 + $0x1630] sm:$0xff]  ;;  %v4437_v44 = vld [vmem:[%s8116_s22 + $0x1428] sm:$0xff]  ;;  %v4436_v46 = vld [vmem:[%s8116_s22 + $0x1420] sm:$0xff] }
 0x3b3   : > { %5842 = vmatpush2.msra.mxu1 %v4402_v47  ;;  %5772 = vmatprep.subr.mxu0 %v4337_v48  ;;  %v4500_v47 = vld [vmem:[%s8116_s22 + $0x1620] sm:$0xff]  ;;  %v4435_v48 = vld [vmem:[%s8116_s22 + $0x1418] sm:$0xff] }
 0x3b4   : > { %5843 = vmatprep.subr.mxu1 %v4401_v49  ;;  %5773 = vmatpush2.msra.mxu0 %v4336_v51  ;;  %v4499_v49 = vld [vmem:[%s8116_s22 + $0x1618] sm:$0xff]  ;;  %v4498_v51 = vld [vmem:[%s8116_s22 + $0x1610] sm:$0xff] }
 0x3b5   : > { %5774 = vmatprep.mubr.f32.mxu0 %v5036_v50  ;;  %5844 = vmatpush2.msra.mxu1 %v4400_v52  ;;  %v4434_v50 = vld [vmem:[%s8116_s22 + $0x1410] sm:$0xff]  ;;  %v4433_v52 = vld [vmem:[%s8116_s22 + $0x1408] sm:$0xff] }
 0x3b6   : > { %5775 = vmatmul.mubr.f32.vlgmr.msra.gmra.mxu0 %v5028_v39  ;;  %5845 = vmatprep.mubr.f32.mxu1 %v5037_v54  ;;  %v4439_v39 = vld [vmem:[%s8116_s22 + $0x1438] sm:$0xff]  ;;  %v4497_v54 = vld [vmem:[%s8116_s22 + $0x1608] sm:$0xff] }
 0x3b7   : > { %5852 = vmatprep.subr.mxu0 %v4463_v55  ;;  %5923 = vmatprep.subr.mxu1 %v4527_v56  ;;  %v4432_v55 = vld [vmem:[%s8116_s22 + $0x1400] sm:$0xff] }
 0x3b8   : > { %5846 = vmatmul.mubr.f32.vlgmr.msra.gmra.mxu1 %v5035_v45  ;;  %5853 = vmatpush1.msra.mxu0 %v4462_v57  ;;  %v4501_v45 = vld [vmem:[%s8116_s22 + $0x1628] sm:$0xff]  ;;  %v4496_v56 = vld [vmem:[%s8116_s22 + $0x1600] sm:$0xff]  ;;  %v4495_v57 = vld [vmem:[%s8116_s22 + $0x15f8] sm:$0xff] }
 0x3b9   : > { %5924 = vmatpush1.msra.mxu1 %v4526_v58  ;;  %5854 = vmatprep.subr.mxu0 %v4461_v59  ;;  %v4559_v58 = vld [vmem:[%s8116_s22 + $0x17f8] sm:$0xff]  ;;  %v4494_v59 = vld [vmem:[%s8116_s22 + $0x15f0] sm:$0xff] }
 0x3ba   : > { %5925 = vmatprep.subr.mxu1 %v4525_v60  ;;  %5855 = vmatpush1.msra.mxu0 %v4460_v61  ;;  %v4558_v60 = vld [vmem:[%s8116_s22 + $0x17f0] sm:$0xff]  ;;  %v4493_v61 = vld [vmem:[%s8116_s22 + $0x15e8] sm:$0xff] }
 0x3bb   : > { %5926 = vmatpush1.msra.mxu1 %v4524_v62  ;;  %5856 = vmatprep.subr.mxu0 %v4459_v63  ;;  %v4557_v62 = vld [vmem:[%s8116_s22 + $0x17e8] sm:$0xff]  ;;  %v4492_v63 = vld [vmem:[%s8116_s22 + $0x15e0] sm:$0xff] }
 0x3bc   : > { %5927 = vmatprep.subr.mxu1 %v4523_v0  ;;  %5857 = vmatpush1.msra.mxu0 %v4458_v1  ;;  %v4556_v0 = vld [vmem:[%s8116_s22 + $0x17e0] sm:$0xff]  ;;  %v4491_v1 = vld [vmem:[%s8116_s22 + $0x15d8] sm:$0xff] }
 0x3bd   : > { %5928 = vmatpush1.msra.mxu1 %v4522_v2  ;;  %5858 = vmatprep.subr.mxu0 %v4457_v3  ;;  %v4555_v2 = vld [vmem:[%s8116_s22 + $0x17d8] sm:$0xff]  ;;  %v4490_v3 = vld [vmem:[%s8116_s22 + $0x15d0] sm:$0xff] }
 0x3be   : > { %5929 = vmatprep.subr.mxu1 %v4521_v4  ;;  %5859 = vmatpush1.msra.mxu0 %v4456_v5  ;;  %v4554_v4 = vld [vmem:[%s8116_s22 + $0x17d0] sm:$0xff]  ;;  %v4489_v5 = vld [vmem:[%s8116_s22 + $0x15c8] sm:$0xff] }
 0x3bf   : > { %5930 = vmatpush1.msra.mxu1 %v4520_v6  ;;  %5860 = vmatprep.subr.mxu0 %v4455_v7  ;;  %v4553_v6 = vld [vmem:[%s8116_s22 + $0x17c8] sm:$0xff]  ;;  %v4488_v7 = vld [vmem:[%s8116_s22 + $0x15c0] sm:$0xff] }
 0x3c0   : > { %5931 = vmatprep.subr.mxu1 %v4519_v8  ;;  %5861 = vmatpush1.msra.mxu0 %v4454_v9  ;;  %v4552_v8 = vld [vmem:[%s8116_s22 + $0x17c0] sm:$0xff]  ;;  %v4487_v9 = vld [vmem:[%s8116_s22 + $0x15b8] sm:$0xff] }
 0x3c1   : > { %5932 = vmatpush1.msra.mxu1 %v4518_v10  ;;  %5862 = vmatprep.subr.mxu0 %v4453_v11  ;;  %v4551_v10 = vld [vmem:[%s8116_s22 + $0x17b8] sm:$0xff]  ;;  %v4486_v11 = vld [vmem:[%s8116_s22 + $0x15b0] sm:$0xff] }
 0x3c2   : > { %5933 = vmatprep.subr.mxu1 %v4517_v12  ;;  %5863 = vmatpush1.msra.mxu0 %v4452_v13  ;;  %v4550_v12 = vld [vmem:[%s8116_s22 + $0x17b0] sm:$0xff]  ;;  %v4485_v13 = vld [vmem:[%s8116_s22 + $0x15a8] sm:$0xff] }
 0x3c3   : > { %5934 = vmatpush1.msra.mxu1 %v4516_v14  ;;  %5864 = vmatprep.subr.mxu0 %v4451_v15  ;;  %v4549_v14 = vld [vmem:[%s8116_s22 + $0x17a8] sm:$0xff]  ;;  %v4484_v15 = vld [vmem:[%s8116_s22 + $0x15a0] sm:$0xff] }
 0x3c4   : > { %5935 = vmatprep.subr.mxu1 %v4515_v16  ;;  %5865 = vmatpush1.msra.mxu0 %v4450_v17  ;;  %v4548_v16 = vld [vmem:[%s8116_s22 + $0x17a0] sm:$0xff]  ;;  %v4483_v17 = vld [vmem:[%s8116_s22 + $0x1598] sm:$0xff] }
 0x3c5   : > { %5936 = vmatpush1.msra.mxu1 %v4514_v18  ;;  %5866 = vmatprep.subr.mxu0 %v4449_v19  ;;  %v4547_v18 = vld [vmem:[%s8116_s22 + $0x1798] sm:$0xff]  ;;  %v4482_v19 = vld [vmem:[%s8116_s22 + $0x1590] sm:$0xff] }
 0x3c6   : > { %5937 = vmatprep.subr.mxu1 %v4513_v20  ;;  %5867 = vmatpush1.msra.mxu0 %v4448_v21  ;;  %v4546_v20 = vld [vmem:[%s8116_s22 + $0x1790] sm:$0xff]  ;;  %v4481_v21 = vld [vmem:[%s8116_s22 + $0x1588] sm:$0xff] }
 0x3c7   : > { %5938 = vmatpush1.msra.mxu1 %v4512_v22  ;;  %5868 = vmatprep.subr.mxu0 %v4447_v23  ;;  %v4545_v22 = vld [vmem:[%s8116_s22 + $0x1788] sm:$0xff]  ;;  %v4480_v23 = vld [vmem:[%s8116_s22 + $0x1580] sm:$0xff] }
 0x3c8   : > { %5939 = vmatprep.subr.mxu1 %v4511_v24  ;;  %5869 = vmatpush1.msra.mxu0 %v4446_v25  ;;  %v4544_v24 = vld [vmem:[%s8116_s22 + $0x1780] sm:$0xff]  ;;  %v4479_v25 = vld [vmem:[%s8116_s22 + $0x1578] sm:$0xff] }
 0x3c9   : > { %5940 = vmatpush1.msra.mxu1 %v4510_v26  ;;  %5870 = vmatprep.subr.mxu0 %v4445_v27  ;;  %v4543_v26 = vld [vmem:[%s8116_s22 + $0x1778] sm:$0xff]  ;;  %v4478_v27 = vld [vmem:[%s8116_s22 + $0x1570] sm:$0xff] }
 0x3ca   : > { %5941 = vmatprep.subr.mxu1 %v4509_v28  ;;  %5871 = vmatpush1.msra.mxu0 %v4444_v29  ;;  %v4542_v28 = vld [vmem:[%s8116_s22 + $0x1770] sm:$0xff]  ;;  %v4477_v29 = vld [vmem:[%s8116_s22 + $0x1568] sm:$0xff] }
 0x3cb   : > { %5942 = vmatpush1.msra.mxu1 %v4508_v30  ;;  %5872 = vmatprep.subr.mxu0 %v4443_v31  ;;  %v4541_v30 = vld [vmem:[%s8116_s22 + $0x1768] sm:$0xff]  ;;  %v4476_v31 = vld [vmem:[%s8116_s22 + $0x1560] sm:$0xff] }
 0x3cc   : > { %5943 = vmatprep.subr.mxu1 %v4507_v32  ;;  %5873 = vmatpush1.msra.mxu0 %v4442_v33  ;;  %v4540_v32 = vld [vmem:[%s8116_s22 + $0x1760] sm:$0xff]  ;;  %v4475_v33 = vld [vmem:[%s8116_s22 + $0x1558] sm:$0xff] }
 0x3cd   : > { %5944 = vmatpush1.msra.mxu1 %v4506_v34  ;;  %5874 = vmatprep.subr.mxu0 %v4441_v35  ;;  %v4539_v34 = vld [vmem:[%s8116_s22 + $0x1758] sm:$0xff]  ;;  %v4474_v35 = vld [vmem:[%s8116_s22 + $0x1550] sm:$0xff] }
 0x3ce   : > { %5945 = vmatprep.subr.mxu1 %v4505_v36  ;;  %5875 = vmatpush1.msra.mxu0 %v4440_v37  ;;  %v4538_v36 = vld [vmem:[%s8116_s22 + $0x1750] sm:$0xff]  ;;  %v3788_v37 = vld [vmem:[%s8104_s7 + $0x28] sm:$0xff] }
 0x3cf   : > { %5946 = vmatpush1.msra.mxu1 %v4504_v38  ;;  %5876 = vmatprep.subr.mxu0 %v4439_v39  ;;  %v4473_v38 = vld [vmem:[%s8116_s22 + $0x1548] sm:$0xff] }
 0x3d0   : > { %5947 = vmatprep.subr.mxu1 %v4503_v40  ;;  %5877 = vmatpush1.msra.mxu0 %v4438_v41  ;;  %v4537_v39 = vld [vmem:[%s8116_s22 + $0x1748] sm:$0xff]  ;;  %v4472_v40 = vld [vmem:[%s8116_s22 + $0x1540] sm:$0xff] }
 0x3d1   : > { %5948 = vmatpush1.msra.mxu1 %v4502_v42  ;;  %5878 = vmatprep.subr.mxu0 %v4437_v44  ;;  %v4536_v41 = vld [vmem:[%s8116_s22 + $0x1740] sm:$0xff]  ;;  %v4471_v42 = vld [vmem:[%s8116_s22 + $0x1538] sm:$0xff] }
 0x3d2   : > { %5949 = vmatprep.subr.mxu1 %v4501_v45  ;;  %5879 = vmatpush1.msra.mxu0 %v4436_v46  ;;  %v4535_v44 = vld [vmem:[%s8116_s22 + $0x1738] sm:$0xff]  ;;  %v5038_v45 = vcombine.high %v3788_v37, %v3788_v37  ;;  %v4470_v46 = vld [vmem:[%s8116_s22 + $0x1530] sm:$0xff] }
 0x3d3   : > { %5950 = vmatpush1.msra.mxu1 %v4500_v47  ;;  %5880 = vmatprep.subr.mxu0 %v4435_v48  ;;  %v4534_v47 = vld [vmem:[%s8116_s22 + $0x1730] sm:$0xff]  ;;  %v4469_v48 = vld [vmem:[%s8116_s22 + $0x1528] sm:$0xff] }
 0x3d4   : > { %5951 = vmatprep.subr.mxu1 %v4499_v49  ;;  %5881 = vmatpush1.msra.mxu0 %v4434_v50  ;;  %v4533_v49 = vld [vmem:[%s8116_s22 + $0x1728] sm:$0xff]  ;;  %v5045_v50 = vrot.slane %v3788_v37, %v8233_v53 }
 0x3d5   : > { %5952 = vmatpush1.msra.mxu1 %v4498_v51  ;;  %5882 = vmatprep.subr.mxu0 %v4433_v52  ;;  %v4468_v51 = vld [vmem:[%s8116_s22 + $0x1520] sm:$0xff]  ;;  %v4573_v37 = vld [vmem:[%s8116_s22 + $0x1868] sm:$0xff] }
 0x3d6   : > { %5953 = vmatprep.subr.mxu1 %v4497_v54  ;;  %5883 = vmatpush1.msra.mxu0 %v4432_v55  ;;  %v4532_v52 = vld [vmem:[%s8116_s22 + $0x1720] sm:$0xff]  ;;  %v4467_v54 = vld [vmem:[%s8116_s22 + $0x1518] sm:$0xff] }
 0x3d7   : > { %5954 = vmatpush1.msra.mxu1 %v4496_v56  ;;  %5884 = vmatprep.subr.mxu0 %v4495_v57  ;;  %v4531_v55 = vld [vmem:[%s8116_s22 + $0x1718] sm:$0xff]  ;;  %v5052_v56 = vrot.slane %v5038_v45, %v8233_v53  ;;  %v4466_v57 = vld [vmem:[%s8116_s22 + $0x1510] sm:$0xff] }
 0x3d8   : > { %5955 = vmatprep.subr.mxu1 %v4559_v58  ;;  %5885 = vmatpush2.msra.mxu0 %v4494_v59  ;;  %v4530_v58 = vld [vmem:[%s8116_s22 + $0x1710] sm:$0xff]  ;;  %v4465_v59 = vld [vmem:[%s8116_s22 + $0x1508] sm:$0xff] }
 0x3d9   : > { %5956 = vmatpush2.msra.mxu1 %v4558_v60  ;;  %5886 = vmatprep.subr.mxu0 %v4493_v61  ;;  %v4529_v60 = vld [vmem:[%s8116_s22 + $0x1708] sm:$0xff]  ;;  %v5053_v61 = vcombine.high %v5045_v50, %v5045_v50  ;;  %v4634_v45 = vld [vmem:[%s8116_s22 + $0x1a50] sm:$0xff] }
 0x3da   : > { %5957 = vmatprep.subr.mxu1 %v4557_v62  ;;  %5887 = vmatpush2.msra.mxu0 %v4492_v63  ;;  %v4464_v62 = vld [vmem:[%s8116_s22 + $0x1500] sm:$0xff] }
 0x3db   : > { %5958 = vmatpush2.msra.mxu1 %v4556_v0  ;;  %5888 = vmatprep.subr.mxu0 %v4491_v1  ;;  %v4528_v63 = vld [vmem:[%s8116_s22 + $0x1700] sm:$0xff]  ;;  %v5054_v0 = vcombine.high %v5052_v56, %v5052_v56  ;;  %v4591_v1 = vld [vmem:[%s8116_s22 + $0x18f8] sm:$0xff] }
 0x3dc   : > { %5959 = vmatprep.subr.mxu1 %v4555_v2  ;;  %5889 = vmatpush2.msra.mxu0 %v4490_v3  ;;  %v4655_v2 = vld [vmem:[%s8116_s22 + $0x1af8] sm:$0xff]  ;;  %v4590_v3 = vld [vmem:[%s8116_s22 + $0x18f0] sm:$0xff] }
 0x3dd   : > { %5960 = vmatpush2.msra.mxu1 %v4554_v4  ;;  %5890 = vmatprep.subr.mxu0 %v4489_v5  ;;  %v4654_v4 = vld [vmem:[%s8116_s22 + $0x1af0] sm:$0xff]  ;;  %v4589_v5 = vld [vmem:[%s8116_s22 + $0x18e8] sm:$0xff] }
 0x3de   : > { %5961 = vmatprep.subr.mxu1 %v4553_v6  ;;  %5891 = vmatpush2.msra.mxu0 %v4488_v7  ;;  %v4653_v6 = vld [vmem:[%s8116_s22 + $0x1ae8] sm:$0xff]  ;;  %v4588_v7 = vld [vmem:[%s8116_s22 + $0x18e0] sm:$0xff] }
 0x3df   : > { %5962 = vmatpush2.msra.mxu1 %v4552_v8  ;;  %5892 = vmatprep.subr.mxu0 %v4487_v9  ;;  %v4652_v8 = vld [vmem:[%s8116_s22 + $0x1ae0] sm:$0xff]  ;;  %v4587_v9 = vld [vmem:[%s8116_s22 + $0x18d8] sm:$0xff] }
 0x3e0   : > { %5963 = vmatprep.subr.mxu1 %v4551_v10  ;;  %5893 = vmatpush2.msra.mxu0 %v4486_v11  ;;  %v4651_v10 = vld [vmem:[%s8116_s22 + $0x1ad8] sm:$0xff]  ;;  %v4586_v11 = vld [vmem:[%s8116_s22 + $0x18d0] sm:$0xff] }
 0x3e1   : > { %5964 = vmatpush2.msra.mxu1 %v4550_v12  ;;  %5894 = vmatprep.subr.mxu0 %v4485_v13  ;;  %v4650_v12 = vld [vmem:[%s8116_s22 + $0x1ad0] sm:$0xff]  ;;  %v4585_v13 = vld [vmem:[%s8116_s22 + $0x18c8] sm:$0xff] }
 0x3e2   : > { %5965 = vmatprep.subr.mxu1 %v4549_v14  ;;  %5895 = vmatpush2.msra.mxu0 %v4484_v15  ;;  %v4649_v14 = vld [vmem:[%s8116_s22 + $0x1ac8] sm:$0xff]  ;;  %v4584_v15 = vld [vmem:[%s8116_s22 + $0x18c0] sm:$0xff] }
 0x3e3   : > { %5966 = vmatpush2.msra.mxu1 %v4548_v16  ;;  %5896 = vmatprep.subr.mxu0 %v4483_v17  ;;  %v4648_v16 = vld [vmem:[%s8116_s22 + $0x1ac0] sm:$0xff]  ;;  %v4583_v17 = vld [vmem:[%s8116_s22 + $0x18b8] sm:$0xff] }
 0x3e4   : > { %5967 = vmatprep.subr.mxu1 %v4547_v18  ;;  %5897 = vmatpush2.msra.mxu0 %v4482_v19  ;;  %v4647_v18 = vld [vmem:[%s8116_s22 + $0x1ab8] sm:$0xff]  ;;  %v4582_v19 = vld [vmem:[%s8116_s22 + $0x18b0] sm:$0xff] }
 0x3e5   : > { %5968 = vmatpush2.msra.mxu1 %v4546_v20  ;;  %5898 = vmatprep.subr.mxu0 %v4481_v21  ;;  %v4646_v20 = vld [vmem:[%s8116_s22 + $0x1ab0] sm:$0xff]  ;;  %v4581_v21 = vld [vmem:[%s8116_s22 + $0x18a8] sm:$0xff] }
 0x3e6   : > { %5969 = vmatprep.subr.mxu1 %v4545_v22  ;;  %5899 = vmatpush2.msra.mxu0 %v4480_v23  ;;  %v4645_v22 = vld [vmem:[%s8116_s22 + $0x1aa8] sm:$0xff]  ;;  %v4580_v23 = vld [vmem:[%s8116_s22 + $0x18a0] sm:$0xff] }
 0x3e7   : > { %5970 = vmatpush2.msra.mxu1 %v4544_v24  ;;  %5900 = vmatprep.subr.mxu0 %v4479_v25  ;;  %v4644_v24 = vld [vmem:[%s8116_s22 + $0x1aa0] sm:$0xff]  ;;  %v4579_v25 = vld [vmem:[%s8116_s22 + $0x1898] sm:$0xff] }
 0x3e8   : > { %5971 = vmatprep.subr.mxu1 %v4543_v26  ;;  %5901 = vmatpush2.msra.mxu0 %v4478_v27  ;;  %v4643_v26 = vld [vmem:[%s8116_s22 + $0x1a98] sm:$0xff]  ;;  %v4578_v27 = vld [vmem:[%s8116_s22 + $0x1890] sm:$0xff] }
 0x3e9   : > { %5972 = vmatpush2.msra.mxu1 %v4542_v28  ;;  %5902 = vmatprep.subr.mxu0 %v4477_v29  ;;  %v4642_v28 = vld [vmem:[%s8116_s22 + $0x1a90] sm:$0xff]  ;;  %v4577_v29 = vld [vmem:[%s8116_s22 + $0x1888] sm:$0xff] }
 0x3ea   : > { %5973 = vmatprep.subr.mxu1 %v4541_v30  ;;  %5903 = vmatpush2.msra.mxu0 %v4476_v31  ;;  %v4641_v30 = vld [vmem:[%s8116_s22 + $0x1a88] sm:$0xff]  ;;  %v4576_v31 = vld [vmem:[%s8116_s22 + $0x1880] sm:$0xff] }
 0x3eb   : > { %5974 = vmatpush2.msra.mxu1 %v4540_v32  ;;  %5904 = vmatprep.subr.mxu0 %v4475_v33  ;;  %v4640_v32 = vld [vmem:[%s8116_s22 + $0x1a80] sm:$0xff]  ;;  %v4575_v33 = vld [vmem:[%s8116_s22 + $0x1878] sm:$0xff] }
 0x3ec   : > { %5975 = vmatprep.subr.mxu1 %v4539_v34  ;;  %5905 = vmatpush2.msra.mxu0 %v4474_v35  ;;  %v4639_v34 = vld [vmem:[%s8116_s22 + $0x1a78] sm:$0xff]  ;;  %v4574_v35 = vld [vmem:[%s8116_s22 + $0x1870] sm:$0xff] }
 0x3ed   : > { %5976 = vmatpush2.msra.mxu1 %v4538_v36  ;;  %5906 = vmatprep.subr.mxu0 %v4473_v38  ;;  %v4638_v36 = vld [vmem:[%s8116_s22 + $0x1a70] sm:$0xff]  ;;  %v4637_v38 = vld [vmem:[%s8116_s22 + $0x1a68] sm:$0xff] }
 0x3ee   : > { %5977 = vmatprep.subr.mxu1 %v4537_v39  ;;  %5907 = vmatpush2.msra.mxu0 %v4472_v40  ;;  %v4572_v39 = vld [vmem:[%s8116_s22 + $0x1860] sm:$0xff] }
 0x3ef   : > { %5978 = vmatpush2.msra.mxu1 %v4536_v41  ;;  %5908 = vmatprep.subr.mxu0 %v4471_v42  ;;  %v4636_v40 = vld [vmem:[%s8116_s22 + $0x1a60] sm:$0xff]  ;;  %v4571_v41 = vld [vmem:[%s8116_s22 + $0x1858] sm:$0xff] }
 0x3f0   : > { %5979 = vmatprep.subr.mxu1 %v4535_v44  ;;  %5909 = vmatpush2.msra.mxu0 %v4470_v46  ;;  %v4635_v42 = vld [vmem:[%s8116_s22 + $0x1a58] sm:$0xff]  ;;  %v4570_v44 = vld [vmem:[%s8116_s22 + $0x1850] sm:$0xff]  ;;  %v4569_v46 = vld [vmem:[%s8116_s22 + $0x1848] sm:$0xff] }
 0x3f1   : > { %5980 = vmatpush2.msra.mxu1 %v4534_v47  ;;  %5910 = vmatprep.subr.mxu0 %v4469_v48  ;;  %v4633_v47 = vld [vmem:[%s8116_s22 + $0x1a48] sm:$0xff]  ;;  %v4568_v48 = vld [vmem:[%s8116_s22 + $0x1840] sm:$0xff] }
 0x3f2   : > { %5981 = vmatprep.subr.mxu1 %v4533_v49  ;;  %5911 = vmatpush2.msra.mxu0 %v4468_v51  ;;  %v4632_v49 = vld [vmem:[%s8116_s22 + $0x1a40] sm:$0xff]  ;;  %v4631_v51 = vld [vmem:[%s8116_s22 + $0x1a38] sm:$0xff] }
 0x3f3   : > { %5982 = vmatpush2.msra.mxu1 %v4532_v52  ;;  %5912 = vmatprep.subr.mxu0 %v4467_v54  ;;  %v4566_v52 = vld [vmem:[%s8116_s22 + $0x1830] sm:$0xff] }
 0x3f4   : > { %5983 = vmatprep.subr.mxu1 %v4531_v55  ;;  %5913 = vmatpush2.msra.mxu0 %v4466_v57  ;;  %v4630_v54 = vld [vmem:[%s8116_s22 + $0x1a30] sm:$0xff]  ;;  %v4565_v55 = vld [vmem:[%s8116_s22 + $0x1828] sm:$0xff]  ;;  %v4564_v57 = vld [vmem:[%s8116_s22 + $0x1820] sm:$0xff] }
 0x3f5   : > { %5984 = vmatpush2.msra.mxu1 %v4530_v58  ;;  %5914 = vmatprep.subr.mxu0 %v4465_v59  ;;  %v4628_v58 = vld [vmem:[%s8116_s22 + $0x1a20] sm:$0xff]  ;;  %v4563_v59 = vld [vmem:[%s8116_s22 + $0x1818] sm:$0xff] }
 0x3f6   : > { %5985 = vmatprep.subr.mxu1 %v4529_v60  ;;  %5915 = vmatpush2.msra.mxu0 %v4464_v62  ;;  %v4627_v60 = vld [vmem:[%s8116_s22 + $0x1a18] sm:$0xff]  ;;  %v4626_v62 = vld [vmem:[%s8116_s22 + $0x1a10] sm:$0xff] }
 0x3f7   : > { %5916 = vmatprep.mubr.f32.mxu0 %v5053_v61  ;;  %5986 = vmatpush2.msra.mxu1 %v4528_v63  ;;  %v4562_v61 = vld [vmem:[%s8116_s22 + $0x1810] sm:$0xff]  ;;  %v4561_v63 = vld [vmem:[%s8116_s22 + $0x1808] sm:$0xff] }
 0x3f8   : > { %5917 = vmatmul.mubr.f32.vlgmr.msra.gmra.mxu0 %v5045_v50  ;;  %5987 = vmatprep.mubr.f32.mxu1 %v5054_v0  ;;  %v4567_v50 = vld [vmem:[%s8116_s22 + $0x1838] sm:$0xff]  ;;  %v4625_v0 = vld [vmem:[%s8116_s22 + $0x1a08] sm:$0xff] }
 0x3f9   : > { %5994 = vmatprep.subr.mxu0 %v4591_v1  ;;  %6065 = vmatprep.subr.mxu1 %v4655_v2  ;;  %v4560_v1 = vld [vmem:[%s8116_s22 + $0x1800] sm:$0xff] }
 0x3fa   : > { %5988 = vmatmul.mubr.f32.vlgmr.msra.gmra.mxu1 %v5052_v56  ;;  %5995 = vmatpush1.msra.mxu0 %v4590_v3  ;;  %v4629_v56 = vld [vmem:[%s8116_s22 + $0x1a28] sm:$0xff]  ;;  %v4624_v2 = vld [vmem:[%s8116_s22 + $0x1a00] sm:$0xff]  ;;  %v4623_v3 = vld [vmem:[%s8116_s22 + $0x19f8] sm:$0xff] }
 0x3fb   : > { %6066 = vmatpush1.msra.mxu1 %v4654_v4  ;;  %5996 = vmatprep.subr.mxu0 %v4589_v5  ;;  %v4687_v4 = vld [vmem:[%s8116_s22 + $0x1bf8] sm:$0xff]  ;;  %v4622_v5 = vld [vmem:[%s8116_s22 + $0x19f0] sm:$0xff] }
 0x3fc   : > { %6067 = vmatprep.subr.mxu1 %v4653_v6  ;;  %5997 = vmatpush1.msra.mxu0 %v4588_v7  ;;  %v4686_v6 = vld [vmem:[%s8116_s22 + $0x1bf0] sm:$0xff]  ;;  %v4621_v7 = vld [vmem:[%s8116_s22 + $0x19e8] sm:$0xff] }
 0x3fd   : > { %6068 = vmatpush1.msra.mxu1 %v4652_v8  ;;  %5998 = vmatprep.subr.mxu0 %v4587_v9  ;;  %v4685_v8 = vld [vmem:[%s8116_s22 + $0x1be8] sm:$0xff]  ;;  %v4620_v9 = vld [vmem:[%s8116_s22 + $0x19e0] sm:$0xff] }
 0x3fe   : > { %6069 = vmatprep.subr.mxu1 %v4651_v10  ;;  %5999 = vmatpush1.msra.mxu0 %v4586_v11  ;;  %v4684_v10 = vld [vmem:[%s8116_s22 + $0x1be0] sm:$0xff]  ;;  %v4619_v11 = vld [vmem:[%s8116_s22 + $0x19d8] sm:$0xff] }
 0x3ff   : > { %6070 = vmatpush1.msra.mxu1 %v4650_v12  ;;  %6000 = vmatprep.subr.mxu0 %v4585_v13  ;;  %v4683_v12 = vld [vmem:[%s8116_s22 + $0x1bd8] sm:$0xff]  ;;  %v4618_v13 = vld [vmem:[%s8116_s22 + $0x19d0] sm:$0xff] }
 0x400   : > { %6071 = vmatprep.subr.mxu1 %v4649_v14  ;;  %6001 = vmatpush1.msra.mxu0 %v4584_v15  ;;  %v4682_v14 = vld [vmem:[%s8116_s22 + $0x1bd0] sm:$0xff]  ;;  %v4617_v15 = vld [vmem:[%s8116_s22 + $0x19c8] sm:$0xff] }
 0x401   : > { %6072 = vmatpush1.msra.mxu1 %v4648_v16  ;;  %6002 = vmatprep.subr.mxu0 %v4583_v17  ;;  %v4681_v16 = vld [vmem:[%s8116_s22 + $0x1bc8] sm:$0xff]  ;;  %v4616_v17 = vld [vmem:[%s8116_s22 + $0x19c0] sm:$0xff] }
 0x402   : > { %6073 = vmatprep.subr.mxu1 %v4647_v18  ;;  %6003 = vmatpush1.msra.mxu0 %v4582_v19  ;;  %v4680_v18 = vld [vmem:[%s8116_s22 + $0x1bc0] sm:$0xff]  ;;  %v4615_v19 = vld [vmem:[%s8116_s22 + $0x19b8] sm:$0xff] }
 0x403   : > { %6074 = vmatpush1.msra.mxu1 %v4646_v20  ;;  %6004 = vmatprep.subr.mxu0 %v4581_v21  ;;  %v4679_v20 = vld [vmem:[%s8116_s22 + $0x1bb8] sm:$0xff]  ;;  %v4614_v21 = vld [vmem:[%s8116_s22 + $0x19b0] sm:$0xff] }
 0x404   : > { %6075 = vmatprep.subr.mxu1 %v4645_v22  ;;  %6005 = vmatpush1.msra.mxu0 %v4580_v23  ;;  %v4678_v22 = vld [vmem:[%s8116_s22 + $0x1bb0] sm:$0xff]  ;;  %v4613_v23 = vld [vmem:[%s8116_s22 + $0x19a8] sm:$0xff] }
 0x405   : > { %6076 = vmatpush1.msra.mxu1 %v4644_v24  ;;  %6006 = vmatprep.subr.mxu0 %v4579_v25  ;;  %v4677_v24 = vld [vmem:[%s8116_s22 + $0x1ba8] sm:$0xff]  ;;  %v4612_v25 = vld [vmem:[%s8116_s22 + $0x19a0] sm:$0xff] }
 0x406   : > { %6077 = vmatprep.subr.mxu1 %v4643_v26  ;;  %6007 = vmatpush1.msra.mxu0 %v4578_v27  ;;  %v4676_v26 = vld [vmem:[%s8116_s22 + $0x1ba0] sm:$0xff]  ;;  %v4611_v27 = vld [vmem:[%s8116_s22 + $0x1998] sm:$0xff] }
 0x407   : > { %6078 = vmatpush1.msra.mxu1 %v4642_v28  ;;  %6008 = vmatprep.subr.mxu0 %v4577_v29  ;;  %v4675_v28 = vld [vmem:[%s8116_s22 + $0x1b98] sm:$0xff]  ;;  %v4610_v29 = vld [vmem:[%s8116_s22 + $0x1990] sm:$0xff] }
 0x408   : > { %6079 = vmatprep.subr.mxu1 %v4641_v30  ;;  %6009 = vmatpush1.msra.mxu0 %v4576_v31  ;;  %v4674_v30 = vld [vmem:[%s8116_s22 + $0x1b90] sm:$0xff]  ;;  %v4609_v31 = vld [vmem:[%s8116_s22 + $0x1988] sm:$0xff] }
 0x409   : > { %6080 = vmatpush1.msra.mxu1 %v4640_v32  ;;  %6010 = vmatprep.subr.mxu0 %v4575_v33  ;;  %v4673_v32 = vld [vmem:[%s8116_s22 + $0x1b88] sm:$0xff]  ;;  %v4608_v33 = vld [vmem:[%s8116_s22 + $0x1980] sm:$0xff] }
 0x40a   : > { %6081 = vmatprep.subr.mxu1 %v4639_v34  ;;  %6011 = vmatpush1.msra.mxu0 %v4574_v35  ;;  %v4672_v34 = vld [vmem:[%s8116_s22 + $0x1b80] sm:$0xff]  ;;  %v4607_v35 = vld [vmem:[%s8116_s22 + $0x1978] sm:$0xff] }
 0x40b   : > { %6082 = vmatpush1.msra.mxu1 %v4638_v36  ;;  %6012 = vmatprep.subr.mxu0 %v4573_v37  ;;  %v4671_v36 = vld [vmem:[%s8116_s22 + $0x1b78] sm:$0xff]  ;;  %v4606_v37 = vld [vmem:[%s8116_s22 + $0x1970] sm:$0xff] }
 0x40c   : > { %6083 = vmatprep.subr.mxu1 %v4637_v38  ;;  %6013 = vmatpush1.msra.mxu0 %v4572_v39  ;;  %v4670_v38 = vld [vmem:[%s8116_s22 + $0x1b70] sm:$0xff]  ;;  %v4605_v39 = vld [vmem:[%s8116_s22 + $0x1968] sm:$0xff] }
 0x40d   : > { %6084 = vmatpush1.msra.mxu1 %v4636_v40  ;;  %6014 = vmatprep.subr.mxu0 %v4571_v41  ;;  %v4669_v40 = vld [vmem:[%s8116_s22 + $0x1b68] sm:$0xff]  ;;  %v4604_v41 = vld [vmem:[%s8116_s22 + $0x1960] sm:$0xff] }
 0x40e   : > { %6085 = vmatprep.subr.mxu1 %v4635_v42  ;;  %6015 = vmatpush1.msra.mxu0 %v4570_v44  ;;  %v4668_v42 = vld [vmem:[%s8116_s22 + $0x1b60] sm:$0xff]  ;;  %v4603_v44 = vld [vmem:[%s8116_s22 + $0x1958] sm:$0xff] }
 0x40f   : > { %6086 = vmatpush1.msra.mxu1 %v4634_v45  ;;  %6016 = vmatprep.subr.mxu0 %v4569_v46  ;;  %v4667_v45 = vld [vmem:[%s8116_s22 + $0x1b58] sm:$0xff]  ;;  %v4602_v46 = vld [vmem:[%s8116_s22 + $0x1950] sm:$0xff] }
 0x410   : > { %6087 = vmatprep.subr.mxu1 %v4633_v47  ;;  %6017 = vmatpush1.msra.mxu0 %v4568_v48  ;;  %v4666_v47 = vld [vmem:[%s8116_s22 + $0x1b50] sm:$0xff] }
 0x411   : > { %6088 = vmatpush1.msra.mxu1 %v4632_v49  ;;  %6018 = vmatprep.subr.mxu0 %v4567_v50  ;;  %v3789_v48 = vld [vmem:[%s8104_s7 + $0x30] sm:$0xff] }
 0x412   : > { %6089 = vmatprep.subr.mxu1 %v4631_v51  ;;  %6019 = vmatpush1.msra.mxu0 %v4566_v52  ;;  %v4601_v49 = vld [vmem:[%s8116_s22 + $0x1948] sm:$0xff]  ;;  %v4600_v51 = vld [vmem:[%s8116_s22 + $0x1940] sm:$0xff] }
 0x413   : > { %6090 = vmatpush1.msra.mxu1 %v4630_v54  ;;  %6020 = vmatprep.subr.mxu0 %v4565_v55  ;;  %v4665_v50 = vld [vmem:[%s8116_s22 + $0x1b48] sm:$0xff]  ;;  %v4664_v52 = vld [vmem:[%s8116_s22 + $0x1b40] sm:$0xff]  ;;  %v4599_v54 = vld [vmem:[%s8116_s22 + $0x1938] sm:$0xff] }
 0x414   : > { %6091 = vmatprep.subr.mxu1 %v4629_v56  ;;  %6021 = vmatpush1.msra.mxu0 %v4564_v57  ;;  %v4663_v55 = vld [vmem:[%s8116_s22 + $0x1b38] sm:$0xff]  ;;  %v5055_v56 = vcombine.high %v3789_v48, %v3789_v48  ;;  %v4598_v57 = vld [vmem:[%s8116_s22 + $0x1930] sm:$0xff] }
 0x415   : > { %6092 = vmatpush1.msra.mxu1 %v4628_v58  ;;  %6022 = vmatprep.subr.mxu0 %v4563_v59  ;;  %v4662_v58 = vld [vmem:[%s8116_s22 + $0x1b30] sm:$0xff]  ;;  %v4597_v59 = vld [vmem:[%s8116_s22 + $0x1928] sm:$0xff] }
 0x416   : > { %6093 = vmatprep.subr.mxu1 %v4627_v60  ;;  %6023 = vmatpush1.msra.mxu0 %v4562_v61  ;;  %v4661_v60 = vld [vmem:[%s8116_s22 + $0x1b28] sm:$0xff]  ;;  %v5062_v61 = vrot.slane %v3789_v48, %v8233_v53 }
 0x417   : > { %6094 = vmatpush1.msra.mxu1 %v4626_v62  ;;  %6024 = vmatprep.subr.mxu0 %v4561_v63  ;;  %v4596_v62 = vld [vmem:[%s8116_s22 + $0x1920] sm:$0xff]  ;;  %v4701_v48 = vld [vmem:[%s8116_s22 + $0x1c68] sm:$0xff] }
 0x418   : > { %6095 = vmatprep.subr.mxu1 %v4625_v0  ;;  %6025 = vmatpush1.msra.mxu0 %v4560_v1  ;;  %v4660_v63 = vld [vmem:[%s8116_s22 + $0x1b20] sm:$0xff]  ;;  %v4595_v0 = vld [vmem:[%s8116_s22 + $0x1918] sm:$0xff] }
 0x419   : > { %6096 = vmatpush1.msra.mxu1 %v4624_v2  ;;  %6026 = vmatprep.subr.mxu0 %v4623_v3  ;;  %v4659_v1 = vld [vmem:[%s8116_s22 + $0x1b18] sm:$0xff]  ;;  %v5069_v2 = vrot.slane %v5055_v56, %v8233_v53  ;;  %v4594_v3 = vld [vmem:[%s8116_s22 + $0x1910] sm:$0xff] }
 0x41a   : > { %6097 = vmatprep.subr.mxu1 %v4687_v4  ;;  %6027 = vmatpush2.msra.mxu0 %v4622_v5  ;;  %v4658_v4 = vld [vmem:[%s8116_s22 + $0x1b10] sm:$0xff]  ;;  %v4593_v5 = vld [vmem:[%s8116_s22 + $0x1908] sm:$0xff] }
 0x41b   : > { %6098 = vmatpush2.msra.mxu1 %v4686_v6  ;;  %6028 = vmatprep.subr.mxu0 %v4621_v7  ;;  %v4657_v6 = vld [vmem:[%s8116_s22 + $0x1b08] sm:$0xff]  ;;  %v5070_v7 = vcombine.high %v5062_v61, %v5062_v61  ;;  %v4762_v56 = vld [vmem:[%s8116_s22 + $0x1e50] sm:$0xff] }
 0x41c   : > { %6099 = vmatprep.subr.mxu1 %v4685_v8  ;;  %6029 = vmatpush2.msra.mxu0 %v4620_v9  ;;  %v4592_v8 = vld [vmem:[%s8116_s22 + $0x1900] sm:$0xff] }
 0x41d   : > { %6100 = vmatpush2.msra.mxu1 %v4684_v10  ;;  %6030 = vmatprep.subr.mxu0 %v4619_v11  ;;  %v4656_v9 = vld [vmem:[%s8116_s22 + $0x1b00] sm:$0xff]  ;;  %v5071_v10 = vcombine.high %v5069_v2, %v5069_v2  ;;  %v4719_v11 = vld [vmem:[%s8116_s22 + $0x1cf8] sm:$0xff] }
 0x41e   : > { %6101 = vmatprep.subr.mxu1 %v4683_v12  ;;  %6031 = vmatpush2.msra.mxu0 %v4618_v13  ;;  %v4783_v12 = vld [vmem:[%s8116_s22 + $0x1ef8] sm:$0xff]  ;;  %v4718_v13 = vld [vmem:[%s8116_s22 + $0x1cf0] sm:$0xff] }
 0x41f   : > { %6102 = vmatpush2.msra.mxu1 %v4682_v14  ;;  %6032 = vmatprep.subr.mxu0 %v4617_v15  ;;  %v4782_v14 = vld [vmem:[%s8116_s22 + $0x1ef0] sm:$0xff]  ;;  %v4717_v15 = vld [vmem:[%s8116_s22 + $0x1ce8] sm:$0xff] }
 0x420   : > { %6103 = vmatprep.subr.mxu1 %v4681_v16  ;;  %6033 = vmatpush2.msra.mxu0 %v4616_v17  ;;  %v4781_v16 = vld [vmem:[%s8116_s22 + $0x1ee8] sm:$0xff]  ;;  %v4716_v17 = vld [vmem:[%s8116_s22 + $0x1ce0] sm:$0xff] }
 0x421   : > { %6104 = vmatpush2.msra.mxu1 %v4680_v18  ;;  %6034 = vmatprep.subr.mxu0 %v4615_v19  ;;  %v4780_v18 = vld [vmem:[%s8116_s22 + $0x1ee0] sm:$0xff]  ;;  %v4715_v19 = vld [vmem:[%s8116_s22 + $0x1cd8] sm:$0xff] }
 0x422   : > { %6105 = vmatprep.subr.mxu1 %v4679_v20  ;;  %6035 = vmatpush2.msra.mxu0 %v4614_v21  ;;  %v4779_v20 = vld [vmem:[%s8116_s22 + $0x1ed8] sm:$0xff]  ;;  %v4714_v21 = vld [vmem:[%s8116_s22 + $0x1cd0] sm:$0xff] }
 0x423   : > { %6106 = vmatpush2.msra.mxu1 %v4678_v22  ;;  %6036 = vmatprep.subr.mxu0 %v4613_v23  ;;  %v4778_v22 = vld [vmem:[%s8116_s22 + $0x1ed0] sm:$0xff]  ;;  %v4713_v23 = vld [vmem:[%s8116_s22 + $0x1cc8] sm:$0xff] }
 0x424   : > { %6107 = vmatprep.subr.mxu1 %v4677_v24  ;;  %6037 = vmatpush2.msra.mxu0 %v4612_v25  ;;  %v4777_v24 = vld [vmem:[%s8116_s22 + $0x1ec8] sm:$0xff]  ;;  %v4712_v25 = vld [vmem:[%s8116_s22 + $0x1cc0] sm:$0xff] }
 0x425   : > { %6108 = vmatpush2.msra.mxu1 %v4676_v26  ;;  %6038 = vmatprep.subr.mxu0 %v4611_v27  ;;  %v4776_v26 = vld [vmem:[%s8116_s22 + $0x1ec0] sm:$0xff]  ;;  %v4711_v27 = vld [vmem:[%s8116_s22 + $0x1cb8] sm:$0xff] }
 0x426   : > { %6109 = vmatprep.subr.mxu1 %v4675_v28  ;;  %6039 = vmatpush2.msra.mxu0 %v4610_v29  ;;  %v4775_v28 = vld [vmem:[%s8116_s22 + $0x1eb8] sm:$0xff]  ;;  %v4710_v29 = vld [vmem:[%s8116_s22 + $0x1cb0] sm:$0xff] }
 0x427   : > { %6110 = vmatpush2.msra.mxu1 %v4674_v30  ;;  %6040 = vmatprep.subr.mxu0 %v4609_v31  ;;  %v4774_v30 = vld [vmem:[%s8116_s22 + $0x1eb0] sm:$0xff]  ;;  %v4709_v31 = vld [vmem:[%s8116_s22 + $0x1ca8] sm:$0xff] }
 0x428   : > { %6111 = vmatprep.subr.mxu1 %v4673_v32  ;;  %6041 = vmatpush2.msra.mxu0 %v4608_v33  ;;  %v4773_v32 = vld [vmem:[%s8116_s22 + $0x1ea8] sm:$0xff]  ;;  %v4708_v33 = vld [vmem:[%s8116_s22 + $0x1ca0] sm:$0xff] }
 0x429   : > { %6112 = vmatpush2.msra.mxu1 %v4672_v34  ;;  %6042 = vmatprep.subr.mxu0 %v4607_v35  ;;  %v4772_v34 = vld [vmem:[%s8116_s22 + $0x1ea0] sm:$0xff]  ;;  %v4707_v35 = vld [vmem:[%s8116_s22 + $0x1c98] sm:$0xff] }
 0x42a   : > { %6113 = vmatprep.subr.mxu1 %v4671_v36  ;;  %6043 = vmatpush2.msra.mxu0 %v4606_v37  ;;  %v4771_v36 = vld [vmem:[%s8116_s22 + $0x1e98] sm:$0xff]  ;;  %v4706_v37 = vld [vmem:[%s8116_s22 + $0x1c90] sm:$0xff] }
 0x42b   : > { %6114 = vmatpush2.msra.mxu1 %v4670_v38  ;;  %6044 = vmatprep.subr.mxu0 %v4605_v39  ;;  %v4770_v38 = vld [vmem:[%s8116_s22 + $0x1e90] sm:$0xff]  ;;  %v4705_v39 = vld [vmem:[%s8116_s22 + $0x1c88] sm:$0xff] }
 0x42c   : > { %6115 = vmatprep.subr.mxu1 %v4669_v40  ;;  %6045 = vmatpush2.msra.mxu0 %v4604_v41  ;;  %v4769_v40 = vld [vmem:[%s8116_s22 + $0x1e88] sm:$0xff]  ;;  %v4704_v41 = vld [vmem:[%s8116_s22 + $0x1c80] sm:$0xff] }
 0x42d   : > { %6116 = vmatpush2.msra.mxu1 %v4668_v42  ;;  %6046 = vmatprep.subr.mxu0 %v4603_v44  ;;  %v4768_v42 = vld [vmem:[%s8116_s22 + $0x1e80] sm:$0xff]  ;;  %v4703_v44 = vld [vmem:[%s8116_s22 + $0x1c78] sm:$0xff] }
 0x42e   : > { %6117 = vmatprep.subr.mxu1 %v4667_v45  ;;  %6047 = vmatpush2.msra.mxu0 %v4602_v46  ;;  %v4767_v45 = vld [vmem:[%s8116_s22 + $0x1e78] sm:$0xff]  ;;  %v4702_v46 = vld [vmem:[%s8116_s22 + $0x1c70] sm:$0xff] }
 0x42f   : > { %6118 = vmatpush2.msra.mxu1 %v4666_v47  ;;  %6048 = vmatprep.subr.mxu0 %v4601_v49  ;;  %v4766_v47 = vld [vmem:[%s8116_s22 + $0x1e70] sm:$0xff]  ;;  %v4765_v49 = vld [vmem:[%s8116_s22 + $0x1e68] sm:$0xff] }
 0x430   : > { %6119 = vmatprep.subr.mxu1 %v4665_v50  ;;  %6049 = vmatpush2.msra.mxu0 %v4600_v51  ;;  %v4700_v50 = vld [vmem:[%s8116_s22 + $0x1c60] sm:$0xff] }
 0x431   : > { %6120 = vmatpush2.msra.mxu1 %v4664_v52  ;;  %6050 = vmatprep.subr.mxu0 %v4599_v54  ;;  %v4764_v51 = vld [vmem:[%s8116_s22 + $0x1e60] sm:$0xff]  ;;  %v4699_v52 = vld [vmem:[%s8116_s22 + $0x1c58] sm:$0xff] }
 0x432   : > { %6121 = vmatprep.subr.mxu1 %v4663_v55  ;;  %6051 = vmatpush2.msra.mxu0 %v4598_v57  ;;  %v4763_v54 = vld [vmem:[%s8116_s22 + $0x1e58] sm:$0xff]  ;;  %v4698_v55 = vld [vmem:[%s8116_s22 + $0x1c50] sm:$0xff]  ;;  %v4697_v57 = vld [vmem:[%s8116_s22 + $0x1c48] sm:$0xff] }
 0x433   : > { %6122 = vmatpush2.msra.mxu1 %v4662_v58  ;;  %6052 = vmatprep.subr.mxu0 %v4597_v59  ;;  %v4761_v58 = vld [vmem:[%s8116_s22 + $0x1e48] sm:$0xff]  ;;  %v4696_v59 = vld [vmem:[%s8116_s22 + $0x1c40] sm:$0xff] }
 0x434   : > { %6123 = vmatprep.subr.mxu1 %v4661_v60  ;;  %6053 = vmatpush2.msra.mxu0 %v4596_v62  ;;  %v4760_v60 = vld [vmem:[%s8116_s22 + $0x1e40] sm:$0xff]  ;;  %v4759_v62 = vld [vmem:[%s8116_s22 + $0x1e38] sm:$0xff] }
 0x435   : > { %6124 = vmatpush2.msra.mxu1 %v4660_v63  ;;  %6054 = vmatprep.subr.mxu0 %v4595_v0  ;;  %v4694_v63 = vld [vmem:[%s8116_s22 + $0x1c30] sm:$0xff] }
 0x436   : > { %6125 = vmatprep.subr.mxu1 %v4659_v1  ;;  %6055 = vmatpush2.msra.mxu0 %v4594_v3  ;;  %v4758_v0 = vld [vmem:[%s8116_s22 + $0x1e30] sm:$0xff]  ;;  %v4693_v1 = vld [vmem:[%s8116_s22 + $0x1c28] sm:$0xff]  ;;  %v4692_v3 = vld [vmem:[%s8116_s22 + $0x1c20] sm:$0xff] }
 0x437   : > { %6126 = vmatpush2.msra.mxu1 %v4658_v4  ;;  %6056 = vmatprep.subr.mxu0 %v4593_v5  ;;  %v4756_v4 = vld [vmem:[%s8116_s22 + $0x1e20] sm:$0xff]  ;;  %v4691_v5 = vld [vmem:[%s8116_s22 + $0x1c18] sm:$0xff] }
 0x438   : > { %6127 = vmatprep.subr.mxu1 %v4657_v6  ;;  %6057 = vmatpush2.msra.mxu0 %v4592_v8  ;;  %v4755_v6 = vld [vmem:[%s8116_s22 + $0x1e18] sm:$0xff]  ;;  %v4754_v8 = vld [vmem:[%s8116_s22 + $0x1e10] sm:$0xff] }
 0x439   : > { %6058 = vmatprep.mubr.f32.mxu0 %v5070_v7  ;;  %6128 = vmatpush2.msra.mxu1 %v4656_v9  ;;  %v4690_v7 = vld [vmem:[%s8116_s22 + $0x1c10] sm:$0xff]  ;;  %v4689_v9 = vld [vmem:[%s8116_s22 + $0x1c08] sm:$0xff] }
 0x43a   : > { %6059 = vmatmul.mubr.f32.vlgmr.msra.gmra.mxu0 %v5062_v61  ;;  %6129 = vmatprep.mubr.f32.mxu1 %v5071_v10  ;;  %v4695_v61 = vld [vmem:[%s8116_s22 + $0x1c38] sm:$0xff]  ;;  %v4753_v10 = vld [vmem:[%s8116_s22 + $0x1e08] sm:$0xff] }
 0x43b   : > { %6136 = vmatprep.subr.mxu0 %v4719_v11  ;;  %6207 = vmatprep.subr.mxu1 %v4783_v12  ;;  %v4688_v11 = vld [vmem:[%s8116_s22 + $0x1c00] sm:$0xff] }
 0x43c   : > { %6130 = vmatmul.mubr.f32.vlgmr.msra.gmra.mxu1 %v5069_v2  ;;  %6137 = vmatpush1.msra.mxu0 %v4718_v13  ;;  %v4757_v2 = vld [vmem:[%s8116_s22 + $0x1e28] sm:$0xff]  ;;  %v4752_v12 = vld [vmem:[%s8116_s22 + $0x1e00] sm:$0xff]  ;;  %v4751_v13 = vld [vmem:[%s8116_s22 + $0x1df8] sm:$0xff] }
 0x43d   : > { %6208 = vmatpush1.msra.mxu1 %v4782_v14  ;;  %6138 = vmatprep.subr.mxu0 %v4717_v15  ;;  %v4815_v14 = vld [vmem:[%s8116_s22 + $0x1ff8] sm:$0xff]  ;;  %v4750_v15 = vld [vmem:[%s8116_s22 + $0x1df0] sm:$0xff] }
 0x43e   : > { %6209 = vmatprep.subr.mxu1 %v4781_v16  ;;  %6139 = vmatpush1.msra.mxu0 %v4716_v17  ;;  %v4814_v16 = vld [vmem:[%s8116_s22 + $0x1ff0] sm:$0xff]  ;;  %v4749_v17 = vld [vmem:[%s8116_s22 + $0x1de8] sm:$0xff] }
 0x43f   : > { %6210 = vmatpush1.msra.mxu1 %v4780_v18  ;;  %6140 = vmatprep.subr.mxu0 %v4715_v19  ;;  %v4813_v18 = vld [vmem:[%s8116_s22 + $0x1fe8] sm:$0xff]  ;;  %v4748_v19 = vld [vmem:[%s8116_s22 + $0x1de0] sm:$0xff] }
 0x440   : > { %6211 = vmatprep.subr.mxu1 %v4779_v20  ;;  %6141 = vmatpush1.msra.mxu0 %v4714_v21  ;;  %v4812_v20 = vld [vmem:[%s8116_s22 + $0x1fe0] sm:$0xff]  ;;  %v4747_v21 = vld [vmem:[%s8116_s22 + $0x1dd8] sm:$0xff] }
 0x441   : > { %6212 = vmatpush1.msra.mxu1 %v4778_v22  ;;  %6142 = vmatprep.subr.mxu0 %v4713_v23  ;;  %v4811_v22 = vld [vmem:[%s8116_s22 + $0x1fd8] sm:$0xff]  ;;  %v4746_v23 = vld [vmem:[%s8116_s22 + $0x1dd0] sm:$0xff] }
 0x442   : > { %6213 = vmatprep.subr.mxu1 %v4777_v24  ;;  %6143 = vmatpush1.msra.mxu0 %v4712_v25  ;;  %v4810_v24 = vld [vmem:[%s8116_s22 + $0x1fd0] sm:$0xff]  ;;  %v4745_v25 = vld [vmem:[%s8116_s22 + $0x1dc8] sm:$0xff] }
 0x443   : > { %6214 = vmatpush1.msra.mxu1 %v4776_v26  ;;  %6144 = vmatprep.subr.mxu0 %v4711_v27  ;;  %v4809_v26 = vld [vmem:[%s8116_s22 + $0x1fc8] sm:$0xff]  ;;  %v4744_v27 = vld [vmem:[%s8116_s22 + $0x1dc0] sm:$0xff] }
 0x444   : > { %6215 = vmatprep.subr.mxu1 %v4775_v28  ;;  %6145 = vmatpush1.msra.mxu0 %v4710_v29  ;;  %v4808_v28 = vld [vmem:[%s8116_s22 + $0x1fc0] sm:$0xff]  ;;  %v4743_v29 = vld [vmem:[%s8116_s22 + $0x1db8] sm:$0xff] }
 0x445   : > { %6216 = vmatpush1.msra.mxu1 %v4774_v30  ;;  %6146 = vmatprep.subr.mxu0 %v4709_v31  ;;  %v4807_v30 = vld [vmem:[%s8116_s22 + $0x1fb8] sm:$0xff]  ;;  %v4742_v31 = vld [vmem:[%s8116_s22 + $0x1db0] sm:$0xff] }
 0x446   : > { %6217 = vmatprep.subr.mxu1 %v4773_v32  ;;  %6147 = vmatpush1.msra.mxu0 %v4708_v33  ;;  %v4806_v32 = vld [vmem:[%s8116_s22 + $0x1fb0] sm:$0xff]  ;;  %v4741_v33 = vld [vmem:[%s8116_s22 + $0x1da8] sm:$0xff] }
 0x447   : > { %6218 = vmatpush1.msra.mxu1 %v4772_v34  ;;  %6148 = vmatprep.subr.mxu0 %v4707_v35  ;;  %v4805_v34 = vld [vmem:[%s8116_s22 + $0x1fa8] sm:$0xff]  ;;  %v4740_v35 = vld [vmem:[%s8116_s22 + $0x1da0] sm:$0xff] }
 0x448   : > { %6219 = vmatprep.subr.mxu1 %v4771_v36  ;;  %6149 = vmatpush1.msra.mxu0 %v4706_v37  ;;  %v4804_v36 = vld [vmem:[%s8116_s22 + $0x1fa0] sm:$0xff]  ;;  %v4739_v37 = vld [vmem:[%s8116_s22 + $0x1d98] sm:$0xff] }
 0x449   : > { %6220 = vmatpush1.msra.mxu1 %v4770_v38  ;;  %6150 = vmatprep.subr.mxu0 %v4705_v39  ;;  %v4803_v38 = vld [vmem:[%s8116_s22 + $0x1f98] sm:$0xff]  ;;  %v4738_v39 = vld [vmem:[%s8116_s22 + $0x1d90] sm:$0xff] }
 0x44a   : > { %6221 = vmatprep.subr.mxu1 %v4769_v40  ;;  %6151 = vmatpush1.msra.mxu0 %v4704_v41  ;;  %v4802_v40 = vld [vmem:[%s8116_s22 + $0x1f90] sm:$0xff]  ;;  %v4737_v41 = vld [vmem:[%s8116_s22 + $0x1d88] sm:$0xff] }
 0x44b   : > { %6222 = vmatpush1.msra.mxu1 %v4768_v42  ;;  %6152 = vmatprep.subr.mxu0 %v4703_v44  ;;  %v4801_v42 = vld [vmem:[%s8116_s22 + $0x1f88] sm:$0xff]  ;;  %v4736_v44 = vld [vmem:[%s8116_s22 + $0x1d80] sm:$0xff] }
 0x44c   : > { %6223 = vmatprep.subr.mxu1 %v4767_v45  ;;  %6153 = vmatpush1.msra.mxu0 %v4702_v46  ;;  %v4800_v45 = vld [vmem:[%s8116_s22 + $0x1f80] sm:$0xff]  ;;  %v4735_v46 = vld [vmem:[%s8116_s22 + $0x1d78] sm:$0xff] }
 0x44d   : > { %6224 = vmatpush1.msra.mxu1 %v4766_v47  ;;  %6154 = vmatprep.subr.mxu0 %v4701_v48  ;;  %v4799_v47 = vld [vmem:[%s8116_s22 + $0x1f78] sm:$0xff]  ;;  %v4734_v48 = vld [vmem:[%s8116_s22 + $0x1d70] sm:$0xff] }
 0x44e   : > { %6225 = vmatprep.subr.mxu1 %v4765_v49  ;;  %6155 = vmatpush1.msra.mxu0 %v4700_v50  ;;  %v4798_v49 = vld [vmem:[%s8116_s22 + $0x1f70] sm:$0xff]  ;;  %v4733_v50 = vld [vmem:[%s8116_s22 + $0x1d68] sm:$0xff] }
 0x44f   : > { %6226 = vmatpush1.msra.mxu1 %v4764_v51  ;;  %6156 = vmatprep.subr.mxu0 %v4699_v52  ;;  %v4797_v51 = vld [vmem:[%s8116_s22 + $0x1f68] sm:$0xff]  ;;  %v4732_v52 = vld [vmem:[%s8116_s22 + $0x1d60] sm:$0xff] }
 0x450   : > { %6227 = vmatprep.subr.mxu1 %v4763_v54  ;;  %6157 = vmatpush1.msra.mxu0 %v4698_v55  ;;  %v4796_v54 = vld [vmem:[%s8116_s22 + $0x1f60] sm:$0xff]  ;;  %v4731_v55 = vld [vmem:[%s8116_s22 + $0x1d58] sm:$0xff] }
 0x451   : > { %6228 = vmatpush1.msra.mxu1 %v4762_v56  ;;  %6158 = vmatprep.subr.mxu0 %v4697_v57  ;;  %v4795_v56 = vld [vmem:[%s8116_s22 + $0x1f58] sm:$0xff]  ;;  %v4730_v57 = vld [vmem:[%s8116_s22 + $0x1d50] sm:$0xff] }
 0x452   : > { %6229 = vmatprep.subr.mxu1 %v4761_v58  ;;  %6159 = vmatpush1.msra.mxu0 %v4696_v59  ;;  %v4794_v58 = vld [vmem:[%s8116_s22 + $0x1f50] sm:$0xff] }
 0x453   : > { %6230 = vmatpush1.msra.mxu1 %v4760_v60  ;;  %6160 = vmatprep.subr.mxu0 %v4695_v61  ;;  %v3790_v59 = vld [vmem:[%s8104_s7 + $0x38] sm:$0xff]  ;;  %v4729_v60 = vld [vmem:[%s8116_s22 + $0x1d48] sm:$0xff] }
 0x454   : > { %6231 = vmatprep.subr.mxu1 %v4759_v62  ;;  %6161 = vmatpush1.msra.mxu0 %v4694_v63  ;;  %v4793_v61 = vld [vmem:[%s8116_s22 + $0x1f48] sm:$0xff]  ;;  %v4728_v62 = vld [vmem:[%s8116_s22 + $0x1d40] sm:$0xff] }
 0x455   : > { %6232 = vmatpush1.msra.mxu1 %v4758_v0  ;;  %6162 = vmatprep.subr.mxu0 %v4693_v1  ;;  %v4792_v63 = vld [vmem:[%s8116_s22 + $0x1f40] sm:$0xff]  ;;  %v4727_v0 = vld [vmem:[%s8116_s22 + $0x1d38] sm:$0xff] }
 0x456   : > { %6233 = vmatprep.subr.mxu1 %v4757_v2  ;;  %6163 = vmatpush1.msra.mxu0 %v4692_v3  ;;  %v4791_v1 = vld [vmem:[%s8116_s22 + $0x1f38] sm:$0xff]  ;;  %v5072_v2 = vcombine.high %v3790_v59, %v3790_v59  ;;  %v4726_v3 = vld [vmem:[%s8116_s22 + $0x1d30] sm:$0xff] }
 0x457   : > { %6234 = vmatpush1.msra.mxu1 %v4756_v4  ;;  %6164 = vmatprep.subr.mxu0 %v4691_v5  ;;  %v4790_v4 = vld [vmem:[%s8116_s22 + $0x1f30] sm:$0xff]  ;;  %v4725_v5 = vld [vmem:[%s8116_s22 + $0x1d28] sm:$0xff] }
 0x458   : > { %6235 = vmatprep.subr.mxu1 %v4755_v6  ;;  %6165 = vmatpush1.msra.mxu0 %v4690_v7  ;;  %v4789_v6 = vld [vmem:[%s8116_s22 + $0x1f28] sm:$0xff]  ;;  %v5079_v7 = vrot.slane %v3790_v59, %v8233_v53 }
 0x459   : > { %6236 = vmatpush1.msra.mxu1 %v4754_v8  ;;  %6166 = vmatprep.subr.mxu0 %v4689_v9  ;;  %v4724_v8 = vld [vmem:[%s8116_s22 + $0x1d20] sm:$0xff]  ;;  %v4829_v59 = vld [vmem:[%s8116_s22 + $0x2068] sm:$0xff] }
 0x45a   : > { %6237 = vmatprep.subr.mxu1 %v4753_v10  ;;  %6167 = vmatpush1.msra.mxu0 %v4688_v11  ;;  %v4788_v9 = vld [vmem:[%s8116_s22 + $0x1f20] sm:$0xff]  ;;  %v4723_v10 = vld [vmem:[%s8116_s22 + $0x1d18] sm:$0xff] }
 0x45b   : > { %6238 = vmatpush1.msra.mxu1 %v4752_v12  ;;  %6168 = vmatprep.subr.mxu0 %v4751_v13  ;;  %v4787_v11 = vld [vmem:[%s8116_s22 + $0x1f18] sm:$0xff]  ;;  %v5086_v12 = vrot.slane %v5072_v2, %v8233_v53  ;;  %v4722_v13 = vld [vmem:[%s8116_s22 + $0x1d10] sm:$0xff] }
 0x45c   : > { %6239 = vmatprep.subr.mxu1 %v4815_v14  ;;  %6169 = vmatpush2.msra.mxu0 %v4750_v15  ;;  %v4786_v14 = vld [vmem:[%s8116_s22 + $0x1f10] sm:$0xff]  ;;  %v4721_v15 = vld [vmem:[%s8116_s22 + $0x1d08] sm:$0xff] }
 0x45d   : > { %6240 = vmatpush2.msra.mxu1 %v4814_v16  ;;  %6170 = vmatprep.subr.mxu0 %v4749_v17  ;;  %v4785_v16 = vld [vmem:[%s8116_s22 + $0x1f08] sm:$0xff]  ;;  %v5087_v17 = vcombine.high %v5079_v7, %v5079_v7  ;;  %v4890_v2 = vld [vmem:[%s8116_s22 + $0x2250] sm:$0xff] }
 0x45e   : > { %6241 = vmatprep.subr.mxu1 %v4813_v18  ;;  %6171 = vmatpush2.msra.mxu0 %v4748_v19  ;;  %v4720_v18 = vld [vmem:[%s8116_s22 + $0x1d00] sm:$0xff] }
 0x45f   : > { %6242 = vmatpush2.msra.mxu1 %v4812_v20  ;;  %6172 = vmatprep.subr.mxu0 %v4747_v21  ;;  %v4784_v19 = vld [vmem:[%s8116_s22 + $0x1f00] sm:$0xff]  ;;  %v5088_v20 = vcombine.high %v5086_v12, %v5086_v12  ;;  %v4847_v21 = vld [vmem:[%s8116_s22 + $0x20f8] sm:$0xff] }
 0x460   : > { %6243 = vmatprep.subr.mxu1 %v4811_v22  ;;  %6173 = vmatpush2.msra.mxu0 %v4746_v23  ;;  %v4911_v22 = vld [vmem:[%s8116_s22 + $0x22f8] sm:$0xff]  ;;  %v4846_v23 = vld [vmem:[%s8116_s22 + $0x20f0] sm:$0xff] }
 0x461   : > { %6244 = vmatpush2.msra.mxu1 %v4810_v24  ;;  %6174 = vmatprep.subr.mxu0 %v4745_v25  ;;  %v4910_v24 = vld [vmem:[%s8116_s22 + $0x22f0] sm:$0xff]  ;;  %v4845_v25 = vld [vmem:[%s8116_s22 + $0x20e8] sm:$0xff] }
 0x462   : > { %6245 = vmatprep.subr.mxu1 %v4809_v26  ;;  %6175 = vmatpush2.msra.mxu0 %v4744_v27  ;;  %v4909_v26 = vld [vmem:[%s8116_s22 + $0x22e8] sm:$0xff]  ;;  %v4844_v27 = vld [vmem:[%s8116_s22 + $0x20e0] sm:$0xff] }
 0x463   : > { %6246 = vmatpush2.msra.mxu1 %v4808_v28  ;;  %6176 = vmatprep.subr.mxu0 %v4743_v29  ;;  %v4908_v28 = vld [vmem:[%s8116_s22 + $0x22e0] sm:$0xff]  ;;  %v4843_v29 = vld [vmem:[%s8116_s22 + $0x20d8] sm:$0xff] }
 0x464   : > { %6247 = vmatprep.subr.mxu1 %v4807_v30  ;;  %6177 = vmatpush2.msra.mxu0 %v4742_v31  ;;  %v4907_v30 = vld [vmem:[%s8116_s22 + $0x22d8] sm:$0xff]  ;;  %v4842_v31 = vld [vmem:[%s8116_s22 + $0x20d0] sm:$0xff] }
 0x465   : > { %6248 = vmatpush2.msra.mxu1 %v4806_v32  ;;  %6178 = vmatprep.subr.mxu0 %v4741_v33  ;;  %v4906_v32 = vld [vmem:[%s8116_s22 + $0x22d0] sm:$0xff]  ;;  %v4841_v33 = vld [vmem:[%s8116_s22 + $0x20c8] sm:$0xff] }
 0x466   : > { %6249 = vmatprep.subr.mxu1 %v4805_v34  ;;  %6179 = vmatpush2.msra.mxu0 %v4740_v35  ;;  %v4905_v34 = vld [vmem:[%s8116_s22 + $0x22c8] sm:$0xff]  ;;  %v4840_v35 = vld [vmem:[%s8116_s22 + $0x20c0] sm:$0xff] }
 0x467   : > { %6250 = vmatpush2.msra.mxu1 %v4804_v36  ;;  %6180 = vmatprep.subr.mxu0 %v4739_v37  ;;  %v4904_v36 = vld [vmem:[%s8116_s22 + $0x22c0] sm:$0xff]  ;;  %v4839_v37 = vld [vmem:[%s8116_s22 + $0x20b8] sm:$0xff] }
 0x468   : > { %6251 = vmatprep.subr.mxu1 %v4803_v38  ;;  %6181 = vmatpush2.msra.mxu0 %v4738_v39  ;;  %v4903_v38 = vld [vmem:[%s8116_s22 + $0x22b8] sm:$0xff]  ;;  %v4838_v39 = vld [vmem:[%s8116_s22 + $0x20b0] sm:$0xff] }
 0x469   : > { %6252 = vmatpush2.msra.mxu1 %v4802_v40  ;;  %6182 = vmatprep.subr.mxu0 %v4737_v41  ;;  %v4902_v40 = vld [vmem:[%s8116_s22 + $0x22b0] sm:$0xff]  ;;  %v4837_v41 = vld [vmem:[%s8116_s22 + $0x20a8] sm:$0xff] }
 0x46a   : > { %6253 = vmatprep.subr.mxu1 %v4801_v42  ;;  %6183 = vmatpush2.msra.mxu0 %v4736_v44  ;;  %v4901_v42 = vld [vmem:[%s8116_s22 + $0x22a8] sm:$0xff]  ;;  %v4836_v44 = vld [vmem:[%s8116_s22 + $0x20a0] sm:$0xff] }
 0x46b   : > { %6254 = vmatpush2.msra.mxu1 %v4800_v45  ;;  %6184 = vmatprep.subr.mxu0 %v4735_v46  ;;  %v4900_v45 = vld [vmem:[%s8116_s22 + $0x22a0] sm:$0xff]  ;;  %v4835_v46 = vld [vmem:[%s8116_s22 + $0x2098] sm:$0xff] }
 0x46c   : > { %6255 = vmatprep.subr.mxu1 %v4799_v47  ;;  %6185 = vmatpush2.msra.mxu0 %v4734_v48  ;;  %v4899_v47 = vld [vmem:[%s8116_s22 + $0x2298] sm:$0xff]  ;;  %v4834_v48 = vld [vmem:[%s8116_s22 + $0x2090] sm:$0xff] }
 0x46d   : > { %6256 = vmatpush2.msra.mxu1 %v4798_v49  ;;  %6186 = vmatprep.subr.mxu0 %v4733_v50  ;;  %v4898_v49 = vld [vmem:[%s8116_s22 + $0x2290] sm:$0xff]  ;;  %v4833_v50 = vld [vmem:[%s8116_s22 + $0x2088] sm:$0xff] }
 0x46e   : > { %6257 = vmatprep.subr.mxu1 %v4797_v51  ;;  %6187 = vmatpush2.msra.mxu0 %v4732_v52  ;;  %v4897_v51 = vld [vmem:[%s8116_s22 + $0x2288] sm:$0xff]  ;;  %v4832_v52 = vld [vmem:[%s8116_s22 + $0x2080] sm:$0xff] }
 0x46f   : > { %6258 = vmatpush2.msra.mxu1 %v4796_v54  ;;  %6188 = vmatprep.subr.mxu0 %v4731_v55  ;;  %v4896_v54 = vld [vmem:[%s8116_s22 + $0x2280] sm:$0xff]  ;;  %v4831_v55 = vld [vmem:[%s8116_s22 + $0x2078] sm:$0xff] }
 0x470   : > { %6259 = vmatprep.subr.mxu1 %v4795_v56  ;;  %6189 = vmatpush2.msra.mxu0 %v4730_v57  ;;  %v4895_v56 = vld [vmem:[%s8116_s22 + $0x2278] sm:$0xff]  ;;  %v4830_v57 = vld [vmem:[%s8116_s22 + $0x2070] sm:$0xff] }
 0x471   : > { %6260 = vmatpush2.msra.mxu1 %v4794_v58  ;;  %6190 = vmatprep.subr.mxu0 %v4729_v60  ;;  %v4894_v58 = vld [vmem:[%s8116_s22 + $0x2270] sm:$0xff]  ;;  %v4893_v60 = vld [vmem:[%s8116_s22 + $0x2268] sm:$0xff] }
 0x472   : > { %6261 = vmatprep.subr.mxu1 %v4793_v61  ;;  %6191 = vmatpush2.msra.mxu0 %v4728_v62  ;;  %v4828_v61 = vld [vmem:[%s8116_s22 + $0x2060] sm:$0xff] }
 0x473   : > { %6262 = vmatpush2.msra.mxu1 %v4792_v63  ;;  %6192 = vmatprep.subr.mxu0 %v4727_v0  ;;  %v4892_v62 = vld [vmem:[%s8116_s22 + $0x2260] sm:$0xff]  ;;  %v4827_v63 = vld [vmem:[%s8116_s22 + $0x2058] sm:$0xff] }
 0x474   : > { %6263 = vmatprep.subr.mxu1 %v4791_v1  ;;  %6193 = vmatpush2.msra.mxu0 %v4726_v3  ;;  %v4891_v0 = vld [vmem:[%s8116_s22 + $0x2258] sm:$0xff]  ;;  %v4826_v1 = vld [vmem:[%s8116_s22 + $0x2050] sm:$0xff]  ;;  %v4825_v3 = vld [vmem:[%s8116_s22 + $0x2048] sm:$0xff] }
 0x475   : > { %6264 = vmatpush2.msra.mxu1 %v4790_v4  ;;  %6194 = vmatprep.subr.mxu0 %v4725_v5  ;;  %v4889_v4 = vld [vmem:[%s8116_s22 + $0x2248] sm:$0xff]  ;;  %v4824_v5 = vld [vmem:[%s8116_s22 + $0x2040] sm:$0xff] }
 0x476   : > { %6265 = vmatprep.subr.mxu1 %v4789_v6  ;;  %6195 = vmatpush2.msra.mxu0 %v4724_v8  ;;  %v4888_v6 = vld [vmem:[%s8116_s22 + $0x2240] sm:$0xff]  ;;  %v4887_v8 = vld [vmem:[%s8116_s22 + $0x2238] sm:$0xff] }
 0x477   : > { %6266 = vmatpush2.msra.mxu1 %v4788_v9  ;;  %6196 = vmatprep.subr.mxu0 %v4723_v10  ;;  %v4822_v9 = vld [vmem:[%s8116_s22 + $0x2030] sm:$0xff] }
 0x478   : > { %6267 = vmatprep.subr.mxu1 %v4787_v11  ;;  %6197 = vmatpush2.msra.mxu0 %v4722_v13  ;;  %v4886_v10 = vld [vmem:[%s8116_s22 + $0x2230] sm:$0xff]  ;;  %v4821_v11 = vld [vmem:[%s8116_s22 + $0x2028] sm:$0xff]  ;;  %v4820_v13 = vld [vmem:[%s8116_s22 + $0x2020] sm:$0xff] }
 0x479   : > { %6268 = vmatpush2.msra.mxu1 %v4786_v14  ;;  %6198 = vmatprep.subr.mxu0 %v4721_v15  ;;  %v4884_v14 = vld [vmem:[%s8116_s22 + $0x2220] sm:$0xff]  ;;  %v4819_v15 = vld [vmem:[%s8116_s22 + $0x2018] sm:$0xff] }
 0x47a   : > { %6269 = vmatprep.subr.mxu1 %v4785_v16  ;;  %6199 = vmatpush2.msra.mxu0 %v4720_v18  ;;  %v4883_v16 = vld [vmem:[%s8116_s22 + $0x2218] sm:$0xff]  ;;  %v4882_v18 = vld [vmem:[%s8116_s22 + $0x2210] sm:$0xff] }
 0x47b   : > { %6200 = vmatprep.mubr.f32.mxu0 %v5087_v17  ;;  %6270 = vmatpush2.msra.mxu1 %v4784_v19  ;;  %v4818_v17 = vld [vmem:[%s8116_s22 + $0x2010] sm:$0xff]  ;;  %v4817_v19 = vld [vmem:[%s8116_s22 + $0x2008] sm:$0xff] }
 0x47c   : > { %6201 = vmatmul.mubr.f32.vlgmr.msra.gmra.mxu0 %v5079_v7  ;;  %6271 = vmatprep.mubr.f32.mxu1 %v5088_v20  ;;  %v4823_v7 = vld [vmem:[%s8116_s22 + $0x2038] sm:$0xff]  ;;  %v4881_v20 = vld [vmem:[%s8116_s22 + $0x2208] sm:$0xff] }
 0x47d   : > { %6278 = vmatprep.subr.mxu0 %v4847_v21  ;;  %6349 = vmatprep.subr.mxu1 %v4911_v22  ;;  %v4816_v21 = vld [vmem:[%s8116_s22 + $0x2000] sm:$0xff] }
 0x47e   : > { %6272 = vmatmul.mubr.f32.vlgmr.msra.gmra.mxu1 %v5086_v12  ;;  %6279 = vmatpush1.msra.mxu0 %v4846_v23  ;;  %v4885_v12 = vld [vmem:[%s8116_s22 + $0x2228] sm:$0xff]  ;;  %v4880_v22 = vld [vmem:[%s8116_s22 + $0x2200] sm:$0xff]  ;;  %v4879_v23 = vld [vmem:[%s8116_s22 + $0x21f8] sm:$0xff] }
 0x47f   : > { %6350 = vmatpush1.msra.mxu1 %v4910_v24  ;;  %6280 = vmatprep.subr.mxu0 %v4845_v25  ;;  %v4943_v24 = vld [vmem:[%s8116_s22 + $0x23f8] sm:$0xff]  ;;  %v4878_v25 = vld [vmem:[%s8116_s22 + $0x21f0] sm:$0xff] }
 0x480   : > { %6351 = vmatprep.subr.mxu1 %v4909_v26  ;;  %6281 = vmatpush1.msra.mxu0 %v4844_v27  ;;  %v4942_v26 = vld [vmem:[%s8116_s22 + $0x23f0] sm:$0xff]  ;;  %v4877_v27 = vld [vmem:[%s8116_s22 + $0x21e8] sm:$0xff] }
 0x481   : > { %6352 = vmatpush1.msra.mxu1 %v4908_v28  ;;  %6282 = vmatprep.subr.mxu0 %v4843_v29  ;;  %v4941_v28 = vld [vmem:[%s8116_s22 + $0x23e8] sm:$0xff]  ;;  %v4876_v29 = vld [vmem:[%s8116_s22 + $0x21e0] sm:$0xff] }
 0x482   : > { %6353 = vmatprep.subr.mxu1 %v4907_v30  ;;  %6283 = vmatpush1.msra.mxu0 %v4842_v31  ;;  %v4940_v30 = vld [vmem:[%s8116_s22 + $0x23e0] sm:$0xff]  ;;  %v4875_v31 = vld [vmem:[%s8116_s22 + $0x21d8] sm:$0xff] }
 0x483   : > { %6354 = vmatpush1.msra.mxu1 %v4906_v32  ;;  %6284 = vmatprep.subr.mxu0 %v4841_v33  ;;  %v4939_v32 = vld [vmem:[%s8116_s22 + $0x23d8] sm:$0xff]  ;;  %v4874_v33 = vld [vmem:[%s8116_s22 + $0x21d0] sm:$0xff] }
 0x484   : > { %6355 = vmatprep.subr.mxu1 %v4905_v34  ;;  %6285 = vmatpush1.msra.mxu0 %v4840_v35  ;;  %v4938_v34 = vld [vmem:[%s8116_s22 + $0x23d0] sm:$0xff]  ;;  %v4873_v35 = vld [vmem:[%s8116_s22 + $0x21c8] sm:$0xff] }
 0x485   : > { %6356 = vmatpush1.msra.mxu1 %v4904_v36  ;;  %6286 = vmatprep.subr.mxu0 %v4839_v37  ;;  %v4937_v36 = vld [vmem:[%s8116_s22 + $0x23c8] sm:$0xff]  ;;  %v4872_v37 = vld [vmem:[%s8116_s22 + $0x21c0] sm:$0xff] }
 0x486   : > { %6357 = vmatprep.subr.mxu1 %v4903_v38  ;;  %6287 = vmatpush1.msra.mxu0 %v4838_v39  ;;  %v4936_v38 = vld [vmem:[%s8116_s22 + $0x23c0] sm:$0xff]  ;;  %v4871_v39 = vld [vmem:[%s8116_s22 + $0x21b8] sm:$0xff] }
 0x487   : > { %6358 = vmatpush1.msra.mxu1 %v4902_v40  ;;  %6288 = vmatprep.subr.mxu0 %v4837_v41  ;;  %v4935_v40 = vld [vmem:[%s8116_s22 + $0x23b8] sm:$0xff]  ;;  %v4870_v41 = vld [vmem:[%s8116_s22 + $0x21b0] sm:$0xff] }
 0x488   : > { %6359 = vmatprep.subr.mxu1 %v4901_v42  ;;  %6289 = vmatpush1.msra.mxu0 %v4836_v44  ;;  %v4934_v42 = vld [vmem:[%s8116_s22 + $0x23b0] sm:$0xff]  ;;  %v4869_v44 = vld [vmem:[%s8116_s22 + $0x21a8] sm:$0xff] }
 0x489   : > { %6360 = vmatpush1.msra.mxu1 %v4900_v45  ;;  %6290 = vmatprep.subr.mxu0 %v4835_v46  ;;  %v4933_v45 = vld [vmem:[%s8116_s22 + $0x23a8] sm:$0xff]  ;;  %v4868_v46 = vld [vmem:[%s8116_s22 + $0x21a0] sm:$0xff] }
 0x48a   : > { %6361 = vmatprep.subr.mxu1 %v4899_v47  ;;  %6291 = vmatpush1.msra.mxu0 %v4834_v48  ;;  %v4932_v47 = vld [vmem:[%s8116_s22 + $0x23a0] sm:$0xff]  ;;  %v4867_v48 = vld [vmem:[%s8116_s22 + $0x2198] sm:$0xff] }
 0x48b   : > { %6362 = vmatpush1.msra.mxu1 %v4898_v49  ;;  %6292 = vmatprep.subr.mxu0 %v4833_v50  ;;  %v4931_v49 = vld [vmem:[%s8116_s22 + $0x2398] sm:$0xff]  ;;  %v4866_v50 = vld [vmem:[%s8116_s22 + $0x2190] sm:$0xff] }
 0x48c   : > { %6363 = vmatprep.subr.mxu1 %v4897_v51  ;;  %6293 = vmatpush1.msra.mxu0 %v4832_v52  ;;  %v4930_v51 = vld [vmem:[%s8116_s22 + $0x2390] sm:$0xff]  ;;  %v4865_v52 = vld [vmem:[%s8116_s22 + $0x2188] sm:$0xff] }
 0x48d   : > { %6364 = vmatpush1.msra.mxu1 %v4896_v54  ;;  %6294 = vmatprep.subr.mxu0 %v4831_v55  ;;  %v4929_v54 = vld [vmem:[%s8116_s22 + $0x2388] sm:$0xff]  ;;  %v4864_v55 = vld [vmem:[%s8116_s22 + $0x2180] sm:$0xff] }
 0x48e   : > { %6365 = vmatprep.subr.mxu1 %v4895_v56  ;;  %6295 = vmatpush1.msra.mxu0 %v4830_v57  ;;  %v4928_v56 = vld [vmem:[%s8116_s22 + $0x2380] sm:$0xff]  ;;  %v4863_v57 = vld [vmem:[%s8116_s22 + $0x2178] sm:$0xff] }
 0x48f   : > { %6366 = vmatpush1.msra.mxu1 %v4894_v58  ;;  %6296 = vmatprep.subr.mxu0 %v4829_v59  ;;  %v4927_v58 = vld [vmem:[%s8116_s22 + $0x2378] sm:$0xff]  ;;  %v4862_v59 = vld [vmem:[%s8116_s22 + $0x2170] sm:$0xff] }
 0x490   : > { %6367 = vmatprep.subr.mxu1 %v4893_v60  ;;  %6297 = vmatpush1.msra.mxu0 %v4828_v61  ;;  %v4926_v60 = vld [vmem:[%s8116_s22 + $0x2370] sm:$0xff]  ;;  %v4861_v61 = vld [vmem:[%s8116_s22 + $0x2168] sm:$0xff] }
 0x491   : > { %6368 = vmatpush1.msra.mxu1 %v4892_v62  ;;  %6298 = vmatprep.subr.mxu0 %v4827_v63  ;;  %v4925_v62 = vld [vmem:[%s8116_s22 + $0x2368] sm:$0xff]  ;;  %v4860_v63 = vld [vmem:[%s8116_s22 + $0x2160] sm:$0xff] }
 0x492   : > { %6369 = vmatprep.subr.mxu1 %v4891_v0  ;;  %6299 = vmatpush1.msra.mxu0 %v4826_v1  ;;  %v4924_v0 = vld [vmem:[%s8116_s22 + $0x2360] sm:$0xff]  ;;  %v4859_v1 = vld [vmem:[%s8116_s22 + $0x2158] sm:$0xff] }
 0x493   : > { %6370 = vmatpush1.msra.mxu1 %v4890_v2  ;;  %6300 = vmatprep.subr.mxu0 %v4825_v3  ;;  %v4923_v2 = vld [vmem:[%s8116_s22 + $0x2358] sm:$0xff] }
 0x494   : > { %6371 = vmatprep.subr.mxu1 %v4889_v4  ;;  %6301 = vmatpush1.msra.mxu0 %v4824_v5  ;;  %v3791_v3 = vld [vmem:[%s8104_s7 + $0x40] sm:$0xff]  ;;  %v4858_v4 = vld [vmem:[%s8116_s22 + $0x2150] sm:$0xff] }
 0x495   : > { %6372 = vmatpush1.msra.mxu1 %v4888_v6  ;;  %6302 = vmatprep.subr.mxu0 %v4823_v7  ;;  %v4922_v5 = vld [vmem:[%s8116_s22 + $0x2350] sm:$0xff]  ;;  %v4857_v6 = vld [vmem:[%s8116_s22 + $0x2148] sm:$0xff] }
 0x496   : > { %6373 = vmatprep.subr.mxu1 %v4887_v8  ;;  %6303 = vmatpush1.msra.mxu0 %v4822_v9  ;;  %v4921_v7 = vld [vmem:[%s8116_s22 + $0x2348] sm:$0xff]  ;;  %v4856_v8 = vld [vmem:[%s8116_s22 + $0x2140] sm:$0xff] }
 0x497   : > { %6374 = vmatpush1.msra.mxu1 %v4886_v10  ;;  %6304 = vmatprep.subr.mxu0 %v4821_v11  ;;  %v4920_v9 = vld [vmem:[%s8116_s22 + $0x2340] sm:$0xff]  ;;  %v5089_v10 = vcombine.high %v3791_v3, %v3791_v3  ;;  %v4855_v11 = vld [vmem:[%s8116_s22 + $0x2138] sm:$0xff] }
 0x498   : > { %6375 = vmatprep.subr.mxu1 %v4885_v12  ;;  %6305 = vmatpush1.msra.mxu0 %v4820_v13  ;;  %v4919_v12 = vld [vmem:[%s8116_s22 + $0x2338] sm:$0xff]  ;;  %v4854_v13 = vld [vmem:[%s8116_s22 + $0x2130] sm:$0xff] }
 0x499   : > { %6376 = vmatpush1.msra.mxu1 %v4884_v14  ;;  %6306 = vmatprep.subr.mxu0 %v4819_v15  ;;  %v4918_v14 = vld [vmem:[%s8116_s22 + $0x2330] sm:$0xff]  ;;  %v4853_v15 = vld [vmem:[%s8116_s22 + $0x2128] sm:$0xff] }
 0x49a   : > { %6377 = vmatprep.subr.mxu1 %v4883_v16  ;;  %6307 = vmatpush1.msra.mxu0 %v4818_v17  ;;  %v4917_v16 = vld [vmem:[%s8116_s22 + $0x2328] sm:$0xff]  ;;  %v5096_v17 = vrot.slane %v3791_v3, %v8233_v53 }
 0x49b   : > { %6378 = vmatpush1.msra.mxu1 %v4882_v18  ;;  %6308 = vmatprep.subr.mxu0 %v4817_v19  ;;  %v4852_v18 = vld [vmem:[%s8116_s22 + $0x2120] sm:$0xff] }
 0x49c   : > { %6379 = vmatprep.subr.mxu1 %v4881_v20  ;;  %6309 = vmatpush1.msra.mxu0 %v4816_v21  ;;  %v4916_v19 = vld [vmem:[%s8116_s22 + $0x2320] sm:$0xff]  ;;  %v5103_v20 = vrot.slane %v5089_v10, %v8233_v53  ;;  %v4851_v21 = vld [vmem:[%s8116_s22 + $0x2118] sm:$0xff] }
 0x49d   : > { %6380 = vmatpush1.msra.mxu1 %v4880_v22  ;;  %6310 = vmatprep.subr.mxu0 %v4879_v23  ;;  %v4915_v22 = vld [vmem:[%s8116_s22 + $0x2318] sm:$0xff]  ;;  %v4850_v23 = vld [vmem:[%s8116_s22 + $0x2110] sm:$0xff] }
 0x49e   : > { %6381 = vmatprep.subr.mxu1 %v4943_v24  ;;  %6311 = vmatpush2.msra.mxu0 %v4878_v25  ;;  %v4914_v24 = vld [vmem:[%s8116_s22 + $0x2310] sm:$0xff]  ;;  %v4849_v25 = vld [vmem:[%s8116_s22 + $0x2108] sm:$0xff] }
 0x49f   : > { %6382 = vmatpush2.msra.mxu1 %v4942_v26  ;;  %6312 = vmatprep.subr.mxu0 %v4877_v27  ;;  %v4913_v26 = vld [vmem:[%s8116_s22 + $0x2308] sm:$0xff]  ;;  %v5104_v27 = vcombine.high %v5096_v17, %v5096_v17 }
 0x4a0   : > { %6383 = vmatprep.subr.mxu1 %v4941_v28  ;;  %6313 = vmatpush2.msra.mxu0 %v4876_v29  ;;  %v4848_v28 = vld [vmem:[%s8116_s22 + $0x2100] sm:$0xff]  ;;  %v5105_v29 = vcombine.high %v5103_v20, %v5103_v20 }
 0x4a1   : > { %6384 = vmatpush2.msra.mxu1 %v4940_v30  ;;  %6314 = vmatprep.subr.mxu0 %v4875_v31  ;;  %v4912_v30 = vld [vmem:[%s8116_s22 + $0x2300] sm:$0xff]  ;;  %v5208_v31 = vpop.f32.mrf.mxu0 }
 0x4a2   : > { %6385 = vmatprep.subr.mxu1 %v4939_v32  ;;  %6315 = vmatpush2.msra.mxu0 %v4874_v33  ;;  %v5279_v32 = vpop.f32.mrf.mxu1 }
 0x4a3   : > { %6386 = vmatpush2.msra.mxu1 %v4938_v34  ;;  %6316 = vmatprep.subr.mxu0 %v4873_v35  ;;  %v5210_v33 = vpop.f32.mrf.mxu0 }
 0x4a4   : > { %6387 = vmatprep.subr.mxu1 %v4937_v36  ;;  %6317 = vmatpush2.msra.mxu0 %v4872_v37  ;;  %v5281_v35 = vpop.f32.mrf.mxu1  ;;  %v5280_v36 = vadd.f32 %v5279_v32, %v5208_v31 }
 0x4a5   : > { %6388 = vmatpush2.msra.mxu1 %v4936_v38  ;;  %6318 = vmatprep.subr.mxu0 %v4871_v39  ;;  %v5350_v34 = vpop.f32.mrf.mxu0  ;;  %v5282_v39 = vadd.f32 %v5281_v35, %v5210_v33 }
 0x4a6   : > { %6389 = vmatprep.subr.mxu1 %v4935_v40  ;;  %6319 = vmatpush2.msra.mxu0 %v4870_v41  ;;  %v5421_v37 = vpop.f32.mrf.mxu1  ;;  %v5351_v40 = vadd.f32 %v5350_v34, %v5280_v36 }
 0x4a7   : > { %6390 = vmatpush2.msra.mxu1 %v4934_v42  ;;  %6320 = vmatprep.subr.mxu0 %v4869_v44  ;;  %v5352_v38 = vpop.f32.mrf.mxu0 }
 0x4a8   : > { %6391 = vmatprep.subr.mxu1 %v4933_v45  ;;  %6321 = vmatpush2.msra.mxu0 %v4868_v46  ;;  %v5353_v42 = vadd.f32 %v5352_v38, %v5282_v39  ;;  %v5423_v44 = vpop.f32.mrf.mxu1  ;;  %v5422_v45 = vadd.f32 %v5421_v37, %v5351_v40  ;;  %v3782_v40 = vld [vmem:[#allocation2] sm:$0xf] }
 0x4a9   : > { %6392 = vmatpush2.msra.mxu1 %v4932_v47  ;;  %6322 = vmatprep.subr.mxu0 %v4867_v48  ;;  %v5492_v41 = vpop.f32.mrf.mxu0 }
 0x4aa   : > { %6393 = vmatprep.subr.mxu1 %v4931_v49  ;;  %6323 = vmatpush2.msra.mxu0 %v4866_v50  ;;  %v5563_v46 = vpop.f32.mrf.mxu1  ;;  %v5424_v48 = vadd.f32 %v5423_v44, %v5353_v42  ;;  %v5493_v49 = vadd.f32 %v5492_v41, %v5422_v45 }
 0x4ab   : > { %6394 = vmatpush2.msra.mxu1 %v4930_v51  ;;  %6324 = vmatprep.subr.mxu0 %v4865_v52  ;;  %v5494_v47 = vpop.f32.mrf.mxu0 }
 0x4ac   : > { %6395 = vmatprep.subr.mxu1 %v4929_v54  ;;  %6325 = vmatpush2.msra.mxu0 %v4864_v55  ;;  %v5495_v51 = vadd.f32 %v5494_v47, %v5424_v48  ;;  %v5565_v52 = vpop.f32.mrf.mxu1  ;;  %v5564_v54 = vadd.f32 %v5563_v46, %v5493_v49 }
 0x4ad   : > { %6396 = vmatpush2.msra.mxu1 %v4928_v56  ;;  %6326 = vmatprep.subr.mxu0 %v4863_v57  ;;  %v5634_v50 = vpop.f32.mrf.mxu0 }
 0x4ae   : > { %6397 = vmatprep.subr.mxu1 %v4927_v58  ;;  %6327 = vmatpush2.msra.mxu0 %v4862_v59  ;;  %v5705_v55 = vpop.f32.mrf.mxu1  ;;  %v5566_v57 = vadd.f32 %v5565_v52, %v5495_v51  ;;  %v5635_v58 = vadd.f32 %v5634_v50, %v5564_v54 }
 0x4af   : > { %6398 = vmatpush2.msra.mxu1 %v4926_v60  ;;  %6328 = vmatprep.subr.mxu0 %v4861_v61  ;;  %v5636_v56 = vpop.f32.mrf.mxu0 }
 0x4b0   : > { %6399 = vmatprep.subr.mxu1 %v4925_v62  ;;  %6329 = vmatpush2.msra.mxu0 %v4860_v63  ;;  %v5637_v60 = vadd.f32 %v5636_v56, %v5566_v57  ;;  %v5707_v61 = vpop.f32.mrf.mxu1  ;;  %v5706_v62 = vadd.f32 %v5705_v55, %v5635_v58 }
 0x4b1   : > { %6400 = vmatpush2.msra.mxu1 %v4924_v0  ;;  %6330 = vmatprep.subr.mxu0 %v4859_v1  ;;  %v5776_v59 = vpop.f32.mrf.mxu0 }
 0x4b2   : > { %6401 = vmatprep.subr.mxu1 %v4923_v2  ;;  %6331 = vmatpush2.msra.mxu0 %v4858_v4  ;;  %v5847_v63 = vpop.f32.mrf.mxu1  ;;  %v5708_v1 = vadd.f32 %v5707_v61, %v5637_v60  ;;  %v5777_v2 = vadd.f32 %v5776_v59, %v5706_v62 }
 0x4b3   : > { %6402 = vmatpush2.msra.mxu1 %v4922_v5  ;;  %6332 = vmatprep.subr.mxu0 %v4857_v6  ;;  %v5778_v0 = vpop.f32.mrf.mxu0 }
 0x4b4   : > { %6403 = vmatprep.subr.mxu1 %v4921_v7  ;;  %6333 = vmatpush2.msra.mxu0 %v4856_v8  ;;  %v5779_v4 = vadd.f32 %v5778_v0, %v5708_v1  ;;  %v5849_v5 = vpop.f32.mrf.mxu1  ;;  %v5848_v6 = vadd.f32 %v5847_v63, %v5777_v2 }
 0x4b5   : > { %6404 = vmatpush2.msra.mxu1 %v4920_v9  ;;  %6334 = vmatprep.subr.mxu0 %v4855_v11 }
 0x4b6   : > { %6405 = vmatprep.subr.mxu1 %v4919_v12  ;;  %6335 = vmatpush2.msra.mxu0 %v4854_v13  ;;  %v5850_v9 = vadd.f32 %v5849_v5, %v5779_v4 }
 0x4b7   : > { %6406 = vmatpush2.msra.mxu1 %v4918_v14  ;;  %6336 = vmatprep.subr.mxu0 %v4853_v15 }
 0x4b8   : > { %6407 = vmatprep.subr.mxu1 %v4917_v16  ;;  %6337 = vmatpush2.msra.mxu0 %v4852_v18  ;;  %v5918_v3 = vpop.f32.mrf.mxu0 }
 0x4b9   : > { %6408 = vmatpush2.msra.mxu1 %v4916_v19  ;;  %6338 = vmatprep.subr.mxu0 %v4851_v21  ;;  %v5919_v10 = vadd.f32 %v5918_v3, %v5848_v6 }
 0x4ba   : > { %6409 = vmatprep.subr.mxu1 %v4915_v22  ;;  %6339 = vmatpush2.msra.mxu0 %v4850_v23  ;;  %v5989_v7 = vpop.f32.mrf.mxu1  ;;  %v5920_v8 = vpop.f32.mrf.mxu0 }
 0x4bb   : > { %6410 = vmatpush2.msra.mxu1 %v4914_v24  ;;  %6340 = vmatprep.subr.mxu0 %v4849_v25  ;;  %v5921_v12 = vadd.f32 %v5920_v8, %v5850_v9  ;;  %v5990_v14 = vadd.f32 %v5989_v7, %v5919_v10 }
 0x4bc   : > { %6411 = vmatprep.subr.mxu1 %v4913_v26  ;;  %6341 = vmatpush2.msra.mxu0 %v4848_v28  ;;  %v5991_v13 = vpop.f32.mrf.mxu1 }
 0x4bd   : > { %6342 = vmatprep.mubr.f32.mxu0 %v5104_v27  ;;  %6412 = vmatpush2.msra.mxu1 %v4912_v30 }
 0x4be   : > { %6413 = vmatprep.mubr.f32.mxu1 %v5105_v29  ;;  %6343 = vmatmul.mubr.f32.vlgmr.msra.gmra.mxu0 %v5096_v17  ;;  %v5992_v17 = vadd.f32 %v5991_v13, %v5921_v12 }
 0x4bf   : > { %6414 = vmatmul.mubr.f32.vlgmr.msra.gmra.mxu1 %v5103_v20 }
 0x4fa   : > { %v6060_v11 = vpop.f32.mrf.mxu0 }
 0x4fb   : > { %v6061_v18 = vadd.f32 %v6060_v11, %v5990_v14 }
 0x4fc   : > { %v6131_v15 = vpop.f32.mrf.mxu1  ;;  %v6062_v16 = vpop.f32.mrf.mxu0 }
 0x4fd   : > { %v6063_v20 = vadd.f32 %v6062_v16, %v5992_v17  ;;  %v6132_v22 = vadd.f32 %v6131_v15, %v6061_v18 }
 0x4fe   : > { %v6133_v21 = vpop.f32.mrf.mxu1 }
 0x4ff   : > { %v6134_v25 = vadd.f32 %v6133_v21, %v6063_v20 }
 0x53c   : > { %v6202_v19 = vpop.f32.mrf.mxu0 }
 0x53d   : > { %v6203_v26 = vadd.f32 %v6202_v19, %v6132_v22 }
 0x53e   : > { %v6273_v23 = vpop.f32.mrf.mxu1  ;;  %v6204_v24 = vpop.f32.mrf.mxu0 }
 0x53f   : > { %v6205_v27 = vadd.f32 %v6204_v24, %v6134_v25  ;;  %v6274_v29 = vadd.f32 %v6273_v23, %v6203_v26 }
 0x540   : > { %v6275_v28 = vpop.f32.mrf.mxu1 }
 0x541   : > { %v6276_v32 = vadd.f32 %v6275_v28, %v6205_v27 }
 0x57e   : > { %v6344_v30 = vpop.f32.mrf.mxu0 }
 0x57f   : > { %v6415_v31 = vpop.f32.mrf.mxu1  ;;  %v6345_v33 = vadd.f32 %v6344_v30, %v6274_v29 }
 0x580   : > { %v6346_v34 = vpop.f32.mrf.mxu0 }
 0x581   : > { %v6347_v35 = vadd.f32 %v6346_v34, %v6276_v32  ;;  %v6417_v36 = vpop.f32.mrf.mxu1  ;;  %v6416_v37 = vadd.f32 %v6415_v31, %v6345_v33 }
 0x583   : > { %v6418_v38 = vadd.f32 %v6417_v36, %v6347_v35 }
 0x585   : > { %v6422_v39 = vcombine.low %v6416_v37, %v6418_v38 }
 0x587   : > { %v6429_v41 = vrot.slane %v6422_v39, %v8233_v53  ;;  %6436 = sbr.rel (%p6616_p1) target bundleno = 1433 (0x599), region = 77 }
 0x589   : > { %v6431_v42 = vadd.f32 %v6429_v41, %v3782_v40 }
 0x58b   : > { %6432 = vst [vmem:[#allocation2] sm:$0xf] %v6431_v42 }
 0x58c   : > { %v6438_v44 = vld [vmem:[%s3765_s12] sm:$0x3]  ;;  %v6442_v45 = vsub.s32 0, %v8221_v43  ;;  %v6446_v46 = vsub.s32 1, %v8221_v43 }
 0x58e   : > { %v6443_v47 = vrot.slane %v6438_v44, %v6442_v45  ;;  %v6447_v48 = vrot.slane %v6438_v44, %v6446_v46 }
 0x590   : > { %v6448_v49 = vcombine.low %v6443_v47, %v6447_v48 }
 0x592   : > { %v6437_v50 = vld [vmem:[#allocation2] sm:$0xf]  ;;  %v6455_v51 = vrot.slane %v6448_v49, %v8233_v53 }
 0x594   : > { %v6457_v52 = vadd.f32 %v6455_v51, %v6437_v50 }
 0x596   : > { %v6458_v54 = vmax.f32 %v6457_v52, 0.0 }
 0x598   : > { %6459 = vst [vmem:[%s8114_s21] sm:$0xf] %v6458_v54 }
 0x599 PF: > { %s13_s18 = sadd.s32 1, %s6791_s18   ;;  %s9344_s12 = smov %s6771_s13 }
 0x59a   : > { %p10_p2 = scmp.ge.s32.totalorder %s13_s18, 20   ;;  %s9345_s13 = smov %s6882_s25 }
 0x59b   : > { %s9346_s14 = smov %s6783_s16  ;;  %s9347_s15 = smov %s6787_s17 }
 0x59c   : > { %s9348_s16 = smov %s9351_s19  ;;  %s9349_s17 = smov %s9355_s20 }
 0x59d   :  { %12 = sbr.rel (!%p10_p2) target bundleno = 4 (0x4), region = 131 }

</bundles_post_ra>
